<compile_context>
chip_gen: v6e
topology: v6e:2x2x1
jax: 0.10.0
libtpu: 0.0.40
codegen_flags: <defaults>
</compile_context>

<pallas_src>
import jax
import jax.numpy as jnp
from jax.experimental import pallas as pl
from jax.experimental.pallas import tpu as pltpu

_VMEM_LIMIT = 48 * 1024 * 1024


# ----------------------------------------------------------------------------
# Kernel 1: decoder MLP (two 1x1 convs + ReLU) fused with the "dec" slice of
# the ConvTranspose weight, channels-major: (512,512)@(512,HW) matmuls with
# pixels on lanes.  Output is the packed deconv contribution (N, H, 4*nc, W).
# ----------------------------------------------------------------------------
def _dec_kernel(x_ref, w1_ref, b1_ref, w2_ref, b2_ref, wd_ref, o_ref):
    x = x_ref[0]                                                   # (512, H*W)
    h = jnp.dot(w1_ref[...], x, preferred_element_type=jnp.float32) + b1_ref[...]
    h = jnp.maximum(h, 0.0)
    # TODO(synk): nn.Dropout(0.8) modeled with eval-mode (identity) semantics.
    h = jnp.dot(w2_ref[...], h, preferred_element_type=jnp.float32) + b2_ref[...]
    h = jnp.maximum(h, 0.0)
    c = jnp.dot(wd_ref[...], h, preferred_element_type=jnp.float32)  # (4*nc, H*W)
    _, H, _, W = o_ref.shape
    for y in range(H):                       # static: scatter rows -> (H, 4nc, W)
        o_ref[0, y] = c[:, y * W:(y + 1) * W]


def dec_contribution(x, w1, b1, w2, b2, wd):
    """x: (N, 512, H, W) NCHW -> (N, H, 4*nc, W) packed deconv contribution."""
    N, C, H, W = x.shape
    P = wd.shape[0]
    x3 = x.reshape(N, C, H * W)              # free view, no transpose
    return pl.pallas_call(
        _dec_kernel,
        out_shape=jax.ShapeDtypeStruct((N, H, P, W), jnp.float32),
        grid=(N,),
        in_specs=[
            pl.BlockSpec((1, C, H * W), lambda n: (n, 0, 0)),
            pl.BlockSpec((C, C), lambda n: (0, 0)),
            pl.BlockSpec((C, 1), lambda n: (0, 0)),
            pl.BlockSpec((C, C), lambda n: (0, 0)),
            pl.BlockSpec((C, 1), lambda n: (0, 0)),
            pl.BlockSpec((P, C), lambda n: (0, 0)),
        ],
        out_specs=pl.BlockSpec((1, H, P, W), lambda n: (n, 0, 0, 0)),
        compiler_params=pltpu.CompilerParams(
            dimension_semantics=("parallel",),
            vmem_limit_bytes=_VMEM_LIMIT),
    )(x3, w1, b1.reshape(C, 1), w2, b2.reshape(C, 1), wd)


# ----------------------------------------------------------------------------
# Kernel 2: pooled-feature contribution.  One channels-major matmul per image:
# (4*nc, C) @ (C, R*Wc), stored row-wise as (N, R, 4*nc, Wc) for the epilogue.
# (For very large R one would add a row-block grid axis.)
# ----------------------------------------------------------------------------
def _contrib_kernel(x_ref, w_ref, o_ref):
    c = jnp.dot(w_ref[...], x_ref[0], preferred_element_type=jnp.float32)
    _, R, _, Wc = o_ref.shape
    for r in range(R):
        o_ref[0, r] = c[:, r * Wc:(r + 1) * Wc]


def pool_contribution(pool, w):
    """pool: (N, C, R, Wc) NCHW -> (N, R, 4*nc, Wc)."""
    N, C, R, Wc = pool.shape
    P = w.shape[0]
    p3 = pool.reshape(N, C, R * Wc)          # free view
    return pl.pallas_call(
        _contrib_kernel,
        out_shape=jax.ShapeDtypeStruct((N, R, P, Wc), jnp.float32),
        grid=(N,),
        in_specs=[
            pl.BlockSpec((1, C, R * Wc), lambda n: (n, 0, 0)),
            pl.BlockSpec((P, C), lambda n: (0, 0)),
        ],
        out_specs=pl.BlockSpec((1, R, P, Wc), lambda n: (n, 0, 0, 0)),
        compiler_params=pltpu.CompilerParams(
            dimension_semantics=("parallel",),
            vmem_limit_bytes=_VMEM_LIMIT),
    )(p3, w)


# ----------------------------------------------------------------------------
# Kernel 3: fused epilogue.  For one (image, decoder-row) it combines the three
# contributions, adds the bias, expands every 2x2 deconv patch across the 4x
# nearest-neighbour replication (0/1 expansion matmuls along lanes), and emits
# 32 final output rows per class directly in NCHW (32*W on the lane dim).
# Packed contribution rows: p = dj*2*nc + di*nc + co.
# ----------------------------------------------------------------------------
def _epilogue_kernel(cd_ref, c4_ref, c3_ref,
                     ed0_ref, ed1_ref, e40_ref, e41_ref, e30_ref, e31_ref,
                     s_ref, brow_ref, o_ref):
    _, nc, _, _ = o_ref.shape
    P2 = brow_ref.shape[0]                                # 2*nc (dj=0 / dj=1 halves)
    f32 = jnp.float32
    cd = cd_ref[0, 0]                                     # (4*nc, W)
    dec_rows = (jnp.dot(cd[:P2], ed0_ref[...], preferred_element_type=f32)
                + jnp.dot(cd[P2:], ed1_ref[...], preferred_element_type=f32))
    for b in range(4):                                    # 4 pool_3 rows per dec row
        c4 = c4_ref[0, b // 2]                            # (4*nc, 2W)
        c3 = c3_ref[0, b]                                 # (4*nc, 4W)
        rows = (dec_rows
                + jnp.dot(c4[:P2], e40_ref[...], preferred_element_type=f32)
                + jnp.dot(c4[P2:], e41_ref[...], preferred_element_type=f32)
                + jnp.dot(c3[:P2], e30_ref[...], preferred_element_type=f32)
                + jnp.dot(c3[P2:], e31_ref[...], preferred_element_type=f32)
                + brow_ref[...])                          # (2*nc, 32W), row q = di*nc+co
        out_all = jnp.dot(s_ref[...], rows, preferred_element_type=f32)  # (nc*8, 32W)
        for co in range(nc):
            o_ref[0, co, 8 * b:8 * (b + 1), :] = out_all[8 * co:8 * (co + 1), :]


def combine_emit(cdec, cp4, cp3, exps, s_mat, brow, num_classes):
    N, H, P, W = cdec.shape
    OW = 32 * W
    nc = num_classes
    ed0, ed1, e40, e41, e30, e31 = exps
    return pl.pallas_call(
        _epilogue_kernel,
        out_shape=jax.ShapeDtypeStruct((N, nc, 32 * H, OW), jnp.float32),
        grid=(N, H),
        in_specs=[
            pl.BlockSpec((1, 1, P, W), lambda n, y: (n, y, 0, 0)),
            pl.BlockSpec((1, 2, P, 2 * W), lambda n, y: (n, y, 0, 0)),
            pl.BlockSpec((1, 4, P, 4 * W), lambda n, y: (n, y, 0, 0)),
            pl.BlockSpec((W, OW), lambda n, y: (0, 0)),
            pl.BlockSpec((W, OW), lambda n, y: (0, 0)),
            pl.BlockSpec((2 * W, OW), lambda n, y: (0, 0)),
            pl.BlockSpec((2 * W, OW), lambda n, y: (0, 0)),
            pl.BlockSpec((4 * W, OW), lambda n, y: (0, 0)),
            pl.BlockSpec((4 * W, OW), lambda n, y: (0, 0)),
            pl.BlockSpec((nc * 8, 2 * nc), lambda n, y: (0, 0)),
            pl.BlockSpec((2 * nc, 1), lambda n, y: (0, 0)),
        ],
        out_specs=pl.BlockSpec((1, nc, 32, OW), lambda n, y: (n, 0, y, 0)),
        compiler_params=pltpu.CompilerParams(
            dimension_semantics=("parallel", "parallel"),
            vmem_limit_bytes=_VMEM_LIMIT),
    )(cdec, cp4, cp3, ed0, ed1, e40, e41, e30, e31, s_mat, brow)


# ----------------------------------------------------------------------------
# Host-side helpers and forward (NCHW in, NCHW out — same as the PyTorch module).
# ----------------------------------------------------------------------------
def _expansion(src_len, rep, parity, out_len):
    # E[xs, ox] = 1 iff ox // rep == xs and ox % 2 == parity
    ox = jnp.arange(out_len)
    xs = jnp.arange(src_len)
    return (((ox[None, :] // rep) == xs[:, None])
            & ((ox[None, :] % 2) == parity)).astype(jnp.float32)


def _selection(nc):
    # S[co*8 + 2a + di, di*nc + co] = 1
    r = jnp.arange(nc * 8)
    q = jnp.arange(2 * nc)
    target = (r % 2) * nc + (r // 8)
    return (q[None, :] == target[:, None]).astype(jnp.float32)


def pack_deconv_weight(wt):
    """torch ConvTranspose2d weight (1280, nc, 2, 2) -> (4*nc, 1280),
    rows ordered p = dj*2*nc + di*nc + co."""
    cin, nc, _, _ = wt.shape
    return jnp.transpose(wt, (3, 2, 1, 0)).reshape(4 * nc, cin)


def column_decoder_forward(x, pool_3, pool_4, params, num_classes):
    N, C, H, W = x.shape
    nc = num_classes
    assert C == 512 and pool_4.shape == (N, 512, 2 * H, 2 * W)
    assert pool_3.shape == (N, 256, 4 * H, 4 * W)

    wpk = pack_deconv_weight(params["wt"])                    # (4*nc, 1280)
    wd, wp4, wp3 = wpk[:, :512], wpk[:, 512:1024], wpk[:, 1024:]

    cdec = dec_contribution(x, params["w1"], params["b1"],
                            params["w2"], params["b2"], wd)   # (N, H, 4nc, W)
    cp4 = pool_contribution(pool_4, wp4)                      # (N, 2H, 4nc, 2W)
    cp3 = pool_contribution(pool_3, wp3)                      # (N, 4H, 4nc, 4W)

    OW = 32 * W
    exps = (_expansion(W, 32, 0, OW), _expansion(W, 32, 1, OW),
            _expansion(2 * W, 16, 0, OW), _expansion(2 * W, 16, 1, OW),
            _expansion(4 * W, 8, 0, OW), _expansion(4 * W, 8, 1, OW))
    s_mat = _selection(nc)
    brow = jnp.concatenate([params["bt"], params["bt"]]).reshape(2 * nc, 1)

    return combine_emit(cdec, cp4, cp3, exps, s_mat, brow, nc)


# ----------------------------------------------------------------------------
# Pure-JAX reference (PyTorch semantics) for verification.
# ----------------------------------------------------------------------------
def reference_forward(x, pool_3, pool_4, params, num_classes):
    def conv1x1(t, w_oi, b):        # w_oi: (out, in)
        return jnp.einsum("ncij,oc->noij", t, w_oi) + b[None, :, None, None]

    def up2(t):
        return jnp.repeat(jnp.repeat(t, 2, axis=2), 2, axis=3)

    h = jax.nn.relu(conv1x1(x, params["w1"], params["b1"]))
    h = jax.nn.relu(conv1x1(h, params["w2"], params["b2"]))
    h = up2(h)
    h = jnp.concatenate([h, pool_4], axis=1)
    h = up2(h)
    h = jnp.concatenate([h, pool_3], axis=1)
    h = up2(h)
    h = up2(h)
    wt = params["wt"]  # (1280, nc, 2, 2) — torch ConvTranspose2d weight layout
    o = jnp.einsum("ncij,codk->noidjk", h, wt)
    Nn, nc, Hi, _, Wi, _ = o.shape
    o = o.reshape(Nn, nc, 2 * Hi, 2 * Wi) + params["bt"][None, :, None, None]
    return o


if __name__ == "__main__":
    key = jax.random.PRNGKey(0)
    ks = jax.random.split(key, 9)

    num_classes = 2
    N, H, W = 2, 2, 2
    scale = 0.05

    # inputs (VGG-19 pool_3: 256ch @ 4x size, pool_4: 512ch @ 2x size)
    x = jax.random.normal(ks[0], (N, 512, H, W), jnp.float32)
    pool_4 = jax.random.normal(ks[1], (N, 512, 2 * H, 2 * W), jnp.float32)
    pool_3 = jax.random.normal(ks[2], (N, 256, 4 * H, 4 * W), jnp.float32)

    params = {
        "w1": scale * jax.random.normal(ks[3], (512, 512), jnp.float32),  # Conv2d(512,512,1)
        "b1": scale * jax.random.normal(ks[4], (512,), jnp.float32),
        "w2": scale * jax.random.normal(ks[5], (512, 512), jnp.float32),
        "b2": scale * jax.random.normal(ks[6], (512,), jnp.float32),
        "wt": scale * jax.random.normal(ks[7], (1280, num_classes, 2, 2), jnp.float32),
        "bt": scale * jax.random.normal(ks[8], (num_classes,), jnp.float32),
    }

    fwd = jax.jit(lambda a, p3, p4, prm: column_decoder_forward(a, p3, p4, prm, num_classes))
    out = jax.block_until_ready(fwd(x, pool_3, pool_4, params))

    ref = jax.block_until_ready(reference_forward(x, pool_3, pool_4, params, num_classes))

    assert out.shape == (N, num_classes, 32 * H, 32 * W), out.shape
    max_err = float(jnp.max(jnp.abs(out - ref)))
    assert max_err < 1e-2, f"mismatch vs reference: {max_err}"

    print("KERNEL_OK")
</pallas_src>

<mosaic_0001>
module attributes {stable_mosaic.version = 11 : i64} {
  func.func @_dec_kernel(%arg0: i32, %arg1: memref<1x512x4xf32, #tpu.memory_space<vmem>>, %arg2: memref<512x512xf32, #tpu.memory_space<vmem>>, %arg3: memref<512x1xf32, #tpu.memory_space<vmem>>, %arg4: memref<512x512xf32, #tpu.memory_space<vmem>>, %arg5: memref<512x1xf32, #tpu.memory_space<vmem>>, %arg6: memref<8x512xf32, #tpu.memory_space<vmem>>, %arg7: memref<1x2x8x2xf32, #tpu.memory_space<vmem>>) attributes {dimension_semantics = [#tpu.dimension_semantics<parallel>], iteration_bounds = array<i64: 2>, scalar_prefetch = 0 : i64, scratch_operands = 0 : i64, tpu.core_type = #tpu.core_type<tc>, window_params = [{transform_indices = @transform_0, window_bounds = array<i64: 1, 512, 4>}, {pipeline_mode = #tpu.pipeline_mode<synchronous>, transform_indices = @transform_1, window_bounds = array<i64: 512, 512>}, {pipeline_mode = #tpu.pipeline_mode<synchronous>, transform_indices = @transform_2, window_bounds = array<i64: 512, 1>}, {pipeline_mode = #tpu.pipeline_mode<synchronous>, transform_indices = @transform_3, window_bounds = array<i64: 512, 512>}, {pipeline_mode = #tpu.pipeline_mode<synchronous>, transform_indices = @transform_4, window_bounds = array<i64: 512, 1>}, {pipeline_mode = #tpu.pipeline_mode<synchronous>, transform_indices = @transform_5, window_bounds = array<i64: 8, 512>}, {transform_indices = @transform_6, window_bounds = array<i64: 1, 2, 8, 2>}]} {
    %c0 = arith.constant 0 : index
    %c0_0 = arith.constant 0 : index
    %c0_1 = arith.constant 0 : index
    %0 = vector.load %arg1[%c0, %c0_0, %c0_1] : memref<1x512x4xf32, #tpu.memory_space<vmem>>, vector<1x512x4xf32>
    %1 = vector.shape_cast %0 : vector<1x512x4xf32> to vector<512x4xf32>
    %c0_2 = arith.constant 0 : index
    %c0_3 = arith.constant 0 : index
    %2 = vector.load %arg2[%c0_2, %c0_3] : memref<512x512xf32, #tpu.memory_space<vmem>>, vector<512x512xf32>
    %cst = arith.constant dense<0.000000e+00> : vector<512x4xf32>
    %3 = tpu.matmul %2, %1, %cst {dimension_numbers = #tpu.dot_dimension_numbers<[1], [0], [0], [1], [0, 0, 1, 1], [], []>} : vector<512x512xf32>, vector<512x4xf32>, vector<512x4xf32> -> vector<512x4xf32>
    %c0_4 = arith.constant 0 : index
    %c0_5 = arith.constant 0 : index
    %4 = vector.load %arg3[%c0_4, %c0_5] : memref<512x1xf32, #tpu.memory_space<vmem>>, vector<512x1xf32>
    %5 = vector.broadcast %4 : vector<512x1xf32> to vector<512x4xf32>
    %6 = arith.addf %3, %5 : vector<512x4xf32>
    %cst_6 = arith.constant 0.000000e+00 : f32
    %7 = vector.broadcast %cst_6 : f32 to vector<512x4xf32>
    %8 = arith.maximumf %6, %7 : vector<512x4xf32>
    %c0_7 = arith.constant 0 : index
    %c0_8 = arith.constant 0 : index
    %9 = vector.load %arg4[%c0_7, %c0_8] : memref<512x512xf32, #tpu.memory_space<vmem>>, vector<512x512xf32>
    %cst_9 = arith.constant dense<0.000000e+00> : vector<512x4xf32>
    %10 = tpu.matmul %9, %8, %cst_9 {dimension_numbers = #tpu.dot_dimension_numbers<[1], [0], [0], [1], [0, 0, 1, 1], [], []>} : vector<512x512xf32>, vector<512x4xf32>, vector<512x4xf32> -> vector<512x4xf32>
    %c0_10 = arith.constant 0 : index
    %c0_11 = arith.constant 0 : index
    %11 = vector.load %arg5[%c0_10, %c0_11] : memref<512x1xf32, #tpu.memory_space<vmem>>, vector<512x1xf32>
    %12 = vector.broadcast %11 : vector<512x1xf32> to vector<512x4xf32>
    %13 = arith.addf %10, %12 : vector<512x4xf32>
    %cst_12 = arith.constant 0.000000e+00 : f32
    %14 = vector.broadcast %cst_12 : f32 to vector<512x4xf32>
    %15 = arith.maximumf %13, %14 : vector<512x4xf32>
    %c0_13 = arith.constant 0 : index
    %c0_14 = arith.constant 0 : index
    %16 = vector.load %arg6[%c0_13, %c0_14] : memref<8x512xf32, #tpu.memory_space<vmem>>, vector<8x512xf32>
    %cst_15 = arith.constant dense<0.000000e+00> : vector<8x4xf32>
    %17 = tpu.matmul %16, %15, %cst_15 {dimension_numbers = #tpu.dot_dimension_numbers<[1], [0], [0], [1], [0, 0, 1, 1], [], []>} : vector<8x512xf32>, vector<512x4xf32>, vector<8x4xf32> -> vector<8x4xf32>
    %18 = vector.extract_strided_slice %17 {offsets = [0, 0], sizes = [8, 2], strides = [1, 1]} : vector<8x4xf32> to vector<8x2xf32>
    %c0_16 = arith.constant 0 : index
    %c0_17 = arith.constant 0 : index
    %c0_18 = arith.constant 0 : index
    %c0_19 = arith.constant 0 : index
    %19 = vector.load %arg7[%c0_16, %c0_17, %c0_18, %c0_19] : memref<1x2x8x2xf32, #tpu.memory_space<vmem>>, vector<1x1x8x2xf32>
    %20 = vector.shape_cast %19 : vector<1x1x8x2xf32> to vector<8x2xf32>
    %21 = vector.shape_cast %18 : vector<8x2xf32> to vector<1x1x8x2xf32>
    tpu.vector_store %arg7[%c0_16, %c0_17, %c0_18, %c0_19], %21 {strides = array<i32>} : memref<1x2x8x2xf32, #tpu.memory_space<vmem>>, vector<1x1x8x2xf32>,
    %22 = vector.extract_strided_slice %17 {offsets = [0, 2], sizes = [8, 2], strides = [1, 1]} : vector<8x4xf32> to vector<8x2xf32>
    %c0_20 = arith.constant 0 : index
    %c1 = arith.constant 1 : index
    %c0_21 = arith.constant 0 : index
    %c0_22 = arith.constant 0 : index
    %23 = vector.load %arg7[%c0_20, %c1, %c0_21, %c0_22] : memref<1x2x8x2xf32, #tpu.memory_space<vmem>>, vector<1x1x8x2xf32>
    %24 = vector.shape_cast %23 : vector<1x1x8x2xf32> to vector<8x2xf32>
    %25 = vector.shape_cast %22 : vector<8x2xf32> to vector<1x1x8x2xf32>
    tpu.vector_store %arg7[%c0_20, %c1, %c0_21, %c0_22], %25 {strides = array<i32>} : memref<1x2x8x2xf32, #tpu.memory_space<vmem>>, vector<1x1x8x2xf32>,
    return
  }
  func.func @transform_0(%arg0: i32) -> (i32, i32, i32) {
    %c0_i32 = arith.constant 0 : i32
    %c0_i32_0 = arith.constant 0 : i32
    %c0_i32_1 = arith.constant 0 : i32
    return %arg0, %c0_i32, %c0_i32_0 : i32, i32, i32
  }
  func.func @transform_1(%arg0: i32) -> (i32, i32) {
    %c0_i32 = arith.constant 0 : i32
    %c0_i32_0 = arith.constant 0 : i32
    %c0_i32_1 = arith.constant 0 : i32
    return %c0_i32, %c0_i32_0 : i32, i32
  }
  func.func @transform_2(%arg0: i32) -> (i32, i32) {
    %c0_i32 = arith.constant 0 : i32
    %c0_i32_0 = arith.constant 0 : i32
    %c0_i32_1 = arith.constant 0 : i32
    return %c0_i32, %c0_i32_0 : i32, i32
  }
  func.func @transform_3(%arg0: i32) -> (i32, i32) {
    %c0_i32 = arith.constant 0 : i32
    %c0_i32_0 = arith.constant 0 : i32
    %c0_i32_1 = arith.constant 0 : i32
    return %c0_i32, %c0_i32_0 : i32, i32
  }
  func.func @transform_4(%arg0: i32) -> (i32, i32) {
    %c0_i32 = arith.constant 0 : i32
    %c0_i32_0 = arith.constant 0 : i32
    %c0_i32_1 = arith.constant 0 : i32
    return %c0_i32, %c0_i32_0 : i32, i32
  }
  func.func @transform_5(%arg0: i32) -> (i32, i32) {
    %c0_i32 = arith.constant 0 : i32
    %c0_i32_0 = arith.constant 0 : i32
    %c0_i32_1 = arith.constant 0 : i32
    return %c0_i32, %c0_i32_0 : i32, i32
  }
  func.func @transform_6(%arg0: i32) -> (i32, i32, i32, i32) {
    %c0_i32 = arith.constant 0 : i32
    %c0_i32_0 = arith.constant 0 : i32
    %c0_i32_1 = arith.constant 0 : i32
    %c0_i32_2 = arith.constant 0 : i32
    return %arg0, %c0_i32, %c0_i32_0, %c0_i32_1 : i32, i32, i32, i32
  }
}

module attributes {stable_mosaic.version = 11 : i64} {
  func.func @_contrib_kernel(%arg0: i32, %arg1: memref<1x512x16xf32, #tpu.memory_space<vmem>>, %arg2: memref<8x512xf32, #tpu.memory_space<vmem>>, %arg3: memref<1x4x8x4xf32, #tpu.memory_space<vmem>>) attributes {dimension_semantics = [#tpu.dimension_semantics<parallel>], iteration_bounds = array<i64: 2>, scalar_prefetch = 0 : i64, scratch_operands = 0 : i64, tpu.core_type = #tpu.core_type<tc>, window_params = [{transform_indices = @transform_0, window_bounds = array<i64: 1, 512, 16>}, {pipeline_mode = #tpu.pipeline_mode<synchronous>, transform_indices = @transform_1, window_bounds = array<i64: 8, 512>}, {transform_indices = @transform_2, window_bounds = array<i64: 1, 4, 8, 4>}]} {
    %c0 = arith.constant 0 : index
    %c0_0 = arith.constant 0 : index
    %0 = vector.load %arg2[%c0, %c0_0] : memref<8x512xf32, #tpu.memory_space<vmem>>, vector<8x512xf32>
    %c0_1 = arith.constant 0 : index
    %c0_2 = arith.constant 0 : index
    %c0_3 = arith.constant 0 : index
    %1 = vector.load %arg1[%c0_1, %c0_2, %c0_3] : memref<1x512x16xf32, #tpu.memory_space<vmem>>, vector<1x512x16xf32>
    %2 = vector.shape_cast %1 : vector<1x512x16xf32> to vector<512x16xf32>
    %cst = arith.constant dense<0.000000e+00> : vector<8x16xf32>
    %3 = tpu.matmul %0, %2, %cst {dimension_numbers = #tpu.dot_dimension_numbers<[1], [0], [0], [1], [0, 0, 1, 1], [], []>} : vector<8x512xf32>, vector<512x16xf32>, vector<8x16xf32> -> vector<8x16xf32>
    %4 = vector.extract_strided_slice %3 {offsets = [0, 0], sizes = [8, 4], strides = [1, 1]} : vector<8x16xf32> to vector<8x4xf32>
    %c0_4 = arith.constant 0 : index
    %c0_5 = arith.constant 0 : index
    %c0_6 = arith.constant 0 : index
    %c0_7 = arith.constant 0 : index
    %5 = vector.load %arg3[%c0_4, %c0_5, %c0_6, %c0_7] : memref<1x4x8x4xf32, #tpu.memory_space<vmem>>, vector<1x1x8x4xf32>
    %6 = vector.shape_cast %5 : vector<1x1x8x4xf32> to vector<8x4xf32>
    %7 = vector.shape_cast %4 : vector<8x4xf32> to vector<1x1x8x4xf32>
    tpu.vector_store %arg3[%c0_4, %c0_5, %c0_6, %c0_7], %7 {strides = array<i32>} : memref<1x4x8x4xf32, #tpu.memory_space<vmem>>, vector<1x1x8x4xf32>,
    %8 = vector.extract_strided_slice %3 {offsets = [0, 4], sizes = [8, 4], strides = [1, 1]} : vector<8x16xf32> to vector<8x4xf32>
    %c0_8 = arith.constant 0 : index
    %c1 = arith.constant 1 : index
    %c0_9 = arith.constant 0 : index
    %c0_10 = arith.constant 0 : index
    %9 = vector.load %arg3[%c0_8, %c1, %c0_9, %c0_10] : memref<1x4x8x4xf32, #tpu.memory_space<vmem>>, vector<1x1x8x4xf32>
    %10 = vector.shape_cast %9 : vector<1x1x8x4xf32> to vector<8x4xf32>
    %11 = vector.shape_cast %8 : vector<8x4xf32> to vector<1x1x8x4xf32>
    tpu.vector_store %arg3[%c0_8, %c1, %c0_9, %c0_10], %11 {strides = array<i32>} : memref<1x4x8x4xf32, #tpu.memory_space<vmem>>, vector<1x1x8x4xf32>,
    %12 = vector.extract_strided_slice %3 {offsets = [0, 8], sizes = [8, 4], strides = [1, 1]} : vector<8x16xf32> to vector<8x4xf32>
    %c0_11 = arith.constant 0 : index
    %c2 = arith.constant 2 : index
    %c0_12 = arith.constant 0 : index
    %c0_13 = arith.constant 0 : index
    %13 = vector.load %arg3[%c0_11, %c2, %c0_12, %c0_13] : memref<1x4x8x4xf32, #tpu.memory_space<vmem>>, vector<1x1x8x4xf32>
    %14 = vector.shape_cast %13 : vector<1x1x8x4xf32> to vector<8x4xf32>
    %15 = vector.shape_cast %12 : vector<8x4xf32> to vector<1x1x8x4xf32>
    tpu.vector_store %arg3[%c0_11, %c2, %c0_12, %c0_13], %15 {strides = array<i32>} : memref<1x4x8x4xf32, #tpu.memory_space<vmem>>, vector<1x1x8x4xf32>,
    %16 = vector.extract_strided_slice %3 {offsets = [0, 12], sizes = [8, 4], strides = [1, 1]} : vector<8x16xf32> to vector<8x4xf32>
    %c0_14 = arith.constant 0 : index
    %c3 = arith.constant 3 : index
    %c0_15 = arith.constant 0 : index
    %c0_16 = arith.constant 0 : index
    %17 = vector.load %arg3[%c0_14, %c3, %c0_15, %c0_16] : memref<1x4x8x4xf32, #tpu.memory_space<vmem>>, vector<1x1x8x4xf32>
    %18 = vector.shape_cast %17 : vector<1x1x8x4xf32> to vector<8x4xf32>
    %19 = vector.shape_cast %16 : vector<8x4xf32> to vector<1x1x8x4xf32>
    tpu.vector_store %arg3[%c0_14, %c3, %c0_15, %c0_16], %19 {strides = array<i32>} : memref<1x4x8x4xf32, #tpu.memory_space<vmem>>, vector<1x1x8x4xf32>,
    return
  }
  func.func @transform_0(%arg0: i32) -> (i32, i32, i32) {
    %c0_i32 = arith.constant 0 : i32
    %c0_i32_0 = arith.constant 0 : i32
    %c0_i32_1 = arith.constant 0 : i32
    return %arg0, %c0_i32, %c0_i32_0 : i32, i32, i32
  }
  func.func @transform_1(%arg0: i32) -> (i32, i32) {
    %c0_i32 = arith.constant 0 : i32
    %c0_i32_0 = arith.constant 0 : i32
    %c0_i32_1 = arith.constant 0 : i32
    return %c0_i32, %c0_i32_0 : i32, i32
  }
  func.func @transform_2(%arg0: i32) -> (i32, i32, i32, i32) {
    %c0_i32 = arith.constant 0 : i32
    %c0_i32_0 = arith.constant 0 : i32
    %c0_i32_1 = arith.constant 0 : i32
    %c0_i32_2 = arith.constant 0 : i32
    return %arg0, %c0_i32, %c0_i32_0, %c0_i32_1 : i32, i32, i32, i32
  }
}

module attributes {stable_mosaic.version = 11 : i64} {
  func.func @_contrib_kernel(%arg0: i32, %arg1: memref<1x256x64xf32, #tpu.memory_space<vmem>>, %arg2: memref<8x256xf32, #tpu.memory_space<vmem>>, %arg3: memref<1x8x8x8xf32, #tpu.memory_space<vmem>>) attributes {dimension_semantics = [#tpu.dimension_semantics<parallel>], iteration_bounds = array<i64: 2>, scalar_prefetch = 0 : i64, scratch_operands = 0 : i64, tpu.core_type = #tpu.core_type<tc>, window_params = [{transform_indices = @transform_0, window_bounds = array<i64: 1, 256, 64>}, {pipeline_mode = #tpu.pipeline_mode<synchronous>, transform_indices = @transform_1, window_bounds = array<i64: 8, 256>}, {transform_indices = @transform_2, window_bounds = array<i64: 1, 8, 8, 8>}]} {
    %c0 = arith.constant 0 : index
    %c0_0 = arith.constant 0 : index
    %0 = vector.load %arg2[%c0, %c0_0] : memref<8x256xf32, #tpu.memory_space<vmem>>, vector<8x256xf32>
    %c0_1 = arith.constant 0 : index
    %c0_2 = arith.constant 0 : index
    %c0_3 = arith.constant 0 : index
    %1 = vector.load %arg1[%c0_1, %c0_2, %c0_3] : memref<1x256x64xf32, #tpu.memory_space<vmem>>, vector<1x256x64xf32>
    %2 = vector.shape_cast %1 : vector<1x256x64xf32> to vector<256x64xf32>
    %cst = arith.constant dense<0.000000e+00> : vector<8x64xf32>
    %3 = tpu.matmul %0, %2, %cst {dimension_numbers = #tpu.dot_dimension_numbers<[1], [0], [0], [1], [0, 0, 1, 1], [], []>} : vector<8x256xf32>, vector<256x64xf32>, vector<8x64xf32> -> vector<8x64xf32>
    %4 = vector.extract_strided_slice %3 {offsets = [0, 0], sizes = [8, 8], strides = [1, 1]} : vector<8x64xf32> to vector<8x8xf32>
    %c0_4 = arith.constant 0 : index
    %c0_5 = arith.constant 0 : index
    %c0_6 = arith.constant 0 : index
    %c0_7 = arith.constant 0 : index
    %5 = vector.load %arg3[%c0_4, %c0_5, %c0_6, %c0_7] : memref<1x8x8x8xf32, #tpu.memory_space<vmem>>, vector<1x1x8x8xf32>
    %6 = vector.shape_cast %5 : vector<1x1x8x8xf32> to vector<8x8xf32>
    %7 = vector.shape_cast %4 : vector<8x8xf32> to vector<1x1x8x8xf32>
    tpu.vector_store %arg3[%c0_4, %c0_5, %c0_6, %c0_7], %7 {strides = array<i32>} : memref<1x8x8x8xf32, #tpu.memory_space<vmem>>, vector<1x1x8x8xf32>,
    %8 = vector.extract_strided_slice %3 {offsets = [0, 8], sizes = [8, 8], strides = [1, 1]} : vector<8x64xf32> to vector<8x8xf32>
    %c0_8 = arith.constant 0 : index
    %c1 = arith.constant 1 : index
    %c0_9 = arith.constant 0 : index
    %c0_10 = arith.constant 0 : index
    %9 = vector.load %arg3[%c0_8, %c1, %c0_9, %c0_10] : memref<1x8x8x8xf32, #tpu.memory_space<vmem>>, vector<1x1x8x8xf32>
    %10 = vector.shape_cast %9 : vector<1x1x8x8xf32> to vector<8x8xf32>
    %11 = vector.shape_cast %8 : vector<8x8xf32> to vector<1x1x8x8xf32>
    tpu.vector_store %arg3[%c0_8, %c1, %c0_9, %c0_10], %11 {strides = array<i32>} : memref<1x8x8x8xf32, #tpu.memory_space<vmem>>, vector<1x1x8x8xf32>,
    %12 = vector.extract_strided_slice %3 {offsets = [0, 16], sizes = [8, 8], strides = [1, 1]} : vector<8x64xf32> to vector<8x8xf32>
    %c0_11 = arith.constant 0 : index
    %c2 = arith.constant 2 : index
    %c0_12 = arith.constant 0 : index
    %c0_13 = arith.constant 0 : index
    %13 = vector.load %arg3[%c0_11, %c2, %c0_12, %c0_13] : memref<1x8x8x8xf32, #tpu.memory_space<vmem>>, vector<1x1x8x8xf32>
    %14 = vector.shape_cast %13 : vector<1x1x8x8xf32> to vector<8x8xf32>
    %15 = vector.shape_cast %12 : vector<8x8xf32> to vector<1x1x8x8xf32>
    tpu.vector_store %arg3[%c0_11, %c2, %c0_12, %c0_13], %15 {strides = array<i32>} : memref<1x8x8x8xf32, #tpu.memory_space<vmem>>, vector<1x1x8x8xf32>,
    %16 = vector.extract_strided_slice %3 {offsets = [0, 24], sizes = [8, 8], strides = [1, 1]} : vector<8x64xf32> to vector<8x8xf32>
    %c0_14 = arith.constant 0 : index
    %c3 = arith.constant 3 : index
    %c0_15 = arith.constant 0 : index
    %c0_16 = arith.constant 0 : index
    %17 = vector.load %arg3[%c0_14, %c3, %c0_15, %c0_16] : memref<1x8x8x8xf32, #tpu.memory_space<vmem>>, vector<1x1x8x8xf32>
    %18 = vector.shape_cast %17 : vector<1x1x8x8xf32> to vector<8x8xf32>
    %19 = vector.shape_cast %16 : vector<8x8xf32> to vector<1x1x8x8xf32>
    tpu.vector_store %arg3[%c0_14, %c3, %c0_15, %c0_16], %19 {strides = array<i32>} : memref<1x8x8x8xf32, #tpu.memory_space<vmem>>, vector<1x1x8x8xf32>,
    %20 = vector.extract_strided_slice %3 {offsets = [0, 32], sizes = [8, 8], strides = [1, 1]} : vector<8x64xf32> to vector<8x8xf32>
    %c0_17 = arith.constant 0 : index
    %c4 = arith.constant 4 : index
    %c0_18 = arith.constant 0 : index
    %c0_19 = arith.constant 0 : index
    %21 = vector.load %arg3[%c0_17, %c4, %c0_18, %c0_19] : memref<1x8x8x8xf32, #tpu.memory_space<vmem>>, vector<1x1x8x8xf32>
    %22 = vector.shape_cast %21 : vector<1x1x8x8xf32> to vector<8x8xf32>
    %23 = vector.shape_cast %20 : vector<8x8xf32> to vector<1x1x8x8xf32>
    tpu.vector_store %arg3[%c0_17, %c4, %c0_18, %c0_19], %23 {strides = array<i32>} : memref<1x8x8x8xf32, #tpu.memory_space<vmem>>, vector<1x1x8x8xf32>,
    %24 = vector.extract_strided_slice %3 {offsets = [0, 40], sizes = [8, 8], strides = [1, 1]} : vector<8x64xf32> to vector<8x8xf32>
    %c0_20 = arith.constant 0 : index
    %c5 = arith.constant 5 : index
    %c0_21 = arith.constant 0 : index
    %c0_22 = arith.constant 0 : index
    %25 = vector.load %arg3[%c0_20, %c5, %c0_21, %c0_22] : memref<1x8x8x8xf32, #tpu.memory_space<vmem>>, vector<1x1x8x8xf32>
    %26 = vector.shape_cast %25 : vector<1x1x8x8xf32> to vector<8x8xf32>
    %27 = vector.shape_cast %24 : vector<8x8xf32> to vector<1x1x8x8xf32>
    tpu.vector_store %arg3[%c0_20, %c5, %c0_21, %c0_22], %27 {strides = array<i32>} : memref<1x8x8x8xf32, #tpu.memory_space<vmem>>, vector<1x1x8x8xf32>,
    %28 = vector.extract_strided_slice %3 {offsets = [0, 48], sizes = [8, 8], strides = [1, 1]} : vector<8x64xf32> to vector<8x8xf32>
    %c0_23 = arith.constant 0 : index
    %c6 = arith.constant 6 : index
    %c0_24 = arith.constant 0 : index
    %c0_25 = arith.constant 0 : index
    %29 = vector.load %arg3[%c0_23, %c6, %c0_24, %c0_25] : memref<1x8x8x8xf32, #tpu.memory_space<vmem>>, vector<1x1x8x8xf32>
    %30 = vector.shape_cast %29 : vector<1x1x8x8xf32> to vector<8x8xf32>
    %31 = vector.shape_cast %28 : vector<8x8xf32> to vector<1x1x8x8xf32>
    tpu.vector_store %arg3[%c0_23, %c6, %c0_24, %c0_25], %31 {strides = array<i32>} : memref<1x8x8x8xf32, #tpu.memory_space<vmem>>, vector<1x1x8x8xf32>,
    %32 = vector.extract_strided_slice %3 {offsets = [0, 56], sizes = [8, 8], strides = [1, 1]} : vector<8x64xf32> to vector<8x8xf32>
    %c0_26 = arith.constant 0 : index
    %c7 = arith.constant 7 : index
    %c0_27 = arith.constant 0 : index
    %c0_28 = arith.constant 0 : index
    %33 = vector.load %arg3[%c0_26, %c7, %c0_27, %c0_28] : memref<1x8x8x8xf32, #tpu.memory_space<vmem>>, vector<1x1x8x8xf32>
    %34 = vector.shape_cast %33 : vector<1x1x8x8xf32> to vector<8x8xf32>
    %35 = vector.shape_cast %32 : vector<8x8xf32> to vector<1x1x8x8xf32>
    tpu.vector_store %arg3[%c0_26, %c7, %c0_27, %c0_28], %35 {strides = array<i32>} : memref<1x8x8x8xf32, #tpu.memory_space<vmem>>, vector<1x1x8x8xf32>,
    return
  }
  func.func @transform_0(%arg0: i32) -> (i32, i32, i32) {
    %c0_i32 = arith.constant 0 : i32
    %c0_i32_0 = arith.constant 0 : i32
    %c0_i32_1 = arith.constant 0 : i32
    return %arg0, %c0_i32, %c0_i32_0 : i32, i32, i32
  }
  func.func @transform_1(%arg0: i32) -> (i32, i32) {
    %c0_i32 = arith.constant 0 : i32
    %c0_i32_0 = arith.constant 0 : i32
    %c0_i32_1 = arith.constant 0 : i32
    return %c0_i32, %c0_i32_0 : i32, i32
  }
  func.func @transform_2(%arg0: i32) -> (i32, i32, i32, i32) {
    %c0_i32 = arith.constant 0 : i32
    %c0_i32_0 = arith.constant 0 : i32
    %c0_i32_1 = arith.constant 0 : i32
    %c0_i32_2 = arith.constant 0 : i32
    return %arg0, %c0_i32, %c0_i32_0, %c0_i32_1 : i32, i32, i32, i32
  }
}

module attributes {stable_mosaic.version = 11 : i64} {
  func.func @_epilogue_kernel(%arg0: i32, %arg1: i32, %arg2: memref<1x1x8x2xf32, #tpu.memory_space<vmem>>, %arg3: memref<1x2x8x4xf32, #tpu.memory_space<vmem>>, %arg4: memref<1x4x8x8xf32, #tpu.memory_space<vmem>>, %arg5: memref<2x64xf32, #tpu.memory_space<vmem>>, %arg6: memref<2x64xf32, #tpu.memory_space<vmem>>, %arg7: memref<4x64xf32, #tpu.memory_space<vmem>>, %arg8: memref<4x64xf32, #tpu.memory_space<vmem>>, %arg9: memref<8x64xf32, #tpu.memory_space<vmem>>, %arg10: memref<8x64xf32, #tpu.memory_space<vmem>>, %arg11: memref<16x4xf32, #tpu.memory_space<vmem>>, %arg12: memref<4x1xf32, #tpu.memory_space<vmem>>, %arg13: memref<1x2x32x64xf32, #tpu.memory_space<vmem>>) attributes {dimension_semantics = [#tpu.dimension_semantics<parallel>, #tpu.dimension_semantics<parallel>], iteration_bounds = array<i64: 2, 2>, scalar_prefetch = 0 : i64, scratch_operands = 0 : i64, tpu.core_type = #tpu.core_type<tc>, window_params = [{transform_indices = @transform_0, window_bounds = array<i64: 1, 1, 8, 2>}, {transform_indices = @transform_1, window_bounds = array<i64: 1, 2, 8, 4>}, {transform_indices = @transform_2, window_bounds = array<i64: 1, 4, 8, 8>}, {pipeline_mode = #tpu.pipeline_mode<synchronous>, transform_indices = @transform_3, window_bounds = array<i64: 2, 64>}, {pipeline_mode = #tpu.pipeline_mode<synchronous>, transform_indices = @transform_4, window_bounds = array<i64: 2, 64>}, {pipeline_mode = #tpu.pipeline_mode<synchronous>, transform_indices = @transform_5, window_bounds = array<i64: 4, 64>}, {pipeline_mode = #tpu.pipeline_mode<synchronous>, transform_indices = @transform_6, window_bounds = array<i64: 4, 64>}, {pipeline_mode = #tpu.pipeline_mode<synchronous>, transform_indices = @transform_7, window_bounds = array<i64: 8, 64>}, {pipeline_mode = #tpu.pipeline_mode<synchronous>, transform_indices = @transform_8, window_bounds = array<i64: 8, 64>}, {pipeline_mode = #tpu.pipeline_mode<synchronous>, transform_indices = @transform_9, window_bounds = array<i64: 16, 4>}, {pipeline_mode = #tpu.pipeline_mode<synchronous>, transform_indices = @transform_10, window_bounds = array<i64: 4, 1>}, {transform_indices = @transform_11, window_bounds = array<i64: 1, 2, 32, 64>}]} {
    %c0 = arith.constant 0 : index
    %c0_0 = arith.constant 0 : index
    %c0_1 = arith.constant 0 : index
    %c0_2 = arith.constant 0 : index
    %0 = vector.load %arg2[%c0, %c0_0, %c0_1, %c0_2] : memref<1x1x8x2xf32, #tpu.memory_space<vmem>>, vector<1x1x8x2xf32>
    %1 = vector.shape_cast %0 : vector<1x1x8x2xf32> to vector<8x2xf32>
    %2 = vector.extract_strided_slice %1 {offsets = [0, 0], sizes = [4, 2], strides = [1, 1]} : vector<8x2xf32> to vector<4x2xf32>
    %c0_3 = arith.constant 0 : index
    %c0_4 = arith.constant 0 : index
    %3 = vector.load %arg5[%c0_3, %c0_4] : memref<2x64xf32, #tpu.memory_space<vmem>>, vector<2x64xf32>
    %cst = arith.constant dense<0.000000e+00> : vector<4x64xf32>
    %4 = tpu.matmul %2, %3, %cst {dimension_numbers = #tpu.dot_dimension_numbers<[1], [0], [0], [1], [0, 0, 1, 1], [], []>} : vector<4x2xf32>, vector<2x64xf32>, vector<4x64xf32> -> vector<4x64xf32>
    %5 = vector.extract_strided_slice %1 {offsets = [4, 0], sizes = [4, 2], strides = [1, 1]} : vector<8x2xf32> to vector<4x2xf32>
    %c0_5 = arith.constant 0 : index
    %c0_6 = arith.constant 0 : index
    %6 = vector.load %arg6[%c0_5, %c0_6] : memref<2x64xf32, #tpu.memory_space<vmem>>, vector<2x64xf32>
    %cst_7 = arith.constant dense<0.000000e+00> : vector<4x64xf32>
    %7 = tpu.matmul %5, %6, %cst_7 {dimension_numbers = #tpu.dot_dimension_numbers<[1], [0], [0], [1], [0, 0, 1, 1], [], []>} : vector<4x2xf32>, vector<2x64xf32>, vector<4x64xf32> -> vector<4x64xf32>
    %8 = arith.addf %4, %7 : vector<4x64xf32>
    %c0_8 = arith.constant 0 : index
    %c0_9 = arith.constant 0 : index
    %c0_10 = arith.constant 0 : index
    %c0_11 = arith.constant 0 : index
    %9 = vector.load %arg3[%c0_8, %c0_9, %c0_10, %c0_11] : memref<1x2x8x4xf32, #tpu.memory_space<vmem>>, vector<1x1x8x4xf32>
    %10 = vector.shape_cast %9 : vector<1x1x8x4xf32> to vector<8x4xf32>
    %c0_12 = arith.constant 0 : index
    %c0_13 = arith.constant 0 : index
    %c0_14 = arith.constant 0 : index
    %c0_15 = arith.constant 0 : index
    %11 = vector.load %arg4[%c0_12, %c0_13, %c0_14, %c0_15] : memref<1x4x8x8xf32, #tpu.memory_space<vmem>>, vector<1x1x8x8xf32>
    %12 = vector.shape_cast %11 : vector<1x1x8x8xf32> to vector<8x8xf32>
    %13 = vector.extract_strided_slice %10 {offsets = [0, 0], sizes = [4, 4], strides = [1, 1]} : vector<8x4xf32> to vector<4x4xf32>
    %c0_16 = arith.constant 0 : index
    %c0_17 = arith.constant 0 : index
    %14 = vector.load %arg7[%c0_16, %c0_17] : memref<4x64xf32, #tpu.memory_space<vmem>>, vector<4x64xf32>
    %cst_18 = arith.constant dense<0.000000e+00> : vector<4x64xf32>
    %15 = tpu.matmul %13, %14, %cst_18 {dimension_numbers = #tpu.dot_dimension_numbers<[1], [0], [0], [1], [0, 0, 1, 1], [], []>} : vector<4x4xf32>, vector<4x64xf32>, vector<4x64xf32> -> vector<4x64xf32>
    %16 = arith.addf %8, %15 : vector<4x64xf32>
    %17 = vector.extract_strided_slice %10 {offsets = [4, 0], sizes = [4, 4], strides = [1, 1]} : vector<8x4xf32> to vector<4x4xf32>
    %c0_19 = arith.constant 0 : index
    %c0_20 = arith.constant 0 : index
    %18 = vector.load %arg8[%c0_19, %c0_20] : memref<4x64xf32, #tpu.memory_space<vmem>>, vector<4x64xf32>
    %cst_21 = arith.constant dense<0.000000e+00> : vector<4x64xf32>
    %19 = tpu.matmul %17, %18, %cst_21 {dimension_numbers = #tpu.dot_dimension_numbers<[1], [0], [0], [1], [0, 0, 1, 1], [], []>} : vector<4x4xf32>, vector<4x64xf32>, vector<4x64xf32> -> vector<4x64xf32>
    %20 = arith.addf %16, %19 : vector<4x64xf32>
    %21 = vector.extract_strided_slice %12 {offsets = [0, 0], sizes = [4, 8], strides = [1, 1]} : vector<8x8xf32> to vector<4x8xf32>
    %c0_22 = arith.constant 0 : index
    %c0_23 = arith.constant 0 : index
    %22 = vector.load %arg9[%c0_22, %c0_23] : memref<8x64xf32, #tpu.memory_space<vmem>>, vector<8x64xf32>
    %cst_24 = arith.constant dense<0.000000e+00> : vector<4x64xf32>
    %23 = tpu.matmul %21, %22, %cst_24 {dimension_numbers = #tpu.dot_dimension_numbers<[1], [0], [0], [1], [0, 0, 1, 1], [], []>} : vector<4x8xf32>, vector<8x64xf32>, vector<4x64xf32> -> vector<4x64xf32>
    %24 = arith.addf %20, %23 : vector<4x64xf32>
    %25 = vector.extract_strided_slice %12 {offsets = [4, 0], sizes = [4, 8], strides = [1, 1]} : vector<8x8xf32> to vector<4x8xf32>
    %c0_25 = arith.constant 0 : index
    %c0_26 = arith.constant 0 : index
    %26 = vector.load %arg10[%c0_25, %c0_26] : memref<8x64xf32, #tpu.memory_space<vmem>>, vector<8x64xf32>
    %cst_27 = arith.constant dense<0.000000e+00> : vector<4x64xf32>
    %27 = tpu.matmul %25, %26, %cst_27 {dimension_numbers = #tpu.dot_dimension_numbers<[1], [0], [0], [1], [0, 0, 1, 1], [], []>} : vector<4x8xf32>, vector<8x64xf32>, vector<4x64xf32> -> vector<4x64xf32>
    %28 = arith.addf %24, %27 : vector<4x64xf32>
    %c0_28 = arith.constant 0 : index
    %c0_29 = arith.constant 0 : index
    %29 = vector.load %arg12[%c0_28, %c0_29] : memref<4x1xf32, #tpu.memory_space<vmem>>, vector<4x1xf32>
    %30 = vector.broadcast %29 : vector<4x1xf32> to vector<4x64xf32>
    %31 = arith.addf %28, %30 : vector<4x64xf32>
    %c0_30 = arith.constant 0 : index
    %c0_31 = arith.constant 0 : index
    %32 = vector.load %arg11[%c0_30, %c0_31] : memref<16x4xf32, #tpu.memory_space<vmem>>, vector<16x4xf32>
    %cst_32 = arith.constant dense<0.000000e+00> : vector<16x64xf32>
    %33 = tpu.matmul %32, %31, %cst_32 {dimension_numbers = #tpu.dot_dimension_numbers<[1], [0], [0], [1], [0, 0, 1, 1], [], []>} : vector<16x4xf32>, vector<4x64xf32>, vector<16x64xf32> -> vector<16x64xf32>
    %34 = vector.extract_strided_slice %33 {offsets = [0, 0], sizes = [8, 64], strides = [1, 1]} : vector<16x64xf32> to vector<8x64xf32>
    %c0_33 = arith.constant 0 : index
    %c0_34 = arith.constant 0 : index
    %c0_35 = arith.constant 0 : index
    %c0_36 = arith.constant 0 : index
    %35 = vector.load %arg13[%c0_33, %c0_34, %c0_35, %c0_36] : memref<1x2x32x64xf32, #tpu.memory_space<vmem>>, vector<1x1x8x64xf32>
    %36 = vector.shape_cast %35 : vector<1x1x8x64xf32> to vector<8x64xf32>
    %37 = vector.shape_cast %34 : vector<8x64xf32> to vector<1x1x8x64xf32>
    tpu.vector_store %arg13[%c0_33, %c0_34, %c0_35, %c0_36], %37 {strides = array<i32>} : memref<1x2x32x64xf32, #tpu.memory_space<vmem>>, vector<1x1x8x64xf32>,
    %38 = vector.extract_strided_slice %33 {offsets = [8, 0], sizes = [8, 64], strides = [1, 1]} : vector<16x64xf32> to vector<8x64xf32>
    %c0_37 = arith.constant 0 : index
    %c1 = arith.constant 1 : index
    %c0_38 = arith.constant 0 : index
    %c0_39 = arith.constant 0 : index
    %39 = vector.load %arg13[%c0_37, %c1, %c0_38, %c0_39] : memref<1x2x32x64xf32, #tpu.memory_space<vmem>>, vector<1x1x8x64xf32>
    %40 = vector.shape_cast %39 : vector<1x1x8x64xf32> to vector<8x64xf32>
    %41 = vector.shape_cast %38 : vector<8x64xf32> to vector<1x1x8x64xf32>
    tpu.vector_store %arg13[%c0_37, %c1, %c0_38, %c0_39], %41 {strides = array<i32>} : memref<1x2x32x64xf32, #tpu.memory_space<vmem>>, vector<1x1x8x64xf32>,
    %c0_40 = arith.constant 0 : index
    %c0_41 = arith.constant 0 : index
    %c0_42 = arith.constant 0 : index
    %c0_43 = arith.constant 0 : index
    %42 = vector.load %arg3[%c0_40, %c0_41, %c0_42, %c0_43] : memref<1x2x8x4xf32, #tpu.memory_space<vmem>>, vector<1x1x8x4xf32>
    %43 = vector.shape_cast %42 : vector<1x1x8x4xf32> to vector<8x4xf32>
    %c0_44 = arith.constant 0 : index
    %c1_45 = arith.constant 1 : index
    %c0_46 = arith.constant 0 : index
    %c0_47 = arith.constant 0 : index
    %44 = vector.load %arg4[%c0_44, %c1_45, %c0_46, %c0_47] : memref<1x4x8x8xf32, #tpu.memory_space<vmem>>, vector<1x1x8x8xf32>
    %45 = vector.shape_cast %44 : vector<1x1x8x8xf32> to vector<8x8xf32>
    %46 = vector.extract_strided_slice %43 {offsets = [0, 0], sizes = [4, 4], strides = [1, 1]} : vector<8x4xf32> to vector<4x4xf32>
    %c0_48 = arith.constant 0 : index
    %c0_49 = arith.constant 0 : index
    %47 = vector.load %arg7[%c0_48, %c0_49] : memref<4x64xf32, #tpu.memory_space<vmem>>, vector<4x64xf32>
    %cst_50 = arith.constant dense<0.000000e+00> : vector<4x64xf32>
    %48 = tpu.matmul %46, %47, %cst_50 {dimension_numbers = #tpu.dot_dimension_numbers<[1], [0], [0], [1], [0, 0, 1, 1], [], []>} : vector<4x4xf32>, vector<4x64xf32>, vector<4x64xf32> -> vector<4x64xf32>
    %49 = arith.addf %8, %48 : vector<4x64xf32>
    %50 = vector.extract_strided_slice %43 {offsets = [4, 0], sizes = [4, 4], strides = [1, 1]} : vector<8x4xf32> to vector<4x4xf32>
    %c0_51 = arith.constant 0 : index
    %c0_52 = arith.constant 0 : index
    %51 = vector.load %arg8[%c0_51, %c0_52] : memref<4x64xf32, #tpu.memory_space<vmem>>, vector<4x64xf32>
    %cst_53 = arith.constant dense<0.000000e+00> : vector<4x64xf32>
    %52 = tpu.matmul %50, %51, %cst_53 {dimension_numbers = #tpu.dot_dimension_numbers<[1], [0], [0], [1], [0, 0, 1, 1], [], []>} : vector<4x4xf32>, vector<4x64xf32>, vector<4x64xf32> -> vector<4x64xf32>
    %53 = arith.addf %49, %52 : vector<4x64xf32>
    %54 = vector.extract_strided_slice %45 {offsets = [0, 0], sizes = [4, 8], strides = [1, 1]} : vector<8x8xf32> to vector<4x8xf32>
    %c0_54 = arith.constant 0 : index
    %c0_55 = arith.constant 0 : index
    %55 = vector.load %arg9[%c0_54, %c0_55] : memref<8x64xf32, #tpu.memory_space<vmem>>, vector<8x64xf32>
    %cst_56 = arith.constant dense<0.000000e+00> : vector<4x64xf32>
    %56 = tpu.matmul %54, %55, %cst_56 {dimension_numbers = #tpu.dot_dimension_numbers<[1], [0], [0], [1], [0, 0, 1, 1], [], []>} : vector<4x8xf32>, vector<8x64xf32>, vector<4x64xf32> -> vector<4x64xf32>
    %57 = arith.addf %53, %56 : vector<4x64xf32>
    %58 = vector.extract_strided_slice %45 {offsets = [4, 0], sizes = [4, 8], strides = [1, 1]} : vector<8x8xf32> to vector<4x8xf32>
    %c0_57 = arith.constant 0 : index
    %c0_58 = arith.constant 0 : index
    %59 = vector.load %arg10[%c0_57, %c0_58] : memref<8x64xf32, #tpu.memory_space<vmem>>, vector<8x64xf32>
    %cst_59 = arith.constant dense<0.000000e+00> : vector<4x64xf32>
    %60 = tpu.matmul %58, %59, %cst_59 {dimension_numbers = #tpu.dot_dimension_numbers<[1], [0], [0], [1], [0, 0, 1, 1], [], []>} : vector<4x8xf32>, vector<8x64xf32>, vector<4x64xf32> -> vector<4x64xf32>
    %61 = arith.addf %57, %60 : vector<4x64xf32>
    %c0_60 = arith.constant 0 : index
    %c0_61 = arith.constant 0 : index
    %62 = vector.load %arg12[%c0_60, %c0_61] : memref<4x1xf32, #tpu.memory_space<vmem>>, vector<4x1xf32>
    %63 = vector.broadcast %62 : vector<4x1xf32> to vector<4x64xf32>
    %64 = arith.addf %61, %63 : vector<4x64xf32>
    %c0_62 = arith.constant 0 : index
    %c0_63 = arith.constant 0 : index
    %65 = vector.load %arg11[%c0_62, %c0_63] : memref<16x4xf32, #tpu.memory_space<vmem>>, vector<16x4xf32>
    %cst_64 = arith.constant dense<0.000000e+00> : vector<16x64xf32>
    %66 = tpu.matmul %65, %64, %cst_64 {dimension_numbers = #tpu.dot_dimension_numbers<[1], [0], [0], [1], [0, 0, 1, 1], [], []>} : vector<16x4xf32>, vector<4x64xf32>, vector<16x64xf32> -> vector<16x64xf32>
    %67 = vector.extract_strided_slice %66 {offsets = [0, 0], sizes = [8, 64], strides = [1, 1]} : vector<16x64xf32> to vector<8x64xf32>
    %c0_65 = arith.constant 0 : index
    %c0_66 = arith.constant 0 : index
    %c8 = arith.constant 8 : index
    %c0_67 = arith.constant 0 : index
    %68 = vector.load %arg13[%c0_65, %c0_66, %c8, %c0_67] : memref<1x2x32x64xf32, #tpu.memory_space<vmem>>, vector<1x1x8x64xf32>
    %69 = vector.shape_cast %68 : vector<1x1x8x64xf32> to vector<8x64xf32>
    %70 = vector.shape_cast %67 : vector<8x64xf32> to vector<1x1x8x64xf32>
    tpu.vector_store %arg13[%c0_65, %c0_66, %c8, %c0_67], %70 {strides = array<i32>} : memref<1x2x32x64xf32, #tpu.memory_space<vmem>>, vector<1x1x8x64xf32>,
    %71 = vector.extract_strided_slice %66 {offsets = [8, 0], sizes = [8, 64], strides = [1, 1]} : vector<16x64xf32> to vector<8x64xf32>
    %c0_68 = arith.constant 0 : index
    %c1_69 = arith.constant 1 : index
    %c8_70 = arith.constant 8 : index
    %c0_71 = arith.constant 0 : index
    %72 = vector.load %arg13[%c0_68, %c1_69, %c8_70, %c0_71] : memref<1x2x32x64xf32, #tpu.memory_space<vmem>>, vector<1x1x8x64xf32>
    %73 = vector.shape_cast %72 : vector<1x1x8x64xf32> to vector<8x64xf32>
    %74 = vector.shape_cast %71 : vector<8x64xf32> to vector<1x1x8x64xf32>
    tpu.vector_store %arg13[%c0_68, %c1_69, %c8_70, %c0_71], %74 {strides = array<i32>} : memref<1x2x32x64xf32, #tpu.memory_space<vmem>>, vector<1x1x8x64xf32>,
    %c0_72 = arith.constant 0 : index
    %c1_73 = arith.constant 1 : index
    %c0_74 = arith.constant 0 : index
    %c0_75 = arith.constant 0 : index
    %75 = vector.load %arg3[%c0_72, %c1_73, %c0_74, %c0_75] : memref<1x2x8x4xf32, #tpu.memory_space<vmem>>, vector<1x1x8x4xf32>
    %76 = vector.shape_cast %75 : vector<1x1x8x4xf32> to vector<8x4xf32>
    %c0_76 = arith.constant 0 : index
    %c2 = arith.constant 2 : index
    %c0_77 = arith.constant 0 : index
    %c0_78 = arith.constant 0 : index
    %77 = vector.load %arg4[%c0_76, %c2, %c0_77, %c0_78] : memref<1x4x8x8xf32, #tpu.memory_space<vmem>>, vector<1x1x8x8xf32>
    %78 = vector.shape_cast %77 : vector<1x1x8x8xf32> to vector<8x8xf32>
    %79 = vector.extract_strided_slice %76 {offsets = [0, 0], sizes = [4, 4], strides = [1, 1]} : vector<8x4xf32> to vector<4x4xf32>
    %c0_79 = arith.constant 0 : index
    %c0_80 = arith.constant 0 : index
    %80 = vector.load %arg7[%c0_79, %c0_80] : memref<4x64xf32, #tpu.memory_space<vmem>>, vector<4x64xf32>
    %cst_81 = arith.constant dense<0.000000e+00> : vector<4x64xf32>
    %81 = tpu.matmul %79, %80, %cst_81 {dimension_numbers = #tpu.dot_dimension_numbers<[1], [0], [0], [1], [0, 0, 1, 1], [], []>} : vector<4x4xf32>, vector<4x64xf32>, vector<4x64xf32> -> vector<4x64xf32>
    %82 = arith.addf %8, %81 : vector<4x64xf32>
    %83 = vector.extract_strided_slice %76 {offsets = [4, 0], sizes = [4, 4], strides = [1, 1]} : vector<8x4xf32> to vector<4x4xf32>
    %c0_82 = arith.constant 0 : index
    %c0_83 = arith.constant 0 : index
    %84 = vector.load %arg8[%c0_82, %c0_83] : memref<4x64xf32, #tpu.memory_space<vmem>>, vector<4x64xf32>
    %cst_84 = arith.constant dense<0.000000e+00> : vector<4x64xf32>
    %85 = tpu.matmul %83, %84, %cst_84 {dimension_numbers = #tpu.dot_dimension_numbers<[1], [0], [0], [1], [0, 0, 1, 1], [], []>} : vector<4x4xf32>, vector<4x64xf32>, vector<4x64xf32> -> vector<4x64xf32>
    %86 = arith.addf %82, %85 : vector<4x64xf32>
    %87 = vector.extract_strided_slice %78 {offsets = [0, 0], sizes = [4, 8], strides = [1, 1]} : vector<8x8xf32> to vector<4x8xf32>
    %c0_85 = arith.constant 0 : index
    %c0_86 = arith.constant 0 : index
    %88 = vector.load %arg9[%c0_85, %c0_86] : memref<8x64xf32, #tpu.memory_space<vmem>>, vector<8x64xf32>
    %cst_87 = arith.constant dense<0.000000e+00> : vector<4x64xf32>
    %89 = tpu.matmul %87, %88, %cst_87 {dimension_numbers = #tpu.dot_dimension_numbers<[1], [0], [0], [1], [0, 0, 1, 1], [], []>} : vector<4x8xf32>, vector<8x64xf32>, vector<4x64xf32> -> vector<4x64xf32>
    %90 = arith.addf %86, %89 : vector<4x64xf32>
    %91 = vector.extract_strided_slice %78 {offsets = [4, 0], sizes = [4, 8], strides = [1, 1]} : vector<8x8xf32> to vector<4x8xf32>
    %c0_88 = arith.constant 0 : index
    %c0_89 = arith.constant 0 : index
    %92 = vector.load %arg10[%c0_88, %c0_89] : memref<8x64xf32, #tpu.memory_space<vmem>>, vector<8x64xf32>
    %cst_90 = arith.constant dense<0.000000e+00> : vector<4x64xf32>
    %93 = tpu.matmul %91, %92, %cst_90 {dimension_numbers = #tpu.dot_dimension_numbers<[1], [0], [0], [1], [0, 0, 1, 1], [], []>} : vector<4x8xf32>, vector<8x64xf32>, vector<4x64xf32> -> vector<4x64xf32>
    %94 = arith.addf %90, %93 : vector<4x64xf32>
    %c0_91 = arith.constant 0 : index
    %c0_92 = arith.constant 0 : index
    %95 = vector.load %arg12[%c0_91, %c0_92] : memref<4x1xf32, #tpu.memory_space<vmem>>, vector<4x1xf32>
    %96 = vector.broadcast %95 : vector<4x1xf32> to vector<4x64xf32>
    %97 = arith.addf %94, %96 : vector<4x64xf32>
    %c0_93 = arith.constant 0 : index
    %c0_94 = arith.constant 0 : index
    %98 = vector.load %arg11[%c0_93, %c0_94] : memref<16x4xf32, #tpu.memory_space<vmem>>, vector<16x4xf32>
    %cst_95 = arith.constant dense<0.000000e+00> : vector<16x64xf32>
    %99 = tpu.matmul %98, %97, %cst_95 {dimension_numbers = #tpu.dot_dimension_numbers<[1], [0], [0], [1], [0, 0, 1, 1], [], []>} : vector<16x4xf32>, vector<4x64xf32>, vector<16x64xf32> -> vector<16x64xf32>
    %100 = vector.extract_strided_slice %99 {offsets = [0, 0], sizes = [8, 64], strides = [1, 1]} : vector<16x64xf32> to vector<8x64xf32>
    %c0_96 = arith.constant 0 : index
    %c0_97 = arith.constant 0 : index
    %c16 = arith.constant 16 : index
    %c0_98 = arith.constant 0 : index
    %101 = vector.load %arg13[%c0_96, %c0_97, %c16, %c0_98] : memref<1x2x32x64xf32, #tpu.memory_space<vmem>>, vector<1x1x8x64xf32>
    %102 = vector.shape_cast %101 : vector<1x1x8x64xf32> to vector<8x64xf32>
    %103 = vector.shape_cast %100 : vector<8x64xf32> to vector<1x1x8x64xf32>
    tpu.vector_store %arg13[%c0_96, %c0_97, %c16, %c0_98], %103 {strides = array<i32>} : memref<1x2x32x64xf32, #tpu.memory_space<vmem>>, vector<1x1x8x64xf32>,
    %104 = vector.extract_strided_slice %99 {offsets = [8, 0], sizes = [8, 64], strides = [1, 1]} : vector<16x64xf32> to vector<8x64xf32>
    %c0_99 = arith.constant 0 : index
    %c1_100 = arith.constant 1 : index
    %c16_101 = arith.constant 16 : index
    %c0_102 = arith.constant 0 : index
    %105 = vector.load %arg13[%c0_99, %c1_100, %c16_101, %c0_102] : memref<1x2x32x64xf32, #tpu.memory_space<vmem>>, vector<1x1x8x64xf32>
    %106 = vector.shape_cast %105 : vector<1x1x8x64xf32> to vector<8x64xf32>
    %107 = vector.shape_cast %104 : vector<8x64xf32> to vector<1x1x8x64xf32>
    tpu.vector_store %arg13[%c0_99, %c1_100, %c16_101, %c0_102], %107 {strides = array<i32>} : memref<1x2x32x64xf32, #tpu.memory_space<vmem>>, vector<1x1x8x64xf32>,
    %c0_103 = arith.constant 0 : index
    %c1_104 = arith.constant 1 : index
    %c0_105 = arith.constant 0 : index
    %c0_106 = arith.constant 0 : index
    %108 = vector.load %arg3[%c0_103, %c1_104, %c0_105, %c0_106] : memref<1x2x8x4xf32, #tpu.memory_space<vmem>>, vector<1x1x8x4xf32>
    %109 = vector.shape_cast %108 : vector<1x1x8x4xf32> to vector<8x4xf32>
    %c0_107 = arith.constant 0 : index
    %c3 = arith.constant 3 : index
    %c0_108 = arith.constant 0 : index
    %c0_109 = arith.constant 0 : index
    %110 = vector.load %arg4[%c0_107, %c3, %c0_108, %c0_109] : memref<1x4x8x8xf32, #tpu.memory_space<vmem>>, vector<1x1x8x8xf32>
    %111 = vector.shape_cast %110 : vector<1x1x8x8xf32> to vector<8x8xf32>
    %112 = vector.extract_strided_slice %109 {offsets = [0, 0], sizes = [4, 4], strides = [1, 1]} : vector<8x4xf32> to vector<4x4xf32>
    %c0_110 = arith.constant 0 : index
    %c0_111 = arith.constant 0 : index
    %113 = vector.load %arg7[%c0_110, %c0_111] : memref<4x64xf32, #tpu.memory_space<vmem>>, vector<4x64xf32>
    %cst_112 = arith.constant dense<0.000000e+00> : vector<4x64xf32>
    %114 = tpu.matmul %112, %113, %cst_112 {dimension_numbers = #tpu.dot_dimension_numbers<[1], [0], [0], [1], [0, 0, 1, 1], [], []>} : vector<4x4xf32>, vector<4x64xf32>, vector<4x64xf32> -> vector<4x64xf32>
    %115 = arith.addf %8, %114 : vector<4x64xf32>
    %116 = vector.extract_strided_slice %109 {offsets = [4, 0], sizes = [4, 4], strides = [1, 1]} : vector<8x4xf32> to vector<4x4xf32>
    %c0_113 = arith.constant 0 : index
    %c0_114 = arith.constant 0 : index
    %117 = vector.load %arg8[%c0_113, %c0_114] : memref<4x64xf32, #tpu.memory_space<vmem>>, vector<4x64xf32>
    %cst_115 = arith.constant dense<0.000000e+00> : vector<4x64xf32>
    %118 = tpu.matmul %116, %117, %cst_115 {dimension_numbers = #tpu.dot_dimension_numbers<[1], [0], [0], [1], [0, 0, 1, 1], [], []>} : vector<4x4xf32>, vector<4x64xf32>, vector<4x64xf32> -> vector<4x64xf32>
    %119 = arith.addf %115, %118 : vector<4x64xf32>
    %120 = vector.extract_strided_slice %111 {offsets = [0, 0], sizes = [4, 8], strides = [1, 1]} : vector<8x8xf32> to vector<4x8xf32>
    %c0_116 = arith.constant 0 : index
    %c0_117 = arith.constant 0 : index
    %121 = vector.load %arg9[%c0_116, %c0_117] : memref<8x64xf32, #tpu.memory_space<vmem>>, vector<8x64xf32>
    %cst_118 = arith.constant dense<0.000000e+00> : vector<4x64xf32>
    %122 = tpu.matmul %120, %121, %cst_118 {dimension_numbers = #tpu.dot_dimension_numbers<[1], [0], [0], [1], [0, 0, 1, 1], [], []>} : vector<4x8xf32>, vector<8x64xf32>, vector<4x64xf32> -> vector<4x64xf32>
    %123 = arith.addf %119, %122 : vector<4x64xf32>
    %124 = vector.extract_strided_slice %111 {offsets = [4, 0], sizes = [4, 8], strides = [1, 1]} : vector<8x8xf32> to vector<4x8xf32>
    %c0_119 = arith.constant 0 : index
    %c0_120 = arith.constant 0 : index
    %125 = vector.load %arg10[%c0_119, %c0_120] : memref<8x64xf32, #tpu.memory_space<vmem>>, vector<8x64xf32>
    %cst_121 = arith.constant dense<0.000000e+00> : vector<4x64xf32>
    %126 = tpu.matmul %124, %125, %cst_121 {dimension_numbers = #tpu.dot_dimension_numbers<[1], [0], [0], [1], [0, 0, 1, 1], [], []>} : vector<4x8xf32>, vector<8x64xf32>, vector<4x64xf32> -> vector<4x64xf32>
    %127 = arith.addf %123, %126 : vector<4x64xf32>
    %c0_122 = arith.constant 0 : index
    %c0_123 = arith.constant 0 : index
    %128 = vector.load %arg12[%c0_122, %c0_123] : memref<4x1xf32, #tpu.memory_space<vmem>>, vector<4x1xf32>
    %129 = vector.broadcast %128 : vector<4x1xf32> to vector<4x64xf32>
    %130 = arith.addf %127, %129 : vector<4x64xf32>
    %c0_124 = arith.constant 0 : index
    %c0_125 = arith.constant 0 : index
    %131 = vector.load %arg11[%c0_124, %c0_125] : memref<16x4xf32, #tpu.memory_space<vmem>>, vector<16x4xf32>
    %cst_126 = arith.constant dense<0.000000e+00> : vector<16x64xf32>
    %132 = tpu.matmul %131, %130, %cst_126 {dimension_numbers = #tpu.dot_dimension_numbers<[1], [0], [0], [1], [0, 0, 1, 1], [], []>} : vector<16x4xf32>, vector<4x64xf32>, vector<16x64xf32> -> vector<16x64xf32>
    %133 = vector.extract_strided_slice %132 {offsets = [0, 0], sizes = [8, 64], strides = [1, 1]} : vector<16x64xf32> to vector<8x64xf32>
    %c0_127 = arith.constant 0 : index
    %c0_128 = arith.constant 0 : index
    %c24 = arith.constant 24 : index
    %c0_129 = arith.constant 0 : index
    %134 = vector.load %arg13[%c0_127, %c0_128, %c24, %c0_129] : memref<1x2x32x64xf32, #tpu.memory_space<vmem>>, vector<1x1x8x64xf32>
    %135 = vector.shape_cast %134 : vector<1x1x8x64xf32> to vector<8x64xf32>
    %136 = vector.shape_cast %133 : vector<8x64xf32> to vector<1x1x8x64xf32>
    tpu.vector_store %arg13[%c0_127, %c0_128, %c24, %c0_129], %136 {strides = array<i32>} : memref<1x2x32x64xf32, #tpu.memory_space<vmem>>, vector<1x1x8x64xf32>,
    %137 = vector.extract_strided_slice %132 {offsets = [8, 0], sizes = [8, 64], strides = [1, 1]} : vector<16x64xf32> to vector<8x64xf32>
    %c0_130 = arith.constant 0 : index
    %c1_131 = arith.constant 1 : index
    %c24_132 = arith.constant 24 : index
    %c0_133 = arith.constant 0 : index
    %138 = vector.load %arg13[%c0_130, %c1_131, %c24_132, %c0_133] : memref<1x2x32x64xf32, #tpu.memory_space<vmem>>, vector<1x1x8x64xf32>
    %139 = vector.shape_cast %138 : vector<1x1x8x64xf32> to vector<8x64xf32>
    %140 = vector.shape_cast %137 : vector<8x64xf32> to vector<1x1x8x64xf32>
    tpu.vector_store %arg13[%c0_130, %c1_131, %c24_132, %c0_133], %140 {strides = array<i32>} : memref<1x2x32x64xf32, #tpu.memory_space<vmem>>, vector<1x1x8x64xf32>,
    return
  }
  func.func @transform_0(%arg0: i32, %arg1: i32) -> (i32, i32, i32, i32) {
    %c0_i32 = arith.constant 0 : i32
    %c0_i32_0 = arith.constant 0 : i32
    %c0_i32_1 = arith.constant 0 : i32
    return %arg0, %arg1, %c0_i32, %c0_i32_0 : i32, i32, i32, i32
  }
  func.func @transform_1(%arg0: i32, %arg1: i32) -> (i32, i32, i32, i32) {
    %c0_i32 = arith.constant 0 : i32
    %c0_i32_0 = arith.constant 0 : i32
    %c0_i32_1 = arith.constant 0 : i32
    return %arg0, %arg1, %c0_i32, %c0_i32_0 : i32, i32, i32, i32
  }
  func.func @transform_2(%arg0: i32, %arg1: i32) -> (i32, i32, i32, i32) {
    %c0_i32 = arith.constant 0 : i32
    %c0_i32_0 = arith.constant 0 : i32
    %c0_i32_1 = arith.constant 0 : i32
    return %arg0, %arg1, %c0_i32, %c0_i32_0 : i32, i32, i32, i32
  }
  func.func @transform_3(%arg0: i32, %arg1: i32) -> (i32, i32) {
    %c0_i32 = arith.constant 0 : i32
    %c0_i32_0 = arith.constant 0 : i32
    %c0_i32_1 = arith.constant 0 : i32
    return %c0_i32, %c0_i32_0 : i32, i32
  }
  func.func @transform_4(%arg0: i32, %arg1: i32) -> (i32, i32) {
    %c0_i32 = arith.constant 0 : i32
    %c0_i32_0 = arith.constant 0 : i32
    %c0_i32_1 = arith.constant 0 : i32
    return %c0_i32, %c0_i32_0 : i32, i32
  }
  func.func @transform_5(%arg0: i32, %arg1: i32) -> (i32, i32) {
    %c0_i32 = arith.constant 0 : i32
    %c0_i32_0 = arith.constant 0 : i32
    %c0_i32_1 = arith.constant 0 : i32
    return %c0_i32, %c0_i32_0 : i32, i32
  }
  func.func @transform_6(%arg0: i32, %arg1: i32) -> (i32, i32) {
    %c0_i32 = arith.constant 0 : i32
    %c0_i32_0 = arith.constant 0 : i32
    %c0_i32_1 = arith.constant 0 : i32
    return %c0_i32, %c0_i32_0 : i32, i32
  }
  func.func @transform_7(%arg0: i32, %arg1: i32) -> (i32, i32) {
    %c0_i32 = arith.constant 0 : i32
    %c0_i32_0 = arith.constant 0 : i32
    %c0_i32_1 = arith.constant 0 : i32
    return %c0_i32, %c0_i32_0 : i32, i32
  }
  func.func @transform_8(%arg0: i32, %arg1: i32) -> (i32, i32) {
    %c0_i32 = arith.constant 0 : i32
    %c0_i32_0 = arith.constant 0 : i32
    %c0_i32_1 = arith.constant 0 : i32
    return %c0_i32, %c0_i32_0 : i32, i32
  }
  func.func @transform_9(%arg0: i32, %arg1: i32) -> (i32, i32) {
    %c0_i32 = arith.constant 0 : i32
    %c0_i32_0 = arith.constant 0 : i32
    %c0_i32_1 = arith.constant 0 : i32
    return %c0_i32, %c0_i32_0 : i32, i32
  }
  func.func @transform_10(%arg0: i32, %arg1: i32) -> (i32, i32) {
    %c0_i32 = arith.constant 0 : i32
    %c0_i32_0 = arith.constant 0 : i32
    %c0_i32_1 = arith.constant 0 : i32
    return %c0_i32, %c0_i32_0 : i32, i32
  }
  func.func @transform_11(%arg0: i32, %arg1: i32) -> (i32, i32, i32, i32) {
    %c0_i32 = arith.constant 0 : i32
    %c0_i32_0 = arith.constant 0 : i32
    %c0_i32_1 = arith.constant 0 : i32
    return %arg0, %c0_i32, %arg1, %c0_i32_0 : i32, i32, i32, i32
  }
}

</mosaic_0001>

<bundles_post_ra>
// kernel: _lambda_.5
= control target key start
LH: loop header
LB: loop body
LE: loop exit
PB: predicated region body
PF: predicated region fallthrough
CT: control target
= control target key end

     0   :  { %s548_s9 = smov 0   ;;  %s647_s0 = inlined_call_operand.vmem [shape: f32[2,512,16], index: 0, kind: input, shape index: {}]   ;;  %s648_s1 = inlined_call_operand.vmem [shape: f32[8,512], index: 1, kind: input, shape index: {}]   ;;  %s649_s2 = inlined_call_operand.vmem [shape: f32[2,4,8,4], index: 2, kind: output, shape index: {}]  }
   0x1 LB: > { %s425_s10 = sadd.s32 4294967295, %s528_s9   ;;  %p429_p0 = scmp.ge.s32.totalorder %s528_s9, 1  ;;  %s528_s9 = sphi %s548_s9, %s12_s9  }
   0x2   : > { %p112_p1 = scmp.lt.s32.totalorder %s528_s9, 3 }
   0x4   : > { %p113_p2 = pnand %p429_p0, %p112_p1 }
   0x5   : > { %p134_p3 = scmp.lt.s32.totalorder (!%p113_p2), %s425_s10, 1  ;;  %s530_s27 = smov (!%p113_p2), 116  }
   0x6   : > { %116 = sbr.rel (%p113_p2) target bundleno = 368 (0x170), region = 28  ;;  %s531_s28 = smov (!%p113_p2), 124  }
   0x7   : > { %s532_s29 = smov (!%p113_p2), 120  }
   0xb   : > { %v145_v0 = vld [vmem:[%s648_s1 + $0x8] sm:$0xff]  ;;  %v147_v1 = vld [vmem:[%s648_s1 + $0x18] sm:$0xff]  ;;  %s651_s10 = smov (!%p134_p3, %s425_s10), 1  ;;  %vm352_vm0 = vcmask 31744  }
   0xc   : > { %276 = vmatprep.mubr.f32.mxu0 %v145_v0  ;;  %346 = vmatprep.mubr.f32.mxu1 %v147_v1  ;;  %s439_s15 = sshll.u32 %s651_s10, 9  ;;  %s440_s23 = sshll.u32 %s651_s10, 5 }
   0xd   : > { %s568_s18 = scalar_lea.vmem %s647_s0, %s439_s15  ;;  %s143_s26 = scalar_lea.vmem %s649_s2, %s440_s23 }
   0xe   : > { %v179_v2 = vld [vmem:[%s568_s18 + $0xf8] sm:$0xff]  ;;  %v178_v6 = vld [vmem:[%s568_s18 + $0xf0] sm:$0xff]  ;;  %v177_v10 = vld [vmem:[%s568_s18 + $0xe8] sm:$0xff] }
   0xf   : > { %v211_v3 = vld [vmem:[%s568_s18 + $0x1f8] sm:$0xff]  ;;  %441 = vmatprep.subr.mxu0 %v179_v2  ;;  %v210_v7 = vld [vmem:[%s568_s18 + $0x1f0] sm:$0xff]  ;;  %v209_v11 = vld [vmem:[%s568_s18 + $0x1e8] sm:$0xff] }
  0x10   : > { %v163_v4 = vld [vmem:[%s568_s18 + $0x78] sm:$0xff]  ;;  %476 = vmatprep.subr.mxu1 %v211_v3  ;;  %v162_v8 = vld [vmem:[%s568_s18 + $0x70] sm:$0xff]  ;;  %v161_v12 = vld [vmem:[%s568_s18 + $0x68] sm:$0xff] }
  0x11   : > { %v195_v5 = vld [vmem:[%s568_s18 + $0x178] sm:$0xff]  ;;  %442 = vmatpush3.msra.mxu0 %v163_v4  ;;  %v194_v9 = vld [vmem:[%s568_s18 + $0x170] sm:$0xff]  ;;  %v193_v13 = vld [vmem:[%s568_s18 + $0x168] sm:$0xff] }
  0x12   : > { %477 = vmatpush3.msra.mxu1 %v195_v5  ;;  %443 = vmatprep.subr.mxu0 %v178_v6  ;;  %v176_v14 = vld [vmem:[%s568_s18 + $0xe0] sm:$0xff]  ;;  %v175_v18 = vld [vmem:[%s568_s18 + $0xd8] sm:$0xff]  ;;  %v174_v22 = vld [vmem:[%s568_s18 + $0xd0] sm:$0xff] }
  0x13   : > { %478 = vmatprep.subr.mxu1 %v210_v7  ;;  %444 = vmatpush3.msra.mxu0 %v162_v8  ;;  %v208_v15 = vld [vmem:[%s568_s18 + $0x1e0] sm:$0xff]  ;;  %v207_v19 = vld [vmem:[%s568_s18 + $0x1d8] sm:$0xff]  ;;  %v206_v23 = vld [vmem:[%s568_s18 + $0x1d0] sm:$0xff] }
  0x14   : > { %479 = vmatpush3.msra.mxu1 %v194_v9  ;;  %445 = vmatprep.subr.mxu0 %v177_v10  ;;  %v160_v16 = vld [vmem:[%s568_s18 + $0x60] sm:$0xff]  ;;  %v159_v20 = vld [vmem:[%s568_s18 + $0x58] sm:$0xff]  ;;  %v158_v24 = vld [vmem:[%s568_s18 + $0x50] sm:$0xff] }
  0x15   : > { %480 = vmatprep.subr.mxu1 %v209_v11  ;;  %v192_v17 = vld [vmem:[%s568_s18 + $0x160] sm:$0xff]  ;;  %446 = vmatpush3.msra.mxu0 %v161_v12  ;;  %v191_v21 = vld [vmem:[%s568_s18 + $0x158] sm:$0xff]  ;;  %v190_v25 = vld [vmem:[%s568_s18 + $0x150] sm:$0xff] }
  0x16   : > { %481 = vmatpush3.msra.mxu1 %v193_v13  ;;  %447 = vmatprep.subr.mxu0 %v176_v14  ;;  %v173_v26 = vld [vmem:[%s568_s18 + $0xc8] sm:$0xff]  ;;  %v172_v30 = vld [vmem:[%s568_s18 + $0xc0] sm:$0xff]  ;;  %v171_v34 = vld [vmem:[%s568_s18 + $0xb8] sm:$0xff] }
  0x17   : > { %482 = vmatprep.subr.mxu1 %v208_v15  ;;  %448 = vmatpush3.msra.mxu0 %v160_v16  ;;  %v205_v27 = vld [vmem:[%s568_s18 + $0x1c8] sm:$0xff]  ;;  %v204_v31 = vld [vmem:[%s568_s18 + $0x1c0] sm:$0xff]  ;;  %v203_v35 = vld [vmem:[%s568_s18 + $0x1b8] sm:$0xff] }
  0x18   : > { %483 = vmatpush3.msra.mxu1 %v192_v17  ;;  %449 = vmatprep.subr.mxu0 %v175_v18  ;;  %v157_v28 = vld [vmem:[%s568_s18 + $0x48] sm:$0xff]  ;;  %v156_v32 = vld [vmem:[%s568_s18 + $0x40] sm:$0xff]  ;;  %v155_v36 = vld [vmem:[%s568_s18 + $0x38] sm:$0xff] }
  0x19   : > { %484 = vmatprep.subr.mxu1 %v207_v19  ;;  %450 = vmatpush3.msra.mxu0 %v159_v20  ;;  %v189_v29 = vld [vmem:[%s568_s18 + $0x148] sm:$0xff]  ;;  %v188_v33 = vld [vmem:[%s568_s18 + $0x140] sm:$0xff]  ;;  %v187_v37 = vld [vmem:[%s568_s18 + $0x138] sm:$0xff] }
  0x1a   : > { %485 = vmatpush3.msra.mxu1 %v191_v21  ;;  %451 = vmatprep.subr.mxu0 %v174_v22  ;;  %v170_v38 = vld [vmem:[%s568_s18 + $0xb0] sm:$0xff]  ;;  %v169_v42 = vld [vmem:[%s568_s18 + $0xa8] sm:$0xff]  ;;  %v168_v46 = vld [vmem:[%s568_s18 + $0xa0] sm:$0xff] }
  0x1b   : > { %486 = vmatprep.subr.mxu1 %v206_v23  ;;  %452 = vmatpush3.msra.mxu0 %v158_v24  ;;  %v202_v39 = vld [vmem:[%s568_s18 + $0x1b0] sm:$0xff]  ;;  %v201_v43 = vld [vmem:[%s568_s18 + $0x1a8] sm:$0xff]  ;;  %v200_v47 = vld [vmem:[%s568_s18 + $0x1a0] sm:$0xff] }
  0x1c   : > { %487 = vmatpush3.msra.mxu1 %v190_v25  ;;  %453 = vmatprep.subr.mxu0 %v173_v26  ;;  %v154_v40 = vld [vmem:[%s568_s18 + $0x30] sm:$0xff]  ;;  %v153_v44 = vld [vmem:[%s568_s18 + $0x28] sm:$0xff]  ;;  %v152_v48 = vld [vmem:[%s568_s18 + $0x20] sm:$0xff] }
  0x1d   : > { %488 = vmatprep.subr.mxu1 %v205_v27  ;;  %454 = vmatpush3.msra.mxu0 %v157_v28  ;;  %v186_v41 = vld [vmem:[%s568_s18 + $0x130] sm:$0xff]  ;;  %v185_v45 = vld [vmem:[%s568_s18 + $0x128] sm:$0xff]  ;;  %v184_v49 = vld [vmem:[%s568_s18 + $0x120] sm:$0xff] }
  0x1e   : > { %489 = vmatpush3.msra.mxu1 %v189_v29  ;;  %455 = vmatprep.subr.mxu0 %v172_v30  ;;  %v167_v50 = vld [vmem:[%s568_s18 + $0x98] sm:$0xff]  ;;  %v166_v54 = vld [vmem:[%s568_s18 + $0x90] sm:$0xff]  ;;  %v165_v58 = vld [vmem:[%s568_s18 + $0x88] sm:$0xff] }
  0x1f   : > { %490 = vmatprep.subr.mxu1 %v204_v31  ;;  %456 = vmatpush3.msra.mxu0 %v156_v32  ;;  %v199_v51 = vld [vmem:[%s568_s18 + $0x198] sm:$0xff]  ;;  %v198_v55 = vld [vmem:[%s568_s18 + $0x190] sm:$0xff]  ;;  %v197_v59 = vld [vmem:[%s568_s18 + $0x188] sm:$0xff] }
  0x20   : > { %491 = vmatpush3.msra.mxu1 %v188_v33  ;;  %457 = vmatprep.subr.mxu0 %v171_v34  ;;  %v151_v52 = vld [vmem:[%s568_s18 + $0x18] sm:$0xff]  ;;  %v150_v56 = vld [vmem:[%s568_s18 + $0x10] sm:$0xff]  ;;  %v149_v60 = vld [vmem:[%s568_s18 + $0x8] sm:$0xff] }
  0x21   : > { %492 = vmatprep.subr.mxu1 %v203_v35  ;;  %458 = vmatpush3.msra.mxu0 %v155_v36  ;;  %v183_v53 = vld [vmem:[%s568_s18 + $0x118] sm:$0xff]  ;;  %v182_v57 = vld [vmem:[%s568_s18 + $0x110] sm:$0xff]  ;;  %v181_v61 = vld [vmem:[%s568_s18 + $0x108] sm:$0xff] }
  0x22   : > { %493 = vmatpush3.msra.mxu1 %v187_v37  ;;  %459 = vmatprep.subr.mxu0 %v170_v38  ;;  %v164_v62 = vld [vmem:[%s568_s18 + $0x80] sm:$0xff]  ;;  %v146_v3 = vld [vmem:[%s648_s1 + $0x10] sm:$0xff] }
  0x23   : > { %494 = vmatprep.subr.mxu1 %v202_v39  ;;  %460 = vmatpush3.msra.mxu0 %v154_v40  ;;  %v196_v63 = vld [vmem:[%s568_s18 + $0x180] sm:$0xff] }
  0x24   : > { %495 = vmatpush3.msra.mxu1 %v186_v41  ;;  %461 = vmatprep.subr.mxu0 %v169_v42  ;;  %v148_v0 = vld [vmem:[%s568_s18] sm:$0xff] }
  0x25   : > { %496 = vmatprep.subr.mxu1 %v201_v43  ;;  %462 = vmatpush3.msra.mxu0 %v153_v44  ;;  %v180_v1 = vld [vmem:[%s568_s18 + $0x100] sm:$0xff] }
  0x26   : > { %497 = vmatpush3.msra.mxu1 %v185_v45  ;;  %463 = vmatprep.subr.mxu0 %v168_v46  ;;  %v144_v2 = vld [vmem:[%s648_s1] sm:$0xff] }
  0x27   : > { %498 = vmatprep.subr.mxu1 %v200_v47  ;;  %464 = vmatpush3.msra.mxu0 %v152_v48 }
  0x28   : > { %499 = vmatpush3.msra.mxu1 %v184_v49  ;;  %465 = vmatprep.subr.mxu0 %v167_v50 }
  0x29   : > { %500 = vmatprep.subr.mxu1 %v199_v51  ;;  %466 = vmatpush3.msra.mxu0 %v151_v52 }
  0x2a   : > { %501 = vmatpush3.msra.mxu1 %v183_v53  ;;  %467 = vmatprep.subr.mxu0 %v166_v54 }
  0x2b   : > { %502 = vmatprep.subr.mxu1 %v198_v55  ;;  %468 = vmatpush3.msra.mxu0 %v150_v56 }
  0x2c   : > { %503 = vmatpush3.msra.mxu1 %v182_v57  ;;  %469 = vmatprep.subr.mxu0 %v165_v58 }
  0x2d   : > { %504 = vmatprep.subr.mxu1 %v197_v59  ;;  %470 = vmatpush3.msra.mxu0 %v149_v60 }
  0x2e   : > { %505 = vmatpush3.msra.mxu1 %v181_v61  ;;  %471 = vmatprep.subr.mxu0 %v164_v62 }
  0x2f   : > { %506 = vmatprep.subr.mxu1 %v196_v63  ;;  %472 = vmatpush3.msra.mxu0 %v148_v0 }
  0x30   : > { %507 = vmatpush3.msra.mxu1 %v180_v1  ;;  %277 = vmatmul.mubr.f32.vlgmr.msra.gmra.mxu0 %v144_v2 }
  0x31   : > { %347 = vmatmul.mubr.f32.vlgmr.msra.gmra.mxu1 %v146_v3 }
  0xf0   : > { %v473_v4 = vpop.f32.mrf.mxu0 }
  0xf1   : > { %v508_v5 = vpop.f32.mrf.mxu1 }
  0xf2   : > { %v474_v6 = vpop.f32.mrf.mxu0 }
  0xf3   : > { %v509_v7 = vpop.f32.mrf.mxu1  ;;  %v475_v8 = vadd.f32 %v474_v6, %v473_v4 }
  0xf4   : > { %v510_v9 = vadd.f32 %v509_v7, %v508_v5 }
  0xf6   : > { %v349_v10 = vadd.f32 %v510_v9, %v475_v8 }
  0xf8   : > { %365 = vrot.lane.b32.xlu1 %v349_v10, %s530_s27  ;;  %355 = vrot.lane.b32.xlu0 %v349_v10, %s531_s28  ;;  %353 = vst.msk [vmem:[%s143_s26] sm:$0xff] %vm352_vm0, %v349_v10 }
  0xfc   : > { %360 = vrot.lane.b32.xlu0 %v349_v10, %s532_s29 }
 0x16a   : > { %v366_v11 = vpop.permute.xlu1 %365  ;;  %v356_v12 = vpop.permute.xlu0 %355 }
 0x16b   : > { %436 = vst.msk [vmem:[%s143_s26 + $0x18] sm:$0xff] %vm352_vm0, %v366_v11  ;;  %434 = vst.msk [vmem:[%s143_s26 + $0x8] sm:$0xff] %vm352_vm0, %v356_v12 }
 0x16e   : > { %v361_v13 = vpop.permute.xlu0 %360 }
 0x16f   : > { %435 = vst.msk [vmem:[%s143_s26 + $0x10] sm:$0xff] %vm352_vm0, %v361_v13 }
 0x170 PF: > { %s12_s9 = sadd.s32 1, %s528_s9  }
 0x171   : > { %p9_p4 = scmp.ge.s32.totalorder %s12_s9, 4  }
 0x173   :  { %11 = sbr.rel (!%p9_p4) target bundleno = 1 (0x1), region = 61 }

// kernel: _lambda_.6
= control target key start
LH: loop header
LB: loop body
LE: loop exit
PB: predicated region body
PF: predicated region fallthrough
CT: control target
= control target key end

     0   :  { %s441_s9 = smov 0   ;;  %s520_s0 = inlined_call_operand.vmem [shape: f32[2,256,64], index: 0, kind: input, shape index: {}]   ;;  %s521_s1 = inlined_call_operand.vmem [shape: f32[8,256], index: 1, kind: input, shape index: {}]   ;;  %s522_s2 = inlined_call_operand.vmem [shape: f32[2,8,8,8], index: 2, kind: output, shape index: {}]  }
   0x1 LB: > { %s341_s10 = sadd.s32 4294967295, %s417_s9   ;;  %p345_p0 = scmp.ge.s32.totalorder %s417_s9, 1  ;;  %s417_s9 = sphi %s441_s9, %s12_s9  }
   0x2   : > { %p112_p1 = scmp.lt.s32.totalorder %s417_s9, 3 }
   0x4   : > { %p113_p2 = pnand %p345_p0, %p112_p1 }
   0x5   : > { %p134_p3 = scmp.lt.s32.totalorder (!%p113_p2), %s341_s10, 1  ;;  %s419_s23 = smov (!%p113_p2), 104  }
   0x6   : > { %116 = sbr.rel (%p113_p2) target bundleno = 372 (0x174), region = 28  ;;  %s420_s24 = smov (!%p113_p2), 120  }
   0x7   : > { %s421_s25 = smov (!%p113_p2), 96   ;;  %s422_s26 = smov (!%p113_p2), 112  }
   0x8   : > { %s423_s27 = smov (!%p113_p2), 80   ;;  %s424_s28 = smov (!%p113_p2), 88  }
   0x9   : > { %s425_s29 = smov (!%p113_p2), 72  }
   0xb   : > { %v145_v0 = vld [vmem:[%s521_s1 + $0x8] sm:$0xff]  ;;  %s524_s10 = smov (!%p134_p3, %s341_s10), 1  ;;  %v144_v33 = vld [vmem:[%s521_s1] sm:$0xff]  ;;  %vm248_vm0 = vcmask 64512  }
   0xc   : > { %242 = vmatprep.mubr.f32.mxu0 %v145_v0  ;;  %s359_s13 = sshll.u32 %s524_s10, 8  ;;  %s360_s19 = sshll.u32 %s524_s10, 6 }
   0xd   : > { %s458_s16 = scalar_lea.vmem %s520_s0, %s359_s13  ;;  %s499_s22 = scalar_lea.vmem %s522_s2, %s360_s19 }
   0xe   : > { %v177_v1 = vld [vmem:[%s458_s16 + $0xf8] sm:$0xff]  ;;  %v176_v3 = vld [vmem:[%s458_s16 + $0xf0] sm:$0xff]  ;;  %v175_v5 = vld [vmem:[%s458_s16 + $0xe8] sm:$0xff] }
   0xf   : > { %v161_v2 = vld [vmem:[%s458_s16 + $0x78] sm:$0xff]  ;;  %361 = vmatprep.subr.mxu0 %v177_v1  ;;  %v160_v4 = vld [vmem:[%s458_s16 + $0x70] sm:$0xff]  ;;  %v159_v6 = vld [vmem:[%s458_s16 + $0x68] sm:$0xff] }
  0x10   : > { %362 = vmatpush3.msra.mxu0 %v161_v2  ;;  %v174_v7 = vld [vmem:[%s458_s16 + $0xe0] sm:$0xff]  ;;  %v173_v9 = vld [vmem:[%s458_s16 + $0xd8] sm:$0xff]  ;;  %v172_v11 = vld [vmem:[%s458_s16 + $0xd0] sm:$0xff] }
  0x11   : > { %363 = vmatprep.subr.mxu0 %v176_v3  ;;  %v158_v8 = vld [vmem:[%s458_s16 + $0x60] sm:$0xff]  ;;  %v157_v10 = vld [vmem:[%s458_s16 + $0x58] sm:$0xff]  ;;  %v156_v12 = vld [vmem:[%s458_s16 + $0x50] sm:$0xff] }
  0x12   : > { %364 = vmatpush3.msra.mxu0 %v160_v4  ;;  %v171_v13 = vld [vmem:[%s458_s16 + $0xc8] sm:$0xff]  ;;  %v170_v15 = vld [vmem:[%s458_s16 + $0xc0] sm:$0xff]  ;;  %v169_v17 = vld [vmem:[%s458_s16 + $0xb8] sm:$0xff] }
  0x13   : > { %365 = vmatprep.subr.mxu0 %v175_v5  ;;  %v155_v14 = vld [vmem:[%s458_s16 + $0x48] sm:$0xff]  ;;  %v154_v16 = vld [vmem:[%s458_s16 + $0x40] sm:$0xff]  ;;  %v153_v18 = vld [vmem:[%s458_s16 + $0x38] sm:$0xff] }
  0x14   : > { %366 = vmatpush3.msra.mxu0 %v159_v6  ;;  %v168_v19 = vld [vmem:[%s458_s16 + $0xb0] sm:$0xff]  ;;  %v167_v21 = vld [vmem:[%s458_s16 + $0xa8] sm:$0xff]  ;;  %v166_v23 = vld [vmem:[%s458_s16 + $0xa0] sm:$0xff] }
  0x15   : > { %367 = vmatprep.subr.mxu0 %v174_v7  ;;  %v152_v20 = vld [vmem:[%s458_s16 + $0x30] sm:$0xff]  ;;  %v151_v22 = vld [vmem:[%s458_s16 + $0x28] sm:$0xff]  ;;  %v150_v24 = vld [vmem:[%s458_s16 + $0x20] sm:$0xff] }
  0x16   : > { %368 = vmatpush3.msra.mxu0 %v158_v8  ;;  %v165_v25 = vld [vmem:[%s458_s16 + $0x98] sm:$0xff]  ;;  %v164_v27 = vld [vmem:[%s458_s16 + $0x90] sm:$0xff]  ;;  %v163_v29 = vld [vmem:[%s458_s16 + $0x88] sm:$0xff] }
  0x17   : > { %369 = vmatprep.subr.mxu0 %v173_v9  ;;  %v149_v26 = vld [vmem:[%s458_s16 + $0x18] sm:$0xff]  ;;  %v148_v28 = vld [vmem:[%s458_s16 + $0x10] sm:$0xff]  ;;  %v147_v30 = vld [vmem:[%s458_s16 + $0x8] sm:$0xff] }
  0x18   : > { %370 = vmatpush3.msra.mxu0 %v157_v10  ;;  %v162_v31 = vld [vmem:[%s458_s16 + $0x80] sm:$0xff] }
  0x19   : > { %371 = vmatprep.subr.mxu0 %v172_v11  ;;  %v146_v32 = vld [vmem:[%s458_s16] sm:$0xff] }
  0x1a   : > { %372 = vmatpush3.msra.mxu0 %v156_v12 }
  0x1b   : > { %373 = vmatprep.subr.mxu0 %v171_v13 }
  0x1c   : > { %374 = vmatpush3.msra.mxu0 %v155_v14 }
  0x1d   : > { %375 = vmatprep.subr.mxu0 %v170_v15 }
  0x1e   : > { %376 = vmatpush3.msra.mxu0 %v154_v16 }
  0x1f   : > { %377 = vmatprep.subr.mxu0 %v169_v17 }
  0x20   : > { %378 = vmatpush3.msra.mxu0 %v153_v18 }
  0x21   : > { %379 = vmatprep.subr.mxu0 %v168_v19 }
  0x22   : > { %380 = vmatpush3.msra.mxu0 %v152_v20 }
  0x23   : > { %381 = vmatprep.subr.mxu0 %v167_v21 }
  0x24   : > { %382 = vmatpush3.msra.mxu0 %v151_v22 }
  0x25   : > { %383 = vmatprep.subr.mxu0 %v166_v23 }
  0x26   : > { %384 = vmatpush3.msra.mxu0 %v150_v24 }
  0x27   : > { %385 = vmatprep.subr.mxu0 %v165_v25 }
  0x28   : > { %386 = vmatpush3.msra.mxu0 %v149_v26 }
  0x29   : > { %387 = vmatprep.subr.mxu0 %v164_v27 }
  0x2a   : > { %388 = vmatpush3.msra.mxu0 %v148_v28 }
  0x2b   : > { %389 = vmatprep.subr.mxu0 %v163_v29 }
  0x2c   : > { %390 = vmatpush3.msra.mxu0 %v147_v30 }
  0x2d   : > { %391 = vmatprep.subr.mxu0 %v162_v31 }
  0x2e   : > { %392 = vmatpush3.msra.mxu0 %v146_v32 }
  0x2f   : > { %243 = vmatmul.mubr.f32.vlgmr.msra.gmra.mxu0 %v144_v33 }
  0xef   : > { %v393_v34 = vpop.f32.mrf.mxu0 }
  0xf1   : > { %v394_v35 = vpop.f32.mrf.mxu0 }
  0xf2   : > { %v395_v36 = vadd.f32 %v394_v35, %v393_v34 }
  0xf4   : > { %261 = vrot.lane.b32.xlu1 %v395_v36, %s419_s23  ;;  %251 = vrot.lane.b32.xlu0 %v395_v36, %s420_s24  ;;  %249 = vst.msk [vmem:[%s499_s22] sm:$0xff] %vm248_vm0, %v395_v36 }
  0xf8   : > { %266 = vrot.lane.b32.xlu1 %v395_v36, %s421_s25  ;;  %256 = vrot.lane.b32.xlu0 %v395_v36, %s422_s26 }
  0xfc   : > { %276 = vrot.lane.b32.xlu1 %v395_v36, %s423_s27  ;;  %271 = vrot.lane.b32.xlu0 %v395_v36, %s424_s28 }
 0x100   : > { %281 = vrot.lane.b32.xlu0 %v395_v36, %s425_s29 }
 0x166   : > { %v262_v37 = vpop.permute.xlu1 %261  ;;  %v252_v38 = vpop.permute.xlu0 %251 }
 0x167   : > { %352 = vst.msk [vmem:[%s499_s22 + $0x18] sm:$0xff] %vm248_vm0, %v262_v37  ;;  %350 = vst.msk [vmem:[%s499_s22 + $0x8] sm:$0xff] %vm248_vm0, %v252_v38 }
 0x16a   : > { %v267_v39 = vpop.permute.xlu1 %266  ;;  %v257_v40 = vpop.permute.xlu0 %256 }
 0x16b   : > { %353 = vst.msk [vmem:[%s499_s22 + $0x20] sm:$0xff] %vm248_vm0, %v267_v39  ;;  %351 = vst.msk [vmem:[%s499_s22 + $0x10] sm:$0xff] %vm248_vm0, %v257_v40 }
 0x16e   : > { %v277_v41 = vpop.permute.xlu1 %276  ;;  %v272_v42 = vpop.permute.xlu0 %271 }
 0x16f   : > { %355 = vst.msk [vmem:[%s499_s22 + $0x30] sm:$0xff] %vm248_vm0, %v277_v41  ;;  %354 = vst.msk [vmem:[%s499_s22 + $0x28] sm:$0xff] %vm248_vm0, %v272_v42 }
 0x172   : > { %v282_v43 = vpop.permute.xlu0 %281 }
 0x173   : > { %356 = vst.msk [vmem:[%s499_s22 + $0x38] sm:$0xff] %vm248_vm0, %v282_v43 }
 0x174 PF: > { %s12_s9 = sadd.s32 1, %s417_s9  }
 0x175   : > { %p9_p4 = scmp.ge.s32.totalorder %s12_s9, 4  }
 0x177   :  { %11 = sbr.rel (!%p9_p4) target bundleno = 1 (0x1), region = 65 }

// kernel: _lambda_.7
= control target key start
LH: loop header
LB: loop body
LE: loop exit
PB: predicated region body
PF: predicated region fallthrough
CT: control target
= control target key end

     0   :  { %s3239_s0 = inlined_call_operand.vmem [shape: f32[2,2,8,2], index: 0, kind: input, shape index: {}]   ;;  %s3240_s1 = inlined_call_operand.vmem [shape: f32[2,4,8,4], index: 1, kind: input, shape index: {}]   ;;  %s3241_s2 = inlined_call_operand.vmem [shape: f32[2,8,8,8], index: 2, kind: input, shape index: {}]   ;;  %s3242_s3 = inlined_call_operand.vmem [shape: f32[2,64], index: 3, kind: input, shape index: {}]   ;;  %s3243_s4 = inlined_call_operand.vmem [shape: f32[2,64], index: 4, kind: input, shape index: {}]   ;;  %s3244_s5 = inlined_call_operand.vmem [shape: f32[4,64], index: 5, kind: input, shape index: {}]   ;;  %s3245_s6 = inlined_call_operand.vmem [shape: f32[4,64], index: 6, kind: input, shape index: {}]   ;;  %s3246_s7 = inlined_call_operand.vmem [shape: f32[8,64], index: 7, kind: input, shape index: {}]   ;;  %s3247_s8 = inlined_call_operand.vmem [shape: f32[8,64], index: 8, kind: input, shape index: {}]   ;;  %s3248_s9 = inlined_call_operand.vmem [shape: f32[16,4], index: 9, kind: input, shape index: {}]   ;;  %s3249_s10 = inlined_call_operand.vmem [shape: f32[4,1], index: 10, kind: input, shape index: {}]   ;;  %s3250_s11 = inlined_call_operand.hbm [shape: f32[2,2,64,64], index: 11, kind: output, shape index: {}]  }
   0x1   :  { %3256 = sst [smem:[#allocation13_spill]] %s3242_s3 }
   0x2   :  { %3257 = sst [smem:[#allocation14_spill]] %s3243_s4 }
   0x3   :  { %16 = vsyncpa [#allocation3], 0 }
   0x4   :  { %18 = vsyncpa [#allocation3 + $0x1], 0  ;;  %s2872_s17 = smov 0   ;;  %s2874_s18 = smov 0  }
   0x5   :  { %s2876_s19 = smov 0   ;;  %s2878_s20 = smov 0  }
   0x6   :  { %s2880_s21 = smov 0   ;;  %s2882_s22 = smov 0  }
   0x7   :  { %s2884_s23 = smov 0   ;;  %s2886_s24 = smov 0  }
   0x8 LB: > { %3258 = sst [smem:[#allocation7_spill]] %s2780_s19  ;;  %s2418_s25 = sadd.s32 4294967295, %s2800_s24   ;;  %s2800_s24 = sphi %s2886_s24, %s24_s24   ;;  %s2796_s23 = sphi %s2884_s23, %s3274_s23   ;;  %s2792_s22 = sphi %s2882_s22, %s3273_s22   ;;  %s2788_s21 = sphi %s2880_s21, %s3272_s21   ;;  %s2784_s20 = sphi %s2878_s20, %s3271_s20   ;;  %s2780_s19 = sphi %s2876_s19, %s3270_s19   ;;  %s2776_s18 = sphi %s2874_s18, %s3276_s18   ;;  %s2772_s17 = sphi %s2872_s17, %s3275_s17  }
   0x9   : > { %3259 = sst [smem:[#allocation8_spill]] %s2792_s22  ;;  %s2419_s26 = sadd.s32 4294967294, %s2800_s24  }
   0xa   : > { %3260 = sst [smem:[#allocation9_spill]] %s2796_s23  ;;  %s33_s27 = sadd.s32 1, %s2792_s22 }
   0xb   : > { %p34_p0 = scmp.ge.s32.totalorder %s33_s27, 2  ;;  %s36_s28 = sadd.s32 1, %s2796_s23 }
   0xc   : > { %p307_p1 = scmp.ne.s32.totalorder %s2780_s19, %s2776_s18  ;;  %p308_p2 = scmp.eq.s32.totalorder %s2418_s25, 3 }
   0xd   : > { %s3278_s27 = smov (%p34_p0, %s33_s27), 0  ;;  %s3280_s28 = smov (!%p34_p0, %s36_s28), %s2796_s23 }
   0xe   : > { %3261 = sst [smem:[#allocation10_spill]] %s3278_s27  ;;  %s293_s29 = ssub.s32 %s2792_s22, %s3278_s27 }
   0xf   : > { %p2923_p3 = por %p308_p2, %p307_p1  ;;  %p38_p4 = scmp.ge.s32.totalorder %s3280_s28, 2 }
  0x10   : > { %p313_p5 = scmp.ne.s32.totalorder %s2776_s18, %s2772_s17  ;;  %p314_p6 = scmp.eq.s32.totalorder %s2419_s26, 3 }
  0x11   : > { %p2422_p7 = scmp.ge.s32.totalorder %s2800_s24, 1  ;;  %s3282_s28 = smov (%p38_p4, %s3280_s28), 0 }
  0x12   : > { %3263 = sst [smem:[#allocation11_spill]] %s3282_s28  ;;  %p2932_p8 = por %p314_p6, %p313_p5 }
  0x13   : > { %p393_p9 = scmp.lt.s32.totalorder %s2800_s24, 5  ;;  %s292_s13 = ssub.s32 %s2796_s23, %s3282_s28 }
  0x14   : > { %s297_s14 = sadd.s32 1, %s2780_s19  ;;  %s294_s15 = sor.u32 %s293_s29, %s292_s13 }
  0x15   : > { %p394_p10 = pnand %p2422_p7, %p393_p9  ;;  %p295_p11 = scmp.eq.s32.totalorder %s294_s15, 0 }
  0x16   : > { %s3266_s3 = sld [smem:[#allocation13_spill]] (!%p394_p10)  ;;  %p454_p12 = scmp.lt.s32.totalorder (!%p394_p10), %s2788_s21, 1 }
  0x17   : > { %s2941_s16 = scalar_select %p295_p11, %s2780_s19, %s297_s14  }
  0x18   : > { %397 = sbr.rel (%p394_p10) target bundleno = 1074 (0x432), region = 64  ;;  %p456_p13 = scmp.lt.s32.totalorder (!%p394_p10), %s2784_s20, 1 }
  0x19   : > { %3265 = sst [smem:[#allocation12_spill]] %s2941_s16  ;;  %s2426_s26 = sshll.u32 (!%p394_p10), %s2784_s20, 1 }
  0x1a   : > { %s3267_s4 = sld [smem:[#allocation14_spill]] (!%p394_p10)  ;;  %p2963_p0 = scmp.lt.s32.totalorder (!%p394_p10), %s2426_s26, 3 }
  0x1b   : > { %s2974_s23 = sshll.u32 (!%p394_p10), %s2784_s20, 2 }
  0x1c   : > { %p475_p1 = scmp.lt.s32.totalorder (!%p394_p10), %s2974_s23, 7 }
  0x1d   : > { %v484_v0 = vld [vmem:[%s3266_s3] sm:$0x3]  ;;  %vm491_vm0 = vcmask 1041408   ;;  %v2802_v1 = vmov 0.0   ;;  %vm2803_vm1 = vmmov 0   ;;  %s2957_s27 = scalar_select %p454_p12, %s2788_s21, 1 }
  0x1e   : > { %2540 = vmatprep.subr.mxu1 %v2802_v1  ;;  %2542 = vmatprep.mubr.msk.f32.mxu1 %vm2803_vm1, %v2802_v1  ;;  %s457_s14 = scalar_select %p456_p13, %s2784_s20, 1  ;;  %v951_v3 = vld [vmem:[%s3249_s10] sm:$0xf]  ;;  %v2804_v4 = vmov 0   ;;  %vm488_vm2 = vcmask 15360   ;;  %vm647_vm3 = vcmask 1043456  }
  0x1f   : > { %2541 = vmatpush3.msk.msra.mxu1 %vm491_vm0, %v484_v0  ;;  %2535 = vmatprep.subr.mxu0 %v2802_v1  ;;  %s2424_s15 = sshll.u32 %s2957_s27, 1  ;;  %v722_v5 = vld [vmem:[%s3245_s6] sm:$0xf]  ;;  %s3284_s26 = smov (!%p2963_p0, %s2426_s26), 3  ;;  %vm643_vm4 = vcmask 31744   ;;  %vm801_vm5 = vcmask 64512  }
  0x20   : > { %v485_v2 = vld [vmem:[%s3267_s4] sm:$0x3]  ;;  %2537 = vmatprep.mubr.msk.f32.mxu0 %vm2803_vm1, %v2802_v1  ;;  %2550 = vmatprep.subr.mxu1 %v2802_v1  ;;  %s459_s3 = sadd.s32 %s2424_s15, %s457_s14  ;;  %s2427_s4 = sshll.u32 %s2957_s27, 2  ;;  %v3064_v39 = vld [vmem:[%s3248_s9 + $0x8] sm:$0xff]  ;;  %vm1044_vm6 = vcmask 523264  }
  0x21   : > { %2536 = vmatpush3.msk.msra.mxu0 %vm491_vm0, %v485_v2  ;;  %2732 = vset.pattern.permute.xlu0 %v2804_v4  ;;  %s2425_s28 = sshll.u32 %s459_s3, 3  ;;  %v642_v8 = vld [vmem:[%s3244_s5] sm:$0xf]  ;;  %s468_s13 = sadd.s32 %s2427_s4, %s3284_s26 }
  0x22   : > { %2545 = vmatprep.subr.mxu0 %v2802_v1  ;;  %2733 = vset.pattern.permute.xlu1 %v2804_v4  ;;  %s461_s19 = scalar_lea.vmem %s3239_s0, %s2425_s28  ;;  %s2430_s22 = sshll.u32 %s2957_s27, 3  ;;  %v1357_v9 = vld [vmem:[%s3249_s10] sm:$0xf] }
  0x23   : > { %954 = vperm.xlu0 %2732, %v951_v3   ;;  %v483_v6 = vld [vmem:[%s461_s19] sm:$0xff]  ;;  %s476_s3 = scalar_select %p475_p1, %s2974_s23, 7 }
  0x24   : > { %v487_v7 = vrot.slane %v483_v6, 4  ;;  %2543 = vmatmul.mubr.msk.f32.vlgmr.msra.gmra.mxu1 %vm488_vm2, %v483_v6  ;;  %s2428_s19 = sshll.u32 %s468_s13, 3  ;;  %v3017_v11 = vld [vmem:[%s3246_s7] sm:$0xff] }
  0x25   : > { %2551 = vmatpush3.msk.msra.mxu1 %vm647_vm3, %v722_v5  ;;  %2552 = vmatprep.mubr.msk.f32.mxu1 %vm2803_vm1, %v2802_v1  ;;  %s478_s25 = sadd.s32 %s2430_s22, %s476_s3  ;;  %s3002_s4 = scalar_lea.vmem %s3240_s1, %s2428_s19  ;;  %v3022_v13 = vld [vmem:[%s3247_s8] sm:$0xff] }
  0x26   : > { %2538 = vmatmul.mubr.msk.f32.vlgmr.msra.gmra.mxu0 %vm488_vm2, %v487_v7  ;;  %2560 = vmatprep.subr.mxu1 %v2802_v1  ;;  %s2431_s26 = sshll.u32 %s478_s25, 3  ;;  %v640_v10 = vld [vmem:[%s3002_s4] sm:$0xff]  ;;  %v3091_v44 = vld [vmem:[%s3002_s4 + $0x8] sm:$0xff]  ;;  %s451_s22 = sand.u32 1, %s2776_s18  }
  0x27   : > { %2546 = vmatpush3.msk.msra.mxu0 %vm647_vm3, %v642_v8  ;;  %2547 = vmatprep.mubr.msk.f32.mxu0 %vm2803_vm1, %v2802_v1  ;;  %s3010_s3 = scalar_lea.vmem %s3241_s2, %s2431_s26  ;;  %v723_v12 = vrot.slane %v640_v10, 4  ;;  %v1051_v16 = vld [vmem:[%s3244_s5] sm:$0xf]  ;;  %s2423_s25 = sshll.u32 %s451_s22, 6  ;;  %v1535_v2 = vrot.slane %v3091_v44, 4 }
  0x28   : > { %2555 = vmatprep.subr.mxu0 %v2802_v1  ;;  %1360 = vperm.xlu0 %2732, %v1357_v9   ;;  %v641_v14 = vld [vmem:[%s3010_s3] sm:$0xff]  ;;  %v2446_v18 = vld [vmem:[%s3010_s3 + $0x8] sm:$0xff]  ;;  %v2458_v47 = vld [vmem:[%s3010_s3 + $0x10] sm:$0xff]  ;;  %s3112_s29 = scalar_lea.vmem [#allocation2], %s2423_s25  ;;  %s2262_s13 = scalar_lea.sflag [#allocation3], %s451_s22 }
  0x29   : > { %2553 = vmatmul.mubr.msk.f32.vlgmr.msra.gmra.mxu1 %vm643_vm4, %v723_v12  ;;  %v877_v15 = vrot.slane %v641_v14, 4  ;;  %v3050_v17 = vld [vmem:[%s3248_s9] sm:$0xff]  ;;  %v1283_v42 = vrot.slane %v2446_v18, 4  ;;  %v1688_v3 = vrot.slane %v2458_v47, 4  ;;  %v2470_v7 = vld [vmem:[%s3010_s3 + $0x18] sm:$0xff] }
  0x2a   : > { %2548 = vmatmul.mubr.msk.f32.vlgmr.msra.gmra.mxu0 %vm643_vm4, %v640_v10  ;;  %2561 = vmatpush3.msra.mxu1 %v3022_v13  ;;  %v1129_v40 = vld [vmem:[%s3245_s6] sm:$0xf] }
  0x2b   : > { %2556 = vmatpush3.msra.mxu0 %v3017_v11  ;;  %2562 = vmatprep.mubr.msk.f32.mxu1 %vm2803_vm1, %v2802_v1  ;;  %v1456_v43 = vld [vmem:[%s3244_s5] sm:$0xf] }
  0x2c   : > { %2557 = vmatprep.mubr.msk.f32.mxu0 %vm2803_vm1, %v2802_v1  ;;  %2570 = vmatprep.subr.mxu1 %v2802_v1  ;;  %v1762_v48 = vld [vmem:[%s3249_s10] sm:$0xf] }
  0x2d   : > { %2563 = vmatmul.mubr.msk.f32.vlgmr.msra.gmra.mxu1 %vm801_vm5, %v877_v15  ;;  %1765 = vperm.xlu1 %2733, %v1762_v48   ;;  %v2166_v49 = vld [vmem:[%s3249_s10] sm:$0xf] }
  0x2e   : > { %2558 = vmatmul.mubr.msk.f32.vlgmr.msra.gmra.mxu0 %vm801_vm5, %v641_v14  ;;  %2571 = vmatpush3.msk.msra.mxu1 %vm647_vm3, %v1051_v16  ;;  %v1534_v63 = vld [vmem:[%s3245_s6] sm:$0xf] }
  0x2f   : > { %2572 = vmatprep.mubr.msk.f32.mxu1 %vm2803_vm1, %v2802_v1  ;;  %2580 = vmatprep.subr.mxu1 %v2802_v1  ;;  %v1860_v4 = vld [vmem:[%s3244_s5] sm:$0xf] }
  0x30   : > { %2567 = vmatprep.mubr.msk.f32.mxu0 %vm643_vm4, %v3050_v17 }
  0x31   : > { %2573 = vmatmul.mubr.msk.f32.vlgmr.msra.gmra.mxu1 %vm643_vm4, %v640_v10  ;;  %2169 = vperm.xlu1 %2733, %v2166_v49  }
  0x32   : > { %2581 = vmatpush3.msra.mxu1 %v3017_v11  ;;  %2582 = vmatprep.mubr.msk.f32.mxu1 %vm2803_vm1, %v2802_v1 }
  0x35   : > { %2583 = vmatmul.mubr.msk.f32.vlgmr.msra.gmra.mxu1 %vm801_vm5, %v2446_v18 }
  0x36   : > { %2592 = vmatprep.mubr.msk.f32.mxu1 %vm643_vm4, %v3050_v17 }
  0x9e   : > { %v955_v36 = vpop.permute.xlu0 %954 }
  0xa3   : > { %v1361_v59 = vpop.permute.xlu0 %1360 }
  0xe4   : > { %v636_v19 = vpop.f32.mrf.mxu1 }
  0xe6   : > { %v561_v20 = vpop.f32.mrf.mxu0  ;;  %v2544_v21 = vpop.f32.mrf.mxu1 }
  0xe7   : > { %v3058_v23 = vadd.f32 %v636_v19, %v561_v20  ;;  %v1766_v19 = vpop.permute.xlu1 %1765 }
  0xe8   : > { %v2539_v22 = vpop.f32.mrf.mxu0 }
  0xe9   : > { %v795_v25 = vpop.f32.mrf.mxu1 }
  0xea   : > { %v717_v24 = vpop.f32.mrf.mxu0 }
  0xeb   : > { %v721_v26 = vadd.f32 %v717_v24, %v3058_v23  ;;  %v2554_v28 = vpop.f32.mrf.mxu1 }
  0xec   : > { %v2549_v27 = vpop.f32.mrf.mxu0 }
  0xed   : > { %v799_v29 = vadd.f32 %v795_v25, %v721_v26  ;;  %v946_v31 = vpop.f32.mrf.mxu1  ;;  %v2092_v25 = vrot.slane %v2470_v7, 4 }
  0xee   : > { %v871_v30 = vpop.f32.mrf.mxu0 }
  0xef   : > { %v875_v32 = vadd.f32 %v871_v30, %v799_v29  ;;  %v2564_v35 = vpop.f32.mrf.mxu1 }
  0xf0   : > { %v2559_v33 = vpop.f32.mrf.mxu0  ;;  %v2170_v35 = vpop.permute.xlu1 %2169 }
  0xf1   : > { %v950_v34 = vadd.f32 %v946_v31, %v875_v32  ;;  %v1124_v38 = vpop.f32.mrf.mxu1 }
  0xf2   : > { %v1128_v52 = vadd.f32 %v1124_v38, %v3058_v23 }
  0xf3   : > { %v957_v37 = vadd.f32 %v955_v36, %v950_v34  ;;  %v2574_v41 = vpop.f32.mrf.mxu1 }
  0xf5   : > { %2565 = vmatprep.subr.msk.mxu0 %vm647_vm3, %v957_v37  ;;  %v1277_v45 = vpop.f32.mrf.mxu1 }
  0xf6   : > { %2566 = vmatpush3.msk.msra.mxu0 %vm647_vm3, %v957_v37 }
  0xf7   : > { %2568 = vmatmul.mubr.msk.f32.vlgmr.msra.gmra.mxu0 %vm643_vm4, %v3064_v39  ;;  %2575 = vmatprep.subr.mxu0 %v2802_v1  ;;  %v2584_v46 = vpop.f32.mrf.mxu1 }
  0xf8   : > { %2576 = vmatpush3.msk.msra.mxu0 %vm647_vm3, %v1129_v40  ;;  %2577 = vmatprep.mubr.msk.f32.mxu0 %vm2803_vm1, %v2802_v1 }
  0xf9   : > { %2585 = vmatprep.subr.mxu0 %v2802_v1 }
  0xfb   : > { %2578 = vmatmul.mubr.msk.f32.vlgmr.msra.gmra.mxu0 %vm643_vm4, %v723_v12 }
  0xfc   : > { %2586 = vmatpush3.msra.mxu0 %v3022_v13  ;;  %2587 = vmatprep.mubr.msk.f32.mxu0 %vm2803_vm1, %v2802_v1 }
  0xfd   : > { %2595 = vmatprep.subr.mxu0 %v2802_v1 }
  0xff   : > { %2588 = vmatmul.mubr.msk.f32.vlgmr.msra.gmra.mxu0 %vm801_vm5, %v1283_v42 }
 0x100   : > { %2596 = vmatpush3.msk.msra.mxu0 %vm647_vm3, %v1456_v43  ;;  %2597 = vmatprep.mubr.msk.f32.mxu0 %vm2803_vm1, %v2802_v1 }
 0x101   : > { %2605 = vmatprep.subr.mxu0 %v2802_v1 }
 0x103   : > { %2598 = vmatmul.mubr.msk.f32.vlgmr.msra.gmra.mxu0 %vm643_vm4, %v3091_v44 }
 0x104   : > { %2606 = vmatpush3.msra.mxu0 %v3017_v11  ;;  %2607 = vmatprep.mubr.msk.f32.mxu0 %vm2803_vm1, %v2802_v1 }
 0x107   : > { %2608 = vmatmul.mubr.msk.f32.vlgmr.msra.gmra.mxu0 %vm801_vm5, %v2458_v47 }
 0x108   : > { %2617 = vmatprep.mubr.msk.f32.mxu0 %vm643_vm4, %v3050_v17 }
 0x1b7   : > { %v2569_v50 = vpop.f32.mrf.mxu0 }
 0x1b8   : > { %2445 = vst.msk [vmem:[%s3112_s29 + $0x20] sm:$0xff] %vm1044_vm6, %v2569_v50 }
 0x1b9   : > { %v1035_v51 = vpop.f32.mrf.mxu0 }
 0x1ba   : > { %1045 = vst.msk [vmem:[%s3112_s29] sm:$0xff] %vm1044_vm6, %v1035_v51 }
 0x1bb   : > { %v1202_v53 = vpop.f32.mrf.mxu0 }
 0x1bc   : > { %v1206_v54 = vadd.f32 %v1202_v53, %v1128_v52 }
 0x1bd   : > { %v2579_v55 = vpop.f32.mrf.mxu0 }
 0x1be   : > { %v1281_v56 = vadd.f32 %v1277_v45, %v1206_v54 }
 0x1bf   : > { %v1352_v57 = vpop.f32.mrf.mxu0 }
 0x1c0   : > { %v1356_v58 = vadd.f32 %v1352_v57, %v1281_v56 }
 0x1c1   : > { %v2589_v60 = vpop.f32.mrf.mxu0 }
 0x1c2   : > { %v1363_v61 = vadd.f32 %v1361_v59, %v1356_v58 }
 0x1c3   : > { %v1529_v62 = vpop.f32.mrf.mxu0 }
 0x1c4   : > { %2590 = vmatprep.subr.msk.mxu1 %vm647_vm3, %v1363_v61  ;;  %v1533_v10 = vadd.f32 %v1529_v62, %v3058_v23 }
 0x1c5   : > { %2591 = vmatpush3.msk.msra.mxu1 %vm647_vm3, %v1363_v61  ;;  %v2599_v0 = vpop.f32.mrf.mxu0 }
 0x1c6   : > { %2593 = vmatmul.mubr.msk.f32.vlgmr.msra.gmra.mxu1 %vm643_vm4, %v3064_v39  ;;  %2600 = vmatprep.subr.mxu1 %v2802_v1 }
 0x1c7   : > { %2601 = vmatpush3.msk.msra.mxu1 %vm647_vm3, %v1534_v63  ;;  %2602 = vmatprep.mubr.msk.f32.mxu1 %vm2803_vm1, %v2802_v1  ;;  %v1682_v5 = vpop.f32.mrf.mxu0 }
 0x1c8   : > { %2610 = vmatprep.subr.mxu1 %v2802_v1 }
 0x1c9   : > { %v2609_v6 = vpop.f32.mrf.mxu0 }
 0x1ca   : > { %2603 = vmatmul.mubr.msk.f32.vlgmr.msra.gmra.mxu1 %vm643_vm4, %v1535_v2 }
 0x1cb   : > { %2611 = vmatpush3.msra.mxu1 %v3022_v13  ;;  %2612 = vmatprep.mubr.msk.f32.mxu1 %vm2803_vm1, %v2802_v1 }
 0x1cc   : > { %2620 = vmatprep.subr.mxu1 %v2802_v1 }
 0x1ce   : > { %2613 = vmatmul.mubr.msk.f32.vlgmr.msra.gmra.mxu1 %vm801_vm5, %v1688_v3 }
 0x1cf   : > { %2621 = vmatpush3.msk.msra.mxu1 %vm647_vm3, %v1860_v4  ;;  %2622 = vmatprep.mubr.msk.f32.mxu1 %vm2803_vm1, %v2802_v1 }
 0x1d0   : > { %2630 = vmatprep.subr.mxu1 %v2802_v1 }
 0x1d2   : > { %2623 = vmatmul.mubr.msk.f32.vlgmr.msra.gmra.mxu1 %vm643_vm4, %v3091_v44 }
 0x1d3   : > { %2631 = vmatpush3.msra.mxu1 %v3017_v11  ;;  %2632 = vmatprep.mubr.msk.f32.mxu1 %vm2803_vm1, %v2802_v1 }
 0x1d6   : > { %2633 = vmatmul.mubr.msk.f32.vlgmr.msra.gmra.mxu1 %vm801_vm5, %v2470_v7 }
 0x1d7   : > { %2642 = vmatprep.mubr.msk.f32.mxu1 %vm643_vm4, %v3050_v17  ;;  %v1938_v17 = vld [vmem:[%s3245_s6] sm:$0xf] }
 0x286   : > { %v2594_v8 = vpop.f32.mrf.mxu1 }
 0x287   : > { %2456 = vst.msk [vmem:[%s3112_s29 + $0x28] sm:$0xff] %vm1044_vm6, %v2594_v8 }
 0x288   : > { %v1441_v9 = vpop.f32.mrf.mxu1 }
 0x289   : > { %1450 = vst.msk [vmem:[%s3112_s29 + $0x8] sm:$0xff] %vm1044_vm6, %v1441_v9 }
 0x28a   : > { %v1607_v11 = vpop.f32.mrf.mxu1 }
 0x28b   : > { %v1611_v12 = vadd.f32 %v1607_v11, %v1533_v10 }
 0x28c   : > { %v2604_v14 = vpop.f32.mrf.mxu1 }
 0x28d   : > { %v1686_v15 = vadd.f32 %v1682_v5, %v1611_v12 }
 0x28e   : > { %v1757_v16 = vpop.f32.mrf.mxu1 }
 0x28f   : > { %v1761_v18 = vadd.f32 %v1757_v16, %v1686_v15 }
 0x290   : > { %v2614_v20 = vpop.f32.mrf.mxu1 }
 0x291   : > { %v1768_v21 = vadd.f32 %v1766_v19, %v1761_v18 }
 0x292   : > { %v1933_v22 = vpop.f32.mrf.mxu1 }
 0x293   : > { %2615 = vmatprep.subr.msk.mxu0 %vm647_vm3, %v1768_v21  ;;  %v1937_v30 = vadd.f32 %v1933_v22, %v3058_v23 }
 0x294   : > { %2616 = vmatpush3.msk.msra.mxu0 %vm647_vm3, %v1768_v21  ;;  %v2624_v24 = vpop.f32.mrf.mxu1 }
 0x295   : > { %2618 = vmatmul.mubr.msk.f32.vlgmr.msra.gmra.mxu0 %vm643_vm4, %v3064_v39  ;;  %2625 = vmatprep.subr.mxu0 %v2802_v1 }
 0x296   : > { %2626 = vmatpush3.msk.msra.mxu0 %vm647_vm3, %v1938_v17  ;;  %2627 = vmatprep.mubr.msk.f32.mxu0 %vm2803_vm1, %v2802_v1  ;;  %v2086_v26 = vpop.f32.mrf.mxu1 }
 0x297   : > { %2635 = vmatprep.subr.mxu0 %v2802_v1 }
 0x298   : > { %v2634_v27 = vpop.f32.mrf.mxu1 }
 0x299   : > { %2628 = vmatmul.mubr.msk.f32.vlgmr.msra.gmra.mxu0 %vm643_vm4, %v1535_v2 }
 0x29a   : > { %2636 = vmatpush3.msra.mxu0 %v3022_v13  ;;  %2637 = vmatprep.mubr.msk.f32.mxu0 %vm2803_vm1, %v2802_v1 }
 0x29d   : > { %2638 = vmatmul.mubr.msk.f32.vlgmr.msra.gmra.mxu0 %vm801_vm5, %v2092_v25 }
 0x355   : > { %v2619_v28 = vpop.f32.mrf.mxu0 }
 0x356   : > { %2468 = vst.msk [vmem:[%s3112_s29 + $0x30] sm:$0xff] %vm1044_vm6, %v2619_v28 }
 0x357   : > { %v1846_v29 = vpop.f32.mrf.mxu0 }
 0x358   : > { %1855 = vst.msk [vmem:[%s3112_s29 + $0x10] sm:$0xff] %vm1044_vm6, %v1846_v29 }
 0x359   : > { %v2011_v31 = vpop.f32.mrf.mxu0 }
 0x35a   : > { %v2015_v13 = vadd.f32 %v2011_v31, %v1937_v30 }
 0x35b   : > { %v2629_v32 = vpop.f32.mrf.mxu0 }
 0x35c   : > { %v2090_v33 = vadd.f32 %v2086_v26, %v2015_v13 }
 0x35d   : > { %v2161_v1 = vpop.f32.mrf.mxu0 }
 0x35e   : > { %v2165_v34 = vadd.f32 %v2161_v1, %v2090_v33 }
 0x35f   : > { %v2639_v36 = vpop.f32.mrf.mxu0 }
 0x360   : > { %v2172_v37 = vadd.f32 %v2170_v35, %v2165_v34 }
 0x362   : > { %2640 = vmatprep.subr.msk.mxu1 %vm647_vm3, %v2172_v37 }
 0x363   : > { %2641 = vmatpush3.msk.msra.mxu1 %vm647_vm3, %v2172_v37 }
 0x364   : > { %2643 = vmatmul.mubr.msk.f32.vlgmr.msra.gmra.mxu1 %vm643_vm4, %v3064_v39 }
 0x424   : > { %v2644_v23 = vpop.f32.mrf.mxu1 }
 0x425   : > { %2480 = vst.msk [vmem:[%s3112_s29 + $0x38] sm:$0xff] %vm1044_vm6, %v2644_v23 }
 0x426   : > { %v2250_v38 = vpop.f32.mrf.mxu1 }
 0x427   : > { %2259 = vst.msk [vmem:[%s3112_s29 + $0x18] sm:$0xff] %vm1044_vm6, %v2250_v38 }
 0x428   : > { %s2483_s4 = sshll.u32 %s2788_s21, 4  ;;  %s2287_s28 = sshll.u32 %s3112_s29, 4  ;;  %s2288_s28 = int_to_ptr.vmem [resolvable:$true] %s2287_s28 }
 0x429   : > { %s2274_s16 = sadd.s32 %s2483_s4, %s2974_s23  ;;  %s2805_s22 = smov 512  }
 0x42a   : > { %s2484_s19 = sshll.u32 %s2274_s16, 7  ;;  %2645 = sst [smem:[#allocation5]] (%p2923_p3), %s2805_s22 }
 0x42b   : > { %s2276_s26 = scalar_lea.hbm %s3250_s11, %s2484_s19  ;;  %s2806_s27 = smov 1024  }
 0x42c   : > { %2646 = sst [smem:[#allocation5 + $0x1]] (%p2923_p3), %s2806_s27  ;;  %s2807_s20 = smov 4  }
 0x42d   : > { %2647 = sst [smem:[#allocation5 + $0x2]] (%p2923_p3), %s2807_s20  ;;  %s2808_s21 = smov 128  }
 0x42e   : > { %2648 = sst [smem:[#allocation5 + $0x3]] (%p2923_p3), %s2808_s21  ;;  %s2809_s23 = smov 8  }
 0x42f   : > { %2649 = sst [smem:[#allocation5 + $0x4]] (%p2923_p3), %s2808_s21  ;;  %s2810_s29 = smov 131072  }
 0x430   : > { %2650 = sst [smem:[#allocation5 + $0x5]] (%p2923_p3), %s2809_s23  ;;  %s2811_s3 = smov 0  }
 0x431   : > { %2651 = dma.general (%p2923_p3), %s2288_s28, 1024, %s2276_s26, %s2262_s13, %s2810_s29, [#allocation5], %s2811_s3, 0  }
 0x432 PF: > { %p2657_p2 = scmp.ge.s32.totalorder %s2800_s24, 2  ;;  %s2315_s15 = sand.u32 1, %s2772_s17  }
 0x433   : > { %s2316_s4 = scalar_lea.sflag [#allocation3], %s2315_s15 }
 0x434   : > { %p2654_p4 = pnand %p2657_p2, %p2932_p8 }
 0x436   : > { %p2655_p5 = pneg %p2654_p4 }
 0x438   : > { %2767 = dma.done.wait (%p2655_p5), %s2316_s4, 1024  }
 0x439   : > { %2769 = vsyncadd (%p2655_p5), %s2316_s4, 4294966272  ;;  %s24_s24 = sadd.s32 1, %s2800_s24   ;;  %s3269_s16 = sld [smem:[#allocation7_spill]] }
 0x43a   : > { %p21_p6 = scmp.ge.s32.totalorder %s24_s24, 6   ;;  %s3270_s19 = sld [smem:[#allocation12_spill]] }
 0x43b   : > { %s3271_s20 = sld [smem:[#allocation8_spill]]  ;;  %s3275_s17 = smov %s2776_s18 }
 0x43c   : > { %s3272_s21 = sld [smem:[#allocation9_spill]]  ;;  %23 = sbr.rel (!%p21_p6) target bundleno = 8 (0x8), region = 115 }
 0x43d   : > { %s3273_s22 = sld [smem:[#allocation10_spill]] }
 0x43e   : > { %s3274_s23 = sld [smem:[#allocation11_spill]] }
 0x43f   : > { %s3276_s18 = smov %s3269_s16 }
 0x441   :  { %2321 = vsyncpa [#allocation3], 1 }
 0x442   :  { %2323 = vsyncpa [#allocation3 + $0x1], 1 }

// kernel: _lambda_.4
= control target key start
LH: loop header
LB: loop body
LE: loop exit
PB: predicated region body
PF: predicated region fallthrough
CT: control target
= control target key end

     0   :  { %11 = vsyncpa [#allocation3], 0  ;;  %s3689_s21 = smov 0   ;;  %s5978_s0 = inlined_call_operand.vmem [shape: f32[2,512,4], index: 0, kind: input, shape index: {}]   ;;  %s5979_s1 = inlined_call_operand.vmem [shape: f32[512,512], index: 1, kind: input, shape index: {}]   ;;  %s5980_s2 = inlined_call_operand.vmem [shape: f32[512,1], index: 2, kind: input, shape index: {}]   ;;  %s5981_s3 = inlined_call_operand.hbm [shape: f32[512,512], index: 3, kind: input, shape index: {}]   ;;  %s5982_s4 = inlined_call_operand.vmem [shape: f32[512,1], index: 4, kind: input, shape index: {}]   ;;  %s5983_s5 = inlined_call_operand.vmem [shape: f32[8,512], index: 5, kind: input, shape index: {}]   ;;  %s5984_s6 = inlined_call_operand.vmem [shape: f32[2,2,8,2], index: 6, kind: output, shape index: {}]  }
   0x1 LB: > { %s3695_s22 = sadd.s32 4294967295, %s3646_s21   ;;  %p3500_p0 = scmp.ge.s32.totalorder %s3646_s21, 1  ;;  %s3646_s21 = sphi %s3689_s21, %s17_s21  }
   0x2   : > { %p179_p1 = scmp.lt.s32.totalorder %s3646_s21, 3  ;;  %s3648_s23 = smov [#allocation2]  }
   0x3   : > { %s197_s24 = sshll.u32 %s3648_s23, 4  ;;  %p3592_p3 = scmp.eq.s32.totalorder %s3695_s22, 0  ;;  %s198_s24 = int_to_ptr.vmem [resolvable:$true] %s197_s24 }
   0x4   : > { %p3699_p2 = pnand %p3500_p0, %p179_p1  ;;  %s3621_s26 = scalar_lea.vmem %s198_s24, 32768 }
   0x5   : > { %p3622_p7 = scmp.ne.s32.totalorder %s198_s24, %s3621_s26  ;;  %p3629_p10 = scmp.lt.s32.totalorder %s198_s24, %s198_s24 }
   0x6   : > { %p3588_p4 = pneg %p3699_p2  ;;  %p3630_p11 = scmp.lt.s32.totalorder %s3621_s26, %s3621_s26 }
   0x8   : > { %p3589_p5 = pnand %p3592_p3, %p3588_p4  ;;  %p3631_p12 = por %p3630_p11, %p3629_p10 }
   0xa   : > { %p3612_p6 = pneg %p3589_p5 }
   0xc   : > { %p3624_p8 = pnand %p3622_p7, %p3612_p6 }
   0xe   : > { %p3625_p9 = pneg %p3624_p8 }
  0x10   : > { %p3632_p13 = pnand %p3631_p12, %p3625_p9 }
  0x12   : > { %3635 = shalt.err (!%p3632_p13)
}
  0x13   : > { %s3649_s27 = smov 512   ;;  %s3650_s28 = smov 32  }
  0x14   : > { %3591 = dma.hbm_to_vmem [thread:$0]  (!%p3589_p5), %s5981_s3, 32768, %s198_s24, [#allocation3], %s3649_s27, %s3649_s27, %s3650_s28  }
  0x15   : > { %227 = sbr.rel (%p3699_p2) target bundleno = 1381 (0x565), region = 44 }
  0x1a   : > { %3641 = dma.done.wait (%p3592_p3), [#allocation3], 32768  }
  0x1b   : > { %3643 = vsyncadd (%p3592_p3), [#allocation3], 4294934528  ;;  %p257_p0 = scmp.lt.s32.totalorder %s3695_s22, 1  ;;  %v5985_v0 = vmov 0.0   ;;  %v3652_v1 = vmov 0   ;;  %v602_v38 = vld [vmem:[%s5980_s2 + $0x78] sm:$0xff] }
  0x1c   : > { %971 = vmatprep.subr.mxu0 %v5985_v0  ;;  %1356 = vmatprep.subr.mxu1 %v5985_v0  ;;  %v634_v41 = vld [vmem:[%s5980_s2 + $0x178] sm:$0xff]  ;;  %v601_v44 = vld [vmem:[%s5980_s2 + $0x70] sm:$0xff]  ;;  %v600_v47 = vld [vmem:[%s5980_s2 + $0x68] sm:$0xff]  ;;  %vm3423_vm0 = vcmask 15360   ;;  %s3653_s24 = smov 126  }
  0x1d   : > { %s6158_s22 = smov (!%p257_p0, %s3695_s22), 1  ;;  %3608 = vset.pattern.permute.xlu0 %v3652_v1  ;;  %3609 = vset.pattern.permute.xlu1 %v3652_v1  ;;  %v633_v50 = vld [vmem:[%s5980_s2 + $0x170] sm:$0xff]  ;;  %v599_v53 = vld [vmem:[%s5980_s2 + $0x60] sm:$0xff]  ;;  %v632_v56 = vld [vmem:[%s5980_s2 + $0x168] sm:$0xff] }
  0x1e   : > { %s3512_s7 = sshll.u32 %s6158_s22, 9  ;;  %728 = vperm.xlu0 %3608, %v602_v38   ;;  %888 = vperm.xlu1 %3609, %v634_v41   ;;  %v598_v59 = vld [vmem:[%s5980_s2 + $0x58] sm:$0xff]  ;;  %v631_v62 = vld [vmem:[%s5980_s2 + $0x160] sm:$0xff]  ;;  %v345_v38 = vld [vmem:[%s5979_s1 + $0x70] sm:$0xff]  ;;  %s3513_s18 = sshll.u32 %s6158_s22, 4 }
  0x1f   : > { %s3727_s10 = scalar_lea.vmem %s5978_s0, %s3512_s7  ;;  %v348_v41 = vld [vmem:[%s5979_s1 + $0x88] sm:$0xff]  ;;  %s266_s23 = scalar_lea.vmem %s5984_s6, %s3513_s18 }
  0x20   : > { %v282_v2 = vld [vmem:[%s3727_s10 + $0x78] sm:$0xff]  ;;  %v281_v4 = vld [vmem:[%s3727_s10 + $0x70] sm:$0xff]  ;;  %v280_v6 = vld [vmem:[%s3727_s10 + $0x68] sm:$0xff] }
  0x21   : > { %v314_v3 = vld [vmem:[%s3727_s10 + $0x178] sm:$0xff]  ;;  %972 = vmatpush1.msra.mxu0 %v282_v2  ;;  %v313_v5 = vld [vmem:[%s3727_s10 + $0x170] sm:$0xff]  ;;  %v312_v7 = vld [vmem:[%s3727_s10 + $0x168] sm:$0xff] }
  0x22   : > { %1357 = vmatpush1.msra.mxu1 %v314_v3  ;;  %973 = vmatprep.subr.mxu0 %v5985_v0  ;;  %v279_v8 = vld [vmem:[%s3727_s10 + $0x60] sm:$0xff]  ;;  %v278_v10 = vld [vmem:[%s3727_s10 + $0x58] sm:$0xff]  ;;  %v277_v12 = vld [vmem:[%s3727_s10 + $0x50] sm:$0xff] }
  0x23   : > { %1358 = vmatprep.subr.mxu1 %v5985_v0  ;;  %974 = vmatpush1.msra.mxu0 %v281_v4  ;;  %v311_v9 = vld [vmem:[%s3727_s10 + $0x160] sm:$0xff]  ;;  %v310_v11 = vld [vmem:[%s3727_s10 + $0x158] sm:$0xff]  ;;  %v309_v13 = vld [vmem:[%s3727_s10 + $0x150] sm:$0xff] }
  0x24   : > { %1359 = vmatpush1.msra.mxu1 %v313_v5  ;;  %975 = vmatprep.subr.mxu0 %v5985_v0  ;;  %v276_v14 = vld [vmem:[%s3727_s10 + $0x48] sm:$0xff]  ;;  %v275_v16 = vld [vmem:[%s3727_s10 + $0x40] sm:$0xff]  ;;  %v274_v18 = vld [vmem:[%s3727_s10 + $0x38] sm:$0xff] }
  0x25   : > { %1360 = vmatprep.subr.mxu1 %v5985_v0  ;;  %976 = vmatpush1.msra.mxu0 %v280_v6  ;;  %v308_v15 = vld [vmem:[%s3727_s10 + $0x148] sm:$0xff]  ;;  %v307_v17 = vld [vmem:[%s3727_s10 + $0x140] sm:$0xff]  ;;  %v306_v19 = vld [vmem:[%s3727_s10 + $0x138] sm:$0xff] }
  0x26   : > { %1361 = vmatpush1.msra.mxu1 %v312_v7  ;;  %977 = vmatprep.subr.mxu0 %v5985_v0  ;;  %v273_v20 = vld [vmem:[%s3727_s10 + $0x30] sm:$0xff]  ;;  %v272_v22 = vld [vmem:[%s3727_s10 + $0x28] sm:$0xff]  ;;  %v271_v24 = vld [vmem:[%s3727_s10 + $0x20] sm:$0xff] }
  0x27   : > { %1362 = vmatprep.subr.mxu1 %v5985_v0  ;;  %978 = vmatpush1.msra.mxu0 %v279_v8  ;;  %v305_v21 = vld [vmem:[%s3727_s10 + $0x130] sm:$0xff]  ;;  %v304_v23 = vld [vmem:[%s3727_s10 + $0x128] sm:$0xff]  ;;  %v303_v25 = vld [vmem:[%s3727_s10 + $0x120] sm:$0xff] }
  0x28   : > { %1363 = vmatpush1.msra.mxu1 %v311_v9  ;;  %979 = vmatprep.subr.mxu0 %v5985_v0  ;;  %v270_v26 = vld [vmem:[%s3727_s10 + $0x18] sm:$0xff]  ;;  %v269_v28 = vld [vmem:[%s3727_s10 + $0x10] sm:$0xff]  ;;  %v268_v30 = vld [vmem:[%s3727_s10 + $0x8] sm:$0xff] }
  0x29   : > { %1364 = vmatprep.subr.mxu1 %v5985_v0  ;;  %980 = vmatpush1.msra.mxu0 %v278_v10  ;;  %v302_v27 = vld [vmem:[%s3727_s10 + $0x118] sm:$0xff]  ;;  %v301_v29 = vld [vmem:[%s3727_s10 + $0x110] sm:$0xff]  ;;  %v300_v31 = vld [vmem:[%s3727_s10 + $0x108] sm:$0xff] }
  0x2a   : > { %1365 = vmatpush1.msra.mxu1 %v310_v11  ;;  %981 = vmatprep.subr.mxu0 %v5985_v0  ;;  %v267_v32 = vld [vmem:[%s3727_s10] sm:$0xff]  ;;  %v298_v34 = vld [vmem:[%s3727_s10 + $0xf8] sm:$0xff]  ;;  %v297_v36 = vld [vmem:[%s3727_s10 + $0xf0] sm:$0xff] }
  0x2b   : > { %1366 = vmatprep.subr.mxu1 %v5985_v0  ;;  %982 = vmatpush1.msra.mxu0 %v277_v12  ;;  %v299_v33 = vld [vmem:[%s3727_s10 + $0x100] sm:$0xff]  ;;  %v330_v35 = vld [vmem:[%s3727_s10 + $0x1f8] sm:$0xff]  ;;  %v329_v37 = vld [vmem:[%s3727_s10 + $0x1f0] sm:$0xff] }
  0x2c   : > { %1367 = vmatpush1.msra.mxu1 %v309_v13  ;;  %983 = vmatprep.subr.mxu0 %v5985_v0  ;;  %v296_v39 = vld [vmem:[%s3727_s10 + $0xe8] sm:$0xff]  ;;  %v295_v42 = vld [vmem:[%s3727_s10 + $0xe0] sm:$0xff]  ;;  %v294_v45 = vld [vmem:[%s3727_s10 + $0xd8] sm:$0xff] }
  0x2d   : > { %1368 = vmatprep.subr.mxu1 %v5985_v0  ;;  %984 = vmatpush1.msra.mxu0 %v276_v14  ;;  %v328_v40 = vld [vmem:[%s3727_s10 + $0x1e8] sm:$0xff]  ;;  %v327_v43 = vld [vmem:[%s3727_s10 + $0x1e0] sm:$0xff]  ;;  %v326_v46 = vld [vmem:[%s3727_s10 + $0x1d8] sm:$0xff] }
  0x2e   : > { %1369 = vmatpush1.msra.mxu1 %v308_v15  ;;  %985 = vmatprep.subr.mxu0 %v5985_v0  ;;  %v293_v48 = vld [vmem:[%s3727_s10 + $0xd0] sm:$0xff]  ;;  %v292_v51 = vld [vmem:[%s3727_s10 + $0xc8] sm:$0xff]  ;;  %v291_v54 = vld [vmem:[%s3727_s10 + $0xc0] sm:$0xff] }
  0x2f   : > { %1370 = vmatprep.subr.mxu1 %v5985_v0  ;;  %986 = vmatpush1.msra.mxu0 %v275_v16  ;;  %v325_v49 = vld [vmem:[%s3727_s10 + $0x1d0] sm:$0xff]  ;;  %v324_v52 = vld [vmem:[%s3727_s10 + $0x1c8] sm:$0xff]  ;;  %v323_v55 = vld [vmem:[%s3727_s10 + $0x1c0] sm:$0xff] }
  0x30   : > { %1371 = vmatpush1.msra.mxu1 %v307_v17  ;;  %987 = vmatprep.subr.mxu0 %v5985_v0  ;;  %v290_v57 = vld [vmem:[%s3727_s10 + $0xb8] sm:$0xff]  ;;  %v289_v60 = vld [vmem:[%s3727_s10 + $0xb0] sm:$0xff]  ;;  %v288_v63 = vld [vmem:[%s3727_s10 + $0xa8] sm:$0xff] }
  0x31   : > { %1372 = vmatprep.subr.mxu1 %v5985_v0  ;;  %988 = vmatpush1.msra.mxu0 %v274_v18  ;;  %v322_v58 = vld [vmem:[%s3727_s10 + $0x1b8] sm:$0xff]  ;;  %v321_v61 = vld [vmem:[%s3727_s10 + $0x1b0] sm:$0xff]  ;;  %v320_v1 = vld [vmem:[%s3727_s10 + $0x1a8] sm:$0xff] }
  0x32   : > { %1373 = vmatpush1.msra.mxu1 %v306_v19  ;;  %989 = vmatprep.subr.mxu0 %v5985_v0  ;;  %v597_v2 = vld [vmem:[%s5980_s2 + $0x50] sm:$0xff]  ;;  %v287_v3 = vld [vmem:[%s3727_s10 + $0xa0] sm:$0xff]  ;;  %v630_v5 = vld [vmem:[%s5980_s2 + $0x158] sm:$0xff] }
  0x33   : > { %1374 = vmatprep.subr.mxu1 %v5985_v0  ;;  %990 = vmatpush1.msra.mxu0 %v273_v20  ;;  %v319_v4 = vld [vmem:[%s3727_s10 + $0x1a0] sm:$0xff]  ;;  %v286_v6 = vld [vmem:[%s3727_s10 + $0x98] sm:$0xff]  ;;  %v596_v8 = vld [vmem:[%s5980_s2 + $0x48] sm:$0xff] }
  0x34   : > { %1375 = vmatpush1.msra.mxu1 %v305_v21  ;;  %991 = vmatprep.subr.mxu0 %v5985_v0  ;;  %v318_v7 = vld [vmem:[%s3727_s10 + $0x198] sm:$0xff]  ;;  %v285_v9 = vld [vmem:[%s3727_s10 + $0x90] sm:$0xff]  ;;  %v284_v12 = vld [vmem:[%s3727_s10 + $0x88] sm:$0xff] }
  0x35   : > { %1376 = vmatprep.subr.mxu1 %v5985_v0  ;;  %992 = vmatpush1.msra.mxu0 %v272_v22  ;;  %v317_v10 = vld [vmem:[%s3727_s10 + $0x190] sm:$0xff]  ;;  %v316_v13 = vld [vmem:[%s3727_s10 + $0x188] sm:$0xff]  ;;  %v595_v14 = vld [vmem:[%s5980_s2 + $0x40] sm:$0xff] }
  0x36   : > { %1377 = vmatpush1.msra.mxu1 %v304_v23  ;;  %993 = vmatprep.subr.mxu0 %v5985_v0  ;;  %v629_v11 = vld [vmem:[%s5980_s2 + $0x150] sm:$0xff]  ;;  %v283_v15 = vld [vmem:[%s3727_s10 + $0x80] sm:$0xff]  ;;  %v332_v16 = vld [vmem:[%s5979_s1 + $0x8] sm:$0xff] }
  0x37   : > { %1378 = vmatprep.subr.mxu1 %v5985_v0  ;;  %994 = vmatpush1.msra.mxu0 %v271_v24  ;;  %v315_v17 = vld [vmem:[%s3727_s10 + $0x180] sm:$0xff]  ;;  %v334_v18 = vld [vmem:[%s5979_s1 + $0x18] sm:$0xff]  ;;  %v333_v20 = vld [vmem:[%s5979_s1 + $0x10] sm:$0xff] }
  0x38   : > { %1379 = vmatpush1.msra.mxu1 %v303_v25  ;;  %995 = vmatprep.subr.mxu0 %v5985_v0  ;;  %v331_v19 = vld [vmem:[%s5979_s1] sm:$0xff]  ;;  %v628_v21 = vld [vmem:[%s5980_s2 + $0x148] sm:$0xff]  ;;  %v594_v22 = vld [vmem:[%s5980_s2 + $0x38] sm:$0xff] }
  0x39   : > { %1380 = vmatprep.subr.mxu1 %v5985_v0  ;;  %996 = vmatpush1.msra.mxu0 %v270_v26  ;;  %v336_v23 = vld [vmem:[%s5979_s1 + $0x28] sm:$0xff]  ;;  %v338_v24 = vld [vmem:[%s5979_s1 + $0x38] sm:$0xff]  ;;  %v335_v25 = vld [vmem:[%s5979_s1 + $0x20] sm:$0xff] }
  0x3a   : > { %1381 = vmatpush1.msra.mxu1 %v302_v27  ;;  %997 = vmatprep.subr.mxu0 %v5985_v0  ;;  %v337_v26 = vld [vmem:[%s5979_s1 + $0x30] sm:$0xff]  ;;  %v627_v27 = vld [vmem:[%s5980_s2 + $0x140] sm:$0xff] }
  0x3b   : > { %1382 = vmatprep.subr.mxu1 %v5985_v0  ;;  %998 = vmatpush1.msra.mxu0 %v269_v28  ;;  %v593_v28 = vld [vmem:[%s5980_s2 + $0x30] sm:$0xff] }
  0x3c   : > { %1383 = vmatpush1.msra.mxu1 %v301_v29  ;;  %999 = vmatprep.subr.mxu0 %v5985_v0  ;;  %v340_v29 = vld [vmem:[%s5979_s1 + $0x48] sm:$0xff] }
  0x3d   : > { %1384 = vmatprep.subr.mxu1 %v5985_v0  ;;  %1000 = vmatpush1.msra.mxu0 %v268_v30  ;;  %v342_v30 = vld [vmem:[%s5979_s1 + $0x58] sm:$0xff] }
  0x3e   : > { %1385 = vmatpush1.msra.mxu1 %v300_v31  ;;  %1001 = vmatprep.subr.mxu0 %v5985_v0  ;;  %v339_v31 = vld [vmem:[%s5979_s1 + $0x40] sm:$0xff] }
  0x3f   : > { %1386 = vmatprep.subr.mxu1 %v5985_v0  ;;  %1002 = vmatpush1.msra.mxu0 %v267_v32  ;;  %v341_v32 = vld [vmem:[%s5979_s1 + $0x50] sm:$0xff] }
  0x40   : > { %1387 = vmatpush1.msra.mxu1 %v299_v33  ;;  %1003 = vmatprep.subr.mxu0 %v5985_v0  ;;  %v626_v33 = vld [vmem:[%s5980_s2 + $0x138] sm:$0xff] }
  0x41   : > { %1388 = vmatprep.subr.mxu1 %v5985_v0  ;;  %1004 = vmatpush2.msra.mxu0 %v298_v34  ;;  %v592_v34 = vld [vmem:[%s5980_s2 + $0x28] sm:$0xff] }
  0x42   : > { %1389 = vmatpush2.msra.mxu1 %v330_v35  ;;  %1005 = vmatprep.subr.mxu0 %v5985_v0  ;;  %v344_v35 = vld [vmem:[%s5979_s1 + $0x68] sm:$0xff] }
  0x43   : > { %1390 = vmatprep.subr.mxu1 %v5985_v0  ;;  %1006 = vmatpush2.msra.mxu0 %v297_v36  ;;  %v346_v36 = vld [vmem:[%s5979_s1 + $0x78] sm:$0xff] }
  0x44   : > { %1391 = vmatpush2.msra.mxu1 %v329_v37  ;;  %1007 = vmatprep.subr.mxu0 %v5985_v0  ;;  %v343_v37 = vld [vmem:[%s5979_s1 + $0x60] sm:$0xff] }
  0x45   : > { %1392 = vmatprep.subr.mxu1 %v5985_v0  ;;  %1008 = vmatpush2.msra.mxu0 %v296_v39  ;;  %v625_v39 = vld [vmem:[%s5980_s2 + $0x130] sm:$0xff] }
  0x46   : > { %1393 = vmatpush2.msra.mxu1 %v328_v40  ;;  %1009 = vmatprep.subr.mxu0 %v5985_v0  ;;  %v591_v40 = vld [vmem:[%s5980_s2 + $0x20] sm:$0xff] }
  0x47   : > { %1394 = vmatprep.subr.mxu1 %v5985_v0  ;;  %1010 = vmatpush2.msra.mxu0 %v295_v42  ;;  %v350_v42 = vld [vmem:[%s5979_s1 + $0x98] sm:$0xff] }
  0x48   : > { %1395 = vmatpush2.msra.mxu1 %v327_v43  ;;  %1011 = vmatprep.subr.mxu0 %v5985_v0  ;;  %v347_v43 = vld [vmem:[%s5979_s1 + $0x80] sm:$0xff] }
  0x49   : > { %1396 = vmatprep.subr.mxu1 %v5985_v0  ;;  %723 = vperm.xlu0 %3608, %v601_v44   ;;  %v349_v44 = vld [vmem:[%s5979_s1 + $0x90] sm:$0xff] }
  0x4a   : > { %1012 = vmatpush2.msra.mxu0 %v294_v45  ;;  %1397 = vmatpush2.msra.mxu1 %v326_v46  ;;  %v624_v45 = vld [vmem:[%s5980_s2 + $0x128] sm:$0xff]  ;;  %v590_v46 = vld [vmem:[%s5980_s2 + $0x18] sm:$0xff] }
  0x4b   : > { %1013 = vmatprep.subr.mxu0 %v5985_v0  ;;  %1398 = vmatprep.subr.mxu1 %v5985_v0 }
  0x4c   : > { %718 = vperm.xlu1 %3609, %v600_v47   ;;  %1014 = vmatpush2.msra.mxu0 %v293_v48  ;;  %v352_v47 = vld [vmem:[%s5979_s1 + $0xa8] sm:$0xff]  ;;  %v354_v48 = vld [vmem:[%s5979_s1 + $0xb8] sm:$0xff] }
  0x4d   : > { %1399 = vmatpush2.msra.mxu1 %v325_v49  ;;  %1015 = vmatprep.subr.mxu0 %v5985_v0  ;;  %v351_v49 = vld [vmem:[%s5979_s1 + $0xa0] sm:$0xff] }
  0x4e   : > { %1400 = vmatprep.subr.mxu1 %v5985_v0  ;;  %883 = vperm.xlu0 %3608, %v633_v50   ;;  %v353_v50 = vld [vmem:[%s5979_s1 + $0xb0] sm:$0xff] }
  0x4f   : > { %1016 = vmatpush2.msra.mxu0 %v292_v51  ;;  %1401 = vmatpush2.msra.mxu1 %v324_v52  ;;  %v623_v51 = vld [vmem:[%s5980_s2 + $0x120] sm:$0xff]  ;;  %v589_v52 = vld [vmem:[%s5980_s2 + $0x10] sm:$0xff] }
  0x50   : > { %1017 = vmatprep.subr.mxu0 %v5985_v0  ;;  %1402 = vmatprep.subr.mxu1 %v5985_v0 }
  0x51   : > { %713 = vperm.xlu1 %3609, %v599_v53   ;;  %1018 = vmatpush2.msra.mxu0 %v291_v54  ;;  %v356_v53 = vld [vmem:[%s5979_s1 + $0xc8] sm:$0xff]  ;;  %v358_v54 = vld [vmem:[%s5979_s1 + $0xd8] sm:$0xff] }
  0x52   : > { %1403 = vmatpush2.msra.mxu1 %v323_v55  ;;  %1019 = vmatprep.subr.mxu0 %v5985_v0  ;;  %v355_v55 = vld [vmem:[%s5979_s1 + $0xc0] sm:$0xff] }
  0x53   : > { %1404 = vmatprep.subr.mxu1 %v5985_v0  ;;  %878 = vperm.xlu0 %3608, %v632_v56   ;;  %v357_v56 = vld [vmem:[%s5979_s1 + $0xd0] sm:$0xff] }
  0x54   : > { %1020 = vmatpush2.msra.mxu0 %v290_v57  ;;  %1405 = vmatpush2.msra.mxu1 %v322_v58  ;;  %v622_v57 = vld [vmem:[%s5980_s2 + $0x118] sm:$0xff]  ;;  %v588_v58 = vld [vmem:[%s5980_s2 + $0x8] sm:$0xff] }
  0x55   : > { %1021 = vmatprep.subr.mxu0 %v5985_v0  ;;  %1406 = vmatprep.subr.mxu1 %v5985_v0 }
  0x56   : > { %708 = vperm.xlu1 %3609, %v598_v59   ;;  %1022 = vmatpush2.msra.mxu0 %v289_v60  ;;  %v360_v59 = vld [vmem:[%s5979_s1 + $0xe8] sm:$0xff]  ;;  %v362_v60 = vld [vmem:[%s5979_s1 + $0xf8] sm:$0xff] }
  0x57   : > { %1407 = vmatpush2.msra.mxu1 %v321_v61  ;;  %1023 = vmatprep.subr.mxu0 %v5985_v0  ;;  %v359_v61 = vld [vmem:[%s5979_s1 + $0xe0] sm:$0xff] }
  0x58   : > { %1408 = vmatprep.subr.mxu1 %v5985_v0  ;;  %873 = vperm.xlu0 %3608, %v631_v62   ;;  %v361_v62 = vld [vmem:[%s5979_s1 + $0xf0] sm:$0xff] }
  0x59   : > { %1024 = vmatpush2.msra.mxu0 %v288_v63  ;;  %1409 = vmatpush2.msra.mxu1 %v320_v1  ;;  %v621_v63 = vld [vmem:[%s5980_s2 + $0x110] sm:$0xff]  ;;  %v587_v1 = vld [vmem:[%s5980_s2] sm:$0xff] }
  0x5a   : > { %1025 = vmatprep.subr.mxu0 %v5985_v0  ;;  %1410 = vmatprep.subr.mxu1 %v5985_v0 }
  0x5b   : > { %703 = vperm.xlu1 %3609, %v597_v2   ;;  %1026 = vmatpush2.msra.mxu0 %v287_v3  ;;  %v364_v2 = vld [vmem:[%s5979_s1 + $0x108] sm:$0xff]  ;;  %v366_v3 = vld [vmem:[%s5979_s1 + $0x118] sm:$0xff] }
  0x5c   : > { %1411 = vmatpush2.msra.mxu1 %v319_v4  ;;  %1027 = vmatprep.subr.mxu0 %v5985_v0  ;;  %v363_v4 = vld [vmem:[%s5979_s1 + $0x100] sm:$0xff] }
  0x5d   : > { %1412 = vmatprep.subr.mxu1 %v5985_v0  ;;  %868 = vperm.xlu0 %3608, %v630_v5   ;;  %v365_v5 = vld [vmem:[%s5979_s1 + $0x110] sm:$0xff] }
  0x5e   : > { %1028 = vmatpush2.msra.mxu0 %v286_v6  ;;  %1413 = vmatpush2.msra.mxu1 %v318_v7  ;;  %v620_v6 = vld [vmem:[%s5980_s2 + $0x108] sm:$0xff]  ;;  %v618_v7 = vld [vmem:[%s5980_s2 + $0xf8] sm:$0xff] }
  0x5f   : > { %1029 = vmatprep.subr.mxu0 %v5985_v0  ;;  %1414 = vmatprep.subr.mxu1 %v5985_v0 }
  0x60   : > { %698 = vperm.xlu1 %3609, %v596_v8   ;;  %1030 = vmatpush2.msra.mxu0 %v285_v9  ;;  %v368_v8 = vld [vmem:[%s5979_s1 + $0x128] sm:$0xff]  ;;  %v370_v9 = vld [vmem:[%s5979_s1 + $0x138] sm:$0xff] }
  0x61   : > { %1415 = vmatpush2.msra.mxu1 %v317_v10  ;;  %1031 = vmatprep.subr.mxu0 %v5985_v0  ;;  %v367_v10 = vld [vmem:[%s5979_s1 + $0x120] sm:$0xff] }
  0x62   : > { %1416 = vmatprep.subr.mxu1 %v5985_v0  ;;  %863 = vperm.xlu0 %3608, %v629_v11   ;;  %v369_v11 = vld [vmem:[%s5979_s1 + $0x130] sm:$0xff] }
  0x63   : > { %1032 = vmatpush2.msra.mxu0 %v284_v12  ;;  %1417 = vmatpush2.msra.mxu1 %v316_v13  ;;  %v619_v12 = vld [vmem:[%s5980_s2 + $0x100] sm:$0xff]  ;;  %v617_v13 = vld [vmem:[%s5980_s2 + $0xf0] sm:$0xff] }
  0x64   : > { %1033 = vmatprep.subr.mxu0 %v5985_v0  ;;  %1418 = vmatprep.subr.mxu1 %v5985_v0 }
  0x65   : > { %693 = vperm.xlu1 %3609, %v595_v14   ;;  %1034 = vmatpush2.msra.mxu0 %v283_v15  ;;  %v372_v14 = vld [vmem:[%s5979_s1 + $0x148] sm:$0xff]  ;;  %v374_v15 = vld [vmem:[%s5979_s1 + $0x158] sm:$0xff] }
  0x66   : > { %1035 = vmatprep.mubr.f32.mxu0 %v332_v16  ;;  %1419 = vmatpush2.msra.mxu1 %v315_v17  ;;  %v371_v16 = vld [vmem:[%s5979_s1 + $0x140] sm:$0xff]  ;;  %v373_v17 = vld [vmem:[%s5979_s1 + $0x150] sm:$0xff] }
  0x67   : > { %1420 = vmatprep.mubr.f32.mxu1 %v334_v18  ;;  %1036 = vmatmul.mubr.f32.vlgmr.msra.gmra.mxu0 %v331_v19  ;;  %v650_v18 = vld [vmem:[%s5980_s2 + $0x1f8] sm:$0xff]  ;;  %v616_v19 = vld [vmem:[%s5980_s2 + $0xe8] sm:$0xff] }
  0x68   : > { %1421 = vmatmul.mubr.f32.vlgmr.msra.gmra.mxu1 %v333_v20  ;;  %858 = vperm.xlu0 %3608, %v628_v21   ;;  %v376_v20 = vld [vmem:[%s5979_s1 + $0x168] sm:$0xff]  ;;  %v378_v21 = vld [vmem:[%s5979_s1 + $0x178] sm:$0xff] }
  0x69   : > { %688 = vperm.xlu1 %3609, %v594_v22   ;;  %1040 = vmatprep.mubr.f32.mxu0 %v336_v23  ;;  %v375_v22 = vld [vmem:[%s5979_s1 + $0x160] sm:$0xff]  ;;  %v377_v23 = vld [vmem:[%s5979_s1 + $0x170] sm:$0xff] }
  0x6a   : > { %1425 = vmatprep.mubr.f32.mxu1 %v338_v24  ;;  %2445 = vmatprep.subr.mxu0 %v5985_v0  ;;  %v649_v24 = vld [vmem:[%s5980_s2 + $0x1f0] sm:$0xff] }
  0x6b   : > { %2830 = vmatprep.subr.mxu1 %v5985_v0  ;;  %1041 = vmatmul.mubr.f32.gmra.mxu0 %v335_v25  ;;  %v615_v25 = vld [vmem:[%s5980_s2 + $0xe0] sm:$0xff] }
  0x6c   : > { %1426 = vmatmul.mubr.f32.gmra.mxu1 %v337_v26  ;;  %853 = vperm.xlu0 %3608, %v627_v27   ;;  %v380_v26 = vld [vmem:[%s5979_s1 + $0x188] sm:$0xff]  ;;  %v382_v27 = vld [vmem:[%s5979_s1 + $0x198] sm:$0xff] }
  0x6d   : > { %683 = vperm.xlu1 %3609, %v593_v28   ;;  %1045 = vmatprep.mubr.f32.mxu0 %v340_v29  ;;  %v379_v28 = vld [vmem:[%s5979_s1 + $0x180] sm:$0xff]  ;;  %v381_v29 = vld [vmem:[%s5979_s1 + $0x190] sm:$0xff] }
  0x6e   : > { %1430 = vmatprep.mubr.f32.mxu1 %v342_v30  ;;  %v648_v30 = vld [vmem:[%s5980_s2 + $0x1e8] sm:$0xff] }
  0x6f   : > { %1046 = vmatmul.mubr.f32.gmra.mxu0 %v339_v31  ;;  %v614_v31 = vld [vmem:[%s5980_s2 + $0xd8] sm:$0xff] }
  0x70   : > { %1431 = vmatmul.mubr.f32.gmra.mxu1 %v341_v32  ;;  %848 = vperm.xlu0 %3608, %v626_v33   ;;  %v384_v32 = vld [vmem:[%s5979_s1 + $0x1a8] sm:$0xff]  ;;  %v386_v33 = vld [vmem:[%s5979_s1 + $0x1b8] sm:$0xff] }
  0x71   : > { %678 = vperm.xlu1 %3609, %v592_v34   ;;  %1050 = vmatprep.mubr.f32.mxu0 %v344_v35  ;;  %v383_v34 = vld [vmem:[%s5979_s1 + $0x1a0] sm:$0xff]  ;;  %v385_v35 = vld [vmem:[%s5979_s1 + $0x1b0] sm:$0xff] }
  0x72   : > { %1435 = vmatprep.mubr.f32.mxu1 %v346_v36  ;;  %v647_v36 = vld [vmem:[%s5980_s2 + $0x1e0] sm:$0xff] }
  0x73   : > { %1051 = vmatmul.mubr.f32.gmra.mxu0 %v343_v37  ;;  %v613_v37 = vld [vmem:[%s5980_s2 + $0xd0] sm:$0xff] }
  0x74   : > { %1436 = vmatmul.mubr.f32.gmra.mxu1 %v345_v38  ;;  %843 = vperm.xlu0 %3608, %v625_v39   ;;  %v388_v38 = vld [vmem:[%s5979_s1 + $0x1c8] sm:$0xff]  ;;  %v390_v39 = vld [vmem:[%s5979_s1 + $0x1d8] sm:$0xff] }
  0x75   : > { %673 = vperm.xlu1 %3609, %v591_v40   ;;  %1055 = vmatprep.mubr.f32.mxu0 %v348_v41  ;;  %v387_v40 = vld [vmem:[%s5979_s1 + $0x1c0] sm:$0xff]  ;;  %v389_v41 = vld [vmem:[%s5979_s1 + $0x1d0] sm:$0xff] }
  0x76   : > { %1440 = vmatprep.mubr.f32.mxu1 %v350_v42  ;;  %v646_v42 = vld [vmem:[%s5980_s2 + $0x1d8] sm:$0xff] }
  0x77   : > { %1056 = vmatmul.mubr.f32.gmra.mxu0 %v347_v43  ;;  %v612_v43 = vld [vmem:[%s5980_s2 + $0xc8] sm:$0xff] }
  0x78   : > { %1441 = vmatmul.mubr.f32.gmra.mxu1 %v349_v44  ;;  %838 = vperm.xlu0 %3608, %v624_v45   ;;  %v392_v44 = vld [vmem:[%s5979_s1 + $0x1e8] sm:$0xff]  ;;  %v394_v45 = vld [vmem:[%s5979_s1 + $0x1f8] sm:$0xff] }
  0x79   : > { %668 = vperm.xlu1 %3609, %v590_v46   ;;  %1060 = vmatprep.mubr.f32.mxu0 %v352_v47  ;;  %v391_v46 = vld [vmem:[%s5979_s1 + $0x1e0] sm:$0xff]  ;;  %v393_v47 = vld [vmem:[%s5979_s1 + $0x1f0] sm:$0xff] }
  0x7a   : > { %1445 = vmatprep.mubr.f32.mxu1 %v354_v48  ;;  %v645_v48 = vld [vmem:[%s5980_s2 + $0x1d0] sm:$0xff] }
  0x7b   : > { %1061 = vmatmul.mubr.f32.gmra.mxu0 %v351_v49  ;;  %v611_v49 = vld [vmem:[%s5980_s2 + $0xc0] sm:$0xff] }
  0x7c   : > { %1446 = vmatmul.mubr.f32.gmra.mxu1 %v353_v50  ;;  %833 = vperm.xlu0 %3608, %v623_v51   ;;  %v396_v50 = vld [vmem:[%s5979_s1 + $0x208] sm:$0xff]  ;;  %v398_v51 = vld [vmem:[%s5979_s1 + $0x218] sm:$0xff] }
  0x7d   : > { %663 = vperm.xlu1 %3609, %v589_v52   ;;  %1065 = vmatprep.mubr.f32.mxu0 %v356_v53  ;;  %v395_v52 = vld [vmem:[%s5979_s1 + $0x200] sm:$0xff]  ;;  %v397_v53 = vld [vmem:[%s5979_s1 + $0x210] sm:$0xff] }
  0x7e   : > { %1450 = vmatprep.mubr.f32.mxu1 %v358_v54  ;;  %v644_v54 = vld [vmem:[%s5980_s2 + $0x1c8] sm:$0xff] }
  0x7f   : > { %1066 = vmatmul.mubr.f32.gmra.mxu0 %v355_v55  ;;  %v610_v55 = vld [vmem:[%s5980_s2 + $0xb8] sm:$0xff] }
  0x80   : > { %1451 = vmatmul.mubr.f32.gmra.mxu1 %v357_v56  ;;  %828 = vperm.xlu0 %3608, %v622_v57   ;;  %v400_v56 = vld [vmem:[%s5979_s1 + $0x228] sm:$0xff]  ;;  %v402_v57 = vld [vmem:[%s5979_s1 + $0x238] sm:$0xff] }
  0x81   : > { %658 = vperm.xlu1 %3609, %v588_v58   ;;  %1070 = vmatprep.mubr.f32.mxu0 %v360_v59  ;;  %v399_v58 = vld [vmem:[%s5979_s1 + $0x220] sm:$0xff]  ;;  %v401_v59 = vld [vmem:[%s5979_s1 + $0x230] sm:$0xff] }
  0x82   : > { %1455 = vmatprep.mubr.f32.mxu1 %v362_v60  ;;  %v643_v60 = vld [vmem:[%s5980_s2 + $0x1c0] sm:$0xff] }
  0x83   : > { %1071 = vmatmul.mubr.f32.gmra.mxu0 %v359_v61  ;;  %v609_v61 = vld [vmem:[%s5980_s2 + $0xb0] sm:$0xff] }
  0x84   : > { %1456 = vmatmul.mubr.f32.gmra.mxu1 %v361_v62  ;;  %823 = vperm.xlu0 %3608, %v621_v63   ;;  %v404_v62 = vld [vmem:[%s5979_s1 + $0x248] sm:$0xff]  ;;  %v406_v63 = vld [vmem:[%s5979_s1 + $0x258] sm:$0xff] }
  0x85   : > { %653 = vperm.xlu1 %3609, %v587_v1   ;;  %1075 = vmatprep.mubr.f32.mxu0 %v364_v2  ;;  %v403_v1 = vld [vmem:[%s5979_s1 + $0x240] sm:$0xff]  ;;  %v405_v2 = vld [vmem:[%s5979_s1 + $0x250] sm:$0xff] }
  0x86   : > { %1460 = vmatprep.mubr.f32.mxu1 %v366_v3  ;;  %v642_v3 = vld [vmem:[%s5980_s2 + $0x1b8] sm:$0xff] }
  0x87   : > { %1076 = vmatmul.mubr.f32.gmra.mxu0 %v363_v4  ;;  %v608_v4 = vld [vmem:[%s5980_s2 + $0xa8] sm:$0xff] }
  0x88   : > { %1461 = vmatmul.mubr.f32.gmra.mxu1 %v365_v5  ;;  %818 = vperm.xlu0 %3608, %v620_v6   ;;  %v408_v5 = vld [vmem:[%s5979_s1 + $0x268] sm:$0xff]  ;;  %v410_v6 = vld [vmem:[%s5979_s1 + $0x278] sm:$0xff] }
  0x89   : > { %808 = vperm.xlu1 %3609, %v618_v7   ;;  %1080 = vmatprep.mubr.f32.mxu0 %v368_v8  ;;  %v407_v7 = vld [vmem:[%s5979_s1 + $0x260] sm:$0xff]  ;;  %v409_v8 = vld [vmem:[%s5979_s1 + $0x270] sm:$0xff] }
  0x8a   : > { %1465 = vmatprep.mubr.f32.mxu1 %v370_v9  ;;  %v641_v9 = vld [vmem:[%s5980_s2 + $0x1b0] sm:$0xff] }
  0x8b   : > { %1081 = vmatmul.mubr.f32.gmra.mxu0 %v367_v10  ;;  %v607_v10 = vld [vmem:[%s5980_s2 + $0xa0] sm:$0xff] }
  0x8c   : > { %1466 = vmatmul.mubr.f32.gmra.mxu1 %v369_v11  ;;  %813 = vperm.xlu0 %3608, %v619_v12   ;;  %v412_v11 = vld [vmem:[%s5979_s1 + $0x288] sm:$0xff]  ;;  %v414_v12 = vld [vmem:[%s5979_s1 + $0x298] sm:$0xff] }
  0x8d   : > { %803 = vperm.xlu1 %3609, %v617_v13   ;;  %1085 = vmatprep.mubr.f32.mxu0 %v372_v14  ;;  %v411_v13 = vld [vmem:[%s5979_s1 + $0x280] sm:$0xff]  ;;  %v413_v14 = vld [vmem:[%s5979_s1 + $0x290] sm:$0xff] }
  0x8e   : > { %1470 = vmatprep.mubr.f32.mxu1 %v374_v15  ;;  %v640_v15 = vld [vmem:[%s5980_s2 + $0x1a8] sm:$0xff] }
  0x8f   : > { %1086 = vmatmul.mubr.f32.gmra.mxu0 %v371_v16  ;;  %v606_v16 = vld [vmem:[%s5980_s2 + $0x98] sm:$0xff] }
  0x90   : > { %1471 = vmatmul.mubr.f32.gmra.mxu1 %v373_v17  ;;  %968 = vperm.xlu0 %3608, %v650_v18   ;;  %v416_v17 = vld [vmem:[%s5979_s1 + $0x2a8] sm:$0xff]  ;;  %v418_v18 = vld [vmem:[%s5979_s1 + $0x2b8] sm:$0xff] }
  0x91   : > { %798 = vperm.xlu1 %3609, %v616_v19   ;;  %1090 = vmatprep.mubr.f32.mxu0 %v376_v20  ;;  %v415_v19 = vld [vmem:[%s5979_s1 + $0x2a0] sm:$0xff]  ;;  %v417_v20 = vld [vmem:[%s5979_s1 + $0x2b0] sm:$0xff] }
  0x92   : > { %1475 = vmatprep.mubr.f32.mxu1 %v378_v21  ;;  %v639_v21 = vld [vmem:[%s5980_s2 + $0x1a0] sm:$0xff] }
  0x93   : > { %1091 = vmatmul.mubr.f32.gmra.mxu0 %v375_v22  ;;  %v605_v22 = vld [vmem:[%s5980_s2 + $0x90] sm:$0xff] }
  0x94   : > { %1476 = vmatmul.mubr.f32.gmra.mxu1 %v377_v23  ;;  %963 = vperm.xlu0 %3608, %v649_v24   ;;  %v420_v23 = vld [vmem:[%s5979_s1 + $0x2c8] sm:$0xff]  ;;  %v422_v24 = vld [vmem:[%s5979_s1 + $0x2d8] sm:$0xff] }
  0x95   : > { %793 = vperm.xlu1 %3609, %v615_v25   ;;  %1095 = vmatprep.mubr.f32.mxu0 %v380_v26  ;;  %v419_v25 = vld [vmem:[%s5979_s1 + $0x2c0] sm:$0xff]  ;;  %v421_v26 = vld [vmem:[%s5979_s1 + $0x2d0] sm:$0xff] }
  0x96   : > { %1480 = vmatprep.mubr.f32.mxu1 %v382_v27  ;;  %v638_v27 = vld [vmem:[%s5980_s2 + $0x198] sm:$0xff] }
  0x97   : > { %1096 = vmatmul.mubr.f32.gmra.mxu0 %v379_v28  ;;  %v604_v28 = vld [vmem:[%s5980_s2 + $0x88] sm:$0xff] }
  0x98   : > { %1481 = vmatmul.mubr.f32.gmra.mxu1 %v381_v29  ;;  %958 = vperm.xlu0 %3608, %v648_v30   ;;  %v424_v29 = vld [vmem:[%s5979_s1 + $0x2e8] sm:$0xff]  ;;  %v426_v30 = vld [vmem:[%s5979_s1 + $0x2f8] sm:$0xff] }
  0x99   : > { %788 = vperm.xlu1 %3609, %v614_v31   ;;  %1100 = vmatprep.mubr.f32.mxu0 %v384_v32  ;;  %v423_v31 = vld [vmem:[%s5979_s1 + $0x2e0] sm:$0xff]  ;;  %v425_v32 = vld [vmem:[%s5979_s1 + $0x2f0] sm:$0xff] }
  0x9a   : > { %1485 = vmatprep.mubr.f32.mxu1 %v386_v33  ;;  %v637_v33 = vld [vmem:[%s5980_s2 + $0x190] sm:$0xff] }
  0x9b   : > { %1101 = vmatmul.mubr.f32.gmra.mxu0 %v383_v34  ;;  %v603_v34 = vld [vmem:[%s5980_s2 + $0x80] sm:$0xff] }
  0x9c   : > { %1486 = vmatmul.mubr.f32.gmra.mxu1 %v385_v35  ;;  %953 = vperm.xlu0 %3608, %v647_v36   ;;  %v4331_v35 = vpop.permute.xlu1 %888  ;;  %v428_v36 = vld [vmem:[%s5979_s1 + $0x308] sm:$0xff] }
  0x9d   : > { %783 = vperm.xlu1 %3609, %v613_v37   ;;  %1105 = vmatprep.mubr.f32.mxu0 %v388_v38  ;;  %5988 = vst [vmem:[#allocation5_spill] sm:$0xff] %v4331_v35  ;;  %v430_v37 = vld [vmem:[%s5979_s1 + $0x318] sm:$0xff]  ;;  %v427_v38 = vld [vmem:[%s5979_s1 + $0x300] sm:$0xff] }
  0x9e   : > { %1490 = vmatprep.mubr.f32.mxu1 %v390_v39  ;;  %v429_v39 = vld [vmem:[%s5979_s1 + $0x310] sm:$0xff] }
  0x9f   : > { %1106 = vmatmul.mubr.f32.gmra.mxu0 %v387_v40  ;;  %v636_v40 = vld [vmem:[%s5980_s2 + $0x188] sm:$0xff] }
  0xa0   : > { %1491 = vmatmul.mubr.f32.gmra.mxu1 %v389_v41  ;;  %948 = vperm.xlu0 %3608, %v646_v42   ;;  %v635_v41 = vld [vmem:[%s5980_s2 + $0x180] sm:$0xff]  ;;  %v432_v42 = vld [vmem:[%s5979_s1 + $0x328] sm:$0xff] }
  0xa1   : > { %778 = vperm.xlu1 %3609, %v612_v43   ;;  %1110 = vmatprep.mubr.f32.mxu0 %v392_v44  ;;  %v434_v43 = vld [vmem:[%s5979_s1 + $0x338] sm:$0xff] }
  0xa2   : > { %1495 = vmatprep.mubr.f32.mxu1 %v394_v45  ;;  %v431_v45 = vld [vmem:[%s5979_s1 + $0x320] sm:$0xff] }
  0xa3   : > { %1111 = vmatmul.mubr.f32.gmra.mxu0 %v391_v46  ;;  %v433_v46 = vld [vmem:[%s5979_s1 + $0x330] sm:$0xff] }
  0xa4   : > { %1496 = vmatmul.mubr.f32.gmra.mxu1 %v393_v47  ;;  %943 = vperm.xlu0 %3608, %v645_v48   ;;  %v2092_v47 = vld [vmem:[%s5982_s4 + $0xf8] sm:$0xff] }
  0xa5   : > { %773 = vperm.xlu1 %3609, %v611_v49   ;;  %1115 = vmatprep.mubr.f32.mxu0 %v396_v50  ;;  %v2124_v48 = vld [vmem:[%s5982_s4 + $0x1f8] sm:$0xff]  ;;  %v436_v49 = vld [vmem:[%s5979_s1 + $0x348] sm:$0xff] }
  0xa6   : > { %1500 = vmatprep.mubr.f32.mxu1 %v398_v51  ;;  %v438_v50 = vld [vmem:[%s5979_s1 + $0x358] sm:$0xff] }
  0xa7   : > { %1116 = vmatmul.mubr.f32.gmra.mxu0 %v395_v52  ;;  %v435_v52 = vld [vmem:[%s5979_s1 + $0x340] sm:$0xff] }
  0xa8   : > { %1501 = vmatmul.mubr.f32.gmra.mxu1 %v397_v53  ;;  %938 = vperm.xlu0 %3608, %v644_v54   ;;  %v437_v53 = vld [vmem:[%s5979_s1 + $0x350] sm:$0xff]  ;;  %v2076_v54 = vld [vmem:[%s5982_s4 + $0x78] sm:$0xff] }
  0xa9   : > { %768 = vperm.xlu1 %3609, %v610_v55   ;;  %1120 = vmatprep.mubr.f32.mxu0 %v400_v56  ;;  %v2108_v55 = vld [vmem:[%s5982_s4 + $0x178] sm:$0xff]  ;;  %v440_v56 = vld [vmem:[%s5979_s1 + $0x368] sm:$0xff] }
  0xaa   : > { %1505 = vmatprep.mubr.f32.mxu1 %v402_v57  ;;  %v442_v57 = vld [vmem:[%s5979_s1 + $0x378] sm:$0xff] }
  0xab   : > { %1121 = vmatmul.mubr.f32.gmra.mxu0 %v399_v58  ;;  %v439_v58 = vld [vmem:[%s5979_s1 + $0x360] sm:$0xff] }
  0xac   : > { %1506 = vmatmul.mubr.f32.gmra.mxu1 %v401_v59  ;;  %933 = vperm.xlu0 %3608, %v643_v60   ;;  %v441_v59 = vld [vmem:[%s5979_s1 + $0x370] sm:$0xff] }
  0xad   : > { %763 = vperm.xlu1 %3609, %v609_v61   ;;  %1125 = vmatprep.mubr.f32.mxu0 %v404_v62  ;;  %v2091_v61 = vld [vmem:[%s5982_s4 + $0xf0] sm:$0xff] }
  0xae   : > { %1510 = vmatprep.mubr.f32.mxu1 %v406_v63  ;;  %v2123_v62 = vld [vmem:[%s5982_s4 + $0x1f0] sm:$0xff]  ;;  %v444_v63 = vld [vmem:[%s5979_s1 + $0x388] sm:$0xff] }
  0xaf   : > { %1126 = vmatmul.mubr.f32.gmra.mxu0 %v403_v1  ;;  %v446_v1 = vld [vmem:[%s5979_s1 + $0x398] sm:$0xff] }
  0xb0   : > { %1511 = vmatmul.mubr.f32.gmra.mxu1 %v405_v2  ;;  %928 = vperm.xlu0 %3608, %v642_v3   ;;  %v443_v2 = vld [vmem:[%s5979_s1 + $0x380] sm:$0xff]  ;;  %v445_v3 = vld [vmem:[%s5979_s1 + $0x390] sm:$0xff] }
  0xb1   : > { %758 = vperm.xlu1 %3609, %v608_v4   ;;  %1130 = vmatprep.mubr.f32.mxu0 %v408_v5  ;;  %v2075_v4 = vld [vmem:[%s5982_s4 + $0x70] sm:$0xff] }
  0xb2   : > { %1515 = vmatprep.mubr.f32.mxu1 %v410_v6  ;;  %v2107_v6 = vld [vmem:[%s5982_s4 + $0x170] sm:$0xff] }
  0xb3   : > { %1131 = vmatmul.mubr.f32.gmra.mxu0 %v407_v7  ;;  %v448_v7 = vld [vmem:[%s5979_s1 + $0x3a8] sm:$0xff] }
  0xb4   : > { %1516 = vmatmul.mubr.f32.gmra.mxu1 %v409_v8  ;;  %923 = vperm.xlu0 %3608, %v641_v9   ;;  %v450_v8 = vld [vmem:[%s5979_s1 + $0x3b8] sm:$0xff]  ;;  %v447_v9 = vld [vmem:[%s5979_s1 + $0x3a0] sm:$0xff] }
  0xb5   : > { %753 = vperm.xlu1 %3609, %v607_v10   ;;  %1135 = vmatprep.mubr.f32.mxu0 %v412_v11  ;;  %v449_v10 = vld [vmem:[%s5979_s1 + $0x3b0] sm:$0xff]  ;;  %v2090_v11 = vld [vmem:[%s5982_s4 + $0xe8] sm:$0xff] }
  0xb6   : > { %1520 = vmatprep.mubr.f32.mxu1 %v414_v12  ;;  %v2122_v12 = vld [vmem:[%s5982_s4 + $0x1e8] sm:$0xff] }
  0xb7   : > { %1136 = vmatmul.mubr.f32.gmra.mxu0 %v411_v13 }
  0xb8   : > { %1521 = vmatmul.mubr.f32.gmra.mxu1 %v413_v14  ;;  %918 = vperm.xlu0 %3608, %v640_v15   ;;  %v452_v14 = vld [vmem:[%s5979_s1 + $0x3c8] sm:$0xff]  ;;  %v454_v15 = vld [vmem:[%s5979_s1 + $0x3d8] sm:$0xff] }
  0xb9   : > { %748 = vperm.xlu1 %3609, %v606_v16   ;;  %1140 = vmatprep.mubr.f32.mxu0 %v416_v17  ;;  %v451_v16 = vld [vmem:[%s5979_s1 + $0x3c0] sm:$0xff]  ;;  %v453_v17 = vld [vmem:[%s5979_s1 + $0x3d0] sm:$0xff] }
  0xba   : > { %1525 = vmatprep.mubr.f32.mxu1 %v418_v18  ;;  %v2074_v18 = vld [vmem:[%s5982_s4 + $0x68] sm:$0xff] }
  0xbb   : > { %1141 = vmatmul.mubr.f32.gmra.mxu0 %v415_v19  ;;  %v2106_v19 = vld [vmem:[%s5982_s4 + $0x168] sm:$0xff] }
  0xbc   : > { %1526 = vmatmul.mubr.f32.gmra.mxu1 %v417_v20  ;;  %913 = vperm.xlu0 %3608, %v639_v21   ;;  %v456_v20 = vld [vmem:[%s5979_s1 + $0x3e8] sm:$0xff]  ;;  %v458_v21 = vld [vmem:[%s5979_s1 + $0x3f8] sm:$0xff] }
  0xbd   : > { %743 = vperm.xlu1 %3609, %v605_v22   ;;  %1145 = vmatprep.mubr.f32.mxu0 %v420_v23  ;;  %v455_v23 = vld [vmem:[%s5979_s1 + $0x3e0] sm:$0xff] }
  0xbe   : > { %1530 = vmatprep.mubr.f32.mxu1 %v422_v24  ;;  %v457_v24 = vld [vmem:[%s5979_s1 + $0x3f0] sm:$0xff] }
  0xbf   : > { %1146 = vmatmul.mubr.f32.gmra.mxu0 %v419_v25  ;;  %v2089_v25 = vld [vmem:[%s5982_s4 + $0xe0] sm:$0xff] }
  0xc0   : > { %1531 = vmatmul.mubr.f32.gmra.mxu1 %v421_v26  ;;  %908 = vperm.xlu0 %3608, %v638_v27   ;;  %v2121_v26 = vld [vmem:[%s5982_s4 + $0x1e0] sm:$0xff]  ;;  %v460_v27 = vld [vmem:[%s5979_s1 + $0x408] sm:$0xff] }
  0xc1   : > { %738 = vperm.xlu1 %3609, %v604_v28   ;;  %1150 = vmatprep.mubr.f32.mxu0 %v424_v29  ;;  %v462_v28 = vld [vmem:[%s5979_s1 + $0x418] sm:$0xff] }
  0xc2   : > { %1535 = vmatprep.mubr.f32.mxu1 %v426_v30  ;;  %v459_v30 = vld [vmem:[%s5979_s1 + $0x400] sm:$0xff] }
  0xc3   : > { %1151 = vmatmul.mubr.f32.gmra.mxu0 %v423_v31  ;;  %v461_v31 = vld [vmem:[%s5979_s1 + $0x410] sm:$0xff] }
  0xc4   : > { %1536 = vmatmul.mubr.f32.gmra.mxu1 %v425_v32  ;;  %903 = vperm.xlu0 %3608, %v637_v33   ;;  %v2073_v32 = vld [vmem:[%s5982_s4 + $0x60] sm:$0xff] }
  0xc5   : > { %733 = vperm.xlu1 %3609, %v603_v34   ;;  %1155 = vmatprep.mubr.f32.mxu0 %v428_v36  ;;  %v2105_v33 = vld [vmem:[%s5982_s4 + $0x160] sm:$0xff]  ;;  %v464_v34 = vld [vmem:[%s5979_s1 + $0x428] sm:$0xff]  ;;  %v466_v36 = vld [vmem:[%s5979_s1 + $0x438] sm:$0xff] }
  0xc6   : > { %1540 = vmatprep.mubr.f32.mxu1 %v430_v37 }
  0xc7   : > { %v4357_v44 = vpop.permute.xlu1 %718  ;;  %1156 = vmatmul.mubr.f32.gmra.mxu0 %v427_v38  ;;  %v463_v38 = vld [vmem:[%s5979_s1 + $0x420] sm:$0xff] }
  0xc8   : > { %1541 = vmatmul.mubr.f32.gmra.mxu1 %v429_v39  ;;  %898 = vperm.xlu0 %3608, %v636_v40   ;;  %v465_v39 = vld [vmem:[%s5979_s1 + $0x430] sm:$0xff]  ;;  %v2088_v40 = vld [vmem:[%s5982_s4 + $0xd8] sm:$0xff] }
  0xc9   : > { %893 = vperm.xlu1 %3609, %v635_v41   ;;  %1160 = vmatprep.mubr.f32.mxu0 %v432_v42  ;;  %v2120_v41 = vld [vmem:[%s5982_s4 + $0x1d8] sm:$0xff]  ;;  %v468_v42 = vld [vmem:[%s5979_s1 + $0x448] sm:$0xff] }
  0xca   : > { %1545 = vmatprep.mubr.f32.mxu1 %v434_v43  ;;  %v470_v43 = vld [vmem:[%s5979_s1 + $0x458] sm:$0xff] }
  0xcb   : > { %1161 = vmatmul.mubr.f32.gmra.mxu0 %v431_v45 }
  0xcc   : > { %1546 = vmatmul.mubr.f32.gmra.mxu1 %v433_v46  ;;  %v4377_v51 = vpop.permute.xlu1 %713  ;;  %2282 = vperm.xlu0 %3608, %v2092_v47   ;;  %v467_v46 = vld [vmem:[%s5979_s1 + $0x440] sm:$0xff]  ;;  %v469_v47 = vld [vmem:[%s5979_s1 + $0x450] sm:$0xff] }
  0xcd   : > { %2442 = vperm.xlu1 %3609, %v2124_v48   ;;  %1165 = vmatprep.mubr.f32.mxu0 %v436_v49  ;;  %v2072_v48 = vld [vmem:[%s5982_s4 + $0x58] sm:$0xff] }
  0xce   : > { %1550 = vmatprep.mubr.f32.mxu1 %v438_v50  ;;  %v2104_v49 = vld [vmem:[%s5982_s4 + $0x158] sm:$0xff]  ;;  %v472_v50 = vld [vmem:[%s5979_s1 + $0x468] sm:$0xff] }
  0xcf   : > { %1166 = vmatmul.mubr.f32.gmra.mxu0 %v435_v52  ;;  %v474_v52 = vld [vmem:[%s5979_s1 + $0x478] sm:$0xff] }
  0xd0   : > { %1551 = vmatmul.mubr.f32.gmra.mxu1 %v437_v53  ;;  %2202 = vperm.xlu0 %3608, %v2076_v54   ;;  %v471_v54 = vld [vmem:[%s5979_s1 + $0x460] sm:$0xff] }
  0xd1   : > { %2362 = vperm.xlu1 %3609, %v2108_v55   ;;  %v4403_v60 = vpop.permute.xlu1 %708  ;;  %1170 = vmatprep.mubr.f32.mxu0 %v440_v56  ;;  %v473_v55 = vld [vmem:[%s5979_s1 + $0x470] sm:$0xff] }
  0xd2   : > { %1555 = vmatprep.mubr.f32.mxu1 %v442_v57  ;;  %v2087_v56 = vld [vmem:[%s5982_s4 + $0xd0] sm:$0xff] }
  0xd3   : > { %1171 = vmatmul.mubr.f32.gmra.mxu0 %v439_v58  ;;  %v2119_v57 = vld [vmem:[%s5982_s4 + $0x1d0] sm:$0xff]  ;;  %v476_v58 = vld [vmem:[%s5979_s1 + $0x488] sm:$0xff] }
  0xd4   : > { %1556 = vmatmul.mubr.f32.gmra.mxu1 %v441_v59  ;;  %2277 = vperm.xlu0 %3608, %v2091_v61   ;;  %v478_v59 = vld [vmem:[%s5979_s1 + $0x498] sm:$0xff]  ;;  %v4575_v61 = vpop.permute.xlu0 %728 }
  0xd5   : > { %2437 = vperm.xlu1 %3609, %v2123_v62   ;;  %1175 = vmatprep.mubr.f32.mxu0 %v444_v63  ;;  %v475_v62 = vld [vmem:[%s5979_s1 + $0x480] sm:$0xff]  ;;  %v477_v63 = vld [vmem:[%s5979_s1 + $0x490] sm:$0xff] }
  0xd6   : > { %1560 = vmatprep.mubr.f32.mxu1 %v446_v1  ;;  %v4426_v5 = vpop.permute.xlu1 %703 }
  0xd7   : > { %1176 = vmatmul.mubr.f32.gmra.mxu0 %v443_v2  ;;  %v2071_v2 = vld [vmem:[%s5982_s4 + $0x50] sm:$0xff] }
  0xd8   : > { %1561 = vmatmul.mubr.f32.gmra.mxu1 %v445_v3  ;;  %2197 = vperm.xlu0 %3608, %v2075_v4   ;;  %v2103_v3 = vld [vmem:[%s5982_s4 + $0x150] sm:$0xff]  ;;  %v480_v4 = vld [vmem:[%s5979_s1 + $0x4a8] sm:$0xff] }
  0xd9   : > { %2357 = vperm.xlu1 %3609, %v2107_v6   ;;  %1180 = vmatprep.mubr.f32.mxu0 %v448_v7  ;;  %v482_v6 = vld [vmem:[%s5979_s1 + $0x4b8] sm:$0xff]  ;;  %v479_v7 = vld [vmem:[%s5979_s1 + $0x4a0] sm:$0xff] }
  0xda   : > { %1565 = vmatprep.mubr.f32.mxu1 %v450_v8  ;;  %v481_v8 = vld [vmem:[%s5979_s1 + $0x4b0] sm:$0xff] }
  0xdb   : > { %v4449_v13 = vpop.permute.xlu1 %698  ;;  %1181 = vmatmul.mubr.f32.gmra.mxu0 %v447_v9  ;;  %v2086_v9 = vld [vmem:[%s5982_s4 + $0xc8] sm:$0xff] }
  0xdc   : > { %1566 = vmatmul.mubr.f32.gmra.mxu1 %v449_v10  ;;  %2272 = vperm.xlu0 %3608, %v2090_v11   ;;  %v2118_v10 = vld [vmem:[%s5982_s4 + $0x1c8] sm:$0xff]  ;;  %v4609_v11 = vpop.permute.xlu0 %723 }
  0xdd   : > { %2432 = vperm.xlu1 %3609, %v2122_v12   ;;  %1185 = vmatprep.mubr.f32.mxu0 %v452_v14  ;;  %v484_v12 = vld [vmem:[%s5979_s1 + $0x4c8] sm:$0xff]  ;;  %v486_v14 = vld [vmem:[%s5979_s1 + $0x4d8] sm:$0xff] }
  0xde   : > { %1570 = vmatprep.mubr.f32.mxu1 %v454_v15 }
  0xdf   : > { %1186 = vmatmul.mubr.f32.gmra.mxu0 %v451_v16  ;;  %v483_v16 = vld [vmem:[%s5979_s1 + $0x4c0] sm:$0xff] }
  0xe0   : > { %1571 = vmatmul.mubr.f32.gmra.mxu1 %v453_v17  ;;  %v4475_v22 = vpop.permute.xlu1 %693  ;;  %2192 = vperm.xlu0 %3608, %v2074_v18   ;;  %v485_v17 = vld [vmem:[%s5979_s1 + $0x4d0] sm:$0xff]  ;;  %v2070_v18 = vld [vmem:[%s5982_s4 + $0x48] sm:$0xff] }
  0xe1   : > { %2352 = vperm.xlu1 %3609, %v2106_v19   ;;  %1190 = vmatprep.mubr.f32.mxu0 %v456_v20  ;;  %v2102_v19 = vld [vmem:[%s5982_s4 + $0x148] sm:$0xff] }
  0xe2   : > { %1575 = vmatprep.mubr.f32.mxu1 %v458_v21  ;;  %v488_v20 = vld [vmem:[%s5979_s1 + $0x4e8] sm:$0xff]  ;;  %v490_v21 = vld [vmem:[%s5979_s1 + $0x4f8] sm:$0xff] }
  0xe3   : > { %1191 = vmatmul.mubr.f32.gmra.mxu0 %v455_v23  ;;  %v4637_v23 = vpop.permute.xlu0 %883 }
  0xe4   : > { %1576 = vmatmul.mubr.f32.gmra.mxu1 %v457_v24  ;;  %v4495_v29 = vpop.permute.xlu1 %688  ;;  %2267 = vperm.xlu0 %3608, %v2089_v25   ;;  %5989 = vst [vmem:[#allocation6_spill] sm:$0xff] %v4637_v23  ;;  %v487_v24 = vld [vmem:[%s5979_s1 + $0x4e0] sm:$0xff]  ;;  %v489_v25 = vld [vmem:[%s5979_s1 + $0x4f0] sm:$0xff] }
  0xe5   : > { %2427 = vperm.xlu1 %3609, %v2121_v26   ;;  %1195 = vmatprep.mubr.f32.mxu0 %v460_v27  ;;  %v2085_v27 = vld [vmem:[%s5982_s4 + $0xc0] sm:$0xff] }
  0xe6   : > { %1580 = vmatprep.mubr.f32.mxu1 %v462_v28  ;;  %v2117_v28 = vld [vmem:[%s5982_s4 + $0x1c0] sm:$0xff] }
  0xe7   : > { %1196 = vmatmul.mubr.f32.gmra.mxu0 %v459_v30  ;;  %v492_v30 = vld [vmem:[%s5979_s1 + $0x508] sm:$0xff] }
  0xe8   : > { %1581 = vmatmul.mubr.f32.gmra.mxu1 %v461_v31  ;;  %v4515_v37 = vpop.permute.xlu1 %683  ;;  %2187 = vperm.xlu0 %3608, %v2073_v32   ;;  %v494_v31 = vld [vmem:[%s5979_s1 + $0x518] sm:$0xff]  ;;  %v491_v32 = vld [vmem:[%s5979_s1 + $0x500] sm:$0xff] }
  0xe9   : > { %2347 = vperm.xlu1 %3609, %v2105_v33   ;;  %1200 = vmatprep.mubr.f32.mxu0 %v464_v34  ;;  %v493_v33 = vld [vmem:[%s5979_s1 + $0x510] sm:$0xff]  ;;  %v2069_v34 = vld [vmem:[%s5982_s4 + $0x40] sm:$0xff] }
  0xea   : > { %1585 = vmatprep.mubr.f32.mxu1 %v466_v36  ;;  %v2101_v36 = vld [vmem:[%s5982_s4 + $0x140] sm:$0xff] }
  0xeb   : > { %1201 = vmatmul.mubr.f32.gmra.mxu0 %v463_v38  ;;  %v4671_v38 = vpop.permute.xlu0 %878 }
  0xec   : > { %1586 = vmatmul.mubr.f32.gmra.mxu1 %v465_v39  ;;  %v4535_v45 = vpop.permute.xlu1 %678  ;;  %2262 = vperm.xlu0 %3608, %v2088_v40   ;;  %5990 = vst [vmem:[#allocation7_spill] sm:$0xff] %v4671_v38  ;;  %v496_v39 = vld [vmem:[%s5979_s1 + $0x528] sm:$0xff]  ;;  %v498_v40 = vld [vmem:[%s5979_s1 + $0x538] sm:$0xff] }
  0xed   : > { %2422 = vperm.xlu1 %3609, %v2120_v41   ;;  %1205 = vmatprep.mubr.f32.mxu0 %v468_v42  ;;  %v495_v42 = vld [vmem:[%s5979_s1 + $0x520] sm:$0xff]  ;;  %v1806_v38 = vld [vmem:[#allocation2 + $0x8] sm:$0xff] }
  0xee   : > { %1590 = vmatprep.mubr.f32.mxu1 %v470_v43  ;;  %v497_v43 = vld [vmem:[%s5979_s1 + $0x530] sm:$0xff] }
  0xef   : > { %1206 = vmatmul.mubr.f32.gmra.mxu0 %v467_v46  ;;  %v2084_v46 = vld [vmem:[%s5982_s4 + $0xb8] sm:$0xff] }
  0xf0   : > { %1591 = vmatmul.mubr.f32.gmra.mxu1 %v469_v47  ;;  %v4555_v53 = vpop.permute.xlu1 %673  ;;  %2182 = vperm.xlu0 %3608, %v2072_v48   ;;  %v2116_v47 = vld [vmem:[%s5982_s4 + $0x1b8] sm:$0xff]  ;;  %v500_v48 = vld [vmem:[%s5979_s1 + $0x548] sm:$0xff] }
  0xf1   : > { %2342 = vperm.xlu1 %3609, %v2104_v49   ;;  %1210 = vmatprep.mubr.f32.mxu0 %v472_v50  ;;  %v502_v49 = vld [vmem:[%s5979_s1 + $0x558] sm:$0xff]  ;;  %v4699_v50 = vpop.permute.xlu0 %873 }
  0xf2   : > { %1595 = vmatprep.mubr.f32.mxu1 %v474_v52  ;;  %5991 = vst [vmem:[#allocation8_spill] sm:$0xff] %v4699_v50  ;;  %v499_v52 = vld [vmem:[%s5979_s1 + $0x540] sm:$0xff] }
  0xf3   : > { %1211 = vmatmul.mubr.f32.gmra.mxu0 %v471_v54  ;;  %v501_v54 = vld [vmem:[%s5979_s1 + $0x550] sm:$0xff] }
  0xf4   : > { %1596 = vmatmul.mubr.f32.gmra.mxu1 %v473_v55  ;;  %2257 = vperm.xlu0 %3608, %v2087_v56   ;;  %v4583_v1 = vpop.permute.xlu1 %668  ;;  %v2068_v56 = vld [vmem:[%s5982_s4 + $0x38] sm:$0xff] }
  0xf5   : > { %2417 = vperm.xlu1 %3609, %v2119_v57   ;;  %1215 = vmatprep.mubr.f32.mxu0 %v476_v58  ;;  %v2100_v57 = vld [vmem:[%s5982_s4 + $0x138] sm:$0xff]  ;;  %v504_v58 = vld [vmem:[%s5979_s1 + $0x568] sm:$0xff] }
  0xf6   : > { %1600 = vmatprep.mubr.f32.mxu1 %v478_v59  ;;  %v506_v59 = vld [vmem:[%s5979_s1 + $0x578] sm:$0xff] }
  0xf7   : > { %1216 = vmatmul.mubr.f32.gmra.mxu0 %v475_v62  ;;  %v503_v62 = vld [vmem:[%s5979_s1 + $0x560] sm:$0xff] }
  0xf8   : > { %1601 = vmatmul.mubr.f32.gmra.mxu1 %v477_v63  ;;  %2177 = vperm.xlu0 %3608, %v2071_v2   ;;  %v4617_v15 = vpop.permute.xlu1 %663  ;;  %v505_v63 = vld [vmem:[%s5979_s1 + $0x570] sm:$0xff] }
  0xf9   : > { %2337 = vperm.xlu1 %3609, %v2103_v3   ;;  %1220 = vmatprep.mubr.f32.mxu0 %v480_v4  ;;  %v2083_v2 = vld [vmem:[%s5982_s4 + $0xb0] sm:$0xff]  ;;  %v4733_v4 = vpop.permute.xlu0 %868 }
  0xfa   : > { %1605 = vmatprep.mubr.f32.mxu1 %v482_v6  ;;  %v2115_v3 = vld [vmem:[%s5982_s4 + $0x1b0] sm:$0xff]  ;;  %5992 = vst [vmem:[#allocation9_spill] sm:$0xff] %v4733_v4  ;;  %v508_v6 = vld [vmem:[%s5979_s1 + $0x588] sm:$0xff]  ;;  %v583_v4 = vld [vmem:[%s5979_s1 + $0x7e0] sm:$0xff] }
  0xfb   : > { %1221 = vmatmul.mubr.f32.gmra.mxu0 %v479_v7  ;;  %v510_v7 = vld [vmem:[%s5979_s1 + $0x598] sm:$0xff] }
  0xfc   : > { %1606 = vmatmul.mubr.f32.gmra.mxu1 %v481_v8  ;;  %2252 = vperm.xlu0 %3608, %v2086_v9   ;;  %v4645_v26 = vpop.permute.xlu1 %658  ;;  %v507_v9 = vld [vmem:[%s5979_s1 + $0x580] sm:$0xff] }
  0xfd   : > { %2412 = vperm.xlu1 %3609, %v2118_v10   ;;  %1225 = vmatprep.mubr.f32.mxu0 %v484_v12  ;;  %v509_v10 = vld [vmem:[%s5979_s1 + $0x590] sm:$0xff] }
  0xfe   : > { %1610 = vmatprep.mubr.f32.mxu1 %v486_v14  ;;  %v2067_v12 = vld [vmem:[%s5982_s4 + $0x30] sm:$0xff] }
  0xff   : > { %1226 = vmatmul.mubr.f32.gmra.mxu0 %v483_v16  ;;  %v2099_v14 = vld [vmem:[%s5982_s4 + $0x130] sm:$0xff]  ;;  %v512_v16 = vld [vmem:[%s5979_s1 + $0x5a8] sm:$0xff] }
 0x100   : > { %1611 = vmatmul.mubr.f32.gmra.mxu1 %v485_v17  ;;  %2172 = vperm.xlu0 %3608, %v2070_v18   ;;  %v4679_v41 = vpop.permute.xlu1 %653  ;;  %v514_v17 = vld [vmem:[%s5979_s1 + $0x5b8] sm:$0xff]  ;;  %v4761_v18 = vpop.permute.xlu0 %863 }
 0x101   : > { %2332 = vperm.xlu1 %3609, %v2102_v19   ;;  %1230 = vmatprep.mubr.f32.mxu0 %v488_v20  ;;  %5993 = vst [vmem:[#allocation10_spill] sm:$0xff] %v4761_v18  ;;  %v511_v19 = vld [vmem:[%s5979_s1 + $0x5a0] sm:$0xff]  ;;  %v513_v20 = vld [vmem:[%s5979_s1 + $0x5b0] sm:$0xff] }
 0x102   : > { %1615 = vmatprep.mubr.f32.mxu1 %v490_v21 }
 0x103   : > { %1231 = vmatmul.mubr.f32.gmra.mxu0 %v487_v24  ;;  %v2082_v24 = vld [vmem:[%s5982_s4 + $0xa8] sm:$0xff] }
 0x104   : > { %1616 = vmatmul.mubr.f32.gmra.mxu1 %v489_v25  ;;  %2247 = vperm.xlu0 %3608, %v2085_v27   ;;  %v4707_v55 = vpop.permute.xlu1 %808  ;;  %v2114_v25 = vld [vmem:[%s5982_s4 + $0x1a8] sm:$0xff] }
 0x105   : > { %2407 = vperm.xlu1 %3609, %v2117_v28   ;;  %1235 = vmatprep.mubr.f32.mxu0 %v492_v30  ;;  %v516_v27 = vld [vmem:[%s5979_s1 + $0x5c8] sm:$0xff]  ;;  %v518_v28 = vld [vmem:[%s5979_s1 + $0x5d8] sm:$0xff]  ;;  %v515_v30 = vld [vmem:[%s5979_s1 + $0x5c0] sm:$0xff] }
 0x106   : > { %1620 = vmatprep.mubr.f32.mxu1 %v494_v31  ;;  %v517_v31 = vld [vmem:[%s5979_s1 + $0x5d0] sm:$0xff] }
 0x107   : > { %1236 = vmatmul.mubr.f32.gmra.mxu0 %v491_v32  ;;  %v2066_v32 = vld [vmem:[%s5982_s4 + $0x28] sm:$0xff] }
 0x108   : > { %1621 = vmatmul.mubr.f32.gmra.mxu1 %v493_v33  ;;  %2167 = vperm.xlu0 %3608, %v2069_v34   ;;  %v4741_v8 = vpop.permute.xlu1 %803  ;;  %v2098_v33 = vld [vmem:[%s5982_s4 + $0x128] sm:$0xff]  ;;  %v4795_v34 = vpop.permute.xlu0 %858 }
 0x109   : > { %2327 = vperm.xlu1 %3609, %v2101_v36   ;;  %1240 = vmatprep.mubr.f32.mxu0 %v496_v39  ;;  %5994 = vst [vmem:[#allocation11_spill] sm:$0xff] %v4795_v34  ;;  %v520_v36 = vld [vmem:[%s5979_s1 + $0x5e8] sm:$0xff]  ;;  %v522_v39 = vld [vmem:[%s5979_s1 + $0x5f8] sm:$0xff]  ;;  %v581_v34 = vld [vmem:[%s5979_s1 + $0x7d0] sm:$0xff] }
 0x10a   : > { %1625 = vmatprep.mubr.f32.mxu1 %v498_v40 }
 0x10b   : > { %1241 = vmatmul.mubr.f32.gmra.mxu0 %v495_v42  ;;  %v519_v42 = vld [vmem:[%s5979_s1 + $0x5e0] sm:$0xff] }
 0x10c   : > { %1626 = vmatmul.mubr.f32.gmra.mxu1 %v497_v43  ;;  %2242 = vperm.xlu0 %3608, %v2084_v46   ;;  %v4769_v21 = vpop.permute.xlu1 %798  ;;  %v521_v43 = vld [vmem:[%s5979_s1 + $0x5f0] sm:$0xff]  ;;  %v2081_v46 = vld [vmem:[%s5982_s4 + $0xa0] sm:$0xff] }
 0x10d   : > { %2402 = vperm.xlu1 %3609, %v2116_v47   ;;  %1245 = vmatprep.mubr.f32.mxu0 %v500_v48  ;;  %v2113_v47 = vld [vmem:[%s5982_s4 + $0x1a0] sm:$0xff]  ;;  %v524_v48 = vld [vmem:[%s5979_s1 + $0x608] sm:$0xff] }
 0x10e   : > { %1630 = vmatprep.mubr.f32.mxu1 %v502_v49  ;;  %v526_v49 = vld [vmem:[%s5979_s1 + $0x618] sm:$0xff] }
 0x10f   : > { %1246 = vmatmul.mubr.f32.gmra.mxu0 %v499_v52  ;;  %v4823_v52 = vpop.permute.xlu0 %853 }
 0x110   : > { %1631 = vmatmul.mubr.f32.gmra.mxu1 %v501_v54  ;;  %2162 = vperm.xlu0 %3608, %v2068_v56   ;;  %v4803_v40 = vpop.permute.xlu1 %793  ;;  %5995 = vst [vmem:[#allocation12_spill] sm:$0xff] %v4823_v52  ;;  %v523_v54 = vld [vmem:[%s5979_s1 + $0x600] sm:$0xff]  ;;  %v525_v56 = vld [vmem:[%s5979_s1 + $0x610] sm:$0xff]  ;;  %v580_v52 = vld [vmem:[%s5979_s1 + $0x7c8] sm:$0xff] }
 0x111   : > { %2322 = vperm.xlu1 %3609, %v2100_v57   ;;  %1250 = vmatprep.mubr.f32.mxu0 %v504_v58  ;;  %v2065_v58 = vld [vmem:[%s5982_s4 + $0x20] sm:$0xff] }
 0x112   : > { %1635 = vmatprep.mubr.f32.mxu1 %v506_v59  ;;  %v2097_v59 = vld [vmem:[%s5982_s4 + $0x120] sm:$0xff] }
 0x113   : > { %1251 = vmatmul.mubr.f32.gmra.mxu0 %v503_v62  ;;  %v528_v62 = vld [vmem:[%s5979_s1 + $0x628] sm:$0xff] }
 0x114   : > { %1636 = vmatmul.mubr.f32.gmra.mxu1 %v505_v63  ;;  %2237 = vperm.xlu0 %3608, %v2083_v2   ;;  %v4831_v57 = vpop.permute.xlu1 %788  ;;  %v530_v63 = vld [vmem:[%s5979_s1 + $0x638] sm:$0xff] }
 0x115   : > { %2397 = vperm.xlu1 %3609, %v2115_v3   ;;  %1255 = vmatprep.mubr.f32.mxu0 %v508_v6 }
 0x116   : > { %1640 = vmatprep.mubr.f32.mxu1 %v510_v7  ;;  %v527_v7 = vld [vmem:[%s5979_s1 + $0x620] sm:$0xff] }
 0x117   : > { %1256 = vmatmul.mubr.f32.gmra.mxu0 %v507_v9  ;;  %v529_v9 = vld [vmem:[%s5979_s1 + $0x630] sm:$0xff] }
 0x118   : > { %1641 = vmatmul.mubr.f32.gmra.mxu1 %v509_v10  ;;  %2157 = vperm.xlu0 %3608, %v2067_v12   ;;  %v2080_v12 = vld [vmem:[%s5982_s4 + $0x98] sm:$0xff] }
 0x119   : > { %2317 = vperm.xlu1 %3609, %v2099_v14   ;;  %1260 = vmatprep.mubr.f32.mxu0 %v512_v16  ;;  %v4858_v14 = vpop.permute.xlu0 %848 }
 0x11a   : > { %1645 = vmatprep.mubr.f32.mxu1 %v514_v17  ;;  %5996 = vst [vmem:[#allocation13_spill] sm:$0xff] %v4858_v14 }
 0x11b   : > { %1261 = vmatmul.mubr.f32.gmra.mxu0 %v511_v19  ;;  %v532_v19 = vld [vmem:[%s5979_s1 + $0x648] sm:$0xff] }
 0x11c   : > { %1646 = vmatmul.mubr.f32.gmra.mxu1 %v513_v20  ;;  %2232 = vperm.xlu0 %3608, %v2082_v24   ;;  %v534_v20 = vld [vmem:[%s5979_s1 + $0x658] sm:$0xff]  ;;  %v4868_v24 = vpop.permute.xlu1 %783 }
 0x11d   : > { %2392 = vperm.xlu1 %3609, %v2114_v25   ;;  %1265 = vmatprep.mubr.f32.mxu0 %v516_v27 }
 0x11e   : > { %1650 = vmatprep.mubr.f32.mxu1 %v518_v28 }
 0x11f   : > { %1266 = vmatmul.mubr.f32.gmra.mxu0 %v515_v30  ;;  %v531_v30 = vld [vmem:[%s5979_s1 + $0x640] sm:$0xff] }
 0x120   : > { %1651 = vmatmul.mubr.f32.gmra.mxu1 %v517_v31  ;;  %2152 = vperm.xlu0 %3608, %v2066_v32   ;;  %v533_v31 = vld [vmem:[%s5979_s1 + $0x650] sm:$0xff] }
 0x121   : > { %2312 = vperm.xlu1 %3609, %v2098_v33   ;;  %1270 = vmatprep.mubr.f32.mxu0 %v520_v36  ;;  %v2064_v33 = vld [vmem:[%s5982_s4 + $0x18] sm:$0xff] }
 0x122   : > { %1655 = vmatprep.mubr.f32.mxu1 %v522_v39 }
 0x123   : > { %1271 = vmatmul.mubr.f32.gmra.mxu0 %v519_v42  ;;  %v536_v42 = vld [vmem:[%s5979_s1 + $0x668] sm:$0xff] }
 0x124   : > { %1656 = vmatmul.mubr.f32.gmra.mxu1 %v521_v43  ;;  %2227 = vperm.xlu0 %3608, %v2081_v46   ;;  %v538_v43 = vld [vmem:[%s5979_s1 + $0x678] sm:$0xff] }
 0x125   : > { %2387 = vperm.xlu1 %3609, %v2113_v47   ;;  %1275 = vmatprep.mubr.f32.mxu0 %v524_v48  ;;  %v4891_v47 = vpop.permute.xlu0 %843 }
 0x126   : > { %1660 = vmatprep.mubr.f32.mxu1 %v526_v49  ;;  %5997 = vst [vmem:[#allocation14_spill] sm:$0xff] %v4891_v47  ;;  %v575_v47 = vld [vmem:[%s5979_s1 + $0x7a0] sm:$0xff] }
 0x127   : > { %v1037_v2 = vpop.f32.mrf.mxu0  ;;  %1276 = vmatmul.mubr.f32.gmra.mxu0 %v523_v54  ;;  %v535_v54 = vld [vmem:[%s5979_s1 + $0x660] sm:$0xff] }
 0x128   : > { %1661 = vmatmul.mubr.f32.gmra.mxu1 %v525_v56  ;;  %v1038_v3 = vadd.f32 %v1037_v2, %v4679_v41  ;;  %v1422_v6 = vpop.f32.mrf.mxu1  ;;  %2147 = vperm.xlu0 %3608, %v2065_v58   ;;  %v2112_v41 = vld [vmem:[%s5982_s4 + $0x198] sm:$0xff]  ;;  %v537_v56 = vld [vmem:[%s5979_s1 + $0x670] sm:$0xff]  ;;  %v4900_v58 = vpop.permute.xlu1 %778 }
 0x129   : > { %2307 = vperm.xlu1 %3609, %v2097_v59   ;;  %v1039_v10 = vpop.f32.mrf.mxu0  ;;  %1280 = vmatprep.mubr.f32.mxu0 %v528_v62  ;;  %v2111_v62 = vld [vmem:[%s5982_s4 + $0x190] sm:$0xff] }
 0x12a   : > { %1665 = vmatprep.mubr.f32.mxu1 %v530_v63  ;;  %v4860_v16 = vadd.f32 %v1422_v6, %v1038_v3  ;;  %v1424_v17 = vpop.f32.mrf.mxu1  ;;  %v540_v3 = vld [vmem:[%s5979_s1 + $0x688] sm:$0xff]  ;;  %v542_v6 = vld [vmem:[%s5979_s1 + $0x698] sm:$0xff] }
 0x12b   : > { %v1042_v25 = vpop.f32.mrf.mxu0  ;;  %1281 = vmatmul.mubr.f32.gmra.mxu0 %v527_v7 }
 0x12c   : > { %1666 = vmatmul.mubr.f32.gmra.mxu1 %v529_v9  ;;  %v1043_v27 = vadd.f32 %v1042_v25, %v4645_v26  ;;  %v1427_v28 = vpop.f32.mrf.mxu1  ;;  %2222 = vperm.xlu0 %3608, %v2080_v12   ;;  %v2096_v26 = vld [vmem:[%s5982_s4 + $0x118] sm:$0xff]  ;;  %v539_v12 = vld [vmem:[%s5979_s1 + $0x680] sm:$0xff] }
 0x12d   : > { %2382 = vperm.xlu1 %3609, %v2112_v41   ;;  %v1044_v32 = vpop.f32.mrf.mxu0  ;;  %1285 = vmatprep.mubr.f32.mxu0 %v532_v19  ;;  %v541_v41 = vld [vmem:[%s5979_s1 + $0x690] sm:$0xff] }
 0x12e   : > { %1670 = vmatprep.mubr.f32.mxu1 %v534_v20  ;;  %v4883_v36 = vadd.f32 %v1427_v28, %v1043_v27  ;;  %v1429_v39 = vpop.f32.mrf.mxu1  ;;  %v2063_v19 = vld [vmem:[%s5982_s4 + $0x10] sm:$0xff]  ;;  %v4929_v20 = vpop.permute.xlu0 %838  ;;  %v544_v28 = vld [vmem:[%s5979_s1 + $0x6a8] sm:$0xff] }
 0x12f   : > { %v1047_v46 = vpop.f32.mrf.mxu0  ;;  %1286 = vmatmul.mubr.f32.gmra.mxu0 %v531_v30  ;;  %5998 = vst [vmem:[#allocation15_spill] sm:$0xff] %v4929_v20  ;;  %v546_v30 = vld [vmem:[%s5979_s1 + $0x6b8] sm:$0xff]  ;;  %v543_v39 = vld [vmem:[%s5979_s1 + $0x6a0] sm:$0xff] }
 0x130   : > { %1671 = vmatmul.mubr.f32.gmra.mxu1 %v533_v31  ;;  %v1048_v48 = vadd.f32 %v1047_v46, %v4617_v15  ;;  %v1432_v49 = vpop.f32.mrf.mxu1  ;;  %2142 = vperm.xlu0 %3608, %v2064_v33   ;;  %v2079_v15 = vld [vmem:[%s5982_s4 + $0x90] sm:$0xff]  ;;  %v4939_v31 = vpop.permute.xlu1 %773  ;;  %v2078_v46 = vld [vmem:[%s5982_s4 + $0x88] sm:$0xff] }
 0x131   : > { %2302 = vperm.xlu1 %3609, %v2096_v26   ;;  %v1049_v59 = vpop.f32.mrf.mxu0  ;;  %1290 = vmatprep.mubr.f32.mxu0 %v536_v42  ;;  %v545_v42 = vld [vmem:[%s5979_s1 + $0x6b0] sm:$0xff] }
 0x132   : > { %1675 = vmatprep.mubr.f32.mxu1 %v538_v43  ;;  %v4908_v63 = vadd.f32 %v1432_v49, %v1048_v48  ;;  %v1434_v2 = vpop.f32.mrf.mxu1 }
 0x133   : > { %v1052_v7 = vpop.f32.mrf.mxu0  ;;  %1291 = vmatmul.mubr.f32.gmra.mxu0 %v535_v54  ;;  %v548_v54 = vld [vmem:[%s5979_s1 + $0x6c8] sm:$0xff]  ;;  %v547_v2 = vld [vmem:[%s5979_s1 + $0x6c0] sm:$0xff] }
 0x134   : > { %1676 = vmatmul.mubr.f32.gmra.mxu1 %v537_v56  ;;  %v1053_v9 = vadd.f32 %v1052_v7, %v4583_v1  ;;  %v1437_v10 = vpop.f32.mrf.mxu1  ;;  %2217 = vperm.xlu0 %3608, %v2079_v15   ;;  %v2095_v1 = vld [vmem:[%s5982_s4 + $0x110] sm:$0xff]  ;;  %v550_v56 = vld [vmem:[%s5979_s1 + $0x6d8] sm:$0xff]  ;;  %v4964_v15 = vpop.permute.xlu0 %833 }
 0x135   : > { %2377 = vperm.xlu1 %3609, %v2111_v62   ;;  %v1054_v17 = vpop.f32.mrf.mxu0  ;;  %1295 = vmatprep.mubr.f32.mxu0 %v540_v3  ;;  %5999 = vst [vmem:[#allocation16_spill] sm:$0xff] %v4964_v15  ;;  %v549_v3 = vld [vmem:[%s5979_s1 + $0x6d0] sm:$0xff] }
 0x136   : > { %1680 = vmatprep.mubr.f32.mxu1 %v542_v6  ;;  %v4931_v25 = vadd.f32 %v1437_v10, %v1053_v9  ;;  %v1439_v27 = vpop.f32.mrf.mxu1  ;;  %v4974_v6 = vpop.permute.xlu1 %768  ;;  %v2062_v9 = vld [vmem:[%s5982_s4 + $0x8] sm:$0xff]  ;;  %v554_v17 = vld [vmem:[%s5979_s1 + $0x6f8] sm:$0xff] }
 0x137   : > { %v1057_v32 = vpop.f32.mrf.mxu0  ;;  %1296 = vmatmul.mubr.f32.gmra.mxu0 %v539_v12  ;;  %6000 = vst [vmem:[#allocation17_spill] sm:$0xff] %v4974_v6  ;;  %v2094_v10 = vld [vmem:[%s5982_s4 + $0x108] sm:$0xff]  ;;  %v551_v27 = vld [vmem:[%s5979_s1 + $0x6e0] sm:$0xff] }
 0x138   : > { %1681 = vmatmul.mubr.f32.gmra.mxu1 %v541_v41  ;;  %v1058_v33 = vadd.f32 %v1057_v32, %v4555_v53  ;;  %v1442_v26 = vpop.f32.mrf.mxu1  ;;  %2137 = vperm.xlu0 %3608, %v2063_v19   ;;  %v2110_v53 = vld [vmem:[%s5982_s4 + $0x188] sm:$0xff]  ;;  %v2077_v32 = vld [vmem:[%s5982_s4 + $0x80] sm:$0xff] }
 0x139   : > { %2297 = vperm.xlu1 %3609, %v2095_v1   ;;  %v1059_v43 = vpop.f32.mrf.mxu0  ;;  %1300 = vmatprep.mubr.f32.mxu0 %v544_v28  ;;  %v552_v41 = vld [vmem:[%s5979_s1 + $0x6e8] sm:$0xff]  ;;  %v553_v28 = vld [vmem:[%s5979_s1 + $0x6f0] sm:$0xff] }
 0x13a   : > { %1685 = vmatprep.mubr.f32.mxu1 %v546_v30  ;;  %v4954_v48 = vadd.f32 %v1442_v26, %v1058_v33  ;;  %v1444_v49 = vpop.f32.mrf.mxu1  ;;  %v2109_v33 = vld [vmem:[%s5982_s4 + $0x180] sm:$0xff]  ;;  %v5004_v26 = vpop.permute.xlu0 %828  ;;  %v558_v43 = vld [vmem:[%s5979_s1 + $0x718] sm:$0xff] }
 0x13b   : > { %v4962_v59 = vpop.f32.mrf.mxu0  ;;  %1301 = vmatmul.mubr.f32.gmra.mxu0 %v543_v39  ;;  %6001 = vst [vmem:[#allocation18_spill] sm:$0xff] %v5004_v26 }
 0x13c   : > { %1686 = vmatmul.mubr.f32.gmra.mxu1 %v545_v42  ;;  %v4966_v62 = vpop.f32.mrf.mxu1  ;;  %2212 = vperm.xlu0 %3608, %v2078_v46   ;;  %v556_v42 = vld [vmem:[%s5979_s1 + $0x708] sm:$0xff]  ;;  %v5012_v46 = vpop.permute.xlu1 %763 }
 0x13d   : > { %2372 = vperm.xlu1 %3609, %v2110_v53   ;;  %v1064_v7 = vpop.f32.mrf.mxu0  ;;  %1305 = vmatprep.mubr.f32.mxu0 %v548_v54  ;;  %6002 = vst [vmem:[#allocation19_spill] sm:$0xff] %v5012_v46  ;;  %v555_v54 = vld [vmem:[%s5979_s1 + $0x700] sm:$0xff] }
 0x13e   : > { %1690 = vmatprep.mubr.f32.mxu1 %v550_v56  ;;  %v1449_v12 = vpop.f32.mrf.mxu1  ;;  %v557_v56 = vld [vmem:[%s5979_s1 + $0x710] sm:$0xff]  ;;  %v2093_v7 = vld [vmem:[%s5982_s4 + $0x100] sm:$0xff] }
 0x13f   : > { %v4988_v19 = vpop.f32.mrf.mxu0  ;;  %1306 = vmatmul.mubr.f32.gmra.mxu0 %v547_v2  ;;  %v562_v12 = vld [vmem:[%s5979_s1 + $0x738] sm:$0xff] }
 0x140   : > { %1691 = vmatmul.mubr.f32.gmra.mxu1 %v549_v3  ;;  %v4990_v1 = vpop.f32.mrf.mxu1  ;;  %2132 = vperm.xlu0 %3608, %v2062_v9   ;;  %v2061_v3 = vld [vmem:[%s5982_s4] sm:$0xff] }
 0x141   : > { %2292 = vperm.xlu1 %3609, %v2094_v10   ;;  %v1069_v30 = vpop.f32.mrf.mxu0  ;;  %1310 = vmatprep.mubr.f32.mxu0 %v552_v41  ;;  %v560_v10 = vld [vmem:[%s5979_s1 + $0x728] sm:$0xff] }
 0x142   : > { %1695 = vmatprep.mubr.f32.mxu1 %v554_v17  ;;  %v1454_v39 = vpop.f32.mrf.mxu1  ;;  %v5038_v17 = vpop.permute.xlu0 %823  ;;  %v561_v30 = vld [vmem:[%s5979_s1 + $0x730] sm:$0xff] }
 0x143   : > { %v5014_v53 = vpop.f32.mrf.mxu0  ;;  %1311 = vmatmul.mubr.f32.gmra.mxu0 %v551_v27  ;;  %6003 = vst [vmem:[#allocation20_spill] sm:$0xff] %v5038_v17  ;;  %v564_v39 = vld [vmem:[%s5979_s1 + $0x748] sm:$0xff] }
 0x144   : > { %1696 = vmatmul.mubr.f32.gmra.mxu1 %v553_v28  ;;  %v5016_v49 = vpop.f32.mrf.mxu1  ;;  %2207 = vperm.xlu0 %3608, %v2077_v32   ;;  %v559_v28 = vld [vmem:[%s5979_s1 + $0x720] sm:$0xff]  ;;  %v5048_v32 = vpop.permute.xlu1 %758 }
 0x145   : > { %2367 = vperm.xlu1 %3609, %v2109_v33   ;;  %v1074_v2 = vpop.f32.mrf.mxu0  ;;  %1315 = vmatprep.mubr.f32.mxu0 %v556_v42  ;;  %6004 = vst [vmem:[#allocation21_spill] sm:$0xff] %v5048_v32  ;;  %v566_v42 = vld [vmem:[%s5979_s1 + $0x758] sm:$0xff] }
 0x146   : > { %1700 = vmatprep.mubr.f32.mxu1 %v558_v43  ;;  %v1459_v9 = vpop.f32.mrf.mxu1  ;;  %v563_v2 = vld [vmem:[%s5979_s1 + $0x740] sm:$0xff] }
 0x147   : > { %v5036_v41 = vpop.f32.mrf.mxu0  ;;  %1316 = vmatmul.mubr.f32.gmra.mxu0 %v555_v54  ;;  %v568_v9 = vld [vmem:[%s5979_s1 + $0x768] sm:$0xff] }
 0x148   : > { %1701 = vmatmul.mubr.f32.gmra.mxu1 %v557_v56  ;;  %v5040_v27 = vpop.f32.mrf.mxu1  ;;  %2127 = vperm.xlu0 %3608, %v2061_v3   ;;  %v565_v3 = vld [vmem:[%s5979_s1 + $0x750] sm:$0xff] }
 0x149   : > { %2287 = vperm.xlu1 %3609, %v2093_v7   ;;  %v1079_v33 = vpop.f32.mrf.mxu0  ;;  %1320 = vmatprep.mubr.f32.mxu0 %v560_v10  ;;  %v570_v10 = vld [vmem:[%s5979_s1 + $0x778] sm:$0xff] }
 0x14a   : > { %1705 = vmatprep.mubr.f32.mxu1 %v562_v12  ;;  %v1464_v43 = vpop.f32.mrf.mxu1 }
 0x14b   : > { %v5056_v54 = vpop.f32.mrf.mxu0  ;;  %1321 = vmatmul.mubr.f32.gmra.mxu0 %v559_v28  ;;  %v5072_v28 = vpop.permute.xlu1 %753 }
 0x14c   : > { %1706 = vmatmul.mubr.f32.gmra.mxu1 %v561_v30  ;;  %v5058_v56 = vpop.f32.mrf.mxu1  ;;  %1325 = vmatprep.mubr.f32.mxu0 %v564_v39  ;;  %v567_v39 = vld [vmem:[%s5979_s1 + $0x760] sm:$0xff] }
 0x14d   : > { %1710 = vmatprep.mubr.f32.mxu1 %v566_v42  ;;  %v1084_v7 = vpop.f32.mrf.mxu0  ;;  %v569_v42 = vld [vmem:[%s5979_s1 + $0x770] sm:$0xff] }
 0x14e   : > { %v1469_v12 = vpop.f32.mrf.mxu1  ;;  %v572_v7 = vld [vmem:[%s5979_s1 + $0x788] sm:$0xff] }
 0x14f   : > { %v5074_v30 = vpop.f32.mrf.mxu0  ;;  %1326 = vmatmul.mubr.f32.gmra.mxu0 %v563_v2  ;;  %v574_v2 = vld [vmem:[%s5979_s1 + $0x798] sm:$0xff]  ;;  %v571_v12 = vld [vmem:[%s5979_s1 + $0x780] sm:$0xff]  ;;  %v5100_v0 = vpop.permute.xlu1 %748 }
 0x150   : > { %1711 = vmatmul.mubr.f32.gmra.mxu1 %v565_v3  ;;  %v5076_v33 = vpop.f32.mrf.mxu1  ;;  %1330 = vmatprep.mubr.f32.mxu0 %v568_v9 }
 0x151   : > { %1715 = vmatprep.mubr.f32.mxu1 %v570_v10  ;;  %v1089_v43 = vpop.f32.mrf.mxu0 }
 0x152   : > { %v1474_v3 = vpop.f32.mrf.mxu1  ;;  %v573_v43 = vld [vmem:[%s5979_s1 + $0x790] sm:$0xff] }
 0x153   : > { %v5090_v9 = vpop.f32.mrf.mxu0  ;;  %1331 = vmatmul.mubr.f32.gmra.mxu0 %v567_v39  ;;  %v576_v39 = vld [vmem:[%s5979_s1 + $0x7a8] sm:$0xff] }
 0x154   : > { %1716 = vmatmul.mubr.f32.gmra.mxu1 %v569_v42  ;;  %v5092_v10 = vpop.f32.mrf.mxu1  ;;  %1335 = vmatprep.mubr.f32.mxu0 %v572_v7  ;;  %v578_v42 = vld [vmem:[%s5979_s1 + $0x7b8] sm:$0xff] }
 0x155   : > { %1720 = vmatprep.mubr.f32.mxu1 %v574_v2  ;;  %v1094_v20 = vpop.f32.mrf.mxu0 }
 0x156   : > { %v1479_v7 = vpop.f32.mrf.mxu1  ;;  %v577_v20 = vld [vmem:[%s5979_s1 + $0x7b0] sm:$0xff] }
 0x157   : > { %v1097_v2 = vpop.f32.mrf.mxu0  ;;  %1336 = vmatmul.mubr.f32.gmra.mxu0 %v571_v12  ;;  %v582_v12 = vld [vmem:[%s5979_s1 + $0x7d8] sm:$0xff] }
 0x158   : > { %1721 = vmatmul.mubr.f32.gmra.mxu1 %v573_v43  ;;  %v1482_v3 = vpop.f32.mrf.mxu1  ;;  %1340 = vmatprep.mubr.f32.mxu0 %v576_v39  ;;  %v5120_v39 = vpop.permute.xlu1 %743  ;;  %v1098_v26 = vadd.f32 %v1097_v2, %v4377_v51 }
 0x159   : > { %1725 = vmatprep.mubr.f32.mxu1 %v578_v42  ;;  %v1099_v14 = vpop.f32.mrf.mxu0 }
 0x15a   : > { %v1484_v43 = vpop.f32.mrf.mxu1  ;;  %v579_v14 = vld [vmem:[%s5979_s1 + $0x7c0] sm:$0xff] }
 0x15b   : > { %v1102_v42 = vpop.f32.mrf.mxu0  ;;  %1341 = vmatmul.mubr.f32.gmra.mxu0 %v575_v47  ;;  %v584_v43 = vld [vmem:[%s5979_s1 + $0x7e8] sm:$0xff]  ;;  %v586_v47 = vld [vmem:[%s5979_s1 + $0x7f8] sm:$0xff] }
 0x15c   : > { %1726 = vmatmul.mubr.f32.gmra.mxu1 %v577_v20  ;;  %v1487_v7 = vpop.f32.mrf.mxu1  ;;  %1345 = vmatprep.mubr.f32.mxu0 %v580_v52  ;;  %v739_v50 = vpop.permute.xlu1 %738 }
 0x15d   : > { %1730 = vmatprep.mubr.f32.mxu1 %v582_v12  ;;  %v1104_v18 = vpop.f32.mrf.mxu0 }
 0x15e   : > { %v1489_v20 = vpop.f32.mrf.mxu1  ;;  %v585_v18 = vld [vmem:[%s5979_s1 + $0x7f0] sm:$0xff] }
 0x15f   : > { %v1107_v52 = vpop.f32.mrf.mxu0  ;;  %1346 = vmatmul.mubr.f32.gmra.mxu0 %v579_v14 }
 0x160   : > { %1731 = vmatmul.mubr.f32.gmra.mxu1 %v581_v34  ;;  %v1492_v12 = vpop.f32.mrf.mxu1  ;;  %1350 = vmatprep.mubr.f32.mxu0 %v584_v43  ;;  %v1108_v23 = vadd.f32 %v1107_v52, %v4609_v11  ;;  %v1103_v34 = vadd.f32 %v1102_v42, %v4357_v44  ;;  %v1093_v11 = vadd.f32 %v5090_v9, %v4403_v60 }
 0x161   : > { %1735 = vmatprep.mubr.f32.mxu1 %v586_v47  ;;  %v1109_v35 = vpop.f32.mrf.mxu0  ;;  %v1083_v60 = vadd.f32 %v5056_v54, %v4449_v13 }
 0x162   : > { %v1494_v20 = vpop.f32.mrf.mxu1  ;;  %v1493_v32 = vadd.f32 %v1492_v12, %v1108_v23  ;;  %v734_v35 = vpop.permute.xlu1 %733  ;;  %v1488_v52 = vadd.f32 %v1487_v7, %v1103_v34 }
 0x163   : > { %v1112_v15 = vpop.f32.mrf.mxu0  ;;  %1351 = vmatmul.mubr.f32.gmra.mxu0 %v583_v4  ;;  %v1468_v54 = vadd.f32 %v5058_v56, %v1083_v60 }
 0x164   : > { %1736 = vmatmul.mubr.f32.gmra.mxu1 %v585_v18  ;;  %v1113_v14 = vadd.f32 %v1112_v15, %v4575_v61  ;;  %v1497_v43 = vpop.f32.mrf.mxu1  ;;  %2509 = vmatprep.mubr.f32.mxu0 %v1806_v38  ;;  %v1088_v61 = vadd.f32 %v5074_v30, %v4426_v5  ;;  %v1483_v38 = vadd.f32 %v1482_v3, %v1098_v26  ;;  %v1755_v15 = vmax.f32 %v1493_v32, 0.0 }
 0x165   : > { %v1114_v47 = vpop.f32.mrf.mxu0  ;;  %v1078_v5 = vadd.f32 %v5036_v41, %v4475_v22  ;;  %v1068_v41 = vadd.f32 %v4988_v19, %v4515_v37 }
 0x166   : > { %v1498_v46 = vadd.f32 %v1497_v43, %v1113_v14  ;;  %v1499_v17 = vpop.f32.mrf.mxu1  ;;  %v1473_v26 = vadd.f32 %v5076_v33, %v1088_v61  ;;  %v1753_v32 = vmax.f32 %v1483_v38, 0.0 }
 0x167   : > { %v1117_v6 = vpop.f32.mrf.mxu0  ;;  %v6005_v17 = vmov 0.0   ;;  %v1463_v33 = vadd.f32 %v5040_v27, %v1078_v5  ;;  %v1453_v19 = vadd.f32 %v4990_v1, %v1068_v41 }
 0x168   : > { %v1756_v4 = vmax.f32 %v1498_v46, 0.0  ;;  %v1118_v18 = vadd.f32 %v1117_v6, %v734_v35  ;;  %v1502_v20 = vpop.f32.mrf.mxu1  ;;  %v1478_v46 = vadd.f32 %v5092_v10, %v1093_v11  ;;  %v1754_v6 = vmax.f32 %v1488_v52, 0.0 }
 0x169   : > { %v1119_v44 = vpop.f32.mrf.mxu0  ;;  %v1751_v14 = vmax.f32 %v1473_v26, 0.0  ;;  %v1749_v27 = vmax.f32 %v1463_v33, 0.0 }
 0x16a   : > { %v5148_v42 = vadd.f32 %v1502_v20, %v1118_v18  ;;  %v1504_v51 = vpop.f32.mrf.mxu1  ;;  %2446 = vmatpush1.msra.mxu0 %v1756_v4  ;;  %v1752_v10 = vmax.f32 %v1478_v46, 0.0  ;;  %v1747_v44 = vmax.f32 %v1453_v19, 0.0  ;;  %v1744_v46 = vmax.f32 %v4931_v25, 0.0 }
 0x16b   : > { %v1122_v23 = vpop.f32.mrf.mxu0  ;;  %2447 = vmatprep.subr.mxu0 %v6005_v17 }
 0x16c   : > { %v1123_v9 = vadd.f32 %v1122_v23, %v739_v50  ;;  %v1507_v2 = vpop.f32.mrf.mxu1  ;;  %2448 = vmatpush1.msra.mxu0 %v1755_v15  ;;  %v1073_v50 = vadd.f32 %v5014_v53, %v4495_v29  ;;  %v1063_v53 = vadd.f32 %v4962_v59, %v4535_v45 }
 0x16d   : > { %v1124_v7 = vpop.f32.mrf.mxu0  ;;  %2449 = vmatprep.subr.mxu0 %v6005_v17 }
 0x16e   : > { %v5158_v30 = vadd.f32 %v1507_v2, %v1123_v9  ;;  %v1509_v3 = vpop.f32.mrf.mxu1  ;;  %2450 = vmatpush1.msra.mxu0 %v1754_v6  ;;  %v1458_v56 = vadd.f32 %v5016_v49, %v1073_v50  ;;  %v1448_v45 = vadd.f32 %v4966_v62, %v1063_v53  ;;  %v1743_v2 = vmax.f32 %v4908_v63, 0.0 }
 0x16f   : > { %v1127_v13 = vpop.f32.mrf.mxu0  ;;  %2451 = vmatprep.subr.mxu0 %v6005_v17 }
 0x170   : > { %v1128_v12 = vadd.f32 %v1127_v13, %v5120_v39  ;;  %v1512_v34 = vpop.f32.mrf.mxu1  ;;  %2452 = vmatpush1.msra.mxu0 %v1753_v32  ;;  %v1750_v39 = vmax.f32 %v1468_v54, 0.0  ;;  %v1748_v59 = vmax.f32 %v1458_v56, 0.0  ;;  %v1746_v15 = vmax.f32 %v1448_v45, 0.0  ;;  %v819_v54 = vpop.permute.xlu0 %818 }
 0x171   : > { %v1129_v22 = vpop.f32.mrf.mxu0  ;;  %2453 = vmatprep.subr.mxu0 %v6005_v17  ;;  %v1741_v32 = vmax.f32 %v4860_v16, 0.0 }
 0x172   : > { %v5169_v43 = vadd.f32 %v1512_v34, %v1128_v12  ;;  %v1514_v47 = vpop.f32.mrf.mxu1  ;;  %2454 = vmatpush1.msra.mxu0 %v1752_v10 }
 0x173   : > { %v1132_v29 = vpop.f32.mrf.mxu0  ;;  %2455 = vmatprep.subr.mxu0 %v6005_v17 }
 0x174   : > { %v1133_v35 = vadd.f32 %v1132_v29, %v5100_v0  ;;  %v1517_v11 = vpop.f32.mrf.mxu1  ;;  %2456 = vmatpush1.msra.mxu0 %v1751_v14  ;;  %v814_v33 = vpop.permute.xlu0 %813 }
 0x175   : > { %v1134_v37 = vpop.f32.mrf.mxu0  ;;  %2457 = vmatprep.subr.mxu0 %v6005_v17 }
 0x176   : > { %v5178_v52 = vadd.f32 %v1517_v11, %v1133_v35  ;;  %v1519_v4 = vpop.f32.mrf.mxu1  ;;  %2458 = vmatpush1.msra.mxu0 %v1750_v39 }
 0x177   : > { %v1137_v18 = vpop.f32.mrf.mxu0  ;;  %2459 = vmatprep.subr.mxu0 %v6005_v17 }
 0x178   : > { %v1138_v0 = vadd.f32 %v1137_v18, %v5072_v28  ;;  %v1522_v49 = vpop.f32.mrf.mxu1  ;;  %2460 = vmatpush1.msra.mxu0 %v1749_v27  ;;  %v1745_v28 = vmax.f32 %v4954_v48, 0.0  ;;  %v1742_v48 = vmax.f32 %v4883_v36, 0.0  ;;  %v5217_v35 = vpop.permute.xlu0 %968 }
 0x179   : > { %v1139_v20 = vpop.f32.mrf.mxu0  ;;  %2461 = vmatprep.subr.mxu0 %v6005_v17 }
 0x17a   : > { %v5184_v1 = vadd.f32 %v1522_v49, %v1138_v0  ;;  %v1524_v61 = vpop.f32.mrf.mxu1  ;;  %2462 = vmatpush1.msra.mxu0 %v1748_v59 }
 0x17b   : > { %v5186_v38 = vpop.f32.mrf.mxu0  ;;  %2463 = vmatprep.subr.mxu0 %v6005_v17 }
 0x17c   : > { %v5189_v51 = vpop.f32.mrf.mxu1  ;;  %2464 = vmatpush1.msra.mxu0 %v1747_v44  ;;  %v5219_v45 = vpop.permute.xlu0 %963 }
 0x17d   : > { %v1144_v62 = vpop.f32.mrf.mxu0  ;;  %2465 = vmatprep.subr.mxu0 %v6005_v17 }
 0x17e   : > { %v1529_v23 = vpop.f32.mrf.mxu1  ;;  %2466 = vmatpush1.msra.mxu0 %v1746_v15 }
 0x17f   : > { %v5193_v60 = vpop.f32.mrf.mxu0  ;;  %2467 = vmatprep.subr.mxu0 %v6005_v17 }
 0x180   : > { %v5197_v6 = vpop.f32.mrf.mxu1  ;;  %2468 = vmatpush1.msra.mxu0 %v1745_v28  ;;  %v5222_v62 = vpop.permute.xlu0 %958 }
 0x181   : > { %v1149_v9 = vpop.f32.mrf.mxu0  ;;  %2469 = vmatprep.subr.mxu0 %v6005_v17 }
 0x182   : > { %v1534_v7 = vpop.f32.mrf.mxu1  ;;  %2470 = vmatpush1.msra.mxu0 %v1744_v46 }
 0x183   : > { %v5201_v5 = vpop.f32.mrf.mxu0  ;;  %2471 = vmatprep.subr.mxu0 %v6005_v17 }
 0x184   : > { %v5205_v26 = vpop.f32.mrf.mxu1  ;;  %2472 = vmatpush1.msra.mxu0 %v1743_v2 }
 0x185   : > { %v1154_v25 = vpop.f32.mrf.mxu0  ;;  %2473 = vmatprep.subr.mxu0 %v6005_v17 }
 0x186   : > { %v1539_v3 = vpop.f32.mrf.mxu1  ;;  %2474 = vmatpush1.msra.mxu0 %v1742_v48 }
 0x187   : > { %v5209_v13 = vpop.f32.mrf.mxu0  ;;  %2475 = vmatprep.subr.mxu0 %v6005_v17 }
 0x188   : > { %v5212_v63 = vpop.f32.mrf.mxu1  ;;  %2476 = vmatpush1.msra.mxu0 %v1741_v32 }
 0x189   : > { %v1159_v50 = vpop.f32.mrf.mxu0  ;;  %2477 = vmatprep.subr.mxu0 %v6005_v17 }
 0x18a   : > { %v1544_v36 = vpop.f32.mrf.mxu1 }
 0x18b   : > { %v1162_v10 = vpop.f32.mrf.mxu0 }
 0x18c   : > { %v5215_v12 = vpop.f32.mrf.mxu1 }
 0x18d   : > { %v1164_v34 = vpop.f32.mrf.mxu0 }
 0x18e   : > { %v1549_v22 = vpop.f32.mrf.mxu1 }
 0x18f   : > { %v1167_v16 = vpop.f32.mrf.mxu0 }
 0x190   : > { %v1552_v41 = vpop.f32.mrf.mxu1 }
 0x191   : > { %v1169_v14 = vpop.f32.mrf.mxu0 }
 0x192   : > { %v1554_v47 = vpop.f32.mrf.mxu1  ;;  %v5228_v14 = vpop.permute.xlu0 %953 }
 0x193   : > { %v1172_v29 = vpop.f32.mrf.mxu0 }
 0x194   : > { %v1557_v53 = vpop.f32.mrf.mxu1  ;;  %v1173_v50 = vadd.f32 %v1172_v29, %v4831_v57  ;;  %v1163_v57 = vadd.f32 %v1162_v10, %v4900_v58 }
 0x195   : > { %v1174_v56 = vpop.f32.mrf.mxu0 }
 0x196   : > { %v1559_v39 = vpop.f32.mrf.mxu1  ;;  %v1558_v29 = vadd.f32 %v1557_v53, %v1173_v50  ;;  %v1548_v53 = vadd.f32 %v5215_v12, %v1163_v57  ;;  %v6009_v12 = vld [vmem:[#allocation21_spill] sm:$0xff] }
 0x197   : > { %v1177_v11 = vpop.f32.mrf.mxu0 }
 0x198   : > { %v1562_v37 = vpop.f32.mrf.mxu1  ;;  %v1178_v7 = vadd.f32 %v1177_v11, %v4803_v40 }
 0x199   : > { %v1179_v19 = vpop.f32.mrf.mxu0 }
 0x19a   : > { %v1564_v27 = vpop.f32.mrf.mxu1 }
 0x19b   : > { %v1182_v4 = vpop.f32.mrf.mxu0 }
 0x19c   : > { %v1567_v18 = vpop.f32.mrf.mxu1  ;;  %v1183_v23 = vadd.f32 %v1182_v4, %v4769_v21  ;;  %v1168_v21 = vadd.f32 %v1167_v16, %v4868_v24  ;;  %v1158_v24 = vadd.f32 %v5209_v13, %v4939_v31 }
 0x19d   : > { %v1184_v59 = vpop.f32.mrf.mxu0 }
 0x19e   : > { %v1569_v0 = vpop.f32.mrf.mxu1  ;;  %v1568_v36 = vadd.f32 %v1567_v18, %v1183_v23  ;;  %v1553_v16 = vadd.f32 %v1552_v41, %v1168_v21  ;;  %v6008_v41 = vld [vmem:[#allocation19_spill] sm:$0xff] }
 0x19f   : > { %v1187_v49 = vpop.f32.mrf.mxu0  ;;  %v5240_v0 = vpop.permute.xlu0 %948 }
 0x1a0   : > { %v1572_v20 = vpop.f32.mrf.mxu1  ;;  %v1188_v61 = vadd.f32 %v1187_v49, %v4741_v8  ;;  %v1770_v19 = vmax.f32 %v1568_v36, 0.0  ;;  %v1768_v49 = vmax.f32 %v1558_v29, 0.0 }
 0x1a1   : > { %v1189_v44 = vpop.f32.mrf.mxu0 }
 0x1a2   : > { %v1574_v15 = vpop.f32.mrf.mxu1  ;;  %v1573_v48 = vadd.f32 %v1572_v20, %v1188_v61  ;;  %v6007_v20 = vld [vmem:[#allocation20_spill] sm:$0xff]  ;;  %v1148_v61 = vadd.f32 %v5193_v60, %v6008_v41 }
 0x1a3   : > { %v1192_v28 = vpop.f32.mrf.mxu0  ;;  %v1543_v15 = vadd.f32 %v5212_v63, %v1158_v24  ;;  %v5258_v60 = vpop.permute.xlu0 %943  ;;  %v1760_v24 = vmax.f32 %v5178_v52, 0.0 }
 0x1a4   : > { %v1193_v46 = vadd.f32 %v1192_v28, %v4707_v55  ;;  %v1577_v9 = vpop.f32.mrf.mxu1  ;;  %v1563_v55 = vadd.f32 %v1562_v37, %v1178_v7  ;;  %v1771_v56 = vmax.f32 %v1573_v48, 0.0  ;;  %v1767_v28 = vmax.f32 %v1553_v16, 0.0  ;;  %v6010_v48 = vld [vmem:[#allocation18_spill] sm:$0xff] }
 0x1a5   : > { %v1194_v2 = vpop.f32.mrf.mxu0  ;;  %v1766_v7 = vmax.f32 %v1548_v53, 0.0  ;;  %v1765_v50 = vmax.f32 %v1543_v15, 0.0 }
 0x1a6   : > { %v1578_v25 = vadd.f32 %v1577_v9, %v1193_v46  ;;  %v1579_v32 = vpop.f32.mrf.mxu1  ;;  %v1769_v37 = vmax.f32 %v1563_v55, 0.0  ;;  %v1143_v9 = vadd.f32 %v5186_v38, %v6009_v12 }
 0x1a7   : > { %v1197_v3 = vpop.f32.mrf.mxu0 }
 0x1a8   : > { %v1772_v8 = vmax.f32 %v1578_v25, 0.0  ;;  %v1198_v34 = vadd.f32 %v1197_v3, %v814_v33  ;;  %v1582_v22 = vpop.f32.mrf.mxu1  ;;  %v1533_v3 = vadd.f32 %v5197_v6, %v1148_v61 }
 0x1a9   : > { %v1199_v47 = vpop.f32.mrf.mxu0 }
 0x1aa   : > { %v5231_v39 = vadd.f32 %v1582_v22, %v1198_v34  ;;  %v1584_v40 = vpop.f32.mrf.mxu1  ;;  %2478 = vmatpush2.msra.mxu0 %v1772_v8  ;;  %v6011_v22 = vld [vmem:[#allocation16_spill] sm:$0xff] }
 0x1ab   : > { %v1202_v11 = vpop.f32.mrf.mxu0  ;;  %2479 = vmatprep.subr.mxu0 %v6005_v17 }
 0x1ac   : > { %v1203_v33 = vadd.f32 %v1202_v11, %v819_v54  ;;  %v1587_v27 = vpop.f32.mrf.mxu1  ;;  %2480 = vmatpush2.msra.mxu0 %v1771_v56  ;;  %v6006_v54 = vld [vmem:[#allocation17_spill] sm:$0xff]  ;;  %v1763_v56 = vmax.f32 %v1533_v3, 0.0  ;;  %v5270_v11 = vpop.permute.xlu0 %938 }
 0x1ad   : > { %v1204_v4 = vpop.f32.mrf.mxu0  ;;  %2481 = vmatprep.subr.mxu0 %v6005_v17  ;;  %v1153_v10 = vadd.f32 %v5201_v5, %v6006_v54 }
 0x1ae   : > { %v5238_v18 = vadd.f32 %v1587_v27, %v1203_v33  ;;  %v1589_v59 = vpop.f32.mrf.mxu1  ;;  %2482 = vmatpush2.msra.mxu0 %v1770_v19  ;;  %v1761_v33 = vmax.f32 %v5184_v1, 0.0 }
 0x1af   : > { %v1207_v58 = vpop.f32.mrf.mxu0  ;;  %2483 = vmatprep.subr.mxu0 %v6005_v17  ;;  %v1538_v2 = vadd.f32 %v5205_v26, %v1153_v10  ;;  %v1528_v26 = vadd.f32 %v5189_v51, %v1143_v9  ;;  %v1758_v10 = vmax.f32 %v5158_v30, 0.0  ;;  %v1808_v30 = vld [vmem:[#allocation2 + $0x18] sm:$0xff] }
 0x1b0   : > { %v1208_v44 = vadd.f32 %v1207_v58, %v6007_v20  ;;  %v1592_v31 = vpop.f32.mrf.mxu1  ;;  %2484 = vmatpush2.msra.mxu0 %v1769_v37  ;;  %v5285_v37 = vpop.permute.xlu0 %933  ;;  %v1759_v58 = vmax.f32 %v5169_v43, 0.0  ;;  %2894 = vmatprep.mubr.f32.mxu1 %v1808_v30 }
 0x1b1   : > { %v1209_v13 = vpop.f32.mrf.mxu0  ;;  %2485 = vmatprep.subr.mxu0 %v6005_v17  ;;  %v1764_v34 = vmax.f32 %v1538_v2, 0.0  ;;  %v1762_v51 = vmax.f32 %v1528_v26, 0.0  ;;  %v1822_v26 = vld [vmem:[#allocation2 + $0x88] sm:$0xff] }
 0x1b2   : > { %v5251_v23 = vadd.f32 %v1592_v31, %v1208_v44  ;;  %v1594_v46 = vpop.f32.mrf.mxu1  ;;  %2486 = vmatpush2.msra.mxu0 %v1768_v49  ;;  %v1757_v49 = vmax.f32 %v5148_v42, 0.0  ;;  %v1805_v44 = vld [vmem:[#allocation2] sm:$0xff]  ;;  %v1810_v13 = vld [vmem:[#allocation2 + $0x28] sm:$0xff] }
 0x1b3   : > { %v1212_v5 = vpop.f32.mrf.mxu0  ;;  %2487 = vmatprep.subr.mxu0 %v6005_v17  ;;  %v1809_v42 = vld [vmem:[#allocation2 + $0x20] sm:$0xff]  ;;  %v1814_v46 = vld [vmem:[#allocation2 + $0x48] sm:$0xff] }
 0x1b4   : > { %v1213_v25 = vadd.f32 %v1212_v5, %v6010_v48  ;;  %v1597_v32 = vpop.f32.mrf.mxu1  ;;  %2488 = vmatpush2.msra.mxu0 %v1767_v28  ;;  %v5297_v43 = vpop.permute.xlu0 %928 }
 0x1b5   : > { %v1214_v63 = vpop.f32.mrf.mxu0  ;;  %2489 = vmatprep.subr.mxu0 %v6005_v17 }
 0x1b6   : > { %v5262_v36 = vadd.f32 %v1597_v32, %v1213_v25  ;;  %v1599_v8 = vpop.f32.mrf.mxu1  ;;  %2490 = vmatpush2.msra.mxu0 %v1766_v7  ;;  %v1813_v7 = vld [vmem:[#allocation2 + $0x40] sm:$0xff]  ;;  %v1818_v25 = vld [vmem:[#allocation2 + $0x68] sm:$0xff] }
 0x1b7   : > { %v1217_v38 = vpop.f32.mrf.mxu0  ;;  %2491 = vmatprep.subr.mxu0 %v6005_v17 }
 0x1b8   : > { %v1218_v47 = vadd.f32 %v1217_v38, %v6011_v22  ;;  %v1602_v21 = vpop.f32.mrf.mxu1  ;;  %2492 = vmatpush2.msra.mxu0 %v1765_v50  ;;  %v5308_v12 = vpop.permute.xlu0 %923  ;;  %v1817_v50 = vld [vmem:[#allocation2 + $0x60] sm:$0xff] }
 0x1b9   : > { %v1219_v55 = vpop.f32.mrf.mxu0  ;;  %2493 = vmatprep.subr.mxu0 %v6005_v17 }
 0x1ba   : > { %v5268_v6 = vadd.f32 %v1602_v21, %v1218_v47  ;;  %v1604_v40 = vpop.f32.mrf.mxu1  ;;  %2494 = vmatpush2.msra.mxu0 %v1764_v34  ;;  %v1821_v21 = vld [vmem:[#allocation2 + $0x80] sm:$0xff] }
 0x1bb   : > { %v5272_v57 = vpop.f32.mrf.mxu0  ;;  %2495 = vmatprep.subr.mxu0 %v6005_v17 }
 0x1bc   : > { %v5275_v29 = vpop.f32.mrf.mxu1  ;;  %2496 = vmatpush2.msra.mxu0 %v1763_v56  ;;  %v5314_v8 = vpop.permute.xlu0 %918  ;;  %v1826_v56 = vld [vmem:[#allocation2 + $0xa8] sm:$0xff] }
 0x1bd   : > { %v1224_v19 = vpop.f32.mrf.mxu0  ;;  %2497 = vmatprep.subr.mxu0 %v6005_v17 }
 0x1be   : > { %v1609_v27 = vpop.f32.mrf.mxu1  ;;  %2498 = vmatpush2.msra.mxu0 %v1762_v51 }
 0x1bf   : > { %v5279_v4 = vpop.f32.mrf.mxu0  ;;  %2499 = vmatprep.subr.mxu0 %v6005_v17  ;;  %v1825_v27 = vld [vmem:[#allocation2 + $0xa0] sm:$0xff] }
 0x1c0   : > { %v5283_v16 = vpop.f32.mrf.mxu1  ;;  %2500 = vmatpush2.msra.mxu0 %v1761_v33  ;;  %v5318_v51 = vpop.permute.xlu0 %913 }
 0x1c1   : > { %v1229_v59 = vpop.f32.mrf.mxu0  ;;  %2501 = vmatprep.subr.mxu0 %v6005_v17 }
 0x1c2   : > { %v1614_v54 = vpop.f32.mrf.mxu1  ;;  %2502 = vmatpush2.msra.mxu0 %v1760_v24  ;;  %v1830_v59 = vld [vmem:[#allocation2 + $0xc8] sm:$0xff] }
 0x1c3   : > { %v5289_v1 = vpop.f32.mrf.mxu0  ;;  %2503 = vmatprep.subr.mxu0 %v6005_v17 }
 0x1c4   : > { %v5293_v53 = vpop.f32.mrf.mxu1  ;;  %2504 = vmatpush2.msra.mxu0 %v1759_v58 }
 0x1c5   : > { %v1234_v52 = vpop.f32.mrf.mxu0  ;;  %2505 = vmatprep.subr.mxu0 %v6005_v17 }
 0x1c6   : > { %v1619_v20 = vpop.f32.mrf.mxu1  ;;  %2506 = vmatpush2.msra.mxu0 %v1758_v10  ;;  %v1829_v52 = vld [vmem:[#allocation2 + $0xc0] sm:$0xff] }
 0x1c7   : > { %v5299_v31 = vpop.f32.mrf.mxu0  ;;  %2507 = vmatprep.subr.mxu0 %v6005_v17 }
 0x1c8   : > { %v5302_v41 = vpop.f32.mrf.mxu1  ;;  %2508 = vmatpush2.msra.mxu0 %v1757_v49  ;;  %v5320_v49 = vpop.permute.xlu0 %908 }
 0x1c9   : > { %v1239_v61 = vpop.f32.mrf.mxu0  ;;  %2510 = vmatmul.mubr.f32.vlgmr.msra.gmra.mxu0 %v1805_v44  ;;  %v1834_v44 = vld [vmem:[#allocation2 + $0xe8] sm:$0xff] }
 0x1ca   : > { %v1624_v15 = vpop.f32.mrf.mxu1  ;;  %2514 = vmatprep.mubr.f32.mxu0 %v1810_v13  ;;  %v6012_v61 = vld [vmem:[#allocation6_spill] sm:$0xff] }
 0x1cb   : > { %v5304_v28 = vpop.f32.mrf.mxu0 }
 0x1cc   : > { %v5306_v5 = vpop.f32.mrf.mxu1 }
 0x1cd   : > { %v1244_v9 = vpop.f32.mrf.mxu0  ;;  %2515 = vmatmul.mubr.f32.gmra.mxu0 %v1809_v42 }
 0x1ce   : > { %v1629_v2 = vpop.f32.mrf.mxu1  ;;  %2519 = vmatprep.mubr.f32.mxu0 %v1814_v46  ;;  %v1833_v46 = vld [vmem:[#allocation2 + $0xe0] sm:$0xff] }
 0x1cf   : > { %v5310_v48 = vpop.f32.mrf.mxu0  ;;  %v1838_v2 = vld [vmem:[#allocation2 + $0x108] sm:$0xff] }
 0x1d0   : > { %v5312_v32 = vpop.f32.mrf.mxu1 }
 0x1d1   : > { %v1249_v63 = vpop.f32.mrf.mxu0  ;;  %2520 = vmatmul.mubr.f32.gmra.mxu0 %v1813_v7  ;;  %v6013_v7 = vld [vmem:[#allocation7_spill] sm:$0xff] }
 0x1d2   : > { %v1634_v3 = vpop.f32.mrf.mxu1  ;;  %2524 = vmatprep.mubr.f32.mxu0 %v1818_v25  ;;  %v6014_v63 = vld [vmem:[#allocation5_spill] sm:$0xff] }
 0x1d3   : > { %v1252_v38 = vpop.f32.mrf.mxu0 }
 0x1d4   : > { %v5316_v34 = vpop.f32.mrf.mxu1 }
 0x1d5   : > { %v1254_v22 = vpop.f32.mrf.mxu0  ;;  %2525 = vmatmul.mubr.f32.gmra.mxu0 %v1817_v50 }
 0x1d6   : > { %v1639_v47 = vpop.f32.mrf.mxu1  ;;  %2529 = vmatprep.mubr.f32.mxu0 %v1822_v26  ;;  %v904_v26 = vpop.permute.xlu0 %903 }
 0x1d7   : > { %v1257_v55 = vpop.f32.mrf.mxu0  ;;  %v6015_v47 = vld [vmem:[#allocation8_spill] sm:$0xff] }
 0x1d8   : > { %v1642_v40 = vpop.f32.mrf.mxu1 }
 0x1d9   : > { %v1259_v19 = vpop.f32.mrf.mxu0  ;;  %2530 = vmatmul.mubr.f32.gmra.mxu0 %v1821_v21  ;;  %v1258_v21 = vadd.f32 %v1257_v55, %v6015_v47 }
 0x1da   : > { %v1644_v33 = vpop.f32.mrf.mxu1  ;;  %2534 = vmatprep.mubr.f32.mxu0 %v1826_v56 }
 0x1db   : > { %v1262_v24 = vpop.f32.mrf.mxu0  ;;  %v1643_v55 = vadd.f32 %v1642_v40, %v1258_v21  ;;  %v6019_v21 = vld [vmem:[#allocation12_spill] sm:$0xff] }
 0x1dc   : > { %v1647_v58 = vpop.f32.mrf.mxu1  ;;  %v1263_v25 = vadd.f32 %v1262_v24, %v6013_v7  ;;  %v1841_v7 = vld [vmem:[#allocation2 + $0x120] sm:$0xff] }
 0x1dd   : > { %v1264_v54 = vpop.f32.mrf.mxu0  ;;  %2535 = vmatmul.mubr.f32.gmra.mxu0 %v1825_v27  ;;  %v1837_v27 = vld [vmem:[#allocation2 + $0x100] sm:$0xff] }
 0x1de   : > { %v1649_v10 = vpop.f32.mrf.mxu1  ;;  %2539 = vmatprep.mubr.f32.mxu0 %v1830_v59  ;;  %v894_v59 = vpop.permute.xlu1 %893 }
 0x1df   : > { %v1267_v20 = vpop.f32.mrf.mxu0  ;;  %v1842_v10 = vld [vmem:[#allocation2 + $0x128] sm:$0xff] }
 0x1e0   : > { %v1652_v13 = vpop.f32.mrf.mxu1  ;;  %v1268_v15 = vadd.f32 %v1267_v20, %v6012_v61 }
 0x1e1   : > { %v1269_v30 = vpop.f32.mrf.mxu0  ;;  %2540 = vmatmul.mubr.f32.gmra.mxu0 %v1829_v52  ;;  %v6016_v52 = vld [vmem:[#allocation9_spill] sm:$0xff] }
 0x1e2   : > { %v1654_v42 = vpop.f32.mrf.mxu1  ;;  %2544 = vmatprep.mubr.f32.mxu0 %v1834_v44  ;;  %v1653_v56 = vadd.f32 %v1652_v13, %v1268_v15  ;;  %v1253_v20 = vadd.f32 %v1252_v38, %v6016_v52  ;;  %v1648_v44 = vadd.f32 %v1647_v58, %v1263_v25  ;;  %v1846_v38 = vld [vmem:[#allocation2 + $0x148] sm:$0xff]  ;;  %v6018_v58 = vld [vmem:[#allocation11_spill] sm:$0xff] }
 0x1e3   : > { %v1272_v9 = vpop.f32.mrf.mxu0  ;;  %v1243_v25 = vadd.f32 %v5304_v28, %v6018_v58  ;;  %v1845_v28 = vld [vmem:[#allocation2 + $0x140] sm:$0xff] }
 0x1e4   : > { %v1273_v3 = vadd.f32 %v1272_v9, %v6014_v63  ;;  %v1657_v50 = vpop.f32.mrf.mxu1  ;;  %v6017_v9 = vld [vmem:[#allocation10_spill] sm:$0xff]  ;;  %v1787_v13 = vmax.f32 %v1653_v56, 0.0  ;;  %v899_v63 = vpop.permute.xlu0 %898  ;;  %v1238_v56 = vadd.f32 %v5299_v31, %v6019_v21 }
 0x1e5   : > { %v1274_v22 = vpop.f32.mrf.mxu0  ;;  %2545 = vmatmul.mubr.f32.gmra.mxu0 %v1833_v46  ;;  %v1248_v46 = vadd.f32 %v5310_v48, %v6017_v9 }
 0x1e6   : > { %v1658_v19 = vadd.f32 %v1657_v50, %v1273_v3  ;;  %v1659_v33 = vpop.f32.mrf.mxu1  ;;  %2549 = vmatprep.mubr.f32.mxu0 %v1838_v2  ;;  %v1638_v50 = vadd.f32 %v5316_v34, %v1253_v20  ;;  %v1786_v22 = vmax.f32 %v1648_v44, 0.0  ;;  %v1628_v20 = vadd.f32 %v5306_v5, %v1243_v25 }
 0x1e7   : > { %v1277_v54 = vpop.f32.mrf.mxu0  ;;  %v1785_v33 = vmax.f32 %v1643_v55, 0.0 }
 0x1e8   : > { %v1788_v24 = vmax.f32 %v1658_v19, 0.0  ;;  %v1278_v30 = vadd.f32 %v1277_v54, %v894_v59  ;;  %v1662_v61 = vpop.f32.mrf.mxu1  ;;  %v1633_v19 = vadd.f32 %v5312_v32, %v1248_v46  ;;  %v1850_v54 = vld [vmem:[#allocation2 + $0x168] sm:$0xff]  ;;  %v1784_v44 = vmax.f32 %v1638_v50, 0.0 }
 0x1e9   : > { %v1279_v42 = vpop.f32.mrf.mxu0  ;;  %2550 = vmatmul.mubr.f32.gmra.mxu0 %v1837_v27 }
 0x1ea   : > { %v5329_v15 = vadd.f32 %v1662_v61, %v1278_v30  ;;  %v1664_v2 = vpop.f32.mrf.mxu1  ;;  %2831 = vmatpush1.msra.mxu1 %v1788_v24  ;;  %2554 = vmatprep.mubr.f32.mxu0 %v1842_v10  ;;  %v6020_v10 = vld [vmem:[#allocation13_spill] sm:$0xff]  ;;  %v6021_v30 = vld [vmem:[#allocation14_spill] sm:$0xff]  ;;  %v1623_v42 = vadd.f32 %v5302_v41, %v1238_v56  ;;  %v1783_v9 = vmax.f32 %v1633_v19, 0.0 }
 0x1eb   : > { %v1282_v3 = vpop.f32.mrf.mxu0  ;;  %2832 = vmatprep.subr.mxu1 %v6005_v17  ;;  %v1233_v52 = vadd.f32 %v5289_v1, %v6020_v10  ;;  %v1228_v61 = vadd.f32 %v5279_v4, %v6021_v30  ;;  %v1849_v1 = vld [vmem:[#allocation2 + $0x160] sm:$0xff] }
 0x1ec   : > { %v1283_v48 = vadd.f32 %v1282_v3, %v899_v63  ;;  %v1667_v40 = vpop.f32.mrf.mxu1  ;;  %2833 = vmatpush1.msra.mxu1 %v1787_v13  ;;  %v6022_v13 = vld [vmem:[#allocation15_spill] sm:$0xff]  ;;  %v1782_v63 = vmax.f32 %v1628_v20, 0.0  ;;  %v1781_v58 = vmax.f32 %v1623_v42, 0.0 }
 0x1ed   : > { %v1284_v47 = vpop.f32.mrf.mxu0  ;;  %2555 = vmatmul.mubr.f32.gmra.mxu0 %v1841_v7  ;;  %2834 = vmatprep.subr.mxu1 %v6005_v17  ;;  %v1223_v2 = vadd.f32 %v5272_v57, %v6022_v13  ;;  %v1618_v7 = vadd.f32 %v5293_v53, %v1233_v52  ;;  %v1853_v57 = vld [vmem:[#allocation2 + $0x180] sm:$0xff]  ;;  %v1858_v53 = vld [vmem:[#allocation2 + $0x1a8] sm:$0xff] }
 0x1ee   : > { %v5339_v27 = vadd.f32 %v1667_v40, %v1283_v48  ;;  %v1669_v59 = vpop.f32.mrf.mxu1  ;;  %2835 = vmatpush1.msra.mxu1 %v1786_v22  ;;  %2559 = vmatprep.mubr.f32.mxu0 %v1846_v38  ;;  %v1613_v38 = vadd.f32 %v5283_v16, %v1228_v61  ;;  %v1861_v52 = vld [vmem:[#allocation2 + $0x1c0] sm:$0xff] }
 0x1ef   : > { %v1287_v34 = vpop.f32.mrf.mxu0  ;;  %2836 = vmatprep.subr.mxu1 %v6005_v17  ;;  %v1780_v48 = vmax.f32 %v1618_v7, 0.0  ;;  %v1865_v61 = vld [vmem:[#allocation2 + $0x1e0] sm:$0xff] }
 0x1f0   : > { %v1288_v31 = vadd.f32 %v1287_v34, %v904_v26  ;;  %v1672_v24 = vpop.f32.mrf.mxu1  ;;  %2837 = vmatpush1.msra.mxu1 %v1785_v33  ;;  %v1854_v26 = vld [vmem:[#allocation2 + $0x188] sm:$0xff]  ;;  %v1779_v16 = vmax.f32 %v1613_v38, 0.0  ;;  %v1857_v33 = vld [vmem:[#allocation2 + $0x1a0] sm:$0xff] }
 0x1f1   : > { %v1289_v32 = vpop.f32.mrf.mxu0  ;;  %2560 = vmatmul.mubr.f32.gmra.mxu0 %v1845_v28  ;;  %2838 = vmatprep.subr.mxu1 %v6005_v17 }
 0x1f2   : > { %v5349_v46 = vadd.f32 %v1672_v24, %v1288_v31  ;;  %v1674_v55 = vpop.f32.mrf.mxu1  ;;  %2839 = vmatpush1.msra.mxu1 %v1784_v44  ;;  %2564 = vmatprep.mubr.f32.mxu0 %v1850_v54  ;;  %v1777_v54 = vmax.f32 %v5268_v6, 0.0  ;;  %v1866_v44 = vld [vmem:[#allocation2 + $0x1e8] sm:$0xff]  ;;  %v1776_v31 = vmax.f32 %v5262_v36, 0.0  ;;  %v1775_v6 = vmax.f32 %v5251_v23, 0.0 }
 0x1f3   : > { %v1292_v5 = vpop.f32.mrf.mxu0  ;;  %2840 = vmatprep.subr.mxu1 %v6005_v17  ;;  %v1774_v36 = vmax.f32 %v5238_v18, 0.0  ;;  %v1773_v23 = vmax.f32 %v5231_v39, 0.0 }
 0x1f4   : > { %v1293_v4 = vadd.f32 %v1292_v5, %v5320_v49  ;;  %v1677_v41 = vpop.f32.mrf.mxu1  ;;  %2841 = vmatpush1.msra.mxu1 %v1783_v9  ;;  %v1608_v49 = vadd.f32 %v5275_v29, %v1223_v2  ;;  %v1862_v29 = vld [vmem:[#allocation2 + $0x1c8] sm:$0xff] }
 0x1f5   : > { %v1294_v3 = vpop.f32.mrf.mxu0  ;;  %2565 = vmatmul.mubr.f32.gmra.mxu0 %v1849_v1  ;;  %2842 = vmatprep.subr.mxu1 %v6005_v17  ;;  %v1870_v9 = vld [vmem:[#allocation2 + $0x208] sm:$0xff] }
 0x1f6   : > { %v5358_v25 = vadd.f32 %v1677_v41, %v1293_v4  ;;  %v1679_v50 = vpop.f32.mrf.mxu1  ;;  %2843 = vmatpush1.msra.mxu1 %v1782_v63  ;;  %2569 = vmatprep.mubr.f32.mxu0 %v1854_v26  ;;  %v1778_v28 = vmax.f32 %v1608_v49, 0.0  ;;  %v1869_v26 = vld [vmem:[#allocation2 + $0x200] sm:$0xff]  ;;  %v1874_v2 = vld [vmem:[#allocation2 + $0x228] sm:$0xff] }
 0x1f7   : > { %v1297_v22 = vpop.f32.mrf.mxu0  ;;  %2844 = vmatprep.subr.mxu1 %v6005_v17  ;;  %v1873_v4 = vld [vmem:[#allocation2 + $0x220] sm:$0xff]  ;;  %v1878_v41 = vld [vmem:[#allocation2 + $0x248] sm:$0xff] }
 0x1f8   : > { %v1298_v40 = vadd.f32 %v1297_v22, %v5318_v51  ;;  %v1682_v47 = vpop.f32.mrf.mxu1  ;;  %2845 = vmatpush1.msra.mxu1 %v1781_v58  ;;  %v1877_v50 = vld [vmem:[#allocation2 + $0x240] sm:$0xff]  ;;  %v1882_v22 = vld [vmem:[#allocation2 + $0x268] sm:$0xff] }
 0x1f9   : > { %v1299_v21 = vpop.f32.mrf.mxu0  ;;  %2570 = vmatmul.mubr.f32.gmra.mxu0 %v1853_v57  ;;  %2846 = vmatprep.subr.mxu1 %v6005_v17 }
 0x1fa   : > { %v5364_v56 = vadd.f32 %v1682_v47, %v1298_v40  ;;  %v1684_v19 = vpop.f32.mrf.mxu1  ;;  %2847 = vmatpush1.msra.mxu1 %v1780_v48  ;;  %2574 = vmatprep.mubr.f32.mxu0 %v1858_v53  ;;  %v1881_v40 = vld [vmem:[#allocation2 + $0x260] sm:$0xff]  ;;  %v1886_v21 = vld [vmem:[#allocation2 + $0x288] sm:$0xff] }
 0x1fb   : > { %v5366_v59 = vpop.f32.mrf.mxu0  ;;  %2848 = vmatprep.subr.mxu1 %v6005_v17 }
 0x1fc   : > { %v5369_v51 = vpop.f32.mrf.mxu1  ;;  %2849 = vmatpush1.msra.mxu1 %v1779_v16 }
 0x1fd   : > { %v1304_v34 = vpop.f32.mrf.mxu0  ;;  %2575 = vmatmul.mubr.f32.gmra.mxu0 %v1857_v33  ;;  %2850 = vmatprep.subr.mxu1 %v6005_v17 }
 0x1fe   : > { %v1689_v10 = vpop.f32.mrf.mxu1  ;;  %2851 = vmatpush1.msra.mxu1 %v1778_v28  ;;  %2579 = vmatprep.mubr.f32.mxu0 %v1862_v29  ;;  %v1885_v29 = vld [vmem:[#allocation2 + $0x280] sm:$0xff]  ;;  %v1890_v34 = vld [vmem:[#allocation2 + $0x2a8] sm:$0xff] }
 0x1ff   : > { %v5373_v20 = vpop.f32.mrf.mxu0  ;;  %2852 = vmatprep.subr.mxu1 %v6005_v17 }
 0x200   : > { %v5377_v24 = vpop.f32.mrf.mxu1  ;;  %2853 = vmatpush1.msra.mxu1 %v1777_v54 }
 0x201   : > { %v1309_v32 = vpop.f32.mrf.mxu0  ;;  %2580 = vmatmul.mubr.f32.gmra.mxu0 %v1861_v52  ;;  %2854 = vmatprep.subr.mxu1 %v6005_v17 }
 0x202   : > { %v1694_v30 = vpop.f32.mrf.mxu1  ;;  %2855 = vmatpush1.msra.mxu1 %v1776_v31  ;;  %2584 = vmatprep.mubr.f32.mxu0 %v1866_v44  ;;  %v1889_v44 = vld [vmem:[#allocation2 + $0x2a0] sm:$0xff]  ;;  %v1894_v32 = vld [vmem:[#allocation2 + $0x2c8] sm:$0xff] }
 0x203   : > { %v5381_v42 = vpop.f32.mrf.mxu0  ;;  %2856 = vmatprep.subr.mxu1 %v6005_v17 }
 0x204   : > { %v5385_v55 = vpop.f32.mrf.mxu1  ;;  %2857 = vmatpush1.msra.mxu1 %v1775_v6 }
 0x205   : > { %v1314_v1 = vpop.f32.mrf.mxu0  ;;  %2585 = vmatmul.mubr.f32.gmra.mxu0 %v1865_v61  ;;  %2858 = vmatprep.subr.mxu1 %v6005_v17 }
 0x206   : > { %v1699_v5 = vpop.f32.mrf.mxu1  ;;  %2859 = vmatpush1.msra.mxu1 %v1774_v36  ;;  %2589 = vmatprep.mubr.f32.mxu0 %v1870_v9  ;;  %v1893_v9 = vld [vmem:[#allocation2 + $0x2c0] sm:$0xff]  ;;  %v1898_v1 = vld [vmem:[#allocation2 + $0x2e8] sm:$0xff] }
 0x207   : > { %v5389_v13 = vpop.f32.mrf.mxu0  ;;  %2860 = vmatprep.subr.mxu1 %v6005_v17 }
 0x208   : > { %v5392_v7 = vpop.f32.mrf.mxu1  ;;  %2861 = vmatpush1.msra.mxu1 %v1773_v23 }
 0x209   : > { %v1319_v18 = vpop.f32.mrf.mxu0  ;;  %2590 = vmatmul.mubr.f32.gmra.mxu0 %v1869_v26  ;;  %2862 = vmatprep.subr.mxu1 %v6005_v17 }
 0x20a   : > { %v1704_v63 = vpop.f32.mrf.mxu1  ;;  %2594 = vmatprep.mubr.f32.mxu0 %v1874_v2  ;;  %v1897_v18 = vld [vmem:[#allocation2 + $0x2e0] sm:$0xff] }
 0x20b   : > { %v5395_v39 = vpop.f32.mrf.mxu0 }
 0x20c   : > { %v5397_v3 = vpop.f32.mrf.mxu1 }
 0x20d   : > { %v1324_v38 = vpop.f32.mrf.mxu0  ;;  %2595 = vmatmul.mubr.f32.gmra.mxu0 %v1873_v4  ;;  %v1902_v4 = vld [vmem:[#allocation2 + $0x308] sm:$0xff] }
 0x20e   : > { %v1709_v58 = vpop.f32.mrf.mxu1  ;;  %2599 = vmatprep.mubr.f32.mxu0 %v1878_v41 }
 0x20f   : > { %v1327_v57 = vpop.f32.mrf.mxu0 }
 0x210   : > { %v5399_v53 = vpop.f32.mrf.mxu1 }
 0x211   : > { %v1329_v49 = vpop.f32.mrf.mxu0  ;;  %2600 = vmatmul.mubr.f32.gmra.mxu0 %v1877_v50 }
 0x212   : > { %v1714_v48 = vpop.f32.mrf.mxu1  ;;  %2604 = vmatprep.mubr.f32.mxu0 %v1882_v22 }
 0x213   : > { %v1332_v47 = vpop.f32.mrf.mxu0 }
 0x214   : > { %v1717_v16 = vpop.f32.mrf.mxu1 }
 0x215   : > { %v1334_v19 = vpop.f32.mrf.mxu0  ;;  %2605 = vmatmul.mubr.f32.gmra.mxu0 %v1881_v40 }
 0x216   : > { %v1719_v33 = vpop.f32.mrf.mxu1  ;;  %2609 = vmatprep.mubr.f32.mxu0 %v1886_v21  ;;  %v1901_v21 = vld [vmem:[#allocation2 + $0x300] sm:$0xff]  ;;  %v1333_v19 = vadd.f32 %v1332_v47, %v5240_v0  ;;  %v1318_v0 = vadd.f32 %v5389_v13, %v5285_v37  ;;  %v1308_v37 = vadd.f32 %v5373_v20, %v5308_v12 }
 0x217   : > { %v1337_v28 = vpop.f32.mrf.mxu0  ;;  %v1909_v47 = vld [vmem:[#allocation2 + $0x340] sm:$0xff] }
 0x218   : > { %v1722_v54 = vpop.f32.mrf.mxu1  ;;  %v1338_v22 = vadd.f32 %v1337_v28, %v5228_v14  ;;  %v1910_v14 = vld [vmem:[#allocation2 + $0x348] sm:$0xff]  ;;  %v1323_v28 = vadd.f32 %v5395_v39, %v5270_v11  ;;  %v1313_v11 = vadd.f32 %v5381_v42, %v5297_v43  ;;  %v1703_v13 = vadd.f32 %v5392_v7, %v1318_v0  ;;  %v1917_v7 = vld [vmem:[#allocation2 + $0x380] sm:$0xff] }
 0x219   : > { %v1339_v10 = vpop.f32.mrf.mxu0  ;;  %2610 = vmatmul.mubr.f32.gmra.mxu0 %v1885_v29  ;;  %v1303_v43 = vadd.f32 %v5366_v59, %v5314_v8  ;;  %v1693_v12 = vadd.f32 %v5377_v24, %v1308_v37  ;;  %v1921_v59 = vld [vmem:[#allocation2 + $0x3a0] sm:$0xff]  ;;  %v1926_v24 = vld [vmem:[#allocation2 + $0x3c8] sm:$0xff] }
 0x21a   : > { %v1724_v52 = vpop.f32.mrf.mxu1  ;;  %2614 = vmatprep.mubr.f32.mxu0 %v1890_v34  ;;  %v1723_v34 = vadd.f32 %v1722_v54, %v1338_v22  ;;  %v1905_v10 = vld [vmem:[#allocation2 + $0x320] sm:$0xff]  ;;  %v1914_v54 = vld [vmem:[#allocation2 + $0x368] sm:$0xff]  ;;  %v1708_v39 = vadd.f32 %v5397_v3, %v1323_v28  ;;  %v1698_v42 = vadd.f32 %v5385_v55, %v1313_v11  ;;  %v1797_v20 = vmax.f32 %v1703_v13, 0.0  ;;  %v1820_v22 = vld [vmem:[#allocation2 + $0x78] sm:$0xff] }
 0x21b   : > { %v1342_v31 = vpop.f32.mrf.mxu0  ;;  %v1718_v52 = vadd.f32 %v1717_v16, %v1333_v19  ;;  %v1795_v8 = vmax.f32 %v1693_v12, 0.0  ;;  %v1949_v19 = vld [vmem:[#allocation2 + $0x480] sm:$0xff]  ;;  %v1832_v28 = vld [vmem:[#allocation2 + $0xd8] sm:$0xff]  ;;  %v1966_v11 = vld [vmem:[#allocation2 + $0x508] sm:$0xff] }
 0x21c   : > { %v1727_v6 = vpop.f32.mrf.mxu1  ;;  %v1343_v41 = vadd.f32 %v1342_v31, %v5222_v62  ;;  %v1328_v62 = vadd.f32 %v1327_v57, %v5258_v60  ;;  %v1801_v57 = vmax.f32 %v1723_v34, 0.0  ;;  %v1913_v31 = vld [vmem:[#allocation2 + $0x360] sm:$0xff]  ;;  %v1798_v3 = vmax.f32 %v1708_v39, 0.0  ;;  %v1840_v39 = vld [vmem:[#allocation2 + $0x118] sm:$0xff]  ;;  %v1839_v13 = vld [vmem:[#allocation2 + $0x110] sm:$0xff] }
 0x21d   : > { %v1344_v30 = vpop.f32.mrf.mxu0  ;;  %2615 = vmatmul.mubr.f32.gmra.mxu0 %v1889_v44  ;;  %v1800_v16 = vmax.f32 %v1718_v52, 0.0  ;;  %v1957_v52 = vld [vmem:[#allocation2 + $0x4c0] sm:$0xff]  ;;  %v1848_v12 = vld [vmem:[#allocation2 + $0x158] sm:$0xff] }
 0x21e   : > { %v1729_v61 = vpop.f32.mrf.mxu1  ;;  %2619 = vmatprep.mubr.f32.mxu0 %v1894_v32  ;;  %v1728_v33 = vadd.f32 %v1727_v6, %v1343_v41  ;;  %v1713_v60 = vadd.f32 %v5399_v53, %v1328_v62  ;;  %v1918_v32 = vld [vmem:[#allocation2 + $0x388] sm:$0xff]  ;;  %v1688_v30 = vadd.f32 %v5369_v51, %v1303_v43  ;;  %v1925_v51 = vld [vmem:[#allocation2 + $0x3c0] sm:$0xff]  ;;  %v1828_v62 = vld [vmem:[#allocation2 + $0xb8] sm:$0xff] }
 0x21f   : > { %v1347_v36 = vpop.f32.mrf.mxu0  ;;  %v1922_v6 = vld [vmem:[#allocation2 + $0x3a8] sm:$0xff]  ;;  %v1796_v61 = vmax.f32 %v1698_v42, 0.0  ;;  %v1965_v37 = vld [vmem:[#allocation2 + $0x500] sm:$0xff]  ;;  %v1843_v43 = vld [vmem:[#allocation2 + $0x130] sm:$0xff] }
 0x220   : > { %v1732_v23 = vpop.f32.mrf.mxu1  ;;  %v1348_v26 = vadd.f32 %v1347_v36, %v5219_v45  ;;  %v1906_v45 = vld [vmem:[#allocation2 + $0x328] sm:$0xff]  ;;  %v1802_v44 = vmax.f32 %v1728_v33, 0.0  ;;  %v1799_v53 = vmax.f32 %v1713_v60, 0.0  ;;  %v1794_v55 = vmax.f32 %v1688_v30, 0.0  ;;  %v1823_v33 = vld [vmem:[#allocation2 + $0x90] sm:$0xff]  ;;  %v1852_v30 = vld [vmem:[#allocation2 + $0x178] sm:$0xff] }
 0x221   : > { %v1349_v5 = vpop.f32.mrf.mxu0  ;;  %2620 = vmatmul.mubr.f32.gmra.mxu0 %v1893_v9  ;;  %v1793_v9 = vmax.f32 %v5364_v56, 0.0  ;;  %v1930_v36 = vld [vmem:[#allocation2 + $0x3e8] sm:$0xff] }
 0x222   : > { %v1734_v2 = vpop.f32.mrf.mxu1  ;;  %2624 = vmatprep.mubr.f32.mxu0 %v1898_v1  ;;  %v1733_v49 = vadd.f32 %v1732_v23, %v1348_v26  ;;  %v1792_v1 = vmax.f32 %v5358_v25, 0.0  ;;  %v1791_v23 = vmax.f32 %v5349_v46, 0.0  ;;  %v1929_v5 = vld [vmem:[#allocation2 + $0x3e0] sm:$0xff]  ;;  %v1934_v56 = vld [vmem:[#allocation2 + $0x408] sm:$0xff]  ;;  %v1790_v26 = vmax.f32 %v5339_v27, 0.0 }
 0x223   : > { %v1352_v63 = vpop.f32.mrf.mxu0  ;;  %v1789_v25 = vmax.f32 %v5329_v15, 0.0  ;;  %v1933_v2 = vld [vmem:[#allocation2 + $0x400] sm:$0xff]  ;;  %v1938_v46 = vld [vmem:[#allocation2 + $0x428] sm:$0xff] }
 0x224   : > { %v1353_v38 = vadd.f32 %v1352_v63, %v5217_v35  ;;  %v1737_v58 = vpop.f32.mrf.mxu1  ;;  %v1803_v35 = vmax.f32 %v1733_v49, 0.0  ;;  %v1812_v63 = vld [vmem:[#allocation2 + $0x38] sm:$0xff]  ;;  %v1937_v27 = vld [vmem:[#allocation2 + $0x420] sm:$0xff]  ;;  %v1942_v41 = vld [vmem:[#allocation2 + $0x448] sm:$0xff] }
 0x225   : > { %v1354_v50 = vpop.f32.mrf.mxu0  ;;  %2625 = vmatmul.mubr.f32.gmra.mxu0 %v1897_v18  ;;  %v1807_v18 = vld [vmem:[#allocation2 + $0x10] sm:$0xff]  ;;  %v1941_v15 = vld [vmem:[#allocation2 + $0x440] sm:$0xff]  ;;  %v1962_v60 = vld [vmem:[#allocation2 + $0x4e8] sm:$0xff] }
 0x226   : > { %v1738_v48 = vadd.f32 %v1737_v58, %v1353_v38  ;;  %v1739_v40 = vpop.f32.mrf.mxu1  ;;  %2629 = vmatprep.mubr.f32.mxu0 %v1902_v4  ;;  %v1811_v4 = vld [vmem:[#allocation2 + $0x30] sm:$0xff]  ;;  %v1816_v38 = vld [vmem:[#allocation2 + $0x58] sm:$0xff]  ;;  %v5443_v58 = vpop.permute.xlu0 %2282  ;;  %v1945_v49 = vld [vmem:[#allocation2 + $0x460] sm:$0xff] }
 0x227   : > { %v1815_v50 = vld [vmem:[#allocation2 + $0x50] sm:$0xff] }
 0x228   : > { %v1804_v29 = vmax.f32 %v1738_v48, 0.0  ;;  %v1819_v48 = vld [vmem:[#allocation2 + $0x70] sm:$0xff] }
 0x229   : > { %2630 = vmatmul.mubr.f32.gmra.mxu0 %v1901_v21  ;;  %v1950_v21 = vld [vmem:[#allocation2 + $0x488] sm:$0xff] }
 0x22a   : > { %2863 = vmatpush2.msra.mxu1 %v1804_v29  ;;  %2634 = vmatprep.mubr.f32.mxu0 %v1906_v45  ;;  %v5445_v40 = vpop.permute.xlu0 %2202  ;;  %v1824_v45 = vld [vmem:[#allocation2 + $0x98] sm:$0xff]  ;;  %v1954_v29 = vld [vmem:[#allocation2 + $0x4a8] sm:$0xff] }
 0x22b   : > { %2864 = vmatprep.subr.mxu1 %v6005_v17 }
 0x22c   : > { %2865 = vmatpush2.msra.mxu1 %v1803_v35  ;;  %v1953_v35 = vld [vmem:[#allocation2 + $0x4a0] sm:$0xff] }
 0x22d   : > { %2635 = vmatmul.mubr.f32.gmra.mxu0 %v1905_v10  ;;  %2866 = vmatprep.subr.mxu1 %v6005_v17  ;;  %v1827_v10 = vld [vmem:[#allocation2 + $0xb0] sm:$0xff] }
 0x22e   : > { %2867 = vmatpush2.msra.mxu1 %v1802_v44  ;;  %2639 = vmatprep.mubr.f32.mxu0 %v1910_v14  ;;  %v5447_v34 = vpop.permute.xlu0 %2277  ;;  %v1958_v14 = vld [vmem:[#allocation2 + $0x4c8] sm:$0xff]  ;;  %v1831_v44 = vld [vmem:[#allocation2 + $0xd0] sm:$0xff] }
 0x22f   : > { %2868 = vmatprep.subr.mxu1 %v6005_v17 }
 0x230   : > { %2869 = vmatpush2.msra.mxu1 %v1801_v57  ;;  %v1836_v57 = vld [vmem:[#allocation2 + $0xf8] sm:$0xff] }
 0x231   : > { %2640 = vmatmul.mubr.f32.gmra.mxu0 %v1909_v47  ;;  %2870 = vmatprep.subr.mxu1 %v6005_v17  ;;  %v1961_v47 = vld [vmem:[#allocation2 + $0x4e0] sm:$0xff] }
 0x232   : > { %2871 = vmatpush2.msra.mxu1 %v1800_v16  ;;  %2644 = vmatprep.mubr.f32.mxu0 %v1914_v54  ;;  %v5449_v0 = vpop.permute.xlu0 %2197  ;;  %v1835_v54 = vld [vmem:[#allocation2 + $0xf0] sm:$0xff] }
 0x233   : > { %2872 = vmatprep.subr.mxu1 %v6005_v17 }
 0x234   : > { %2873 = vmatpush2.msra.mxu1 %v1799_v53  ;;  %v1970_v53 = vld [vmem:[#allocation2 + $0x528] sm:$0xff] }
 0x235   : > { %2645 = vmatmul.mubr.f32.gmra.mxu0 %v1913_v31  ;;  %2874 = vmatprep.subr.mxu1 %v6005_v17  ;;  %v1844_v31 = vld [vmem:[#allocation2 + $0x138] sm:$0xff] }
 0x236   : > { %2875 = vmatpush2.msra.mxu1 %v1798_v3  ;;  %2649 = vmatprep.mubr.f32.mxu0 %v1918_v32  ;;  %v5451_v16 = vpop.permute.xlu0 %2272  ;;  %v1969_v32 = vld [vmem:[#allocation2 + $0x520] sm:$0xff]  ;;  %v1974_v3 = vld [vmem:[#allocation2 + $0x548] sm:$0xff] }
 0x237   : > { %2876 = vmatprep.subr.mxu1 %v6005_v17 }
 0x238   : > { %2877 = vmatpush2.msra.mxu1 %v1797_v20  ;;  %v1973_v20 = vld [vmem:[#allocation2 + $0x540] sm:$0xff] }
 0x239   : > { %2650 = vmatmul.mubr.f32.gmra.mxu0 %v1917_v7  ;;  %2878 = vmatprep.subr.mxu1 %v6005_v17  ;;  %v1847_v7 = vld [vmem:[#allocation2 + $0x150] sm:$0xff] }
 0x23a   : > { %2879 = vmatpush2.msra.mxu1 %v1796_v61  ;;  %2654 = vmatprep.mubr.f32.mxu0 %v1922_v6  ;;  %v5453_v42 = vpop.permute.xlu0 %2192  ;;  %v1978_v6 = vld [vmem:[#allocation2 + $0x568] sm:$0xff] }
 0x23b   : > { %2880 = vmatprep.subr.mxu1 %v6005_v17 }
 0x23c   : > { %2881 = vmatpush2.msra.mxu1 %v1795_v8  ;;  %v1977_v8 = vld [vmem:[#allocation2 + $0x560] sm:$0xff] }
 0x23d   : > { %2655 = vmatmul.mubr.f32.gmra.mxu0 %v1921_v59  ;;  %2882 = vmatprep.subr.mxu1 %v6005_v17  ;;  %v1851_v59 = vld [vmem:[#allocation2 + $0x170] sm:$0xff] }
 0x23e   : > { %2883 = vmatpush2.msra.mxu1 %v1794_v55  ;;  %2659 = vmatprep.mubr.f32.mxu0 %v1926_v24  ;;  %v5455_v61 = vpop.permute.xlu0 %2267  ;;  %v1982_v24 = vld [vmem:[#allocation2 + $0x588] sm:$0xff]  ;;  %v1856_v55 = vld [vmem:[#allocation2 + $0x198] sm:$0xff] }
 0x23f   : > { %2884 = vmatprep.subr.mxu1 %v6005_v17 }
 0x240   : > { %2885 = vmatpush2.msra.mxu1 %v1793_v9  ;;  %v1981_v9 = vld [vmem:[#allocation2 + $0x580] sm:$0xff] }
 0x241   : > { %2660 = vmatmul.mubr.f32.gmra.mxu0 %v1925_v51  ;;  %2886 = vmatprep.subr.mxu1 %v6005_v17  ;;  %v1855_v51 = vld [vmem:[#allocation2 + $0x190] sm:$0xff] }
 0x242   : > { %2887 = vmatpush2.msra.mxu1 %v1792_v1  ;;  %2664 = vmatprep.mubr.f32.mxu0 %v1930_v36  ;;  %v5457_v36 = vpop.permute.xlu0 %2187  ;;  %v1986_v1 = vld [vmem:[#allocation2 + $0x5a8] sm:$0xff] }
 0x243   : > { %2888 = vmatprep.subr.mxu1 %v6005_v17 }
 0x244   : > { %2889 = vmatpush2.msra.mxu1 %v1791_v23  ;;  %v1860_v23 = vld [vmem:[#allocation2 + $0x1b8] sm:$0xff] }
 0x245   : > { %2665 = vmatmul.mubr.f32.gmra.mxu0 %v1929_v5  ;;  %2890 = vmatprep.subr.mxu1 %v6005_v17  ;;  %v1985_v5 = vld [vmem:[#allocation2 + $0x5a0] sm:$0xff] }
 0x246   : > { %2891 = vmatpush2.msra.mxu1 %v1790_v26  ;;  %2669 = vmatprep.mubr.f32.mxu0 %v1934_v56  ;;  %v1859_v56 = vld [vmem:[#allocation2 + $0x1b0] sm:$0xff]  ;;  %v1990_v26 = vld [vmem:[#allocation2 + $0x5c8] sm:$0xff] }
 0x247   : > { %2892 = vmatprep.subr.mxu1 %v6005_v17  ;;  %v1946_v17 = vld [vmem:[#allocation2 + $0x468] sm:$0xff] }
 0x248   : > { %2893 = vmatpush2.msra.mxu1 %v1789_v25  ;;  %v1864_v25 = vld [vmem:[#allocation2 + $0x1d8] sm:$0xff] }
 0x249   : > { %2670 = vmatmul.mubr.f32.gmra.mxu0 %v1933_v2  ;;  %2895 = vmatmul.mubr.f32.vlgmr.msra.gmra.mxu1 %v1807_v18  ;;  %v5459_v2 = vpop.permute.xlu0 %2262  ;;  %v1989_v18 = vld [vmem:[#allocation2 + $0x5c0] sm:$0xff] }
 0x24a   : > { %2674 = vmatprep.mubr.f32.mxu0 %v1938_v46  ;;  %2899 = vmatprep.mubr.f32.mxu1 %v1812_v63  ;;  %6023 = vst [vmem:[#allocation17_spill] sm:$0xff] %v5459_v2  ;;  %v1863_v46 = vld [vmem:[#allocation2 + $0x1d0] sm:$0xff]  ;;  %v1994_v63 = vld [vmem:[#allocation2 + $0x5e8] sm:$0xff] }
 0x24d   : > { %2675 = vmatmul.mubr.f32.gmra.mxu0 %v1937_v27  ;;  %2900 = vmatmul.mubr.f32.gmra.mxu1 %v1811_v4  ;;  %v1868_v27 = vld [vmem:[#allocation2 + $0x1f8] sm:$0xff]  ;;  %v1993_v4 = vld [vmem:[#allocation2 + $0x5e0] sm:$0xff] }
 0x24e   : > { %2679 = vmatprep.mubr.f32.mxu0 %v1942_v41  ;;  %2904 = vmatprep.mubr.f32.mxu1 %v1816_v38  ;;  %v1867_v41 = vld [vmem:[#allocation2 + $0x1f0] sm:$0xff]  ;;  %v5461_v38 = vpop.permute.xlu0 %2182 }
 0x251   : > { %2680 = vmatmul.mubr.f32.gmra.mxu0 %v1941_v15  ;;  %2905 = vmatmul.mubr.f32.gmra.mxu1 %v1815_v50  ;;  %v1998_v15 = vld [vmem:[#allocation2 + $0x608] sm:$0xff]  ;;  %v1872_v50 = vld [vmem:[#allocation2 + $0x218] sm:$0xff] }
 0x252   : > { %2684 = vmatprep.mubr.f32.mxu0 %v1946_v17  ;;  %2909 = vmatprep.mubr.f32.mxu1 %v1820_v22  ;;  %v1997_v17 = vld [vmem:[#allocation2 + $0x600] sm:$0xff]  ;;  %v1871_v22 = vld [vmem:[#allocation2 + $0x210] sm:$0xff] }
 0x255   : > { %2685 = vmatmul.mubr.f32.gmra.mxu0 %v1945_v49  ;;  %2910 = vmatmul.mubr.f32.gmra.mxu1 %v1819_v48  ;;  %v2002_v49 = vld [vmem:[#allocation2 + $0x628] sm:$0xff]  ;;  %v1876_v48 = vld [vmem:[#allocation2 + $0x238] sm:$0xff] }
 0x256   : > { %2689 = vmatprep.mubr.f32.mxu0 %v1950_v21  ;;  %2914 = vmatprep.mubr.f32.mxu1 %v1824_v45  ;;  %v5463_v21 = vpop.permute.xlu0 %2257 }
 0x257   : > { %6024 = vst [vmem:[#allocation20_spill] sm:$0xff] %v5463_v21 }
 0x259   : > { %2690 = vmatmul.mubr.f32.gmra.mxu0 %v1949_v19  ;;  %2915 = vmatmul.mubr.f32.gmra.mxu1 %v1823_v33  ;;  %v2001_v19 = vld [vmem:[#allocation2 + $0x620] sm:$0xff]  ;;  %v1875_v33 = vld [vmem:[#allocation2 + $0x230] sm:$0xff] }
 0x25a   : > { %2694 = vmatprep.mubr.f32.mxu0 %v1954_v29  ;;  %2919 = vmatprep.mubr.f32.mxu1 %v1828_v62  ;;  %v2006_v62 = vld [vmem:[#allocation2 + $0x648] sm:$0xff] }
 0x25d   : > { %2695 = vmatmul.mubr.f32.gmra.mxu0 %v1953_v35  ;;  %2920 = vmatmul.mubr.f32.gmra.mxu1 %v1827_v10  ;;  %v1880_v35 = vld [vmem:[#allocation2 + $0x258] sm:$0xff] }
 0x25e   : > { %2699 = vmatprep.mubr.f32.mxu0 %v1958_v14  ;;  %2924 = vmatprep.mubr.f32.mxu1 %v1832_v28  ;;  %v2005_v14 = vld [vmem:[#allocation2 + $0x640] sm:$0xff]  ;;  %v1879_v28 = vld [vmem:[#allocation2 + $0x250] sm:$0xff] }
 0x261   : > { %2700 = vmatmul.mubr.f32.gmra.mxu0 %v1957_v52  ;;  %2925 = vmatmul.mubr.f32.gmra.mxu1 %v1831_v44  ;;  %v5469_v52 = vpop.permute.xlu0 %2177 }
 0x262   : > { %2704 = vmatprep.mubr.f32.mxu0 %v1962_v60  ;;  %2929 = vmatprep.mubr.f32.mxu1 %v1836_v57  ;;  %v2010_v60 = vld [vmem:[#allocation2 + $0x668] sm:$0xff]  ;;  %v1884_v57 = vld [vmem:[#allocation2 + $0x278] sm:$0xff] }
 0x265   : > { %2705 = vmatmul.mubr.f32.gmra.mxu0 %v1961_v47  ;;  %2930 = vmatmul.mubr.f32.gmra.mxu1 %v1835_v54  ;;  %v2009_v54 = vld [vmem:[#allocation2 + $0x660] sm:$0xff] }
 0x266   : > { %2709 = vmatprep.mubr.f32.mxu0 %v1966_v11  ;;  %2934 = vmatprep.mubr.f32.mxu1 %v1840_v39  ;;  %v1883_v11 = vld [vmem:[#allocation2 + $0x270] sm:$0xff] }
 0x269   : > { %2710 = vmatmul.mubr.f32.gmra.mxu0 %v1965_v37  ;;  %2935 = vmatmul.mubr.f32.gmra.mxu1 %v1839_v13  ;;  %v2014_v37 = vld [vmem:[#allocation2 + $0x688] sm:$0xff]  ;;  %v1888_v13 = vld [vmem:[#allocation2 + $0x298] sm:$0xff] }
 0x26a   : > { %2714 = vmatprep.mubr.f32.mxu0 %v1970_v53  ;;  %2939 = vmatprep.mubr.f32.mxu1 %v1844_v31  ;;  %v5473_v53 = vpop.permute.xlu0 %2252 }
 0x26b   : > { %6025 = vst [vmem:[#allocation19_spill] sm:$0xff] %v5473_v53 }
 0x26d   : > { %2715 = vmatmul.mubr.f32.gmra.mxu0 %v1969_v32  ;;  %2940 = vmatmul.mubr.f32.gmra.mxu1 %v1843_v43  ;;  %v2013_v32 = vld [vmem:[#allocation2 + $0x680] sm:$0xff]  ;;  %v1887_v43 = vld [vmem:[#allocation2 + $0x290] sm:$0xff] }
 0x26e   : > { %2719 = vmatprep.mubr.f32.mxu0 %v1974_v3  ;;  %2944 = vmatprep.mubr.f32.mxu1 %v1848_v12  ;;  %v2018_v12 = vld [vmem:[#allocation2 + $0x6a8] sm:$0xff] }
 0x271   : > { %2720 = vmatmul.mubr.f32.gmra.mxu0 %v1973_v20  ;;  %2945 = vmatmul.mubr.f32.gmra.mxu1 %v1847_v7  ;;  %v1892_v20 = vld [vmem:[#allocation2 + $0x2b8] sm:$0xff] }
 0x272   : > { %2724 = vmatprep.mubr.f32.mxu0 %v1978_v6  ;;  %2949 = vmatprep.mubr.f32.mxu1 %v1852_v30  ;;  %v2017_v6 = vld [vmem:[#allocation2 + $0x6a0] sm:$0xff]  ;;  %v1891_v30 = vld [vmem:[#allocation2 + $0x2b0] sm:$0xff] }
 0x275   : > { %2725 = vmatmul.mubr.f32.gmra.mxu0 %v1977_v8  ;;  %2950 = vmatmul.mubr.f32.gmra.mxu1 %v1851_v59  ;;  %v5479_v8 = vpop.permute.xlu0 %2172 }
 0x276   : > { %2729 = vmatprep.mubr.f32.mxu0 %v1982_v24  ;;  %2954 = vmatprep.mubr.f32.mxu1 %v1856_v55  ;;  %v2022_v24 = vld [vmem:[#allocation2 + $0x6c8] sm:$0xff]  ;;  %v1896_v55 = vld [vmem:[#allocation2 + $0x2d8] sm:$0xff] }
 0x279   : > { %2730 = vmatmul.mubr.f32.gmra.mxu0 %v1981_v9  ;;  %2955 = vmatmul.mubr.f32.gmra.mxu1 %v1855_v51  ;;  %v2021_v51 = vld [vmem:[#allocation2 + $0x6c0] sm:$0xff] }
 0x27a   : > { %2734 = vmatprep.mubr.f32.mxu0 %v1986_v1  ;;  %2959 = vmatprep.mubr.f32.mxu1 %v1860_v23  ;;  %v1895_v1 = vld [vmem:[#allocation2 + $0x2d0] sm:$0xff] }
 0x27d   : > { %2735 = vmatmul.mubr.f32.gmra.mxu0 %v1985_v5  ;;  %2960 = vmatmul.mubr.f32.gmra.mxu1 %v1859_v56  ;;  %v2026_v5 = vld [vmem:[#allocation2 + $0x6e8] sm:$0xff]  ;;  %v1900_v56 = vld [vmem:[#allocation2 + $0x2f8] sm:$0xff] }
 0x27e   : > { %2739 = vmatprep.mubr.f32.mxu0 %v1990_v26  ;;  %2964 = vmatprep.mubr.f32.mxu1 %v1864_v25  ;;  %v5483_v26 = vpop.permute.xlu0 %2247 }
 0x27f   : > { %6026 = vst [vmem:[#allocation21_spill] sm:$0xff] %v5483_v26 }
 0x281   : > { %2740 = vmatmul.mubr.f32.gmra.mxu0 %v1989_v18  ;;  %2965 = vmatmul.mubr.f32.gmra.mxu1 %v1863_v46  ;;  %v2025_v18 = vld [vmem:[#allocation2 + $0x6e0] sm:$0xff]  ;;  %v1899_v46 = vld [vmem:[#allocation2 + $0x2f0] sm:$0xff] }
 0x282   : > { %2744 = vmatprep.mubr.f32.mxu0 %v1994_v63  ;;  %2969 = vmatprep.mubr.f32.mxu1 %v1868_v27  ;;  %v2030_v27 = vld [vmem:[#allocation2 + $0x708] sm:$0xff] }
 0x285   : > { %2745 = vmatmul.mubr.f32.gmra.mxu0 %v1993_v4  ;;  %2970 = vmatmul.mubr.f32.gmra.mxu1 %v1867_v41  ;;  %v1904_v4 = vld [vmem:[#allocation2 + $0x318] sm:$0xff] }
 0x286   : > { %2749 = vmatprep.mubr.f32.mxu0 %v1998_v15  ;;  %2974 = vmatprep.mubr.f32.mxu1 %v1872_v50  ;;  %v2029_v15 = vld [vmem:[#allocation2 + $0x700] sm:$0xff]  ;;  %v1903_v50 = vld [vmem:[#allocation2 + $0x310] sm:$0xff] }
 0x289   : > { %v5465_v45 = vpop.f32.mrf.mxu0  ;;  %2750 = vmatmul.mubr.f32.gmra.mxu0 %v1997_v17  ;;  %2975 = vmatmul.mubr.f32.gmra.mxu1 %v1871_v22  ;;  %v5489_v17 = vpop.permute.xlu0 %2167 }
 0x28a   : > { %2754 = vmatprep.mubr.f32.mxu0 %v2002_v49  ;;  %2979 = vmatprep.mubr.f32.mxu1 %v1876_v48  ;;  %v2034_v49 = vld [vmem:[#allocation2 + $0x728] sm:$0xff]  ;;  %v1908_v48 = vld [vmem:[#allocation2 + $0x338] sm:$0xff] }
 0x28b   : > { %v2513_v29 = vpop.f32.mrf.mxu0 }
 0x28c   : > { %v1907_v29 = vld [vmem:[#allocation2 + $0x330] sm:$0xff] }
 0x28d   : > { %v5467_v10 = vpop.f32.mrf.mxu0  ;;  %2755 = vmatmul.mubr.f32.gmra.mxu0 %v2001_v19  ;;  %2980 = vmatmul.mubr.f32.gmra.mxu1 %v1875_v33  ;;  %v2033_v33 = vld [vmem:[#allocation2 + $0x720] sm:$0xff] }
 0x28e   : > { %2759 = vmatprep.mubr.f32.mxu0 %v2006_v62  ;;  %2984 = vmatprep.mubr.f32.mxu1 %v1880_v35  ;;  %v2038_v35 = vld [vmem:[#allocation2 + $0x748] sm:$0xff] }
 0x28f   : > { %v2518_v44 = vpop.f32.mrf.mxu0 }
 0x291   : > { %v5471_v47 = vpop.f32.mrf.mxu0  ;;  %2760 = vmatmul.mubr.f32.gmra.mxu0 %v2005_v14  ;;  %2985 = vmatmul.mubr.f32.gmra.mxu1 %v1879_v28  ;;  %v1912_v14 = vld [vmem:[#allocation2 + $0x358] sm:$0xff]  ;;  %v5493_v28 = vpop.permute.xlu0 %2242 }
 0x292   : > { %2764 = vmatprep.mubr.f32.mxu0 %v2010_v60  ;;  %2989 = vmatprep.mubr.f32.mxu1 %v1884_v57  ;;  %6027 = vst [vmem:[#allocation18_spill] sm:$0xff] %v5493_v28  ;;  %v2037_v60 = vld [vmem:[#allocation2 + $0x740] sm:$0xff]  ;;  %v1911_v57 = vld [vmem:[#allocation2 + $0x350] sm:$0xff] }
 0x293   : > { %v2523_v39 = vpop.f32.mrf.mxu0 }
 0x294   : > { %v1916_v39 = vld [vmem:[#allocation2 + $0x378] sm:$0xff] }
 0x295   : > { %v5475_v31 = vpop.f32.mrf.mxu0  ;;  %2765 = vmatmul.mubr.f32.gmra.mxu0 %v2009_v54  ;;  %2990 = vmatmul.mubr.f32.gmra.mxu1 %v1883_v11  ;;  %v2042_v11 = vld [vmem:[#allocation2 + $0x768] sm:$0xff] }
 0x296   : > { %2769 = vmatprep.mubr.f32.mxu0 %v2014_v37  ;;  %2994 = vmatprep.mubr.f32.mxu1 %v1888_v13  ;;  %v2041_v13 = vld [vmem:[#allocation2 + $0x760] sm:$0xff] }
 0x297   : > { %v2528_v3 = vpop.f32.mrf.mxu0 }
 0x299   : > { %v5477_v7 = vpop.f32.mrf.mxu0  ;;  %2770 = vmatmul.mubr.f32.gmra.mxu0 %v2013_v32  ;;  %2995 = vmatmul.mubr.f32.gmra.mxu1 %v1887_v43  ;;  %v1915_v32 = vld [vmem:[#allocation2 + $0x370] sm:$0xff]  ;;  %v5499_v43 = vpop.permute.xlu0 %2162 }
 0x29a   : > { %2774 = vmatprep.mubr.f32.mxu0 %v2018_v12  ;;  %2999 = vmatprep.mubr.f32.mxu1 %v1892_v20  ;;  %v2046_v12 = vld [vmem:[#allocation2 + $0x788] sm:$0xff]  ;;  %v1920_v20 = vld [vmem:[#allocation2 + $0x398] sm:$0xff] }
 0x29b   : > { %v2533_v59 = vpop.f32.mrf.mxu0 }
 0x29c   : > { %v2045_v59 = vld [vmem:[#allocation2 + $0x780] sm:$0xff] }
 0x29d   : > { %v5481_v9 = vpop.f32.mrf.mxu0  ;;  %2775 = vmatmul.mubr.f32.gmra.mxu0 %v2017_v6  ;;  %3000 = vmatmul.mubr.f32.gmra.mxu1 %v1891_v30 }
 0x29e   : > { %2779 = vmatprep.mubr.f32.mxu0 %v2022_v24  ;;  %3004 = vmatprep.mubr.f32.mxu1 %v1896_v55  ;;  %v1919_v24 = vld [vmem:[#allocation2 + $0x390] sm:$0xff] }
 0x29f   : > { %v2538_v23 = vpop.f32.mrf.mxu0 }
 0x2a0   : > { %v5504_v23 = vpop.permute.xlu0 %2237 }
 0x2a1   : > { %v5485_v25 = vpop.f32.mrf.mxu0  ;;  %2780 = vmatmul.mubr.f32.gmra.mxu0 %v2021_v51  ;;  %3005 = vmatmul.mubr.f32.gmra.mxu1 %v1895_v1  ;;  %v2050_v51 = vld [vmem:[#allocation2 + $0x7a8] sm:$0xff]  ;;  %v1924_v1 = vld [vmem:[#allocation2 + $0x3b8] sm:$0xff]  ;;  %6028 = vst [vmem:[#allocation16_spill] sm:$0xff] %v5504_v23 }
 0x2a2   : > { %2784 = vmatprep.mubr.f32.mxu0 %v2026_v5  ;;  %3009 = vmatprep.mubr.f32.mxu1 %v1900_v56  ;;  %v2049_v56 = vld [vmem:[#allocation2 + $0x7a0] sm:$0xff] }
 0x2a3   : > { %v2543_v63 = vpop.f32.mrf.mxu0 }
 0x2a4   : > { %v1928_v63 = vld [vmem:[#allocation2 + $0x3d8] sm:$0xff] }
 0x2a5   : > { %v5487_v41 = vpop.f32.mrf.mxu0  ;;  %2785 = vmatmul.mubr.f32.gmra.mxu0 %v2025_v18  ;;  %3010 = vmatmul.mubr.f32.gmra.mxu1 %v1899_v46  ;;  %v1923_v18 = vld [vmem:[#allocation2 + $0x3b0] sm:$0xff] }
 0x2a6   : > { %2789 = vmatprep.mubr.f32.mxu0 %v2030_v27  ;;  %3014 = vmatprep.mubr.f32.mxu1 %v1904_v4  ;;  %v2053_v4 = vld [vmem:[#allocation2 + $0x7c0] sm:$0xff] }
 0x2a7   : > { %v2548_v22 = vpop.f32.mrf.mxu0 }
 0x2a9   : > { %v5491_v19 = vpop.f32.mrf.mxu0  ;;  %2790 = vmatmul.mubr.f32.gmra.mxu0 %v2029_v15  ;;  %3015 = vmatmul.mubr.f32.gmra.mxu1 %v1903_v50  ;;  %v1927_v15 = vld [vmem:[#allocation2 + $0x3d0] sm:$0xff]  ;;  %v5510_v50 = vpop.permute.xlu0 %2157 }
 0x2aa   : > { %2794 = vmatprep.mubr.f32.mxu0 %v2034_v49  ;;  %3019 = vmatprep.mubr.f32.mxu1 %v1908_v48  ;;  %v2058_v49 = vld [vmem:[#allocation2 + $0x7e8] sm:$0xff]  ;;  %v1932_v48 = vld [vmem:[#allocation2 + $0x3f8] sm:$0xff] }
 0x2ab   : > { %v2553_v62 = vpop.f32.mrf.mxu0 }
 0x2ac   : > { %v1931_v62 = vld [vmem:[#allocation2 + $0x3f0] sm:$0xff] }
 0x2ad   : > { %v5495_v44 = vpop.f32.mrf.mxu0  ;;  %2795 = vmatmul.mubr.f32.gmra.mxu0 %v2033_v33  ;;  %3020 = vmatmul.mubr.f32.gmra.mxu1 %v1907_v29  ;;  %v2057_v29 = vld [vmem:[#allocation2 + $0x7e0] sm:$0xff] }
 0x2ae   : > { %2799 = vmatprep.mubr.f32.mxu0 %v2038_v35  ;;  %3024 = vmatprep.mubr.f32.mxu1 %v1912_v14  ;;  %v1936_v14 = vld [vmem:[#allocation2 + $0x418] sm:$0xff] }
 0x2af   : > { %v2558_v54 = vpop.f32.mrf.mxu0 }
 0x2b0   : > { %v1935_v54 = vld [vmem:[#allocation2 + $0x410] sm:$0xff] }
 0x2b1   : > { %v5497_v37 = vpop.f32.mrf.mxu0  ;;  %2800 = vmatmul.mubr.f32.gmra.mxu0 %v2037_v60  ;;  %3025 = vmatmul.mubr.f32.gmra.mxu1 %v1911_v57  ;;  %v5514_v60 = vpop.permute.xlu0 %2232 }
 0x2b2   : > { %2804 = vmatprep.mubr.f32.mxu0 %v2042_v11  ;;  %3029 = vmatprep.mubr.f32.mxu1 %v1916_v39  ;;  %6029 = vst [vmem:[#allocation6_spill] sm:$0xff] %v5514_v60  ;;  %v1940_v39 = vld [vmem:[#allocation2 + $0x438] sm:$0xff] }
 0x2b3   : > { %v2563_v3 = vpop.f32.mrf.mxu0  ;;  %v1988_v60 = vld [vmem:[#allocation2 + $0x5b8] sm:$0xff] }
 0x2b5   : > { %v2566_v6 = vpop.f32.mrf.mxu0  ;;  %2805 = vmatmul.mubr.f32.gmra.mxu0 %v2041_v13  ;;  %3030 = vmatmul.mubr.f32.gmra.mxu1 %v1915_v32  ;;  %v1939_v32 = vld [vmem:[#allocation2 + $0x430] sm:$0xff]  ;;  %v5520_v3 = vpop.permute.xlu0 %2152 }
 0x2b6   : > { %v5502_v30 = vadd.f32 %v2566_v6, %v5461_v38  ;;  %2809 = vmatprep.mubr.f32.mxu0 %v2046_v12  ;;  %3034 = vmatprep.mubr.f32.mxu1 %v1920_v20  ;;  %v2054_v38 = vld [vmem:[#allocation2 + $0x7c8] sm:$0xff]  ;;  %v1944_v20 = vld [vmem:[#allocation2 + $0x458] sm:$0xff]  ;;  %v5522_v6 = vpop.permute.xlu1 %2442 }
 0x2b7   : > { %v2568_v55 = vpop.f32.mrf.mxu0  ;;  %6030 = vst [vmem:[#allocation7_spill] sm:$0xff] %v5522_v6  ;;  %v1976_v6 = vld [vmem:[#allocation2 + $0x558] sm:$0xff] }
 0x2b9   : > { %v5506_v5 = vpop.f32.mrf.mxu0  ;;  %2810 = vmatmul.mubr.f32.gmra.mxu0 %v2045_v59  ;;  %3035 = vmatmul.mubr.f32.gmra.mxu1 %v1919_v24  ;;  %v1943_v24 = vld [vmem:[#allocation2 + $0x450] sm:$0xff] }
 0x2ba   : > { %2814 = vmatprep.mubr.f32.mxu0 %v2050_v51  ;;  %3039 = vmatprep.mubr.f32.mxu1 %v1924_v1  ;;  %v1948_v51 = vld [vmem:[#allocation2 + $0x478] sm:$0xff]  ;;  %v5526_v1 = vpop.permute.xlu0 %2227 }
 0x2bb   : > { %v2573_v46 = vpop.f32.mrf.mxu0 }
 0x2bc   : > { %v1947_v46 = vld [vmem:[#allocation2 + $0x470] sm:$0xff] }
 0x2bd   : > { %v5508_v27 = vpop.f32.mrf.mxu0  ;;  %2815 = vmatmul.mubr.f32.gmra.mxu0 %v2049_v56  ;;  %3040 = vmatmul.mubr.f32.gmra.mxu1 %v1923_v18  ;;  %v5530_v18 = vpop.permute.xlu1 %2362 }
 0x2be   : > { %2819 = vmatprep.mubr.f32.mxu0 %v2054_v38  ;;  %3044 = vmatprep.mubr.f32.mxu1 %v1928_v63  ;;  %6031 = vst [vmem:[#allocation5_spill] sm:$0xff] %v5530_v18  ;;  %v1952_v63 = vld [vmem:[#allocation2 + $0x498] sm:$0xff] }
 0x2bf   : > { %v2578_v22 = vpop.f32.mrf.mxu0 }
 0x2c0   : > { %v5534_v22 = vpop.permute.xlu0 %2147 }
 0x2c1   : > { %v5512_v33 = vpop.f32.mrf.mxu0  ;;  %2820 = vmatmul.mubr.f32.gmra.mxu0 %v2053_v4  ;;  %3045 = vmatmul.mubr.f32.gmra.mxu1 %v1927_v15  ;;  %v1951_v15 = vld [vmem:[#allocation2 + $0x490] sm:$0xff] }
 0x2c2   : > { %2824 = vmatprep.mubr.f32.mxu0 %v2058_v49  ;;  %3049 = vmatprep.mubr.f32.mxu1 %v1932_v48  ;;  %v1956_v48 = vld [vmem:[#allocation2 + $0x4b8] sm:$0xff] }
 0x2c3   : > { %v2583_v35 = vpop.f32.mrf.mxu0 }
 0x2c4   : > { %v1955_v35 = vld [vmem:[#allocation2 + $0x4b0] sm:$0xff] }
 0x2c5   : > { %v5516_v57 = vpop.f32.mrf.mxu0  ;;  %2825 = vmatmul.mubr.f32.gmra.mxu0 %v2057_v29  ;;  %3050 = vmatmul.mubr.f32.gmra.mxu1 %v1931_v62  ;;  %v5536_v29 = vpop.permute.xlu1 %2437 }
 0x2c6   : > { %3054 = vmatprep.mubr.f32.mxu1 %v1936_v14  ;;  %6032 = vst [vmem:[#allocation8_spill] sm:$0xff] %v5536_v29 }
 0x2c7   : > { %v2588_v11 = vpop.f32.mrf.mxu0 }
 0x2c8   : > { %v5540_v11 = vpop.permute.xlu0 %2222 }
 0x2c9   : > { %v5518_v13 = vpop.f32.mrf.mxu0  ;;  %3055 = vmatmul.mubr.f32.gmra.mxu1 %v1935_v54  ;;  %v1960_v54 = vld [vmem:[#allocation2 + $0x4d8] sm:$0xff] }
 0x2ca   : > { %3059 = vmatprep.mubr.f32.mxu1 %v1940_v39 }
 0x2cb   : > { %v2593_v12 = vpop.f32.mrf.mxu0 }
 0x2cc   : > { %v1959_v12 = vld [vmem:[#allocation2 + $0x4d0] sm:$0xff] }
 0x2cd   : > { %v5524_v59 = vpop.f32.mrf.mxu0  ;;  %3060 = vmatmul.mubr.f32.gmra.mxu1 %v1939_v32  ;;  %v5544_v32 = vpop.permute.xlu1 %2357 }
 0x2ce   : > { %3064 = vmatprep.mubr.f32.mxu1 %v1944_v20  ;;  %6034 = vst [vmem:[#allocation10_spill] sm:$0xff] %v5544_v32 }
 0x2cf   : > { %v2598_v55 = vpop.f32.mrf.mxu0 }
 0x2d1   : > { %v5528_v56 = vpop.f32.mrf.mxu0  ;;  %3065 = vmatmul.mubr.f32.gmra.mxu1 %v1943_v24  ;;  %v1964_v24 = vld [vmem:[#allocation2 + $0x4f8] sm:$0xff] }
 0x2d2   : > { %3069 = vmatprep.mubr.f32.mxu1 %v1948_v51  ;;  %v1963_v51 = vld [vmem:[#allocation2 + $0x4f0] sm:$0xff] }
 0x2d3   : > { %v2603_v38 = vpop.f32.mrf.mxu0 }
 0x2d5   : > { %v5532_v4 = vpop.f32.mrf.mxu0  ;;  %3070 = vmatmul.mubr.f32.gmra.mxu1 %v1947_v46  ;;  %v5548_v46 = vpop.permute.xlu0 %2142 }
 0x2d6   : > { %3074 = vmatprep.mubr.f32.mxu1 %v1952_v63  ;;  %v1968_v63 = vld [vmem:[#allocation2 + $0x518] sm:$0xff] }
 0x2d7   : > { %v2608_v49 = vpop.f32.mrf.mxu0 }
 0x2d9   : > { %v5538_v62 = vpop.f32.mrf.mxu0  ;;  %3075 = vmatmul.mubr.f32.gmra.mxu1 %v1951_v15  ;;  %v5550_v15 = vpop.permute.xlu1 %2432 }
 0x2da   : > { %3079 = vmatprep.mubr.f32.mxu1 %v1956_v48  ;;  %6036 = vst [vmem:[#allocation12_spill] sm:$0xff] %v5550_v15  ;;  %v1967_v48 = vld [vmem:[#allocation2 + $0x510] sm:$0xff]  ;;  %v1980_v15 = vld [vmem:[#allocation2 + $0x578] sm:$0xff] }
 0x2db   : > { %v2613_v14 = vpop.f32.mrf.mxu0 }
 0x2dc   : > { %v1972_v14 = vld [vmem:[#allocation2 + $0x538] sm:$0xff] }
 0x2dd   : > { %v5542_v39 = vpop.f32.mrf.mxu0  ;;  %3080 = vmatmul.mubr.f32.gmra.mxu1 %v1955_v35 }
 0x2de   : > { %6033 = vst [vmem:[#allocation9_spill] sm:$0xff] %v5542_v39  ;;  %3084 = vmatprep.mubr.f32.mxu1 %v1960_v54  ;;  %v5554_v54 = vpop.permute.xlu0 %2217 }
 0x2df   : > { %v2618_v20 = vpop.f32.mrf.mxu0 }
 0x2e1   : > { %v5546_v55 = vpop.f32.mrf.mxu0  ;;  %3085 = vmatmul.mubr.f32.gmra.mxu1 %v1959_v12  ;;  %v5558_v12 = vpop.permute.xlu1 %2352 }
 0x2e2   : > { %6035 = vst [vmem:[#allocation11_spill] sm:$0xff] %v5546_v55  ;;  %3089 = vmatprep.mubr.f32.mxu1 %v1964_v24  ;;  %6039 = vst [vmem:[#allocation15_spill] sm:$0xff] %v5558_v12  ;;  %v1971_v24 = vld [vmem:[#allocation2 + $0x530] sm:$0xff]  ;;  %v1984_v12 = vld [vmem:[#allocation2 + $0x598] sm:$0xff] }
 0x2e3   : > { %v2623_v38 = vpop.f32.mrf.mxu0 }
 0x2e5   : > { %v5552_v49 = vpop.f32.mrf.mxu0  ;;  %3090 = vmatmul.mubr.f32.gmra.mxu1 %v1963_v51  ;;  %v1975_v51 = vld [vmem:[#allocation2 + $0x550] sm:$0xff]  ;;  %v5564_v18 = vpop.permute.xlu1 %2427 }
 0x2e6   : > { %6037 = vst [vmem:[#allocation13_spill] sm:$0xff] %v5552_v49  ;;  %3094 = vmatprep.mubr.f32.mxu1 %v1968_v63  ;;  %v5562_v63 = vpop.permute.xlu0 %2137  ;;  %6041 = vst [vmem:[#allocation23_spill] sm:$0xff] %v5564_v18 }
 0x2e7   : > { %v2628_v35 = vpop.f32.mrf.mxu0 }
 0x2e9   : > { %v5556_v20 = vpop.f32.mrf.mxu0  ;;  %3095 = vmatmul.mubr.f32.gmra.mxu1 %v1967_v48  ;;  %v1979_v48 = vld [vmem:[#allocation2 + $0x570] sm:$0xff] }
 0x2ea   : > { %6038 = vst [vmem:[#allocation14_spill] sm:$0xff] %v5556_v20  ;;  %3099 = vmatprep.mubr.f32.mxu1 %v1972_v14  ;;  %v2000_v20 = vld [vmem:[#allocation2 + $0x618] sm:$0xff] }
 0x2eb   : > { %v2633_v38 = vpop.f32.mrf.mxu0 }
 0x2ec   : > { %v5568_v38 = vpop.permute.xlu0 %2212 }
 0x2ed   : > { %v5560_v29 = vpop.f32.mrf.mxu0  ;;  %3100 = vmatmul.mubr.f32.gmra.mxu1 %v1971_v24  ;;  %v1983_v24 = vld [vmem:[#allocation2 + $0x590] sm:$0xff] }
 0x2ee   : > { %6040 = vst [vmem:[#allocation22_spill] sm:$0xff] %v5560_v29  ;;  %3104 = vmatprep.mubr.f32.mxu1 %v1976_v6  ;;  %v5572_v6 = vpop.permute.xlu1 %2347 }
 0x2ef   : > { %v2638_v35 = vpop.f32.mrf.mxu0  ;;  %6044 = vst [vmem:[#allocation26_spill] sm:$0xff] %v5572_v6 }
 0x2f1   : > { %v5566_v32 = vpop.f32.mrf.mxu0  ;;  %3105 = vmatmul.mubr.f32.gmra.mxu1 %v1975_v51  ;;  %v1987_v51 = vld [vmem:[#allocation2 + $0x5b0] sm:$0xff] }
 0x2f2   : > { %6042 = vst [vmem:[#allocation24_spill] sm:$0xff] %v5566_v32  ;;  %3109 = vmatprep.mubr.f32.mxu1 %v1980_v15  ;;  %v2133_v15 = vpop.permute.xlu0 %2132  ;;  %v5576_v23 = vpop.permute.xlu1 %2422 }
 0x2f3   : > { %v2643_v14 = vpop.f32.mrf.mxu0  ;;  %6045 = vst [vmem:[#allocation27_spill] sm:$0xff] %v5576_v23 }
 0x2f4   : > { %v1992_v14 = vld [vmem:[#allocation2 + $0x5d8] sm:$0xff] }
 0x2f5   : > { %v5570_v39 = vpop.f32.mrf.mxu0  ;;  %3110 = vmatmul.mubr.f32.gmra.mxu1 %v1979_v48  ;;  %v1991_v48 = vld [vmem:[#allocation2 + $0x5d0] sm:$0xff] }
 0x2f6   : > { %6043 = vst [vmem:[#allocation25_spill] sm:$0xff] %v5570_v39  ;;  %3114 = vmatprep.mubr.f32.mxu1 %v1984_v12  ;;  %v1996_v12 = vld [vmem:[#allocation2 + $0x5f8] sm:$0xff]  ;;  %v5580_v28 = vpop.permute.xlu0 %2207 }
 0x2f7   : > { %v2648_v35 = vpop.f32.mrf.mxu0 }
 0x2f9   : > { %v5574_v55 = vpop.f32.mrf.mxu0  ;;  %3115 = vmatmul.mubr.f32.gmra.mxu1 %v1983_v24  ;;  %v5584_v24 = vpop.permute.xlu1 %2342 }
 0x2fa   : > { %3119 = vmatprep.mubr.f32.mxu1 %v1988_v60  ;;  %v1995_v60 = vld [vmem:[#allocation2 + $0x5f0] sm:$0xff] }
 0x2fb   : > { %v2653_v18 = vpop.f32.mrf.mxu0 }
 0x2fd   : > { %v5578_v49 = vpop.f32.mrf.mxu0  ;;  %3120 = vmatmul.mubr.f32.gmra.mxu1 %v1987_v51  ;;  %v1999_v51 = vld [vmem:[#allocation2 + $0x610] sm:$0xff]  ;;  %v5588_v29 = vpop.permute.xlu1 %2417 }
 0x2fe   : > { %3124 = vmatprep.mubr.f32.mxu1 %v1992_v14  ;;  %v2128_v14 = vpop.permute.xlu0 %2127  ;;  %6046 = vst [vmem:[#allocation28_spill] sm:$0xff] %v5588_v29 }
 0x2ff   : > { %v2658_v6 = vpop.f32.mrf.mxu0  ;;  %v2512_v53 = vadd.f32 %v5465_v45, %v2128_v14  ;;  %v2007_v14 = vld [vmem:[#allocation2 + $0x650] sm:$0xff] }
 0x300   : > { %v2004_v6 = vld [vmem:[#allocation2 + $0x638] sm:$0xff] }
 0x301   : > { %v5582_v35 = vpop.f32.mrf.mxu0  ;;  %3125 = vmatmul.mubr.f32.gmra.mxu1 %v1991_v48  ;;  %v5598_v29 = vpop.permute.xlu1 %2337 }
 0x302   : > { %3129 = vmatprep.mubr.f32.mxu1 %v1996_v12  ;;  %6048 = vst [vmem:[#allocation30_spill] sm:$0xff] %v5598_v29 }
 0x303   : > { %v2663_v18 = vpop.f32.mrf.mxu0 }
 0x304   : > { %v2003_v18 = vld [vmem:[#allocation2 + $0x630] sm:$0xff] }
 0x305   : > { %v5586_v26 = vpop.f32.mrf.mxu0  ;;  %3130 = vmatmul.mubr.f32.gmra.mxu1 %v1995_v60  ;;  %v2008_v60 = vld [vmem:[#allocation2 + $0x658] sm:$0xff] }
 0x306   : > { %3134 = vmatprep.mubr.f32.mxu1 %v2000_v20  ;;  %v2517_v20 = vadd.f32 %v5467_v10, %v2133_v15  ;;  %v2011_v15 = vld [vmem:[#allocation2 + $0x670] sm:$0xff] }
 0x307   : > { %v2668_v23 = vpop.f32.mrf.mxu0 }
 0x309   : > { %v5591_v32 = vpop.f32.mrf.mxu0  ;;  %v2896_v48 = vpop.f32.mrf.mxu1  ;;  %3135 = vmatmul.mubr.f32.gmra.mxu1 %v1999_v51 }
 0x30a   : > { %v5593_v12 = vadd.f32 %v2896_v48, %v2512_v53  ;;  %3139 = vmatprep.mubr.f32.mxu1 %v2004_v6  ;;  %v2012_v48 = vld [vmem:[#allocation2 + $0x678] sm:$0xff] }
 0x30b   : > { %v2673_v21 = vpop.f32.mrf.mxu0  ;;  %v2898_v39 = vpop.f32.mrf.mxu1 }
 0x30c   : > { %6047 = vst [vmem:[#allocation29_spill] sm:$0xff] %v5593_v12  ;;  %v2522_v21 = vadd.f32 %v5471_v47, %v5562_v63  ;;  %v2015_v63 = vld [vmem:[#allocation2 + $0x690] sm:$0xff] }
 0x30d   : > { %v5596_v2 = vpop.f32.mrf.mxu0  ;;  %v2901_v23 = vpop.f32.mrf.mxu1  ;;  %3140 = vmatmul.mubr.f32.gmra.mxu1 %v2003_v18 }
 0x30e   : > { %v5600_v45 = vadd.f32 %v2901_v23, %v2517_v20  ;;  %3144 = vmatprep.mubr.f32.mxu1 %v2008_v60  ;;  %v2016_v20 = vld [vmem:[#allocation2 + $0x698] sm:$0xff]  ;;  %v5608_v23 = vpop.permute.xlu1 %2412  ;;  %v2527_v60 = vadd.f32 %v5475_v31, %v5548_v46  ;;  %v2019_v46 = vld [vmem:[#allocation2 + $0x6b0] sm:$0xff] }
 0x30f   : > { %v2678_v51 = vpop.f32.mrf.mxu0  ;;  %v2903_v53 = vpop.f32.mrf.mxu1  ;;  %6050 = vst [vmem:[#allocation32_spill] sm:$0xff] %v5608_v23 }
 0x310   : > { %6049 = vst [vmem:[#allocation31_spill] sm:$0xff] %v5600_v45  ;;  %v6091_v45 = vld [vmem:[#allocation25_spill] sm:$0xff] }
 0x311   : > { %v5604_v39 = vpop.f32.mrf.mxu0  ;;  %v2906_v6 = vpop.f32.mrf.mxu1  ;;  %3145 = vmatmul.mubr.f32.gmra.mxu1 %v2007_v14 }
 0x312   : > { %v5606_v10 = vadd.f32 %v2906_v6, %v2522_v21  ;;  %3149 = vmatprep.mubr.f32.mxu1 %v2012_v48  ;;  %v2020_v48 = vld [vmem:[#allocation2 + $0x6b8] sm:$0xff]  ;;  %v5620_v23 = vpop.permute.xlu1 %2332 }
 0x313   : > { %v2683_v18 = vpop.f32.mrf.mxu0  ;;  %v2908_v29 = vpop.f32.mrf.mxu1  ;;  %6051 = vst [vmem:[#allocation33_spill] sm:$0xff] %v5620_v23 }
 0x314   : > { %v2532_v29 = vadd.f32 %v5477_v7, %v5534_v22  ;;  %v2023_v22 = vld [vmem:[#allocation2 + $0x6d0] sm:$0xff] }
 0x315   : > { %v5612_v51 = vpop.f32.mrf.mxu0  ;;  %v2911_v53 = vpop.f32.mrf.mxu1  ;;  %3150 = vmatmul.mubr.f32.gmra.mxu1 %v2011_v15 }
 0x316   : > { %v5614_v47 = vadd.f32 %v2911_v53, %v2527_v60  ;;  %3154 = vmatprep.mubr.f32.mxu1 %v2016_v20  ;;  %v2024_v20 = vld [vmem:[#allocation2 + $0x6d8] sm:$0xff]  ;;  %v2537_v53 = vadd.f32 %v5481_v9, %v5520_v3  ;;  %v2027_v3 = vld [vmem:[#allocation2 + $0x6f0] sm:$0xff] }
 0x317   : > { %v2688_v14 = vpop.f32.mrf.mxu0  ;;  %v2913_v21 = vpop.f32.mrf.mxu1 }
 0x319   : > { %v5618_v6 = vpop.f32.mrf.mxu0  ;;  %v2916_v18 = vpop.f32.mrf.mxu1  ;;  %3155 = vmatmul.mubr.f32.gmra.mxu1 %v2015_v63 }
 0x31a   : > { %v5622_v31 = vadd.f32 %v2916_v18, %v2532_v29  ;;  %3159 = vmatprep.mubr.f32.mxu1 %v2020_v48  ;;  %v2028_v29 = vld [vmem:[#allocation2 + $0x6f8] sm:$0xff]  ;;  %v5630_v18 = vpop.permute.xlu1 %2407  ;;  %v2542_v48 = vadd.f32 %v5485_v25, %v5510_v50  ;;  %v2031_v50 = vld [vmem:[#allocation2 + $0x710] sm:$0xff] }
 0x31b   : > { %v2693_v15 = vpop.f32.mrf.mxu0  ;;  %v2918_v60 = vpop.f32.mrf.mxu1  ;;  %6052 = vst [vmem:[#allocation34_spill] sm:$0xff] %v5630_v18 }
 0x31d   : > { %v5626_v14 = vpop.f32.mrf.mxu0  ;;  %v2921_v21 = vpop.f32.mrf.mxu1  ;;  %3160 = vmatmul.mubr.f32.gmra.mxu1 %v2019_v46 }
 0x31e   : > { %v5628_v7 = vadd.f32 %v2921_v21, %v2537_v53  ;;  %3164 = vmatprep.mubr.f32.mxu1 %v2024_v20  ;;  %v2032_v20 = vld [vmem:[#allocation2 + $0x718] sm:$0xff]  ;;  %v5642_v18 = vpop.permute.xlu1 %2327 }
 0x31f   : > { %v2698_v63 = vpop.f32.mrf.mxu0  ;;  %v2923_v23 = vpop.f32.mrf.mxu1  ;;  %6054 = vst [vmem:[#allocation36_spill] sm:$0xff] %v5642_v18 }
 0x320   : > { %v2547_v23 = vadd.f32 %v5487_v41, %v5499_v43  ;;  %v2035_v43 = vld [vmem:[#allocation2 + $0x730] sm:$0xff] }
 0x321   : > { %v5634_v15 = vpop.f32.mrf.mxu0  ;;  %v2926_v60 = vpop.f32.mrf.mxu1  ;;  %3165 = vmatmul.mubr.f32.gmra.mxu1 %v2023_v22 }
 0x322   : > { %v5636_v9 = vadd.f32 %v2926_v60, %v2542_v48  ;;  %3169 = vmatprep.mubr.f32.mxu1 %v2028_v29  ;;  %v2036_v29 = vld [vmem:[#allocation2 + $0x738] sm:$0xff]  ;;  %v2552_v60 = vadd.f32 %v5491_v19, %v5489_v17  ;;  %v2039_v19 = vld [vmem:[#allocation2 + $0x750] sm:$0xff] }
 0x323   : > { %v2703_v46 = vpop.f32.mrf.mxu0  ;;  %v2928_v53 = vpop.f32.mrf.mxu1 }
 0x325   : > { %v5640_v21 = vpop.f32.mrf.mxu0  ;;  %v2931_v63 = vpop.f32.mrf.mxu1  ;;  %3170 = vmatmul.mubr.f32.gmra.mxu1 %v2027_v3 }
 0x326   : > { %6053 = vst [vmem:[#allocation35_spill] sm:$0xff] %v5640_v21  ;;  %v5644_v25 = vadd.f32 %v2931_v63, %v2547_v23  ;;  %3174 = vmatprep.mubr.f32.mxu1 %v2032_v20  ;;  %v2040_v23 = vld [vmem:[#allocation2 + $0x758] sm:$0xff]  ;;  %v5652_v63 = vpop.permute.xlu1 %2402  ;;  %v2557_v20 = vadd.f32 %v5495_v44, %v5479_v8  ;;  %v2043_v44 = vld [vmem:[#allocation2 + $0x770] sm:$0xff] }
 0x327   : > { %v2708_v22 = vpop.f32.mrf.mxu0  ;;  %v2933_v48 = vpop.f32.mrf.mxu1  ;;  %6056 = vst [vmem:[#allocation38_spill] sm:$0xff] %v5652_v63 }
 0x329   : > { %v5648_v46 = vpop.f32.mrf.mxu0  ;;  %v2936_v53 = vpop.f32.mrf.mxu1  ;;  %3175 = vmatmul.mubr.f32.gmra.mxu1 %v2031_v50 }
 0x32a   : > { %6055 = vst [vmem:[#allocation37_spill] sm:$0xff] %v5648_v46  ;;  %v5650_v41 = vadd.f32 %v2936_v53, %v2552_v60  ;;  %3179 = vmatprep.mubr.f32.mxu1 %v2036_v29  ;;  %v2044_v29 = vld [vmem:[#allocation2 + $0x778] sm:$0xff]  ;;  %v5664_v63 = vpop.permute.xlu1 %2322 }
 0x32b   : > { %v2713_v3 = vpop.f32.mrf.mxu0  ;;  %v2938_v18 = vpop.f32.mrf.mxu1  ;;  %6059 = vst [vmem:[#allocation41_spill] sm:$0xff] %v5664_v63 }
 0x32c   : > { %v2562_v18 = vadd.f32 %v5497_v37, %v5469_v52  ;;  %v2047_v37 = vld [vmem:[#allocation2 + $0x790] sm:$0xff] }
 0x32d   : > { %v5656_v22 = vpop.f32.mrf.mxu0  ;;  %v2941_v48 = vpop.f32.mrf.mxu1  ;;  %3180 = vmatmul.mubr.f32.gmra.mxu1 %v2035_v43 }
 0x32e   : > { %6057 = vst [vmem:[#allocation39_spill] sm:$0xff] %v5656_v22  ;;  %v5658_v17 = vadd.f32 %v2941_v48, %v2557_v20  ;;  %3184 = vmatprep.mubr.f32.mxu1 %v2040_v23  ;;  %v2048_v23 = vld [vmem:[#allocation2 + $0x798] sm:$0xff] }
 0x32f   : > { %v2718_v50 = vpop.f32.mrf.mxu0  ;;  %v2943_v60 = vpop.f32.mrf.mxu1 }
 0x331   : > { %v5662_v53 = vpop.f32.mrf.mxu0  ;;  %v2946_v3 = vpop.f32.mrf.mxu1  ;;  %3185 = vmatmul.mubr.f32.gmra.mxu1 %v2039_v19 }
 0x332   : > { %6058 = vst [vmem:[#allocation40_spill] sm:$0xff] %v5662_v53  ;;  %v5666_v8 = vadd.f32 %v2946_v3, %v2562_v18  ;;  %3189 = vmatprep.mubr.f32.mxu1 %v2044_v29  ;;  %v2052_v18 = vld [vmem:[#allocation2 + $0x7b8] sm:$0xff]  ;;  %v5674_v3 = vpop.permute.xlu1 %2397  ;;  %v2572_v29 = vadd.f32 %v5506_v5, %v5457_v36  ;;  %v2055_v5 = vld [vmem:[#allocation2 + $0x7d0] sm:$0xff] }
 0x333   : > { %v2723_v43 = vpop.f32.mrf.mxu0  ;;  %v2948_v20 = vpop.f32.mrf.mxu1  ;;  %6061 = vst [vmem:[#allocation43_spill] sm:$0xff] %v5674_v3 }
 0x335   : > { %v2726_v48 = vpop.f32.mrf.mxu0  ;;  %v2951_v50 = vpop.f32.mrf.mxu1  ;;  %3190 = vmatmul.mubr.f32.gmra.mxu1 %v2043_v44 }
 0x336   : > { %v5669_v60 = vadd.f32 %v2726_v48, %v5584_v24  ;;  %v5672_v52 = vadd.f32 %v2951_v50, %v5502_v30  ;;  %3194 = vmatprep.mubr.f32.mxu1 %v2048_v23  ;;  %v2051_v24 = vld [vmem:[#allocation2 + $0x7b0] sm:$0xff]  ;;  %v2056_v23 = vld [vmem:[#allocation2 + $0x7d8] sm:$0xff]  ;;  %v5686_v3 = vpop.permute.xlu1 %2317 }
 0x337   : > { %v2728_v19 = vpop.f32.mrf.mxu0  ;;  %v2953_v53 = vpop.f32.mrf.mxu1 }
 0x338   : > { %6060 = vst [vmem:[#allocation42_spill] sm:$0xff] %v5669_v60  ;;  %v2577_v53 = vadd.f32 %v5508_v27, %v5453_v42  ;;  %v2059_v27 = vld [vmem:[#allocation2 + $0x7f0] sm:$0xff] }
 0x339   : > { %v5678_v43 = vpop.f32.mrf.mxu0  ;;  %v2956_v20 = vpop.f32.mrf.mxu1  ;;  %3195 = vmatmul.mubr.f32.gmra.mxu1 %v2047_v37 }
 0x33a   : > { %6062 = vst [vmem:[#allocation44_spill] sm:$0xff] %v5678_v43  ;;  %v5680_v44 = vadd.f32 %v2956_v20, %v2572_v29  ;;  %3199 = vmatprep.mubr.f32.mxu1 %v2052_v18  ;;  %v2060_v18 = vld [vmem:[#allocation2 + $0x7f8] sm:$0xff]  ;;  %v2582_v20 = vadd.f32 %v5512_v33, %v5449_v0 }
 0x33b   : > { %v2733_v30 = vpop.f32.mrf.mxu0  ;;  %v2958_v48 = vpop.f32.mrf.mxu1 }
 0x33d   : > { %v5684_v50 = vpop.f32.mrf.mxu0  ;;  %v2961_v19 = vpop.f32.mrf.mxu1  ;;  %3200 = vmatmul.mubr.f32.gmra.mxu1 %v2051_v24 }
 0x33e   : > { %6063 = vst [vmem:[#allocation45_spill] sm:$0xff] %v5684_v50  ;;  %v5688_v36 = vadd.f32 %v2961_v19, %v2577_v53  ;;  %3204 = vmatprep.mubr.f32.mxu1 %v2056_v23  ;;  %v5696_v53 = vpop.permute.xlu1 %2392  ;;  %v2587_v23 = vadd.f32 %v5516_v57, %v5445_v40  ;;  %v2597_v57 = vadd.f32 %v5524_v59, %v5568_v38 }
 0x33f   : > { %v2738_v37 = vpop.f32.mrf.mxu0  ;;  %v2963_v29 = vpop.f32.mrf.mxu1  ;;  %6065 = vst [vmem:[#allocation47_spill] sm:$0xff] %v5696_v53  ;;  %v2607_v59 = vadd.f32 %v5532_v4, %v5540_v11 }
 0x341   : > { %v5692_v30 = vpop.f32.mrf.mxu0  ;;  %v2966_v48 = vpop.f32.mrf.mxu1  ;;  %3205 = vmatmul.mubr.f32.gmra.mxu1 %v2055_v5  ;;  %v2592_v5 = vadd.f32 %v5518_v13, %v5580_v28  ;;  %v2602_v13 = vadd.f32 %v5528_v56, %v5554_v54  ;;  %v2612_v56 = vadd.f32 %v5538_v62, %v5526_v1 }
 0x342   : > { %6064 = vst [vmem:[#allocation46_spill] sm:$0xff] %v5692_v30  ;;  %v5694_v42 = vadd.f32 %v2966_v48, %v2582_v20  ;;  %3209 = vmatprep.mubr.f32.mxu1 %v2060_v18 }
 0x343   : > { %v2743_v24 = vpop.f32.mrf.mxu0  ;;  %v2968_v50 = vpop.f32.mrf.mxu1 }
 0x344   : > { %v5708_v50 = vpop.permute.xlu1 %2312 }
 0x345   : > { %v5700_v19 = vpop.f32.mrf.mxu0  ;;  %v2971_v37 = vpop.f32.mrf.mxu1  ;;  %3210 = vmatmul.mubr.f32.gmra.mxu1 %v2059_v27 }
 0x346   : > { %6066 = vst [vmem:[#allocation48_spill] sm:$0xff] %v5700_v19  ;;  %v5702_v0 = vadd.f32 %v2971_v37, %v2587_v23 }
 0x347   : > { %v2748_v33 = vpop.f32.mrf.mxu0  ;;  %v2973_v29 = vpop.f32.mrf.mxu1 }
 0x348   : > { %v5718_v28 = vpop.permute.xlu1 %2387 }
 0x349   : > { %v5706_v18 = vpop.f32.mrf.mxu0  ;;  %v2976_v20 = vpop.f32.mrf.mxu1  ;;  %6071 = vst [vmem:[#allocation53_spill] sm:$0xff] %v5718_v28 }
 0x34a   : > { %6067 = vst [vmem:[#allocation49_spill] sm:$0xff] %v5706_v18  ;;  %v5710_v48 = vadd.f32 %v2976_v20, %v2592_v5 }
 0x34b   : > { %v2753_v24 = vpop.f32.mrf.mxu0  ;;  %v2978_v40 = vpop.f32.mrf.mxu1 }
 0x34c   : > { %6068 = vst [vmem:[#allocation50_spill] sm:$0xff] %v5710_v48 }
 0x34d   : > { %v5714_v27 = vpop.f32.mrf.mxu0  ;;  %v2981_v23 = vpop.f32.mrf.mxu1 }
 0x34e   : > { %6069 = vst [vmem:[#allocation51_spill] sm:$0xff] %v5714_v27  ;;  %v5716_v37 = vadd.f32 %v2981_v23, %v2597_v57  ;;  %v5730_v23 = vpop.permute.xlu1 %2307 }
 0x34f   : > { %v2758_v33 = vpop.f32.mrf.mxu0  ;;  %v2983_v29 = vpop.f32.mrf.mxu1 }
 0x350   : > { %6070 = vst [vmem:[#allocation52_spill] sm:$0xff] %v5716_v37 }
 0x351   : > { %v5722_v53 = vpop.f32.mrf.mxu0  ;;  %v2986_v5 = vpop.f32.mrf.mxu1 }
 0x352   : > { %6072 = vst [vmem:[#allocation54_spill] sm:$0xff] %v5722_v53  ;;  %v5724_v20 = vadd.f32 %v2986_v5, %v2602_v13  ;;  %v5740_v4 = vpop.permute.xlu1 %2382 }
 0x353   : > { %v2763_v24 = vpop.f32.mrf.mxu0  ;;  %v2988_v40 = vpop.f32.mrf.mxu1  ;;  %6075 = vst [vmem:[#allocation57_spill] sm:$0xff] %v5740_v4 }
 0x355   : > { %v5728_v38 = vpop.f32.mrf.mxu0  ;;  %v2991_v57 = vpop.f32.mrf.mxu1 }
 0x356   : > { %6073 = vst [vmem:[#allocation55_spill] sm:$0xff] %v5728_v38  ;;  %v5732_v33 = vadd.f32 %v2991_v57, %v2607_v59  ;;  %v5750_v1 = vpop.permute.xlu1 %2302 }
 0x357   : > { %v2768_v29 = vpop.f32.mrf.mxu0  ;;  %v2993_v28 = vpop.f32.mrf.mxu1 }
 0x359   : > { %v5736_v54 = vpop.f32.mrf.mxu0  ;;  %v2996_v13 = vpop.f32.mrf.mxu1 }
 0x35a   : > { %6074 = vst [vmem:[#allocation56_spill] sm:$0xff] %v5736_v54  ;;  %v5738_v5 = vadd.f32 %v2996_v13, %v2612_v56  ;;  %v5756_v4 = vpop.permute.xlu1 %2377 }
 0x35b   : > { %v2773_v24 = vpop.f32.mrf.mxu0  ;;  %v2998_v40 = vpop.f32.mrf.mxu1  ;;  %6079 = vst [vmem:[#allocation61_spill] sm:$0xff] %v5756_v4 }
 0x35d   : > { %v5742_v11 = vpop.f32.mrf.mxu0  ;;  %v5744_v38 = vpop.f32.mrf.mxu1 }
 0x35e   : > { %6076 = vst [vmem:[#allocation58_spill] sm:$0xff] %v5742_v11 }
 0x35f   : > { %v2778_v59 = vpop.f32.mrf.mxu0  ;;  %v3003_v57 = vpop.f32.mrf.mxu1 }
 0x361   : > { %v5746_v29 = vpop.f32.mrf.mxu0  ;;  %v5748_v28 = vpop.f32.mrf.mxu1 }
 0x362   : > { %6077 = vst [vmem:[#allocation59_spill] sm:$0xff] %v5746_v29 }
 0x363   : > { %v2783_v62 = vpop.f32.mrf.mxu0  ;;  %v3008_v54 = vpop.f32.mrf.mxu1 }
 0x364   : > { %v5766_v62 = vpop.permute.xlu1 %2297 }
 0x365   : > { %v5752_v56 = vpop.f32.mrf.mxu0  ;;  %v5754_v13 = vpop.f32.mrf.mxu1 }
 0x366   : > { %6078 = vst [vmem:[#allocation60_spill] sm:$0xff] %v5752_v56 }
 0x367   : > { %v2788_v24 = vpop.f32.mrf.mxu0  ;;  %v3013_v40 = vpop.f32.mrf.mxu1 }
 0x368   : > { %v5770_v4 = vpop.permute.xlu1 %2372 }
 0x369   : > { %v5758_v11 = vpop.f32.mrf.mxu0  ;;  %v5760_v59 = vpop.f32.mrf.mxu1  ;;  %6083 = vst [vmem:[#allocation65_spill] sm:$0xff] %v5770_v4 }
 0x36a   : > { %6080 = vst [vmem:[#allocation62_spill] sm:$0xff] %v5758_v11 }
 0x36b   : > { %v2793_v57 = vpop.f32.mrf.mxu0  ;;  %v3018_v29 = vpop.f32.mrf.mxu1 }
 0x36c   : > { %v2293_v60 = vpop.permute.xlu1 %2292 }
 0x36d   : > { %v5762_v53 = vpop.f32.mrf.mxu0  ;;  %v5764_v27 = vpop.f32.mrf.mxu1 }
 0x36e   : > { %6081 = vst [vmem:[#allocation63_spill] sm:$0xff] %v5762_v53 }
 0x36f   : > { %v2798_v54 = vpop.f32.mrf.mxu0  ;;  %v3023_v56 = vpop.f32.mrf.mxu1 }
 0x371   : > { %v5768_v18 = vpop.f32.mrf.mxu0  ;;  %v3026_v24 = vpop.f32.mrf.mxu1 }
 0x372   : > { %6082 = vst [vmem:[#allocation64_spill] sm:$0xff] %v5768_v18 }
 0x373   : > { %v2803_v40 = vpop.f32.mrf.mxu0  ;;  %v3028_v19 = vpop.f32.mrf.mxu1 }
 0x374   : > { %v5778_v40 = vpop.permute.xlu1 %2367 }
 0x375   : > { %v5772_v11 = vpop.f32.mrf.mxu0  ;;  %v3031_v30 = vpop.f32.mrf.mxu1  ;;  %6087 = vst [vmem:[#allocation69_spill] sm:$0xff] %v5778_v40 }
 0x376   : > { %6084 = vst [vmem:[#allocation66_spill] sm:$0xff] %v5772_v11 }
 0x377   : > { %v2808_v57 = vpop.f32.mrf.mxu0  ;;  %v3033_v29 = vpop.f32.mrf.mxu1 }
 0x378   : > { %v2662_v57 = vadd.f32 %v5582_v35, %v5447_v34  ;;  %v2667_v29 = vadd.f32 %v5586_v26, %v5443_v58  ;;  %v3230_v58 = vmax.f32 %v5702_v0, 0.0 }
 0x379   : > { %v5774_v43 = vpop.f32.mrf.mxu0  ;;  %v3036_v53 = vpop.f32.mrf.mxu1 }
 0x37a   : > { %6085 = vst [vmem:[#allocation67_spill] sm:$0xff] %v5774_v43  ;;  %v2288_v43 = vpop.permute.xlu1 %2287 }
 0x37b   : > { %v2813_v22 = vpop.f32.mrf.mxu0  ;;  %v3038_v46 = vpop.f32.mrf.mxu1 }
 0x37d   : > { %v5776_v54 = vpop.f32.mrf.mxu0  ;;  %v3041_v56 = vpop.f32.mrf.mxu1 }
 0x37e   : > { %6086 = vst [vmem:[#allocation68_spill] sm:$0xff] %v5776_v54 }
 0x37f   : > { %v2818_v18 = vpop.f32.mrf.mxu0  ;;  %v3043_v12 = vpop.f32.mrf.mxu1 }
 0x380   : > { %v2657_v12 = vadd.f32 %v5578_v49, %v5451_v16  ;;  %v3229_v49 = vmax.f32 %v5694_v42, 0.0 }
 0x381   : > { %v5780_v19 = vpop.f32.mrf.mxu0  ;;  %v3046_v4 = vpop.f32.mrf.mxu1 }
 0x382   : > { %6088 = vst [vmem:[#allocation70_spill] sm:$0xff] %v5780_v19  ;;  %v3047_v18 = vadd.f32 %v3046_v4, %v2662_v57  ;;  %v3042_v34 = vadd.f32 %v3041_v56, %v2657_v12  ;;  %v3228_v56 = vmax.f32 %v5688_v36, 0.0  ;;  %v6098_v12 = vld [vmem:[#allocation18_spill] sm:$0xff] }
 0x383   : > { %v2823_v11 = vpop.f32.mrf.mxu0  ;;  %v3048_v48 = vpop.f32.mrf.mxu1 }
 0x384   : > { %v2652_v48 = vadd.f32 %v5574_v55, %v5455_v61  ;;  %v2672_v11 = vadd.f32 %v5591_v32, %v2288_v43  ;;  %v3245_v63 = vmax.f32 %v3047_v18, 0.0  ;;  %v6092_v61 = vld [vmem:[#allocation20_spill] sm:$0xff]  ;;  %v2677_v43 = vadd.f32 %v5596_v2, %v2293_v60  ;;  %v6096_v2 = vld [vmem:[#allocation21_spill] sm:$0xff]  ;;  %v6097_v60 = vld [vmem:[#allocation14_spill] sm:$0xff] }
 0x385   : > { %v5786_v22 = vpop.f32.mrf.mxu0  ;;  %v3051_v46 = vpop.f32.mrf.mxu1  ;;  %v6093_v55 = vld [vmem:[#allocation24_spill] sm:$0xff]  ;;  %v3244_v0 = vmax.f32 %v3042_v34, 0.0  ;;  %v6099_v18 = vld [vmem:[#allocation13_spill] sm:$0xff] }
 0x386   : > { %6089 = vst [vmem:[#allocation71_spill] sm:$0xff] %v5786_v22  ;;  %v3052_v54 = vadd.f32 %v3051_v46, %v2667_v29  ;;  %v6090_v22 = vld [vmem:[#allocation17_spill] sm:$0xff]  ;;  %v3037_v21 = vadd.f32 %v3036_v53, %v2652_v48  ;;  %v2642_v32 = vadd.f32 %v6093_v55, %v6092_v61  ;;  %v6094_v53 = vld [vmem:[#allocation19_spill] sm:$0xff]  ;;  %v2627_v48 = vadd.f32 %v6099_v18, %v6098_v12  ;;  %v6102_v61 = vld [vmem:[#allocation6_spill] sm:$0xff] }
 0x387   : > { %v3053_v40 = vpop.f32.mrf.mxu1  ;;  %v2828_v19 = vpop.f32.mrf.mxu0  ;;  %v2647_v37 = vadd.f32 %v6091_v45, %v6090_v22  ;;  %v3227_v22 = vmax.f32 %v5680_v44, 0.0  ;;  %v6103_v55 = vld [vmem:[#allocation9_spill] sm:$0xff]  ;;  %v3280_v18 = vld [vmem:[%s5983_s5 + $0x8] sm:$0xff] }
 0x388   : > { %v3246_v35 = vmax.f32 %v3052_v54, 0.0  ;;  %v6095_v40 = vld [vmem:[#allocation22_spill] sm:$0xff]  ;;  %v3027_v57 = vadd.f32 %v3026_v24, %v2642_v32  ;;  %v3243_v29 = vmax.f32 %v3037_v21, 0.0  ;;  %v3226_v24 = vmax.f32 %v5672_v52, 0.0  ;;  %3347 = vmatprep.mubr.f32.mxu0 %v3280_v18  ;;  %v6128_v18 = vld [vmem:[#allocation51_spill] sm:$0xff] }
 0x389   : > { %v3056_v26 = vpop.f32.mrf.mxu1  ;;  %v3032_v54 = vadd.f32 %v3031_v30, %v2647_v37  ;;  %v2637_v19 = vadd.f32 %v6095_v40, %v6094_v53  ;;  %v2632_v30 = vadd.f32 %v6097_v60, %v6096_v2  ;;  %v2687_v52 = vadd.f32 %v5612_v51, %v5750_v1  ;;  %v6104_v60 = vld [vmem:[#allocation41_spill] sm:$0xff] }
 0x38a   : > { %v5796_v16 = vadd.f32 %v3056_v26, %v2672_v11  ;;  %3514 = vmatprep.subr.mxu0 %v3246_v35  ;;  %v3241_v11 = vmax.f32 %v3027_v57, 0.0  ;;  %v3225_v35 = vmax.f32 %v5666_v8, 0.0  ;;  %v3012_v26 = vadd.f32 %v5754_v13, %v2627_v48  ;;  %v6110_v48 = vld [vmem:[#allocation36_spill] sm:$0xff] }
 0x38b   : > { %v3058_v4 = vpop.f32.mrf.mxu1  ;;  %3515 = vmatpush3.msra.mxu0 %v3230_v58  ;;  %v3022_v36 = vadd.f32 %v5764_v27, %v2637_v19  ;;  %v3242_v37 = vmax.f32 %v3032_v54, 0.0  ;;  %v3017_v44 = vadd.f32 %v5760_v59, %v2632_v30  ;;  %v6100_v27 = vld [vmem:[#allocation16_spill] sm:$0xff]  ;;  %v3224_v59 = vmax.f32 %v5658_v17, 0.0  ;;  %v6105_v30 = vld [vmem:[#allocation35_spill] sm:$0xff] }
 0x38c   : > { %3516 = vmatprep.subr.mxu0 %v3245_v63  ;;  %v2682_v63 = vadd.f32 %v5604_v39, %v5766_v62  ;;  %v6101_v62 = vld [vmem:[#allocation11_spill] sm:$0xff]  ;;  %v2617_v32 = vadd.f32 %v6103_v55, %v6102_v61  ;;  %v2692_v1 = vadd.f32 %v5618_v6, %v5730_v23  ;;  %v3238_v13 = vmax.f32 %v3012_v26, 0.0  ;;  %v6114_v55 = vld [vmem:[#allocation30_spill] sm:$0xff] }
 0x38d   : > { %v3061_v45 = vpop.f32.mrf.mxu1  ;;  %3517 = vmatpush3.msra.mxu0 %v3229_v49  ;;  %v2622_v58 = vadd.f32 %v6101_v62, %v6100_v27  ;;  %v3240_v49 = vmax.f32 %v3022_v36, 0.0  ;;  %v3221_v40 = vmax.f32 %v5636_v9, 0.0  ;;  %v2697_v19 = vadd.f32 %v5626_v14, %v5708_v50  ;;  %v3282_v27 = vld [vmem:[%s5983_s5 + $0x18] sm:$0xff]  ;;  %v6113_v26 = vld [vmem:[#allocation39_spill] sm:$0xff] }
 0x38e   : > { %v5805_v42 = vadd.f32 %v3061_v45, %v2677_v43  ;;  %3518 = vmatprep.subr.mxu0 %v3244_v0  ;;  %v3239_v43 = vmax.f32 %v3017_v44, 0.0  ;;  %v3223_v0 = vmax.f32 %v5650_v41, 0.0  ;;  %v3002_v17 = vadd.f32 %v5744_v38, %v2617_v32  ;;  %v6111_v44 = vld [vmem:[#allocation37_spill] sm:$0xff]  ;;  %3417 = vmatprep.mubr.f32.mxu1 %v3282_v27  ;;  %v6115_v32 = vld [vmem:[#allocation40_spill] sm:$0xff]  ;;  %v6130_v27 = vld [vmem:[#allocation54_spill] sm:$0xff] }
 0x38f   : > { %v3063_v46 = vpop.f32.mrf.mxu1  ;;  %3519 = vmatpush3.msra.mxu0 %v3228_v56  ;;  %v3007_v8 = vadd.f32 %v5748_v28, %v2622_v58  ;;  %v3222_v56 = vmax.f32 %v5644_v25, 0.0  ;;  %v3220_v38 = vmax.f32 %v5628_v7, 0.0  ;;  %v3235_v25 = vmax.f32 %v5738_v5, 0.0 }
 0x390   : > { %3520 = vmatprep.subr.mxu0 %v3243_v29  ;;  %v3236_v6 = vmax.f32 %v3002_v17, 0.0  ;;  %v3219_v29 = vmax.f32 %v5622_v31, 0.0  ;;  %v2702_v9 = vadd.f32 %v5634_v15, %v5686_v3  ;;  %v3234_v14 = vmax.f32 %v5732_v33, 0.0  ;;  %v6106_v15 = vld [vmem:[#allocation52_spill] sm:$0xff]  ;;  %v6107_v33 = vld [vmem:[#allocation31_spill] sm:$0xff]  ;;  %v6116_v17 = vld [vmem:[#allocation42_spill] sm:$0xff] }
 0x391   : > { %v3066_v21 = vpop.f32.mrf.mxu1  ;;  %3521 = vmatpush3.msra.mxu0 %v3227_v22  ;;  %v3237_v28 = vmax.f32 %v3007_v8, 0.0  ;;  %v3218_v50 = vmax.f32 %v5614_v47, 0.0  ;;  %v3233_v46 = vmax.f32 %v5724_v20, 0.0  ;;  %v3217_v2 = vmax.f32 %v5606_v10, 0.0 }
 0x392   : > { %v5817_v34 = vadd.f32 %v3066_v21, %v2682_v63  ;;  %3522 = vmatprep.subr.mxu0 %v3242_v37  ;;  %v2707_v63 = vadd.f32 %v6105_v30, %v6104_v60  ;;  %v3232_v3 = vmax.f32 %v6106_v15, 0.0  ;;  %v3216_v36 = vmax.f32 %v6107_v33, 0.0  ;;  %v6108_v37 = vld [vmem:[#allocation50_spill] sm:$0xff]  ;;  %v6109_v21 = vld [vmem:[#allocation29_spill] sm:$0xff]  ;;  %v6124_v30 = vld [vmem:[#allocation48_spill] sm:$0xff] }
 0x393   : > { %v3068_v39 = vpop.f32.mrf.mxu1  ;;  %3523 = vmatpush3.msra.mxu0 %v3226_v24  ;;  %v3231_v24 = vmax.f32 %v6108_v37, 0.0  ;;  %v3215_v12 = vmax.f32 %v6109_v21, 0.0  ;;  %v2722_v8 = vadd.f32 %v6115_v32, %v6114_v55  ;;  %v6123_v60 = vld [vmem:[#allocation5_spill] sm:$0xff] }
 0x394   : > { %3524 = vmatprep.subr.mxu0 %v3241_v11  ;;  %v2712_v11 = vadd.f32 %v6111_v44, %v6110_v48 }
 0x395   : > { %v3071_v4 = vpop.f32.mrf.mxu1  ;;  %3525 = vmatpush3.msra.mxu0 %v3225_v35  ;;  %v3279_v35 = vld [vmem:[%s5983_s5] sm:$0xff] }
 0x396   : > { %v5829_v54 = vadd.f32 %v3071_v4, %v2687_v52  ;;  %3526 = vmatprep.subr.mxu0 %v3240_v49  ;;  %v6112_v52 = vld [vmem:[#allocation33_spill] sm:$0xff] }
 0x397   : > { %v3073_v51 = vpop.f32.mrf.mxu1  ;;  %3527 = vmatpush3.msra.mxu0 %v3224_v59  ;;  %v2717_v49 = vadd.f32 %v6113_v26, %v6112_v52 }
 0x398   : > { %3528 = vmatprep.subr.mxu0 %v3239_v43 }
 0x399   : > { %v3076_v45 = vpop.f32.mrf.mxu1  ;;  %3529 = vmatpush3.msra.mxu0 %v3223_v0 }
 0x39a   : > { %v5836_v53 = vadd.f32 %v3076_v45, %v2692_v1  ;;  %3530 = vmatprep.subr.mxu0 %v3238_v13  ;;  %v6117_v45 = vld [vmem:[#allocation26_spill] sm:$0xff] }
 0x39b   : > { %v3078_v41 = vpop.f32.mrf.mxu1  ;;  %3531 = vmatpush3.msra.mxu0 %v3222_v56 }
 0x39c   : > { %3532 = vmatprep.subr.mxu0 %v3237_v28  ;;  %v6118_v28 = vld [vmem:[#allocation44_spill] sm:$0xff] }
 0x39d   : > { %v3081_v23 = vpop.f32.mrf.mxu1  ;;  %3533 = vmatpush3.msra.mxu0 %v3221_v40  ;;  %v2732_v40 = vadd.f32 %v6118_v28, %v6117_v45 }
 0x39e   : > { %v5843_v57 = vadd.f32 %v3081_v23, %v2697_v19  ;;  %3534 = vmatprep.subr.mxu0 %v3236_v6  ;;  %v6120_v23 = vld [vmem:[#allocation45_spill] sm:$0xff] }
 0x39f   : > { %v3083_v22 = vpop.f32.mrf.mxu1  ;;  %3535 = vmatpush3.msra.mxu0 %v3220_v38  ;;  %v6119_v38 = vld [vmem:[#allocation15_spill] sm:$0xff] }
 0x3a0   : > { %3536 = vmatprep.subr.mxu0 %v3235_v25  ;;  %v2737_v25 = vadd.f32 %v6120_v23, %v6119_v38 }
 0x3a1   : > { %v3086_v7 = vpop.f32.mrf.mxu1  ;;  %3537 = vmatpush3.msra.mxu0 %v3219_v29 }
 0x3a2   : > { %v5851_v5 = vadd.f32 %v3086_v7, %v2702_v9  ;;  %3538 = vmatprep.subr.mxu0 %v3234_v14  ;;  %v6121_v14 = vld [vmem:[#allocation10_spill] sm:$0xff] }
 0x3a3   : > { %v3088_v31 = vpop.f32.mrf.mxu1  ;;  %3539 = vmatpush3.msra.mxu0 %v3218_v50  ;;  %v6122_v50 = vld [vmem:[#allocation46_spill] sm:$0xff] }
 0x3a4   : > { %3540 = vmatprep.subr.mxu0 %v3233_v46  ;;  %v2742_v7 = vadd.f32 %v6122_v50, %v6121_v14 }
 0x3a5   : > { %v3091_v47 = vpop.f32.mrf.mxu1  ;;  %3541 = vmatpush3.msra.mxu0 %v3217_v2 }
 0x3a6   : > { %v5859_v20 = vadd.f32 %v3091_v47, %v2707_v63  ;;  %3542 = vmatprep.subr.mxu0 %v3232_v3  ;;  %v2747_v63 = vadd.f32 %v6124_v30, %v6123_v60  ;;  %v6126_v47 = vld [vmem:[#allocation49_spill] sm:$0xff] }
 0x3a7   : > { %v3093_v10 = vpop.f32.mrf.mxu1  ;;  %3543 = vmatpush3.msra.mxu0 %v3216_v36  ;;  %v6125_v36 = vld [vmem:[#allocation69_spill] sm:$0xff] }
 0x3a8   : > { %3544 = vmatprep.subr.mxu0 %v3231_v24  ;;  %v2752_v37 = vadd.f32 %v6126_v47, %v6125_v36  ;;  %v6127_v10 = vld [vmem:[#allocation65_spill] sm:$0xff] }
 0x3a9   : > { %v3096_v39 = vpop.f32.mrf.mxu1  ;;  %3545 = vmatpush3.msra.mxu0 %v3215_v12  ;;  %v2757_v48 = vadd.f32 %v6128_v18, %v6127_v10  ;;  %v6137_v10 = vld [vmem:[#allocation7_spill] sm:$0xff] }
 0x3aa   : > { %v5873_v62 = vadd.f32 %v3096_v39, %v2712_v11  ;;  %3348 = vmatmul.mubr.f32.vlgmr.msra.gmra.mxu0 %v3279_v35  ;;  %v6129_v39 = vld [vmem:[#allocation61_spill] sm:$0xff]  ;;  %v6138_v18 = vld [vmem:[#allocation71_spill] sm:$0xff] }
 0x3ab   : > { %v3098_v58 = vpop.f32.mrf.mxu1 }
 0x3ac   : > { %v2762_v58 = vadd.f32 %v6130_v27, %v6129_v39  ;;  %v6140_v39 = vld [vmem:[#allocation68_spill] sm:$0xff] }
 0x3ad   : > { %v3101_v59 = vpop.f32.mrf.mxu1 }
 0x3ae   : > { %v5877_v4 = vadd.f32 %v3101_v59, %v2717_v49  ;;  %v6131_v59 = vld [vmem:[#allocation57_spill] sm:$0xff] }
 0x3af   : > { %v3103_v61 = vpop.f32.mrf.mxu1 }
 0x3b0   : > { %v6132_v61 = vld [vmem:[#allocation55_spill] sm:$0xff] }
 0x3b1   : > { %v3106_v43 = vpop.f32.mrf.mxu1  ;;  %v2767_v55 = vadd.f32 %v6132_v61, %v6131_v59  ;;  %v6141_v59 = vld [vmem:[#allocation23_spill] sm:$0xff] }
 0x3b2   : > { %v5881_v0 = vadd.f32 %v3106_v43, %v2722_v8  ;;  %v6142_v61 = vld [vmem:[#allocation67_spill] sm:$0xff] }
 0x3b3   : > { %v3108_v51 = vpop.f32.mrf.mxu1 }
 0x3b4   : > { %v6133_v51 = vld [vmem:[#allocation53_spill] sm:$0xff] }
 0x3b5   : > { %v3111_v1 = vpop.f32.mrf.mxu1 }
 0x3b6   : > { %v5884_v13 = vadd.f32 %v3111_v1, %v6116_v17  ;;  %v6134_v1 = vld [vmem:[#allocation56_spill] sm:$0xff] }
 0x3b7   : > { %v3113_v56 = vpop.f32.mrf.mxu1  ;;  %v2772_v17 = vadd.f32 %v6134_v1, %v6133_v51  ;;  %v6143_v1 = vld [vmem:[#allocation27_spill] sm:$0xff] }
 0x3b9   : > { %v3116_v41 = vpop.f32.mrf.mxu1 }
 0x3ba   : > { %v5888_v19 = vadd.f32 %v3116_v41, %v2732_v40 }
 0x3bb   : > { %v3118_v6 = vpop.f32.mrf.mxu1 }
 0x3bd   : > { %v3121_v29 = vpop.f32.mrf.mxu1 }
 0x3be   : > { %v5892_v22 = vadd.f32 %v3121_v29, %v2737_v25 }
 0x3bf   : > { %v3123_v9 = vpop.f32.mrf.mxu1 }
 0x3c1   : > { %v3126_v46 = vpop.f32.mrf.mxu1 }
 0x3c2   : > { %v5896_v2 = vadd.f32 %v3126_v46, %v2742_v7 }
 0x3c3   : > { %v3128_v31 = vpop.f32.mrf.mxu1 }
 0x3c5   : > { %v3131_v15 = vpop.f32.mrf.mxu1 }
 0x3c6   : > { %v3132_v3 = vadd.f32 %v3131_v15, %v2747_v63 }
 0x3c7   : > { %v3133_v33 = vpop.f32.mrf.mxu1 }
 0x3c8   : > { %v3262_v51 = vmax.f32 %v3132_v3, 0.0  ;;  %v6148_v3 = vld [vmem:[#allocation63_spill] sm:$0xff] }
 0x3c9   : > { %v3136_v24 = vpop.f32.mrf.mxu1 }
 0x3ca   : > { %v5902_v21 = vadd.f32 %v3136_v24, %v2752_v37  ;;  %v6135_v37 = vld [vmem:[#allocation8_spill] sm:$0xff]  ;;  %v6136_v24 = vld [vmem:[#allocation70_spill] sm:$0xff] }
 0x3cb   : > { %v3138_v12 = vpop.f32.mrf.mxu1 }
 0x3cc   : > { %v2822_v12 = vadd.f32 %v6136_v24, %v6135_v37  ;;  %v6150_v37 = vld [vmem:[#allocation62_spill] sm:$0xff] }
 0x3cd   : > { %v3141_v44 = vpop.f32.mrf.mxu1 }
 0x3ce   : > { %v5906_v11 = vadd.f32 %v3141_v44, %v2757_v48  ;;  %v2827_v48 = vadd.f32 %v6138_v18, %v6137_v10  ;;  %v6152_v18 = vld [vmem:[#allocation60_spill] sm:$0xff] }
 0x3cf   : > { %v3143_v35 = vpop.f32.mrf.mxu1 }
 0x3d0   : > { %v6139_v35 = vld [vmem:[#allocation12_spill] sm:$0xff] }
 0x3d1   : > { %v3146_v52 = vpop.f32.mrf.mxu1  ;;  %v2817_v27 = vadd.f32 %v6140_v39, %v6139_v35  ;;  %v6154_v39 = vld [vmem:[#allocation59_spill] sm:$0xff] }
 0x3d2   : > { %v5910_v26 = vadd.f32 %v3146_v52, %v2762_v58 }
 0x3d3   : > { %v3148_v49 = vpop.f32.mrf.mxu1 }
 0x3d5   : > { %v3151_v32 = vpop.f32.mrf.mxu1 }
 0x3d6   : > { %v5914_v8 = vadd.f32 %v3151_v32, %v2767_v55  ;;  %v2812_v55 = vadd.f32 %v6142_v61, %v6141_v59 }
 0x3d7   : > { %v3153_v43 = vpop.f32.mrf.mxu1 }
 0x3d9   : > { %v3156_v56 = vpop.f32.mrf.mxu1 }
 0x3da   : > { %v5918_v45 = vadd.f32 %v3156_v56, %v2772_v17  ;;  %v6144_v17 = vld [vmem:[#allocation66_spill] sm:$0xff] }
 0x3db   : > { %v3158_v28 = vpop.f32.mrf.mxu1  ;;  %v2807_v56 = vadd.f32 %v6144_v17, %v6143_v1  ;;  %v3266_v1 = vmax.f32 %v5914_v8, 0.0  ;;  %v3249_v17 = vmax.f32 %v5817_v34, 0.0  ;;  %v3247_v8 = vmax.f32 %v5796_v16, 0.0 }
 0x3dd   : > { %v5920_v40 = vpop.f32.mrf.mxu1 }
 0x3df   : > { %v3163_v41 = vpop.f32.mrf.mxu1 }
 0x3e1   : > { %v5922_v6 = vpop.f32.mrf.mxu1 }
 0x3e3   : > { %v3168_v38 = vpop.f32.mrf.mxu1 }
 0x3e4   : > { %v3261_v38 = vmax.f32 %v5896_v2, 0.0  ;;  %v6149_v2 = vld [vmem:[#allocation34_spill] sm:$0xff] }
 0x3e5   : > { %v3171_v23 = vpop.f32.mrf.mxu1  ;;  %v2792_v24 = vadd.f32 %v6150_v37, %v6149_v2 }
 0x3e7   : > { %v3173_v25 = vpop.f32.mrf.mxu1 }
 0x3e8   : > { %v6145_v25 = vld [vmem:[#allocation28_spill] sm:$0xff] }
 0x3e9   : > { %v3176_v29 = vpop.f32.mrf.mxu1 }
 0x3eb   : > { %v3178_v9 = vpop.f32.mrf.mxu1 }
 0x3ec   : > { %v6146_v9 = vld [vmem:[#allocation64_spill] sm:$0xff] }
 0x3ed   : > { %v3181_v14 = vpop.f32.mrf.mxu1 }
 0x3ef   : > { %v3183_v50 = vpop.f32.mrf.mxu1 }
 0x3f0   : > { %v2802_v50 = vadd.f32 %v6146_v9, %v6145_v25 }
 0x3f1   : > { %v3186_v7 = vpop.f32.mrf.mxu1 }
 0x3f3   : > { %v3188_v46 = vpop.f32.mrf.mxu1 }
 0x3f5   : > { %v3191_v31 = vpop.f32.mrf.mxu1 }
 0x3f6   : > { %v3192_v46 = vadd.f32 %v3191_v31, %v2807_v56  ;;  %v3258_v31 = vmax.f32 %v5884_v13, 0.0  ;;  %v6155_v13 = vld [vmem:[#allocation47_spill] sm:$0xff] }
 0x3f7   : > { %v3193_v60 = vpop.f32.mrf.mxu1 }
 0x3f8   : > { %v3274_v10 = vmax.f32 %v3192_v46, 0.0 }
 0x3f9   : > { %v3196_v30 = vpop.f32.mrf.mxu1 }
 0x3fa   : > { %v3197_v28 = vadd.f32 %v3196_v30, %v2812_v55  ;;  %v3259_v30 = vmax.f32 %v5888_v19, 0.0  ;;  %v6153_v19 = vld [vmem:[#allocation43_spill] sm:$0xff]  ;;  %v3255_v55 = vmax.f32 %v5873_v62, 0.0  ;;  %v3267_v62 = vmax.f32 %v5918_v45, 0.0 }
 0x3fb   : > { %v3198_v63 = vpop.f32.mrf.mxu1  ;;  %v3248_v45 = vmax.f32 %v5805_v42, 0.0 }
 0x3fc   : > { %v3260_v63 = vmax.f32 %v5892_v22, 0.0  ;;  %v6151_v22 = vld [vmem:[#allocation38_spill] sm:$0xff] }
 0x3fd   : > { %v3201_v15 = vpop.f32.mrf.mxu1 }
 0x3fe   : > { %v3202_v32 = vadd.f32 %v3201_v15, %v2817_v27  ;;  %v6147_v15 = vld [vmem:[#allocation32_spill] sm:$0xff]  ;;  %v2782_v27 = vadd.f32 %v6154_v39, %v6153_v19 }
 0x3ff   : > { %v3203_v33 = vpop.f32.mrf.mxu1 }
 0x400   : > { %v3276_v60 = vmax.f32 %v3202_v32, 0.0  ;;  %v2797_v33 = vadd.f32 %v6148_v3, %v6147_v15  ;;  %v3167_v61 = vadd.f32 %v5922_v6, %v2782_v27  ;;  %v3252_v6 = vmax.f32 %v5843_v57, 0.0 }
 0x401   : > { %v3206_v36 = vpop.f32.mrf.mxu1  ;;  %v3264_v57 = vmax.f32 %v5906_v11, 0.0 }
 0x402   : > { %v3207_v58 = vadd.f32 %v3206_v36, %v2822_v12  ;;  %v3187_v36 = vadd.f32 %v3186_v7, %v2802_v50  ;;  %v3182_v12 = vadd.f32 %v3181_v14, %v2797_v33  ;;  %v3257_v7 = vmax.f32 %v5881_v0, 0.0 }
 0x403   : > { %v3208_v47 = vpop.f32.mrf.mxu1  ;;  %v3256_v14 = vmax.f32 %v5877_v4, 0.0  ;;  %v3253_v4 = vmax.f32 %v5851_v5, 0.0  ;;  %v3265_v5 = vmax.f32 %v5910_v26, 0.0 }
 0x404   : > { %v3277_v41 = vmax.f32 %v3207_v58, 0.0  ;;  %v3275_v47 = vmax.f32 %v3197_v28, 0.0  ;;  %v3273_v35 = vmax.f32 %v3187_v36, 0.0 }
 0x405   : > { %v3211_v44 = vpop.f32.mrf.mxu1 }
 0x406   : > { %v3212_v52 = vadd.f32 %v3211_v44, %v2827_v48  ;;  %v2787_v48 = vadd.f32 %v6152_v18, %v6151_v22  ;;  %v3177_v44 = vadd.f32 %v3176_v29, %v2792_v24 }
 0x407   : > { %v3213_v49 = vpop.f32.mrf.mxu1 }
 0x408   : > { %v3278_v43 = vmax.f32 %v3212_v52, 0.0  ;;  %v3172_v58 = vadd.f32 %v3171_v23, %v2787_v48  ;;  %v3272_v52 = vmax.f32 %v3182_v12, 0.0  ;;  %v6156_v49 = vld [vmem:[#allocation58_spill] sm:$0xff]  ;;  %v3271_v29 = vmax.f32 %v3177_v44, 0.0 }
 0x409   : > { %v2777_v59 = vadd.f32 %v6156_v49, %v6155_v13  ;;  %v3254_v23 = vmax.f32 %v5859_v20, 0.0  ;;  %v3250_v20 = vmax.f32 %v5829_v54, 0.0  ;;  %v3281_v54 = vld [vmem:[%s5983_s5 + $0x10] sm:$0xff] }
 0x40a   : > { %3549 = vmatprep.subr.mxu1 %v3278_v43  ;;  %v3270_v32 = vmax.f32 %v3172_v58, 0.0  ;;  %v3269_v43 = vmax.f32 %v3167_v61, 0.0 }
 0x40b   : > { %3550 = vmatpush3.msra.mxu1 %v3262_v51  ;;  %v3162_v0 = vadd.f32 %v5920_v40, %v2777_v59  ;;  %v3251_v40 = vmax.f32 %v5836_v53, 0.0  ;;  %v3263_v53 = vmax.f32 %v5902_v21, 0.0 }
 0x40c   : > { %3551 = vmatprep.subr.mxu1 %v3277_v41 }
 0x40d   : > { %3552 = vmatpush3.msra.mxu1 %v3261_v38  ;;  %v3268_v51 = vmax.f32 %v3162_v0, 0.0 }
 0x40e   : > { %3553 = vmatprep.subr.mxu1 %v3276_v60 }
 0x40f   : > { %3554 = vmatpush3.msra.mxu1 %v3260_v63 }
 0x410   : > { %3555 = vmatprep.subr.mxu1 %v3275_v47 }
 0x411   : > { %3556 = vmatpush3.msra.mxu1 %v3259_v30 }
 0x412   : > { %3557 = vmatprep.subr.mxu1 %v3274_v10 }
 0x413   : > { %3558 = vmatpush3.msra.mxu1 %v3258_v31 }
 0x414   : > { %3559 = vmatprep.subr.mxu1 %v3273_v35 }
 0x415   : > { %3560 = vmatpush3.msra.mxu1 %v3257_v7 }
 0x416   : > { %3561 = vmatprep.subr.mxu1 %v3272_v52 }
 0x417   : > { %3562 = vmatpush3.msra.mxu1 %v3256_v14 }
 0x418   : > { %3563 = vmatprep.subr.mxu1 %v3271_v29 }
 0x419   : > { %3564 = vmatpush3.msra.mxu1 %v3255_v55 }
 0x41a   : > { %3565 = vmatprep.subr.mxu1 %v3270_v32 }
 0x41b   : > { %3566 = vmatpush3.msra.mxu1 %v3254_v23 }
 0x41c   : > { %3567 = vmatprep.subr.mxu1 %v3269_v43 }
 0x41d   : > { %3568 = vmatpush3.msra.mxu1 %v3253_v4 }
 0x41e   : > { %3569 = vmatprep.subr.mxu1 %v3268_v51 }
 0x41f   : > { %3570 = vmatpush3.msra.mxu1 %v3252_v6 }
 0x420   : > { %3571 = vmatprep.subr.mxu1 %v3267_v62 }
 0x421   : > { %3572 = vmatpush3.msra.mxu1 %v3251_v40 }
 0x422   : > { %3573 = vmatprep.subr.mxu1 %v3266_v1 }
 0x423   : > { %3574 = vmatpush3.msra.mxu1 %v3250_v20 }
 0x424   : > { %3575 = vmatprep.subr.mxu1 %v3265_v5 }
 0x425   : > { %3576 = vmatpush3.msra.mxu1 %v3249_v17 }
 0x426   : > { %3577 = vmatprep.subr.mxu1 %v3264_v57 }
 0x427   : > { %3578 = vmatpush3.msra.mxu1 %v3248_v45 }
 0x428   : > { %3579 = vmatprep.subr.mxu1 %v3263_v53 }
 0x429   : > { %3580 = vmatpush3.msra.mxu1 %v3247_v8 }
 0x42a   : > { %3418 = vmatmul.mubr.f32.vlgmr.msra.gmra.mxu1 %v3281_v54 }
 0x46a   : > { %v3546_v34 = vpop.f32.mrf.mxu0 }
 0x46c   : > { %v3547_v11 = vpop.f32.mrf.mxu0 }
 0x46d   : > { %v3548_v42 = vadd.f32 %v3547_v11, %v3546_v34 }
 0x4ea   : > { %v3581_v26 = vpop.f32.mrf.mxu1 }
 0x4ec   : > { %v3582_v56 = vpop.f32.mrf.mxu1 }
 0x4ed   : > { %v3583_v28 = vadd.f32 %v3582_v56, %v3581_v26 }
 0x4ef   : > { %v3420_v16 = vadd.f32 %v3583_v28, %v3548_v42 }
 0x4f1   : > { %3426 = vrot.lane.b32.xlu0 %v3420_v16, %s3653_s24  ;;  %3424 = vst.msk [vmem:[%s266_s23] sm:$0xff] %vm3423_vm0, %v3420_v16 }
 0x563   : > { %v3427_v21 = vpop.permute.xlu0 %3426 }
 0x564   : > { %3509 = vst.msk [vmem:[%s266_s23 + $0x8] sm:$0xff] %vm3423_vm0, %v3427_v21 }
 0x565 PF: > { %s17_s21 = sadd.s32 1, %s3646_s21  }
 0x566   : > { %p14_p1 = scmp.ge.s32.totalorder %s17_s21, 4  }
 0x568   :  { %16 = sbr.rel (!%p14_p1) target bundleno = 1 (0x1), region = 80 }
 0x56d   :  { %3452 = vsyncpa [#allocation3], 1 }
 0x56e   :  { %3454 = vsyncpa [#allocation3 + $0x1], 1 }

</bundles_post_ra>
